<compile_context>
chip_gen: v5e
topology: v5e:2x2
jax: 0.10.0
libtpu: 0.0.40
codegen_flags: <defaults>
</compile_context>

<pallas_src>
import functools

import numpy as np
import jax
import jax.numpy as jnp
from jax.experimental import pallas as pl
from jax.experimental.pallas import tpu as pltpu


# --------------------------------------------------------------------------
# Kernel
# --------------------------------------------------------------------------
def _bottleneck_kernel(xp_ref, xc_ref, xn_ref,
                       w1_ref, b1_ref, w2_ref, b2_ref, w3_ref, b3_ref,
                       hwm_ref, out_ref, cat_ref, *, TD, H, W, P, C4):
    """Fused Bottleneck for one (batch, D-tile) grid step.

    xp_ref : (1, 1,  HW, C4) bf16  previous-D halo slice (clamped at d==0)
    xc_ref : (1, TD, HW, C4) bf16  center D tile (also the residual)
    xn_ref : (1, 1,  HW, C4) bf16  next-D halo slice (clamped at last tile)
    w1_ref : (C4, P)         bf16  conv1 weight, BN1 scale folded in
    b1_ref : (1, P)          f32   folded BN1 bias
    w2_ref : (3, 9*P, P)     bf16  conv2 weight, (kh,kw,cin) folded into K
    b2_ref : (1, P)          f32   folded BN2 bias
    w3_ref : (P, C4)         bf16  conv3 weight, BN3 scale folded in
    b3_ref : (1, C4)         f32   folded BN3 bias
    hwm_ref: (HW, 9)         f32   per-row validity mask for each (kh,kw) tap
    out_ref: (1, TD, HW, C4) bf16
    cat_ref: (TD+2, HW, 9*P) bf16  persistent im2col scratch (fully rewritten
                                   every step -> safe under megacore)
    """
    HW = H * W
    d_idx = pl.program_id(1)
    not_first = (d_idx > 0).astype(jnp.float32)
    not_last = (d_idx < pl.num_programs(1) - 1).astype(jnp.float32)

    w1 = w1_ref[...]
    b1 = b1_ref[0, :]
    masks = [hwm_ref[:, j:j + 1] for j in range(9)]          # 9 x (HW, 1)

    # ---- stage 1 (1x1x1 conv + BN + ReLU) and stage-2 LHS build ----------
    # One padded-D slice at a time; each (kh,kw)-shifted slab is written
    # straight into its lane group of cat_ref (no concat materialization).
    for dd in range(TD + 2):
        if dd == 0:
            x_dd, gate = xp_ref[0, 0], not_first
        elif dd == TD + 1:
            x_dd, gate = xn_ref[0, 0], not_last
        else:
            x_dd, gate = xc_ref[0, dd - 1], None

        t1 = jnp.dot(x_dd, w1, preferred_element_type=jnp.float32)
        t1 = jnp.maximum(t1 + b1, 0.0)
        if gate is not None:
            t1 = t1 * gate                       # zero-pad conv2's D halo at edges

        for kh in range(3):
            for kw in range(3):
                j = kh * 3 + kw
                shift = (kh - 1) * W + (kw - 1)  # slab[r] = t1[r + shift] (masked)
                if shift == 0:
                    slab = t1
                else:
                    rolled = pltpu.roll(t1, (-shift) % HW, axis=0)   # XLU rotate
                    slab = rolled * masks[j]                          # zero wrapped rows
                cat_ref[dd, :, j * P:(j + 1) * P] = slab.astype(jnp.bfloat16)

    # ---- stage 2 (3x3x3 conv, 3 dots with K = 9*P) + stage 3 + residual --
    b2 = b2_ref[0, :]
    w3 = w3_ref[...]
    b3 = b3_ref[0, :]
    for td in range(TD):
        acc = jnp.dot(cat_ref[td], w2_ref[0], preferred_element_type=jnp.float32)
        acc = acc + jnp.dot(cat_ref[td + 1], w2_ref[1],
                            preferred_element_type=jnp.float32)
        acc = acc + jnp.dot(cat_ref[td + 2], w2_ref[2],
                            preferred_element_type=jnp.float32)
        t2 = jnp.maximum(acc + b2, 0.0).astype(jnp.bfloat16)

        y = jnp.dot(t2, w3, preferred_element_type=jnp.float32)
        y = y + b3 + xc_ref[0, td].astype(jnp.float32)       # residual re-read here
        out_ref[0, td] = jnp.maximum(y, 0.0).astype(out_ref.dtype)


# --------------------------------------------------------------------------
# VMEM sizing helpers (generation aware)
# --------------------------------------------------------------------------
def _vmem_cap_bytes():
    try:
        info = pltpu.get_tpu_info()
        for attr in ("vmem_capacity_bytes", "vmem_bytes", "vmem_size_bytes"):
            v = getattr(info, attr, None)
            if v:
                return int(v)
    except Exception:
        pass
    return 64 * 1024 * 1024          # conservative fallback (v7x physical VMEM)


def _estimate_step_bytes(TD, HW, P, C4):
    bf16, f32 = 2, 4
    io = 2 * 2 * TD * HW * C4 * bf16           # x-center + out blocks, double-buffered
    halo = 2 * 2 * HW * C4 * bf16              # prev/next halo rows, double-buffered
    wgt = 2 * ((C4 * P + 27 * P * P + P * C4) * bf16
               + (2 * P + C4) * f32 + HW * 128 * f32)
    cat = (TD + 2) * HW * 9 * P * bf16         # persistent im2col scratch
    live = 4 * HW * P * f32 + 2 * HW * 9 * P * bf16 + 2 * HW * C4 * f32
    return io + halo + wgt + cat + live


def _vmem_limit_bytes(TD, HW, P, C4, budget):
    est = int(1.4 * _estimate_step_bytes(TD, HW, P, C4))
    return max(32 * 1024 * 1024, min(budget, est))


def _pick_d_tile(D, HW, P, C4, budget):
    for td in range(D, 0, -1):
        if D % td == 0 and 1.4 * _estimate_step_bytes(td, HW, P, C4) <= 0.75 * budget:
            return td
    return 1


def _make_hw_masks(H, W):
    """mask[r, kh*3+kw] = 1.0 iff the (kh,kw) tap of output row r is in-bounds."""
    HW = H * W
    h = np.arange(HW) // W
    w = np.arange(HW) % W
    m = np.zeros((HW, 9), np.float32)
    for kh in range(3):
        for kw in range(3):
            ok = ((h + kh - 1 >= 0) & (h + kh - 1 < H)
                  & (w + kw - 1 >= 0) & (w + kw - 1 < W))
            m[:, kh * 3 + kw] = ok.astype(np.float32)
    return jnp.asarray(m)


# --------------------------------------------------------------------------
# Wrapper
# --------------------------------------------------------------------------
def bottleneck_forward(x_cl, kp, *, H, W, d_tile=None):
    """Fused Bottleneck, stride=1, downsample=None.

    x_cl: (N, D, H*W, 4*planes) channels-last activations (bf16 preferred).
    Returns bf16 of the same shape.  In the full network the model stays
    channels-last throughout; no per-block layout transposes.
    """
    x_cl = x_cl.astype(jnp.bfloat16)
    N, D, HW, C4 = x_cl.shape
    assert HW == H * W
    P = kp["w1"].shape[1]

    budget = int(0.85 * _vmem_cap_bytes())      # headroom for Mosaic internal scratch
    TD = d_tile if d_tile is not None else _pick_d_tile(D, HW, P, C4, budget)
    assert D % TD == 0, "d_tile must divide D"
    DT = D // TD

    hw_masks = _make_hw_masks(H, W)
    kernel = functools.partial(_bottleneck_kernel, TD=TD, H=H, W=W, P=P, C4=C4)

    def xc_map(n, d):
        return (n, d, 0, 0)

    def xp_map(n, d):
        return (n, jnp.maximum(d * TD - 1, 0), 0, 0)

    def xn_map(n, d):
        return (n, jnp.minimum(d * TD + TD, D - 1), 0, 0)

    c2 = lambda n, d: (0, 0)
    c3 = lambda n, d: (0, 0, 0)

    in_specs = [
        pl.BlockSpec((1, 1, HW, C4), xp_map),        # previous-D halo slice
        pl.BlockSpec((1, TD, HW, C4), xc_map),       # center D tile (+ residual)
        pl.BlockSpec((1, 1, HW, C4), xn_map),        # next-D halo slice
        pl.BlockSpec((C4, P), c2),                   # conv1 weight (BN folded)
        pl.BlockSpec((1, P), c2),                    # bn1 bias
        pl.BlockSpec((3, 9 * P, P), c3),             # conv2 weight (BN + kh/kw folded)
        pl.BlockSpec((1, P), c2),                    # bn2 bias
        pl.BlockSpec((P, C4), c2),                   # conv3 weight (BN folded)
        pl.BlockSpec((1, C4), c2),                   # bn3 bias
        pl.BlockSpec((HW, 9), c2),                   # (kh,kw) validity masks
    ]

    return pl.pallas_call(
        kernel,
        out_shape=jax.ShapeDtypeStruct((N, D, HW, C4), jnp.bfloat16),
        grid_spec=pltpu.PrefetchScalarGridSpec(
            num_scalar_prefetch=0,
            grid=(N, DT),
            in_specs=in_specs,
            out_specs=pl.BlockSpec((1, TD, HW, C4), xc_map),
            scratch_shapes=[pltpu.VMEM((TD + 2, HW, 9 * P), jnp.bfloat16)],
        ),
        compiler_params=pltpu.CompilerParams(
            dimension_semantics=("parallel", "parallel"),
            vmem_limit_bytes=_vmem_limit_bytes(TD, HW, P, C4, budget),
        ),
    )(x_cl, x_cl, x_cl, kp["w1"], kp["b1"], kp["w2"], kp["b2"],
      kp["w3"], kp["b3"], hw_masks)


# --------------------------------------------------------------------------
# Parameters (PyTorch layouts) + BN folding
# --------------------------------------------------------------------------
def _fold_bn(gamma, beta, mean, var, eps=1e-5):
    scale = gamma * jax.lax.rsqrt(var + eps)
    return scale, beta - mean * scale


def make_raw_params(key, planes):
    """Synthetic parameters with PyTorch Bottleneck shapes (inplanes = 4*planes)."""
    P, C4 = planes, 4 * planes
    ks = jax.random.split(key, 15)

    def bn(k0, k1, k2, k3, c):
        return (1.0 + 0.1 * jax.random.normal(ks[k0], (c,), jnp.float32),
                0.1 * jax.random.normal(ks[k1], (c,), jnp.float32),
                0.05 * jax.random.normal(ks[k2], (c,), jnp.float32),
                1.0 + 0.1 * jax.random.uniform(ks[k3], (c,), jnp.float32))

    g1, b1, m1, v1 = bn(3, 4, 5, 6, P)
    g2, b2, m2, v2 = bn(7, 8, 9, 10, P)
    g3, b3, m3, v3 = bn(11, 12, 13, 14, C4)
    return {
        "w1": jax.random.normal(ks[0], (P, C4, 1, 1, 1), jnp.float32) * 0.05,
        "w2": jax.random.normal(ks[1], (P, P, 3, 3, 3), jnp.float32) * 0.05,
        "w3": jax.random.normal(ks[2], (C4, P, 1, 1, 1), jnp.float32) * 0.05,
        "bn1_gamma": g1, "bn1_beta": b1, "bn1_mean": m1, "bn1_var": v1,
        "bn2_gamma": g2, "bn2_beta": b2, "bn2_mean": m2, "bn2_var": v2,
        "bn3_gamma": g3, "bn3_beta": b3, "bn3_mean": m3, "bn3_var": v3,
    }


def prepare_params(raw):
    """Fold eval-mode BN into the conv weights; emit bf16 kernel weights and an
    f32 parameter set for the XLA reference."""
    s1, b1 = _fold_bn(raw["bn1_gamma"], raw["bn1_beta"], raw["bn1_mean"], raw["bn1_var"])
    s2, b2 = _fold_bn(raw["bn2_gamma"], raw["bn2_beta"], raw["bn2_mean"], raw["bn2_var"])
    s3, b3 = _fold_bn(raw["bn3_gamma"], raw["bn3_beta"], raw["bn3_mean"], raw["bn3_var"])

    w1 = jnp.transpose(raw["w1"][:, :, 0, 0, 0], (1, 0)) * s1[None, :]              # (C4, P)
    w2 = jnp.transpose(raw["w2"], (2, 3, 4, 1, 0)) * s2[None, None, None, None, :]  # (3,3,3,P,P)
    w3 = jnp.transpose(raw["w3"][:, :, 0, 0, 0], (1, 0)) * s3[None, :]              # (P, C4)

    C4, P = w1.shape
    kparams = {
        "w1": w1.astype(jnp.bfloat16),
        "b1": b1.reshape(1, P).astype(jnp.float32),
        "w2": w2.reshape(3, 9 * P, P).astype(jnp.bfloat16),
        "b2": b2.reshape(1, P).astype(jnp.float32),
        "w3": w3.astype(jnp.bfloat16),
        "b3": b3.reshape(1, C4).astype(jnp.float32),
    }
    rparams = {"w1": w1, "b1": b1, "w2": w2, "b2": b2, "w3": w3, "b3": b3}
    return kparams, rparams


# --------------------------------------------------------------------------
# Pure-XLA f32 reference (same folded-BN math)
# --------------------------------------------------------------------------
def bottleneck_reference(x_ncdhw, rp):
    x = jnp.transpose(x_ncdhw, (0, 2, 3, 4, 1)).astype(jnp.float32)
    dn = ("NDHWC", "DHWIO", "NDHWC")
    conv = functools.partial(jax.lax.conv_general_dilated,
                             window_strides=(1, 1, 1), dimension_numbers=dn,
                             precision=jax.lax.Precision.HIGHEST)
    t1 = jax.nn.relu(conv(x, rp["w1"][None, None, None], padding="VALID") + rp["b1"])
    t2 = jax.nn.relu(conv(t1, rp["w2"], padding=[(1, 1)] * 3) + rp["b2"])
    y = conv(t2, rp["w3"][None, None, None], padding="VALID") + rp["b3"]
    y = jax.nn.relu(y + x)
    return jnp.transpose(y, (0, 4, 1, 2, 3))


# --------------------------------------------------------------------------
if __name__ == "__main__":
    # Small but representative shape: a layer1 interior Bottleneck
    # (planes=64, inplanes=256), batch=2, D=4, H=W=8.  d_tile=2 exercises the
    # halo'd D-tiling path (grid = (N, D/TD) = (2, 2)).
    N, planes = 2, 64
    C4 = 4 * planes
    D, H, W = 4, 8, 8

    key = jax.random.PRNGKey(0)
    kx, kp = jax.random.split(key)
    x = jax.random.normal(kx, (N, C4, D, H, W), jnp.float32)

    raw = make_raw_params(kp, planes)
    kparams, rparams = prepare_params(raw)

    # One-time NCDHW -> channels-last bf16 conversion (in the full network this
    # happens once at the stem, not per block).
    x_cl = jnp.transpose(x, (0, 2, 3, 4, 1)).reshape(N, D, H * W, C4)
    x_cl = x_cl.astype(jnp.bfloat16)

    fwd = jax.jit(functools.partial(bottleneck_forward, H=H, W=W, d_tile=2))
    out = jax.block_until_ready(fwd(x_cl, kparams))
    assert out.shape == (N, D, H * W, C4)

    # Numerical check vs the f32 XLA reference (bf16 activations + weights on
    # the MXU => small drift).
    ref = bottleneck_reference(x, rparams)                        # (N, C4, D, H, W)
    ref_cl = jnp.transpose(ref, (0, 2, 3, 4, 1)).reshape(N, D, H * W, C4)
    err = float(jnp.max(jnp.abs(out.astype(jnp.float32) - ref_cl)))
    tol = max(2e-1, 2.5e-2 * float(jnp.max(jnp.abs(ref_cl))))
    assert err < tol, f"max abs error vs reference too large: {err} (tol {tol})"

    print("KERNEL_OK")
</pallas_src>

<mosaic_0001>
module attributes {stable_mosaic.version = 11 : i64} {
  func.func @_bottleneck_kernel(%arg0: i32, %arg1: i32, %arg2: memref<1x1x64x256xbf16, #tpu.memory_space<vmem>>, %arg3: memref<1x2x64x256xbf16, #tpu.memory_space<vmem>>, %arg4: memref<1x1x64x256xbf16, #tpu.memory_space<vmem>>, %arg5: memref<256x64xbf16, #tpu.memory_space<vmem>>, %arg6: memref<1x64xf32, #tpu.memory_space<vmem>>, %arg7: memref<3x576x64xbf16, #tpu.memory_space<vmem>>, %arg8: memref<1x64xf32, #tpu.memory_space<vmem>>, %arg9: memref<64x256xbf16, #tpu.memory_space<vmem>>, %arg10: memref<1x256xf32, #tpu.memory_space<vmem>>, %arg11: memref<64x9xf32, #tpu.memory_space<vmem>>, %arg12: memref<1x2x64x256xbf16, #tpu.memory_space<vmem>>, %arg13: memref<4x64x576xbf16, #tpu.memory_space<vmem>>) attributes {dimension_semantics = [#tpu.dimension_semantics<parallel>, #tpu.dimension_semantics<parallel>], iteration_bounds = array<i64: 2, 2>, scalar_prefetch = 0 : i64, scratch_operands = 1 : i64, tpu.core_type = #tpu.core_type<tc>, window_params = [{transform_indices = @transform_0, window_bounds = array<i64: 1, 1, 64, 256>}, {transform_indices = @transform_1, window_bounds = array<i64: 1, 2, 64, 256>}, {transform_indices = @transform_2, window_bounds = array<i64: 1, 1, 64, 256>}, {pipeline_mode = #tpu.pipeline_mode<synchronous>, transform_indices = @transform_3, window_bounds = array<i64: 256, 64>}, {pipeline_mode = #tpu.pipeline_mode<synchronous>, transform_indices = @transform_4, window_bounds = array<i64: 1, 64>}, {pipeline_mode = #tpu.pipeline_mode<synchronous>, transform_indices = @transform_5, window_bounds = array<i64: 3, 576, 64>}, {pipeline_mode = #tpu.pipeline_mode<synchronous>, transform_indices = @transform_6, window_bounds = array<i64: 1, 64>}, {pipeline_mode = #tpu.pipeline_mode<synchronous>, transform_indices = @transform_7, window_bounds = array<i64: 64, 256>}, {pipeline_mode = #tpu.pipeline_mode<synchronous>, transform_indices = @transform_8, window_bounds = array<i64: 1, 256>}, {pipeline_mode = #tpu.pipeline_mode<synchronous>, transform_indices = @transform_9, window_bounds = array<i64: 64, 9>}, {transform_indices = @transform_10, window_bounds = array<i64: 1, 2, 64, 256>}]} {
    %c0_i32 = arith.constant 0 : i32
    %0 = arith.cmpi sgt, %arg1, %c0_i32 : i32
    %1 = arith.extui %0 : i1 to i32
    %2 = arith.sitofp %1 : i32 to f32
    %c1_i32 = arith.constant 1 : i32
    %3 = arith.cmpi slt, %arg1, %c1_i32 : i32
    %4 = arith.extui %3 : i1 to i32
    %5 = arith.sitofp %4 : i32 to f32
    %c0 = arith.constant 0 : index
    %c0_0 = arith.constant 0 : index
    %6 = vector.load %arg5[%c0, %c0_0] : memref<256x64xbf16, #tpu.memory_space<vmem>>, vector<256x64xbf16>
    %c0_1 = arith.constant 0 : index
    %c0_2 = arith.constant 0 : index
    %7 = vector.load %arg6[%c0_1, %c0_2] : memref<1x64xf32, #tpu.memory_space<vmem>>, vector<1x64xf32>
    %8 = vector.shape_cast %7 : vector<1x64xf32> to vector<64xf32>
    %c0_3 = arith.constant 0 : index
    %c0_4 = arith.constant 0 : index
    %9 = vector.load %arg11[%c0_3, %c0_4] : memref<64x9xf32, #tpu.memory_space<vmem>>, vector<64x1xf32>
    %c0_5 = arith.constant 0 : index
    %c1 = arith.constant 1 : index
    %10 = vector.load %arg11[%c0_5, %c1] : memref<64x9xf32, #tpu.memory_space<vmem>>, vector<64x1xf32>
    %c0_6 = arith.constant 0 : index
    %c2 = arith.constant 2 : index
    %11 = vector.load %arg11[%c0_6, %c2] : memref<64x9xf32, #tpu.memory_space<vmem>>, vector<64x1xf32>
    %c0_7 = arith.constant 0 : index
    %c3 = arith.constant 3 : index
    %12 = vector.load %arg11[%c0_7, %c3] : memref<64x9xf32, #tpu.memory_space<vmem>>, vector<64x1xf32>
    %c0_8 = arith.constant 0 : index
    %c5 = arith.constant 5 : index
    %13 = vector.load %arg11[%c0_8, %c5] : memref<64x9xf32, #tpu.memory_space<vmem>>, vector<64x1xf32>
    %c0_9 = arith.constant 0 : index
    %c6 = arith.constant 6 : index
    %14 = vector.load %arg11[%c0_9, %c6] : memref<64x9xf32, #tpu.memory_space<vmem>>, vector<64x1xf32>
    %c0_10 = arith.constant 0 : index
    %c7 = arith.constant 7 : index
    %15 = vector.load %arg11[%c0_10, %c7] : memref<64x9xf32, #tpu.memory_space<vmem>>, vector<64x1xf32>
    %c0_11 = arith.constant 0 : index
    %c8 = arith.constant 8 : index
    %16 = vector.load %arg11[%c0_11, %c8] : memref<64x9xf32, #tpu.memory_space<vmem>>, vector<64x1xf32>
    %c0_12 = arith.constant 0 : index
    %c0_13 = arith.constant 0 : index
    %c0_14 = arith.constant 0 : index
    %c0_15 = arith.constant 0 : index
    %17 = vector.load %arg2[%c0_12, %c0_13, %c0_14, %c0_15] : memref<1x1x64x256xbf16, #tpu.memory_space<vmem>>, vector<1x1x64x256xbf16>
    %18 = vector.shape_cast %17 : vector<1x1x64x256xbf16> to vector<64x256xbf16>
    %cst = arith.constant dense<0.000000e+00> : vector<64x64xf32>
    %19 = tpu.matmul %18, %6, %cst {dimension_numbers = #tpu.dot_dimension_numbers<[1], [0], [0], [1], [0, 0, 1, 1], [], []>} : vector<64x256xbf16>, vector<256x64xbf16>, vector<64x64xf32> -> vector<64x64xf32>
    %20 = vector.shape_cast %8 : vector<64xf32> to vector<1x64xf32>
    %21 = vector.broadcast %20 : vector<1x64xf32> to vector<64x64xf32>
    %22 = arith.addf %19, %21 : vector<64x64xf32>
    %cst_16 = arith.constant 0.000000e+00 : f32
    %23 = vector.broadcast %cst_16 : f32 to vector<64x64xf32>
    %24 = arith.maximumf %22, %23 : vector<64x64xf32>
    %25 = vector.broadcast %2 : f32 to vector<64x64xf32>
    %26 = arith.mulf %24, %25 : vector<64x64xf32>
    %c9_i32 = arith.constant 9 : i32
    %27 = tpu.dynamic_rotate %26 by %c9_i32 dim 0 : vector<64x64xf32>, i32 -> vector<64x64xf32>
    %28 = vector.broadcast %9 : vector<64x1xf32> to vector<64x64xf32>
    %29 = arith.mulf %27, %28 : vector<64x64xf32>
    %30 = arith.truncf %29 : vector<64x64xf32> to vector<64x64xbf16>
    %c0_17 = arith.constant 0 : index
    %c0_18 = arith.constant 0 : index
    %c0_19 = arith.constant 0 : index
    %31 = vector.load %arg13[%c0_17, %c0_18, %c0_19] : memref<4x64x576xbf16, #tpu.memory_space<vmem>>, vector<1x64x64xbf16>
    %32 = vector.shape_cast %31 : vector<1x64x64xbf16> to vector<64x64xbf16>
    %33 = vector.shape_cast %30 : vector<64x64xbf16> to vector<1x64x64xbf16>
    tpu.vector_store %arg13[%c0_17, %c0_18, %c0_19], %33 {strides = array<i32>} : memref<4x64x576xbf16, #tpu.memory_space<vmem>>, vector<1x64x64xbf16>,
    %c8_i32 = arith.constant 8 : i32
    %34 = tpu.dynamic_rotate %26 by %c8_i32 dim 0 : vector<64x64xf32>, i32 -> vector<64x64xf32>
    %35 = vector.broadcast %10 : vector<64x1xf32> to vector<64x64xf32>
    %36 = arith.mulf %34, %35 : vector<64x64xf32>
    %37 = arith.truncf %36 : vector<64x64xf32> to vector<64x64xbf16>
    %c0_20 = arith.constant 0 : index
    %c0_21 = arith.constant 0 : index
    %c64 = arith.constant 64 : index
    %38 = vector.load %arg13[%c0_20, %c0_21, %c64] : memref<4x64x576xbf16, #tpu.memory_space<vmem>>, vector<1x64x64xbf16>
    %39 = vector.shape_cast %38 : vector<1x64x64xbf16> to vector<64x64xbf16>
    %40 = vector.shape_cast %37 : vector<64x64xbf16> to vector<1x64x64xbf16>
    tpu.vector_store %arg13[%c0_20, %c0_21, %c64], %40 {strides = array<i32>} : memref<4x64x576xbf16, #tpu.memory_space<vmem>>, vector<1x64x64xbf16>,
    %c7_i32 = arith.constant 7 : i32
    %41 = tpu.dynamic_rotate %26 by %c7_i32 dim 0 : vector<64x64xf32>, i32 -> vector<64x64xf32>
    %42 = vector.broadcast %11 : vector<64x1xf32> to vector<64x64xf32>
    %43 = arith.mulf %41, %42 : vector<64x64xf32>
    %44 = arith.truncf %43 : vector<64x64xf32> to vector<64x64xbf16>
    %c0_22 = arith.constant 0 : index
    %c0_23 = arith.constant 0 : index
    %c128 = arith.constant 128 : index
    %45 = vector.load %arg13[%c0_22, %c0_23, %c128] : memref<4x64x576xbf16, #tpu.memory_space<vmem>>, vector<1x64x64xbf16>
    %46 = vector.shape_cast %45 : vector<1x64x64xbf16> to vector<64x64xbf16>
    %47 = vector.shape_cast %44 : vector<64x64xbf16> to vector<1x64x64xbf16>
    tpu.vector_store %arg13[%c0_22, %c0_23, %c128], %47 {strides = array<i32>} : memref<4x64x576xbf16, #tpu.memory_space<vmem>>, vector<1x64x64xbf16>,
    %c1_i32_24 = arith.constant 1 : i32
    %48 = tpu.dynamic_rotate %26 by %c1_i32_24 dim 0 : vector<64x64xf32>, i32 -> vector<64x64xf32>
    %49 = vector.broadcast %12 : vector<64x1xf32> to vector<64x64xf32>
    %50 = arith.mulf %48, %49 : vector<64x64xf32>
    %51 = arith.truncf %50 : vector<64x64xf32> to vector<64x64xbf16>
    %c0_25 = arith.constant 0 : index
    %c0_26 = arith.constant 0 : index
    %c192 = arith.constant 192 : index
    %52 = vector.load %arg13[%c0_25, %c0_26, %c192] : memref<4x64x576xbf16, #tpu.memory_space<vmem>>, vector<1x64x64xbf16>
    %53 = vector.shape_cast %52 : vector<1x64x64xbf16> to vector<64x64xbf16>
    %54 = vector.shape_cast %51 : vector<64x64xbf16> to vector<1x64x64xbf16>
    tpu.vector_store %arg13[%c0_25, %c0_26, %c192], %54 {strides = array<i32>} : memref<4x64x576xbf16, #tpu.memory_space<vmem>>, vector<1x64x64xbf16>,
    %55 = arith.truncf %26 : vector<64x64xf32> to vector<64x64xbf16>
    %c0_27 = arith.constant 0 : index
    %c0_28 = arith.constant 0 : index
    %c256 = arith.constant 256 : index
    %56 = vector.load %arg13[%c0_27, %c0_28, %c256] : memref<4x64x576xbf16, #tpu.memory_space<vmem>>, vector<1x64x64xbf16>
    %57 = vector.shape_cast %56 : vector<1x64x64xbf16> to vector<64x64xbf16>
    %58 = vector.shape_cast %55 : vector<64x64xbf16> to vector<1x64x64xbf16>
    tpu.vector_store %arg13[%c0_27, %c0_28, %c256], %58 {strides = array<i32>} : memref<4x64x576xbf16, #tpu.memory_space<vmem>>, vector<1x64x64xbf16>,
    %c63_i32 = arith.constant 63 : i32
    %59 = tpu.dynamic_rotate %26 by %c63_i32 dim 0 : vector<64x64xf32>, i32 -> vector<64x64xf32>
    %60 = vector.broadcast %13 : vector<64x1xf32> to vector<64x64xf32>
    %61 = arith.mulf %59, %60 : vector<64x64xf32>
    %62 = arith.truncf %61 : vector<64x64xf32> to vector<64x64xbf16>
    %c0_29 = arith.constant 0 : index
    %c0_30 = arith.constant 0 : index
    %c320 = arith.constant 320 : index
    %63 = vector.load %arg13[%c0_29, %c0_30, %c320] : memref<4x64x576xbf16, #tpu.memory_space<vmem>>, vector<1x64x64xbf16>
    %64 = vector.shape_cast %63 : vector<1x64x64xbf16> to vector<64x64xbf16>
    %65 = vector.shape_cast %62 : vector<64x64xbf16> to vector<1x64x64xbf16>
    tpu.vector_store %arg13[%c0_29, %c0_30, %c320], %65 {strides = array<i32>} : memref<4x64x576xbf16, #tpu.memory_space<vmem>>, vector<1x64x64xbf16>,
    %c57_i32 = arith.constant 57 : i32
    %66 = tpu.dynamic_rotate %26 by %c57_i32 dim 0 : vector<64x64xf32>, i32 -> vector<64x64xf32>
    %67 = vector.broadcast %14 : vector<64x1xf32> to vector<64x64xf32>
    %68 = arith.mulf %66, %67 : vector<64x64xf32>
    %69 = arith.truncf %68 : vector<64x64xf32> to vector<64x64xbf16>
    %c0_31 = arith.constant 0 : index
    %c0_32 = arith.constant 0 : index
    %c384 = arith.constant 384 : index
    %70 = vector.load %arg13[%c0_31, %c0_32, %c384] : memref<4x64x576xbf16, #tpu.memory_space<vmem>>, vector<1x64x64xbf16>
    %71 = vector.shape_cast %70 : vector<1x64x64xbf16> to vector<64x64xbf16>
    %72 = vector.shape_cast %69 : vector<64x64xbf16> to vector<1x64x64xbf16>
    tpu.vector_store %arg13[%c0_31, %c0_32, %c384], %72 {strides = array<i32>} : memref<4x64x576xbf16, #tpu.memory_space<vmem>>, vector<1x64x64xbf16>,
    %c56_i32 = arith.constant 56 : i32
    %73 = tpu.dynamic_rotate %26 by %c56_i32 dim 0 : vector<64x64xf32>, i32 -> vector<64x64xf32>
    %74 = vector.broadcast %15 : vector<64x1xf32> to vector<64x64xf32>
    %75 = arith.mulf %73, %74 : vector<64x64xf32>
    %76 = arith.truncf %75 : vector<64x64xf32> to vector<64x64xbf16>
    %c0_33 = arith.constant 0 : index
    %c0_34 = arith.constant 0 : index
    %c448 = arith.constant 448 : index
    %77 = vector.load %arg13[%c0_33, %c0_34, %c448] : memref<4x64x576xbf16, #tpu.memory_space<vmem>>, vector<1x64x64xbf16>
    %78 = vector.shape_cast %77 : vector<1x64x64xbf16> to vector<64x64xbf16>
    %79 = vector.shape_cast %76 : vector<64x64xbf16> to vector<1x64x64xbf16>
    tpu.vector_store %arg13[%c0_33, %c0_34, %c448], %79 {strides = array<i32>} : memref<4x64x576xbf16, #tpu.memory_space<vmem>>, vector<1x64x64xbf16>,
    %c55_i32 = arith.constant 55 : i32
    %80 = tpu.dynamic_rotate %26 by %c55_i32 dim 0 : vector<64x64xf32>, i32 -> vector<64x64xf32>
    %81 = vector.broadcast %16 : vector<64x1xf32> to vector<64x64xf32>
    %82 = arith.mulf %80, %81 : vector<64x64xf32>
    %83 = arith.truncf %82 : vector<64x64xf32> to vector<64x64xbf16>
    %c0_35 = arith.constant 0 : index
    %c0_36 = arith.constant 0 : index
    %c512 = arith.constant 512 : index
    %84 = vector.load %arg13[%c0_35, %c0_36, %c512] : memref<4x64x576xbf16, #tpu.memory_space<vmem>>, vector<1x64x64xbf16>
    %85 = vector.shape_cast %84 : vector<1x64x64xbf16> to vector<64x64xbf16>
    %86 = vector.shape_cast %83 : vector<64x64xbf16> to vector<1x64x64xbf16>
    tpu.vector_store %arg13[%c0_35, %c0_36, %c512], %86 {strides = array<i32>} : memref<4x64x576xbf16, #tpu.memory_space<vmem>>, vector<1x64x64xbf16>,
    %c0_37 = arith.constant 0 : index
    %c0_38 = arith.constant 0 : index
    %c0_39 = arith.constant 0 : index
    %c0_40 = arith.constant 0 : index
    %87 = vector.load %arg3[%c0_37, %c0_38, %c0_39, %c0_40] : memref<1x2x64x256xbf16, #tpu.memory_space<vmem>>, vector<1x1x64x256xbf16>
    %88 = vector.shape_cast %87 : vector<1x1x64x256xbf16> to vector<64x256xbf16>
    %cst_41 = arith.constant dense<0.000000e+00> : vector<64x64xf32>
    %89 = tpu.matmul %88, %6, %cst_41 {dimension_numbers = #tpu.dot_dimension_numbers<[1], [0], [0], [1], [0, 0, 1, 1], [], []>} : vector<64x256xbf16>, vector<256x64xbf16>, vector<64x64xf32> -> vector<64x64xf32>
    %90 = vector.shape_cast %8 : vector<64xf32> to vector<1x64xf32>
    %91 = vector.broadcast %90 : vector<1x64xf32> to vector<64x64xf32>
    %92 = arith.addf %89, %91 : vector<64x64xf32>
    %cst_42 = arith.constant 0.000000e+00 : f32
    %93 = vector.broadcast %cst_42 : f32 to vector<64x64xf32>
    %94 = arith.maximumf %92, %93 : vector<64x64xf32>
    %c9_i32_43 = arith.constant 9 : i32
    %95 = tpu.dynamic_rotate %94 by %c9_i32_43 dim 0 : vector<64x64xf32>, i32 -> vector<64x64xf32>
    %96 = vector.broadcast %9 : vector<64x1xf32> to vector<64x64xf32>
    %97 = arith.mulf %95, %96 : vector<64x64xf32>
    %98 = arith.truncf %97 : vector<64x64xf32> to vector<64x64xbf16>
    %c1_44 = arith.constant 1 : index
    %c0_45 = arith.constant 0 : index
    %c0_46 = arith.constant 0 : index
    %99 = vector.load %arg13[%c1_44, %c0_45, %c0_46] : memref<4x64x576xbf16, #tpu.memory_space<vmem>>, vector<1x64x64xbf16>
    %100 = vector.shape_cast %99 : vector<1x64x64xbf16> to vector<64x64xbf16>
    %101 = vector.shape_cast %98 : vector<64x64xbf16> to vector<1x64x64xbf16>
    tpu.vector_store %arg13[%c1_44, %c0_45, %c0_46], %101 {strides = array<i32>} : memref<4x64x576xbf16, #tpu.memory_space<vmem>>, vector<1x64x64xbf16>,
    %c8_i32_47 = arith.constant 8 : i32
    %102 = tpu.dynamic_rotate %94 by %c8_i32_47 dim 0 : vector<64x64xf32>, i32 -> vector<64x64xf32>
    %103 = vector.broadcast %10 : vector<64x1xf32> to vector<64x64xf32>
    %104 = arith.mulf %102, %103 : vector<64x64xf32>
    %105 = arith.truncf %104 : vector<64x64xf32> to vector<64x64xbf16>
    %c1_48 = arith.constant 1 : index
    %c0_49 = arith.constant 0 : index
    %c64_50 = arith.constant 64 : index
    %106 = vector.load %arg13[%c1_48, %c0_49, %c64_50] : memref<4x64x576xbf16, #tpu.memory_space<vmem>>, vector<1x64x64xbf16>
    %107 = vector.shape_cast %106 : vector<1x64x64xbf16> to vector<64x64xbf16>
    %108 = vector.shape_cast %105 : vector<64x64xbf16> to vector<1x64x64xbf16>
    tpu.vector_store %arg13[%c1_48, %c0_49, %c64_50], %108 {strides = array<i32>} : memref<4x64x576xbf16, #tpu.memory_space<vmem>>, vector<1x64x64xbf16>,
    %c7_i32_51 = arith.constant 7 : i32
    %109 = tpu.dynamic_rotate %94 by %c7_i32_51 dim 0 : vector<64x64xf32>, i32 -> vector<64x64xf32>
    %110 = vector.broadcast %11 : vector<64x1xf32> to vector<64x64xf32>
    %111 = arith.mulf %109, %110 : vector<64x64xf32>
    %112 = arith.truncf %111 : vector<64x64xf32> to vector<64x64xbf16>
    %c1_52 = arith.constant 1 : index
    %c0_53 = arith.constant 0 : index
    %c128_54 = arith.constant 128 : index
    %113 = vector.load %arg13[%c1_52, %c0_53, %c128_54] : memref<4x64x576xbf16, #tpu.memory_space<vmem>>, vector<1x64x64xbf16>
    %114 = vector.shape_cast %113 : vector<1x64x64xbf16> to vector<64x64xbf16>
    %115 = vector.shape_cast %112 : vector<64x64xbf16> to vector<1x64x64xbf16>
    tpu.vector_store %arg13[%c1_52, %c0_53, %c128_54], %115 {strides = array<i32>} : memref<4x64x576xbf16, #tpu.memory_space<vmem>>, vector<1x64x64xbf16>,
    %c1_i32_55 = arith.constant 1 : i32
    %116 = tpu.dynamic_rotate %94 by %c1_i32_55 dim 0 : vector<64x64xf32>, i32 -> vector<64x64xf32>
    %117 = vector.broadcast %12 : vector<64x1xf32> to vector<64x64xf32>
    %118 = arith.mulf %116, %117 : vector<64x64xf32>
    %119 = arith.truncf %118 : vector<64x64xf32> to vector<64x64xbf16>
    %c1_56 = arith.constant 1 : index
    %c0_57 = arith.constant 0 : index
    %c192_58 = arith.constant 192 : index
    %120 = vector.load %arg13[%c1_56, %c0_57, %c192_58] : memref<4x64x576xbf16, #tpu.memory_space<vmem>>, vector<1x64x64xbf16>
    %121 = vector.shape_cast %120 : vector<1x64x64xbf16> to vector<64x64xbf16>
    %122 = vector.shape_cast %119 : vector<64x64xbf16> to vector<1x64x64xbf16>
    tpu.vector_store %arg13[%c1_56, %c0_57, %c192_58], %122 {strides = array<i32>} : memref<4x64x576xbf16, #tpu.memory_space<vmem>>, vector<1x64x64xbf16>,
    %123 = arith.truncf %94 : vector<64x64xf32> to vector<64x64xbf16>
    %c1_59 = arith.constant 1 : index
    %c0_60 = arith.constant 0 : index
    %c256_61 = arith.constant 256 : index
    %124 = vector.load %arg13[%c1_59, %c0_60, %c256_61] : memref<4x64x576xbf16, #tpu.memory_space<vmem>>, vector<1x64x64xbf16>
    %125 = vector.shape_cast %124 : vector<1x64x64xbf16> to vector<64x64xbf16>
    %126 = vector.shape_cast %123 : vector<64x64xbf16> to vector<1x64x64xbf16>
    tpu.vector_store %arg13[%c1_59, %c0_60, %c256_61], %126 {strides = array<i32>} : memref<4x64x576xbf16, #tpu.memory_space<vmem>>, vector<1x64x64xbf16>,
    %c63_i32_62 = arith.constant 63 : i32
    %127 = tpu.dynamic_rotate %94 by %c63_i32_62 dim 0 : vector<64x64xf32>, i32 -> vector<64x64xf32>
    %128 = vector.broadcast %13 : vector<64x1xf32> to vector<64x64xf32>
    %129 = arith.mulf %127, %128 : vector<64x64xf32>
    %130 = arith.truncf %129 : vector<64x64xf32> to vector<64x64xbf16>
    %c1_63 = arith.constant 1 : index
    %c0_64 = arith.constant 0 : index
    %c320_65 = arith.constant 320 : index
    %131 = vector.load %arg13[%c1_63, %c0_64, %c320_65] : memref<4x64x576xbf16, #tpu.memory_space<vmem>>, vector<1x64x64xbf16>
    %132 = vector.shape_cast %131 : vector<1x64x64xbf16> to vector<64x64xbf16>
    %133 = vector.shape_cast %130 : vector<64x64xbf16> to vector<1x64x64xbf16>
    tpu.vector_store %arg13[%c1_63, %c0_64, %c320_65], %133 {strides = array<i32>} : memref<4x64x576xbf16, #tpu.memory_space<vmem>>, vector<1x64x64xbf16>,
    %c57_i32_66 = arith.constant 57 : i32
    %134 = tpu.dynamic_rotate %94 by %c57_i32_66 dim 0 : vector<64x64xf32>, i32 -> vector<64x64xf32>
    %135 = vector.broadcast %14 : vector<64x1xf32> to vector<64x64xf32>
    %136 = arith.mulf %134, %135 : vector<64x64xf32>
    %137 = arith.truncf %136 : vector<64x64xf32> to vector<64x64xbf16>
    %c1_67 = arith.constant 1 : index
    %c0_68 = arith.constant 0 : index
    %c384_69 = arith.constant 384 : index
    %138 = vector.load %arg13[%c1_67, %c0_68, %c384_69] : memref<4x64x576xbf16, #tpu.memory_space<vmem>>, vector<1x64x64xbf16>
    %139 = vector.shape_cast %138 : vector<1x64x64xbf16> to vector<64x64xbf16>
    %140 = vector.shape_cast %137 : vector<64x64xbf16> to vector<1x64x64xbf16>
    tpu.vector_store %arg13[%c1_67, %c0_68, %c384_69], %140 {strides = array<i32>} : memref<4x64x576xbf16, #tpu.memory_space<vmem>>, vector<1x64x64xbf16>,
    %c56_i32_70 = arith.constant 56 : i32
    %141 = tpu.dynamic_rotate %94 by %c56_i32_70 dim 0 : vector<64x64xf32>, i32 -> vector<64x64xf32>
    %142 = vector.broadcast %15 : vector<64x1xf32> to vector<64x64xf32>
    %143 = arith.mulf %141, %142 : vector<64x64xf32>
    %144 = arith.truncf %143 : vector<64x64xf32> to vector<64x64xbf16>
    %c1_71 = arith.constant 1 : index
    %c0_72 = arith.constant 0 : index
    %c448_73 = arith.constant 448 : index
    %145 = vector.load %arg13[%c1_71, %c0_72, %c448_73] : memref<4x64x576xbf16, #tpu.memory_space<vmem>>, vector<1x64x64xbf16>
    %146 = vector.shape_cast %145 : vector<1x64x64xbf16> to vector<64x64xbf16>
    %147 = vector.shape_cast %144 : vector<64x64xbf16> to vector<1x64x64xbf16>
    tpu.vector_store %arg13[%c1_71, %c0_72, %c448_73], %147 {strides = array<i32>} : memref<4x64x576xbf16, #tpu.memory_space<vmem>>, vector<1x64x64xbf16>,
    %c55_i32_74 = arith.constant 55 : i32
    %148 = tpu.dynamic_rotate %94 by %c55_i32_74 dim 0 : vector<64x64xf32>, i32 -> vector<64x64xf32>
    %149 = vector.broadcast %16 : vector<64x1xf32> to vector<64x64xf32>
    %150 = arith.mulf %148, %149 : vector<64x64xf32>
    %151 = arith.truncf %150 : vector<64x64xf32> to vector<64x64xbf16>
    %c1_75 = arith.constant 1 : index
    %c0_76 = arith.constant 0 : index
    %c512_77 = arith.constant 512 : index
    %152 = vector.load %arg13[%c1_75, %c0_76, %c512_77] : memref<4x64x576xbf16, #tpu.memory_space<vmem>>, vector<1x64x64xbf16>
    %153 = vector.shape_cast %152 : vector<1x64x64xbf16> to vector<64x64xbf16>
    %154 = vector.shape_cast %151 : vector<64x64xbf16> to vector<1x64x64xbf16>
    tpu.vector_store %arg13[%c1_75, %c0_76, %c512_77], %154 {strides = array<i32>} : memref<4x64x576xbf16, #tpu.memory_space<vmem>>, vector<1x64x64xbf16>,
    %c0_78 = arith.constant 0 : index
    %c1_79 = arith.constant 1 : index
    %c0_80 = arith.constant 0 : index
    %c0_81 = arith.constant 0 : index
    %155 = vector.load %arg3[%c0_78, %c1_79, %c0_80, %c0_81] : memref<1x2x64x256xbf16, #tpu.memory_space<vmem>>, vector<1x1x64x256xbf16>
    %156 = vector.shape_cast %155 : vector<1x1x64x256xbf16> to vector<64x256xbf16>
    %cst_82 = arith.constant dense<0.000000e+00> : vector<64x64xf32>
    %157 = tpu.matmul %156, %6, %cst_82 {dimension_numbers = #tpu.dot_dimension_numbers<[1], [0], [0], [1], [0, 0, 1, 1], [], []>} : vector<64x256xbf16>, vector<256x64xbf16>, vector<64x64xf32> -> vector<64x64xf32>
    %158 = vector.shape_cast %8 : vector<64xf32> to vector<1x64xf32>
    %159 = vector.broadcast %158 : vector<1x64xf32> to vector<64x64xf32>
    %160 = arith.addf %157, %159 : vector<64x64xf32>
    %cst_83 = arith.constant 0.000000e+00 : f32
    %161 = vector.broadcast %cst_83 : f32 to vector<64x64xf32>
    %162 = arith.maximumf %160, %161 : vector<64x64xf32>
    %c9_i32_84 = arith.constant 9 : i32
    %163 = tpu.dynamic_rotate %162 by %c9_i32_84 dim 0 : vector<64x64xf32>, i32 -> vector<64x64xf32>
    %164 = vector.broadcast %9 : vector<64x1xf32> to vector<64x64xf32>
    %165 = arith.mulf %163, %164 : vector<64x64xf32>
    %166 = arith.truncf %165 : vector<64x64xf32> to vector<64x64xbf16>
    %c2_85 = arith.constant 2 : index
    %c0_86 = arith.constant 0 : index
    %c0_87 = arith.constant 0 : index
    %167 = vector.load %arg13[%c2_85, %c0_86, %c0_87] : memref<4x64x576xbf16, #tpu.memory_space<vmem>>, vector<1x64x64xbf16>
    %168 = vector.shape_cast %167 : vector<1x64x64xbf16> to vector<64x64xbf16>
    %169 = vector.shape_cast %166 : vector<64x64xbf16> to vector<1x64x64xbf16>
    tpu.vector_store %arg13[%c2_85, %c0_86, %c0_87], %169 {strides = array<i32>} : memref<4x64x576xbf16, #tpu.memory_space<vmem>>, vector<1x64x64xbf16>,
    %c8_i32_88 = arith.constant 8 : i32
    %170 = tpu.dynamic_rotate %162 by %c8_i32_88 dim 0 : vector<64x64xf32>, i32 -> vector<64x64xf32>
    %171 = vector.broadcast %10 : vector<64x1xf32> to vector<64x64xf32>
    %172 = arith.mulf %170, %171 : vector<64x64xf32>
    %173 = arith.truncf %172 : vector<64x64xf32> to vector<64x64xbf16>
    %c2_89 = arith.constant 2 : index
    %c0_90 = arith.constant 0 : index
    %c64_91 = arith.constant 64 : index
    %174 = vector.load %arg13[%c2_89, %c0_90, %c64_91] : memref<4x64x576xbf16, #tpu.memory_space<vmem>>, vector<1x64x64xbf16>
    %175 = vector.shape_cast %174 : vector<1x64x64xbf16> to vector<64x64xbf16>
    %176 = vector.shape_cast %173 : vector<64x64xbf16> to vector<1x64x64xbf16>
    tpu.vector_store %arg13[%c2_89, %c0_90, %c64_91], %176 {strides = array<i32>} : memref<4x64x576xbf16, #tpu.memory_space<vmem>>, vector<1x64x64xbf16>,
    %c7_i32_92 = arith.constant 7 : i32
    %177 = tpu.dynamic_rotate %162 by %c7_i32_92 dim 0 : vector<64x64xf32>, i32 -> vector<64x64xf32>
    %178 = vector.broadcast %11 : vector<64x1xf32> to vector<64x64xf32>
    %179 = arith.mulf %177, %178 : vector<64x64xf32>
    %180 = arith.truncf %179 : vector<64x64xf32> to vector<64x64xbf16>
    %c2_93 = arith.constant 2 : index
    %c0_94 = arith.constant 0 : index
    %c128_95 = arith.constant 128 : index
    %181 = vector.load %arg13[%c2_93, %c0_94, %c128_95] : memref<4x64x576xbf16, #tpu.memory_space<vmem>>, vector<1x64x64xbf16>
    %182 = vector.shape_cast %181 : vector<1x64x64xbf16> to vector<64x64xbf16>
    %183 = vector.shape_cast %180 : vector<64x64xbf16> to vector<1x64x64xbf16>
    tpu.vector_store %arg13[%c2_93, %c0_94, %c128_95], %183 {strides = array<i32>} : memref<4x64x576xbf16, #tpu.memory_space<vmem>>, vector<1x64x64xbf16>,
    %c1_i32_96 = arith.constant 1 : i32
    %184 = tpu.dynamic_rotate %162 by %c1_i32_96 dim 0 : vector<64x64xf32>, i32 -> vector<64x64xf32>
    %185 = vector.broadcast %12 : vector<64x1xf32> to vector<64x64xf32>
    %186 = arith.mulf %184, %185 : vector<64x64xf32>
    %187 = arith.truncf %186 : vector<64x64xf32> to vector<64x64xbf16>
    %c2_97 = arith.constant 2 : index
    %c0_98 = arith.constant 0 : index
    %c192_99 = arith.constant 192 : index
    %188 = vector.load %arg13[%c2_97, %c0_98, %c192_99] : memref<4x64x576xbf16, #tpu.memory_space<vmem>>, vector<1x64x64xbf16>
    %189 = vector.shape_cast %188 : vector<1x64x64xbf16> to vector<64x64xbf16>
    %190 = vector.shape_cast %187 : vector<64x64xbf16> to vector<1x64x64xbf16>
    tpu.vector_store %arg13[%c2_97, %c0_98, %c192_99], %190 {strides = array<i32>} : memref<4x64x576xbf16, #tpu.memory_space<vmem>>, vector<1x64x64xbf16>,
    %191 = arith.truncf %162 : vector<64x64xf32> to vector<64x64xbf16>
    %c2_100 = arith.constant 2 : index
    %c0_101 = arith.constant 0 : index
    %c256_102 = arith.constant 256 : index
    %192 = vector.load %arg13[%c2_100, %c0_101, %c256_102] : memref<4x64x576xbf16, #tpu.memory_space<vmem>>, vector<1x64x64xbf16>
    %193 = vector.shape_cast %192 : vector<1x64x64xbf16> to vector<64x64xbf16>
    %194 = vector.shape_cast %191 : vector<64x64xbf16> to vector<1x64x64xbf16>
    tpu.vector_store %arg13[%c2_100, %c0_101, %c256_102], %194 {strides = array<i32>} : memref<4x64x576xbf16, #tpu.memory_space<vmem>>, vector<1x64x64xbf16>,
    %c63_i32_103 = arith.constant 63 : i32
    %195 = tpu.dynamic_rotate %162 by %c63_i32_103 dim 0 : vector<64x64xf32>, i32 -> vector<64x64xf32>
    %196 = vector.broadcast %13 : vector<64x1xf32> to vector<64x64xf32>
    %197 = arith.mulf %195, %196 : vector<64x64xf32>
    %198 = arith.truncf %197 : vector<64x64xf32> to vector<64x64xbf16>
    %c2_104 = arith.constant 2 : index
    %c0_105 = arith.constant 0 : index
    %c320_106 = arith.constant 320 : index
    %199 = vector.load %arg13[%c2_104, %c0_105, %c320_106] : memref<4x64x576xbf16, #tpu.memory_space<vmem>>, vector<1x64x64xbf16>
    %200 = vector.shape_cast %199 : vector<1x64x64xbf16> to vector<64x64xbf16>
    %201 = vector.shape_cast %198 : vector<64x64xbf16> to vector<1x64x64xbf16>
    tpu.vector_store %arg13[%c2_104, %c0_105, %c320_106], %201 {strides = array<i32>} : memref<4x64x576xbf16, #tpu.memory_space<vmem>>, vector<1x64x64xbf16>,
    %c57_i32_107 = arith.constant 57 : i32
    %202 = tpu.dynamic_rotate %162 by %c57_i32_107 dim 0 : vector<64x64xf32>, i32 -> vector<64x64xf32>
    %203 = vector.broadcast %14 : vector<64x1xf32> to vector<64x64xf32>
    %204 = arith.mulf %202, %203 : vector<64x64xf32>
    %205 = arith.truncf %204 : vector<64x64xf32> to vector<64x64xbf16>
    %c2_108 = arith.constant 2 : index
    %c0_109 = arith.constant 0 : index
    %c384_110 = arith.constant 384 : index
    %206 = vector.load %arg13[%c2_108, %c0_109, %c384_110] : memref<4x64x576xbf16, #tpu.memory_space<vmem>>, vector<1x64x64xbf16>
    %207 = vector.shape_cast %206 : vector<1x64x64xbf16> to vector<64x64xbf16>
    %208 = vector.shape_cast %205 : vector<64x64xbf16> to vector<1x64x64xbf16>
    tpu.vector_store %arg13[%c2_108, %c0_109, %c384_110], %208 {strides = array<i32>} : memref<4x64x576xbf16, #tpu.memory_space<vmem>>, vector<1x64x64xbf16>,
    %c56_i32_111 = arith.constant 56 : i32
    %209 = tpu.dynamic_rotate %162 by %c56_i32_111 dim 0 : vector<64x64xf32>, i32 -> vector<64x64xf32>
    %210 = vector.broadcast %15 : vector<64x1xf32> to vector<64x64xf32>
    %211 = arith.mulf %209, %210 : vector<64x64xf32>
    %212 = arith.truncf %211 : vector<64x64xf32> to vector<64x64xbf16>
    %c2_112 = arith.constant 2 : index
    %c0_113 = arith.constant 0 : index
    %c448_114 = arith.constant 448 : index
    %213 = vector.load %arg13[%c2_112, %c0_113, %c448_114] : memref<4x64x576xbf16, #tpu.memory_space<vmem>>, vector<1x64x64xbf16>
    %214 = vector.shape_cast %213 : vector<1x64x64xbf16> to vector<64x64xbf16>
    %215 = vector.shape_cast %212 : vector<64x64xbf16> to vector<1x64x64xbf16>
    tpu.vector_store %arg13[%c2_112, %c0_113, %c448_114], %215 {strides = array<i32>} : memref<4x64x576xbf16, #tpu.memory_space<vmem>>, vector<1x64x64xbf16>,
    %c55_i32_115 = arith.constant 55 : i32
    %216 = tpu.dynamic_rotate %162 by %c55_i32_115 dim 0 : vector<64x64xf32>, i32 -> vector<64x64xf32>
    %217 = vector.broadcast %16 : vector<64x1xf32> to vector<64x64xf32>
    %218 = arith.mulf %216, %217 : vector<64x64xf32>
    %219 = arith.truncf %218 : vector<64x64xf32> to vector<64x64xbf16>
    %c2_116 = arith.constant 2 : index
    %c0_117 = arith.constant 0 : index
    %c512_118 = arith.constant 512 : index
    %220 = vector.load %arg13[%c2_116, %c0_117, %c512_118] : memref<4x64x576xbf16, #tpu.memory_space<vmem>>, vector<1x64x64xbf16>
    %221 = vector.shape_cast %220 : vector<1x64x64xbf16> to vector<64x64xbf16>
    %222 = vector.shape_cast %219 : vector<64x64xbf16> to vector<1x64x64xbf16>
    tpu.vector_store %arg13[%c2_116, %c0_117, %c512_118], %222 {strides = array<i32>} : memref<4x64x576xbf16, #tpu.memory_space<vmem>>, vector<1x64x64xbf16>,
    %c0_119 = arith.constant 0 : index
    %c0_120 = arith.constant 0 : index
    %c0_121 = arith.constant 0 : index
    %c0_122 = arith.constant 0 : index
    %223 = vector.load %arg4[%c0_119, %c0_120, %c0_121, %c0_122] : memref<1x1x64x256xbf16, #tpu.memory_space<vmem>>, vector<1x1x64x256xbf16>
    %224 = vector.shape_cast %223 : vector<1x1x64x256xbf16> to vector<64x256xbf16>
    %cst_123 = arith.constant dense<0.000000e+00> : vector<64x64xf32>
    %225 = tpu.matmul %224, %6, %cst_123 {dimension_numbers = #tpu.dot_dimension_numbers<[1], [0], [0], [1], [0, 0, 1, 1], [], []>} : vector<64x256xbf16>, vector<256x64xbf16>, vector<64x64xf32> -> vector<64x64xf32>
    %226 = vector.shape_cast %8 : vector<64xf32> to vector<1x64xf32>
    %227 = vector.broadcast %226 : vector<1x64xf32> to vector<64x64xf32>
    %228 = arith.addf %225, %227 : vector<64x64xf32>
    %cst_124 = arith.constant 0.000000e+00 : f32
    %229 = vector.broadcast %cst_124 : f32 to vector<64x64xf32>
    %230 = arith.maximumf %228, %229 : vector<64x64xf32>
    %231 = vector.broadcast %5 : f32 to vector<64x64xf32>
    %232 = arith.mulf %230, %231 : vector<64x64xf32>
    %c9_i32_125 = arith.constant 9 : i32
    %233 = tpu.dynamic_rotate %232 by %c9_i32_125 dim 0 : vector<64x64xf32>, i32 -> vector<64x64xf32>
    %234 = vector.broadcast %9 : vector<64x1xf32> to vector<64x64xf32>
    %235 = arith.mulf %233, %234 : vector<64x64xf32>
    %236 = arith.truncf %235 : vector<64x64xf32> to vector<64x64xbf16>
    %c3_126 = arith.constant 3 : index
    %c0_127 = arith.constant 0 : index
    %c0_128 = arith.constant 0 : index
    %237 = vector.load %arg13[%c3_126, %c0_127, %c0_128] : memref<4x64x576xbf16, #tpu.memory_space<vmem>>, vector<1x64x64xbf16>
    %238 = vector.shape_cast %237 : vector<1x64x64xbf16> to vector<64x64xbf16>
    %239 = vector.shape_cast %236 : vector<64x64xbf16> to vector<1x64x64xbf16>
    tpu.vector_store %arg13[%c3_126, %c0_127, %c0_128], %239 {strides = array<i32>} : memref<4x64x576xbf16, #tpu.memory_space<vmem>>, vector<1x64x64xbf16>,
    %c8_i32_129 = arith.constant 8 : i32
    %240 = tpu.dynamic_rotate %232 by %c8_i32_129 dim 0 : vector<64x64xf32>, i32 -> vector<64x64xf32>
    %241 = vector.broadcast %10 : vector<64x1xf32> to vector<64x64xf32>
    %242 = arith.mulf %240, %241 : vector<64x64xf32>
    %243 = arith.truncf %242 : vector<64x64xf32> to vector<64x64xbf16>
    %c3_130 = arith.constant 3 : index
    %c0_131 = arith.constant 0 : index
    %c64_132 = arith.constant 64 : index
    %244 = vector.load %arg13[%c3_130, %c0_131, %c64_132] : memref<4x64x576xbf16, #tpu.memory_space<vmem>>, vector<1x64x64xbf16>
    %245 = vector.shape_cast %244 : vector<1x64x64xbf16> to vector<64x64xbf16>
    %246 = vector.shape_cast %243 : vector<64x64xbf16> to vector<1x64x64xbf16>
    tpu.vector_store %arg13[%c3_130, %c0_131, %c64_132], %246 {strides = array<i32>} : memref<4x64x576xbf16, #tpu.memory_space<vmem>>, vector<1x64x64xbf16>,
    %c7_i32_133 = arith.constant 7 : i32
    %247 = tpu.dynamic_rotate %232 by %c7_i32_133 dim 0 : vector<64x64xf32>, i32 -> vector<64x64xf32>
    %248 = vector.broadcast %11 : vector<64x1xf32> to vector<64x64xf32>
    %249 = arith.mulf %247, %248 : vector<64x64xf32>
    %250 = arith.truncf %249 : vector<64x64xf32> to vector<64x64xbf16>
    %c3_134 = arith.constant 3 : index
    %c0_135 = arith.constant 0 : index
    %c128_136 = arith.constant 128 : index
    %251 = vector.load %arg13[%c3_134, %c0_135, %c128_136] : memref<4x64x576xbf16, #tpu.memory_space<vmem>>, vector<1x64x64xbf16>
    %252 = vector.shape_cast %251 : vector<1x64x64xbf16> to vector<64x64xbf16>
    %253 = vector.shape_cast %250 : vector<64x64xbf16> to vector<1x64x64xbf16>
    tpu.vector_store %arg13[%c3_134, %c0_135, %c128_136], %253 {strides = array<i32>} : memref<4x64x576xbf16, #tpu.memory_space<vmem>>, vector<1x64x64xbf16>,
    %c1_i32_137 = arith.constant 1 : i32
    %254 = tpu.dynamic_rotate %232 by %c1_i32_137 dim 0 : vector<64x64xf32>, i32 -> vector<64x64xf32>
    %255 = vector.broadcast %12 : vector<64x1xf32> to vector<64x64xf32>
    %256 = arith.mulf %254, %255 : vector<64x64xf32>
    %257 = arith.truncf %256 : vector<64x64xf32> to vector<64x64xbf16>
    %c3_138 = arith.constant 3 : index
    %c0_139 = arith.constant 0 : index
    %c192_140 = arith.constant 192 : index
    %258 = vector.load %arg13[%c3_138, %c0_139, %c192_140] : memref<4x64x576xbf16, #tpu.memory_space<vmem>>, vector<1x64x64xbf16>
    %259 = vector.shape_cast %258 : vector<1x64x64xbf16> to vector<64x64xbf16>
    %260 = vector.shape_cast %257 : vector<64x64xbf16> to vector<1x64x64xbf16>
    tpu.vector_store %arg13[%c3_138, %c0_139, %c192_140], %260 {strides = array<i32>} : memref<4x64x576xbf16, #tpu.memory_space<vmem>>, vector<1x64x64xbf16>,
    %261 = arith.truncf %232 : vector<64x64xf32> to vector<64x64xbf16>
    %c3_141 = arith.constant 3 : index
    %c0_142 = arith.constant 0 : index
    %c256_143 = arith.constant 256 : index
    %262 = vector.load %arg13[%c3_141, %c0_142, %c256_143] : memref<4x64x576xbf16, #tpu.memory_space<vmem>>, vector<1x64x64xbf16>
    %263 = vector.shape_cast %262 : vector<1x64x64xbf16> to vector<64x64xbf16>
    %264 = vector.shape_cast %261 : vector<64x64xbf16> to vector<1x64x64xbf16>
    tpu.vector_store %arg13[%c3_141, %c0_142, %c256_143], %264 {strides = array<i32>} : memref<4x64x576xbf16, #tpu.memory_space<vmem>>, vector<1x64x64xbf16>,
    %c63_i32_144 = arith.constant 63 : i32
    %265 = tpu.dynamic_rotate %232 by %c63_i32_144 dim 0 : vector<64x64xf32>, i32 -> vector<64x64xf32>
    %266 = vector.broadcast %13 : vector<64x1xf32> to vector<64x64xf32>
    %267 = arith.mulf %265, %266 : vector<64x64xf32>
    %268 = arith.truncf %267 : vector<64x64xf32> to vector<64x64xbf16>
    %c3_145 = arith.constant 3 : index
    %c0_146 = arith.constant 0 : index
    %c320_147 = arith.constant 320 : index
    %269 = vector.load %arg13[%c3_145, %c0_146, %c320_147] : memref<4x64x576xbf16, #tpu.memory_space<vmem>>, vector<1x64x64xbf16>
    %270 = vector.shape_cast %269 : vector<1x64x64xbf16> to vector<64x64xbf16>
    %271 = vector.shape_cast %268 : vector<64x64xbf16> to vector<1x64x64xbf16>
    tpu.vector_store %arg13[%c3_145, %c0_146, %c320_147], %271 {strides = array<i32>} : memref<4x64x576xbf16, #tpu.memory_space<vmem>>, vector<1x64x64xbf16>,
    %c57_i32_148 = arith.constant 57 : i32
    %272 = tpu.dynamic_rotate %232 by %c57_i32_148 dim 0 : vector<64x64xf32>, i32 -> vector<64x64xf32>
    %273 = vector.broadcast %14 : vector<64x1xf32> to vector<64x64xf32>
    %274 = arith.mulf %272, %273 : vector<64x64xf32>
    %275 = arith.truncf %274 : vector<64x64xf32> to vector<64x64xbf16>
    %c3_149 = arith.constant 3 : index
    %c0_150 = arith.constant 0 : index
    %c384_151 = arith.constant 384 : index
    %276 = vector.load %arg13[%c3_149, %c0_150, %c384_151] : memref<4x64x576xbf16, #tpu.memory_space<vmem>>, vector<1x64x64xbf16>
    %277 = vector.shape_cast %276 : vector<1x64x64xbf16> to vector<64x64xbf16>
    %278 = vector.shape_cast %275 : vector<64x64xbf16> to vector<1x64x64xbf16>
    tpu.vector_store %arg13[%c3_149, %c0_150, %c384_151], %278 {strides = array<i32>} : memref<4x64x576xbf16, #tpu.memory_space<vmem>>, vector<1x64x64xbf16>,
    %c56_i32_152 = arith.constant 56 : i32
    %279 = tpu.dynamic_rotate %232 by %c56_i32_152 dim 0 : vector<64x64xf32>, i32 -> vector<64x64xf32>
    %280 = vector.broadcast %15 : vector<64x1xf32> to vector<64x64xf32>
    %281 = arith.mulf %279, %280 : vector<64x64xf32>
    %282 = arith.truncf %281 : vector<64x64xf32> to vector<64x64xbf16>
    %c3_153 = arith.constant 3 : index
    %c0_154 = arith.constant 0 : index
    %c448_155 = arith.constant 448 : index
    %283 = vector.load %arg13[%c3_153, %c0_154, %c448_155] : memref<4x64x576xbf16, #tpu.memory_space<vmem>>, vector<1x64x64xbf16>
    %284 = vector.shape_cast %283 : vector<1x64x64xbf16> to vector<64x64xbf16>
    %285 = vector.shape_cast %282 : vector<64x64xbf16> to vector<1x64x64xbf16>
    tpu.vector_store %arg13[%c3_153, %c0_154, %c448_155], %285 {strides = array<i32>} : memref<4x64x576xbf16, #tpu.memory_space<vmem>>, vector<1x64x64xbf16>,
    %c55_i32_156 = arith.constant 55 : i32
    %286 = tpu.dynamic_rotate %232 by %c55_i32_156 dim 0 : vector<64x64xf32>, i32 -> vector<64x64xf32>
    %287 = vector.broadcast %16 : vector<64x1xf32> to vector<64x64xf32>
    %288 = arith.mulf %286, %287 : vector<64x64xf32>
    %289 = arith.truncf %288 : vector<64x64xf32> to vector<64x64xbf16>
    %c3_157 = arith.constant 3 : index
    %c0_158 = arith.constant 0 : index
    %c512_159 = arith.constant 512 : index
    %290 = vector.load %arg13[%c3_157, %c0_158, %c512_159] : memref<4x64x576xbf16, #tpu.memory_space<vmem>>, vector<1x64x64xbf16>
    %291 = vector.shape_cast %290 : vector<1x64x64xbf16> to vector<64x64xbf16>
    %292 = vector.shape_cast %289 : vector<64x64xbf16> to vector<1x64x64xbf16>
    tpu.vector_store %arg13[%c3_157, %c0_158, %c512_159], %292 {strides = array<i32>} : memref<4x64x576xbf16, #tpu.memory_space<vmem>>, vector<1x64x64xbf16>,
    %c0_160 = arith.constant 0 : index
    %c0_161 = arith.constant 0 : index
    %293 = vector.load %arg8[%c0_160, %c0_161] : memref<1x64xf32, #tpu.memory_space<vmem>>, vector<1x64xf32>
    %294 = vector.shape_cast %293 : vector<1x64xf32> to vector<64xf32>
    %c0_162 = arith.constant 0 : index
    %c0_163 = arith.constant 0 : index
    %295 = vector.load %arg9[%c0_162, %c0_163] : memref<64x256xbf16, #tpu.memory_space<vmem>>, vector<64x256xbf16>
    %c0_164 = arith.constant 0 : index
    %c0_165 = arith.constant 0 : index
    %296 = vector.load %arg10[%c0_164, %c0_165] : memref<1x256xf32, #tpu.memory_space<vmem>>, vector<1x256xf32>
    %297 = vector.shape_cast %296 : vector<1x256xf32> to vector<256xf32>
    %c0_166 = arith.constant 0 : index
    %c0_167 = arith.constant 0 : index
    %c0_168 = arith.constant 0 : index
    %298 = vector.load %arg13[%c0_166, %c0_167, %c0_168] : memref<4x64x576xbf16, #tpu.memory_space<vmem>>, vector<1x64x576xbf16>
    %299 = vector.shape_cast %298 : vector<1x64x576xbf16> to vector<64x576xbf16>
    %c0_169 = arith.constant 0 : index
    %c0_170 = arith.constant 0 : index
    %c0_171 = arith.constant 0 : index
    %300 = vector.load %arg7[%c0_169, %c0_170, %c0_171] : memref<3x576x64xbf16, #tpu.memory_space<vmem>>, vector<1x576x64xbf16>
    %301 = vector.shape_cast %300 : vector<1x576x64xbf16> to vector<576x64xbf16>
    %cst_172 = arith.constant dense<0.000000e+00> : vector<64x64xf32>
    %302 = tpu.matmul %299, %301, %cst_172 {dimension_numbers = #tpu.dot_dimension_numbers<[1], [0], [0], [1], [0, 0, 1, 1], [], []>} : vector<64x576xbf16>, vector<576x64xbf16>, vector<64x64xf32> -> vector<64x64xf32>
    %c1_173 = arith.constant 1 : index
    %c0_174 = arith.constant 0 : index
    %c0_175 = arith.constant 0 : index
    %303 = vector.load %arg13[%c1_173, %c0_174, %c0_175] : memref<4x64x576xbf16, #tpu.memory_space<vmem>>, vector<1x64x576xbf16>
    %304 = vector.shape_cast %303 : vector<1x64x576xbf16> to vector<64x576xbf16>
    %c1_176 = arith.constant 1 : index
    %c0_177 = arith.constant 0 : index
    %c0_178 = arith.constant 0 : index
    %305 = vector.load %arg7[%c1_176, %c0_177, %c0_178] : memref<3x576x64xbf16, #tpu.memory_space<vmem>>, vector<1x576x64xbf16>
    %306 = vector.shape_cast %305 : vector<1x576x64xbf16> to vector<576x64xbf16>
    %cst_179 = arith.constant dense<0.000000e+00> : vector<64x64xf32>
    %307 = tpu.matmul %304, %306, %cst_179 {dimension_numbers = #tpu.dot_dimension_numbers<[1], [0], [0], [1], [0, 0, 1, 1], [], []>} : vector<64x576xbf16>, vector<576x64xbf16>, vector<64x64xf32> -> vector<64x64xf32>
    %308 = arith.addf %302, %307 : vector<64x64xf32>
    %c2_180 = arith.constant 2 : index
    %c0_181 = arith.constant 0 : index
    %c0_182 = arith.constant 0 : index
    %309 = vector.load %arg13[%c2_180, %c0_181, %c0_182] : memref<4x64x576xbf16, #tpu.memory_space<vmem>>, vector<1x64x576xbf16>
    %310 = vector.shape_cast %309 : vector<1x64x576xbf16> to vector<64x576xbf16>
    %c2_183 = arith.constant 2 : index
    %c0_184 = arith.constant 0 : index
    %c0_185 = arith.constant 0 : index
    %311 = vector.load %arg7[%c2_183, %c0_184, %c0_185] : memref<3x576x64xbf16, #tpu.memory_space<vmem>>, vector<1x576x64xbf16>
    %312 = vector.shape_cast %311 : vector<1x576x64xbf16> to vector<576x64xbf16>
    %cst_186 = arith.constant dense<0.000000e+00> : vector<64x64xf32>
    %313 = tpu.matmul %310, %312, %cst_186 {dimension_numbers = #tpu.dot_dimension_numbers<[1], [0], [0], [1], [0, 0, 1, 1], [], []>} : vector<64x576xbf16>, vector<576x64xbf16>, vector<64x64xf32> -> vector<64x64xf32>
    %314 = arith.addf %308, %313 : vector<64x64xf32>
    %315 = vector.shape_cast %294 : vector<64xf32> to vector<1x64xf32>
    %316 = vector.broadcast %315 : vector<1x64xf32> to vector<64x64xf32>
    %317 = arith.addf %314, %316 : vector<64x64xf32>
    %cst_187 = arith.constant 0.000000e+00 : f32
    %318 = vector.broadcast %cst_187 : f32 to vector<64x64xf32>
    %319 = arith.maximumf %317, %318 : vector<64x64xf32>
    %320 = arith.truncf %319 : vector<64x64xf32> to vector<64x64xbf16>
    %cst_188 = arith.constant dense<0.000000e+00> : vector<64x256xf32>
    %321 = tpu.matmul %320, %295, %cst_188 {dimension_numbers = #tpu.dot_dimension_numbers<[1], [0], [0], [1], [0, 0, 1, 1], [], []>} : vector<64x64xbf16>, vector<64x256xbf16>, vector<64x256xf32> -> vector<64x256xf32>
    %322 = vector.shape_cast %297 : vector<256xf32> to vector<1x256xf32>
    %323 = vector.broadcast %322 : vector<1x256xf32> to vector<64x256xf32>
    %324 = arith.addf %321, %323 : vector<64x256xf32>
    %c0_189 = arith.constant 0 : index
    %c0_190 = arith.constant 0 : index
    %c0_191 = arith.constant 0 : index
    %c0_192 = arith.constant 0 : index
    %325 = vector.load %arg3[%c0_189, %c0_190, %c0_191, %c0_192] : memref<1x2x64x256xbf16, #tpu.memory_space<vmem>>, vector<1x1x64x256xbf16>
    %326 = vector.shape_cast %325 : vector<1x1x64x256xbf16> to vector<64x256xbf16>
    %327 = arith.extf %326 : vector<64x256xbf16> to vector<64x256xf32>
    %328 = arith.addf %324, %327 : vector<64x256xf32>
    %cst_193 = arith.constant 0.000000e+00 : f32
    %329 = vector.broadcast %cst_193 : f32 to vector<64x256xf32>
    %330 = arith.maximumf %328, %329 : vector<64x256xf32>
    %331 = arith.truncf %330 : vector<64x256xf32> to vector<64x256xbf16>
    %c0_194 = arith.constant 0 : index
    %c0_195 = arith.constant 0 : index
    %c0_196 = arith.constant 0 : index
    %c0_197 = arith.constant 0 : index
    %332 = vector.load %arg12[%c0_194, %c0_195, %c0_196, %c0_197] : memref<1x2x64x256xbf16, #tpu.memory_space<vmem>>, vector<1x1x64x256xbf16>
    %333 = vector.shape_cast %332 : vector<1x1x64x256xbf16> to vector<64x256xbf16>
    %334 = vector.shape_cast %331 : vector<64x256xbf16> to vector<1x1x64x256xbf16>
    tpu.vector_store %arg12[%c0_194, %c0_195, %c0_196, %c0_197], %334 {strides = array<i32>} : memref<1x2x64x256xbf16, #tpu.memory_space<vmem>>, vector<1x1x64x256xbf16>,
    %c1_198 = arith.constant 1 : index
    %c0_199 = arith.constant 0 : index
    %c0_200 = arith.constant 0 : index
    %335 = vector.load %arg13[%c1_198, %c0_199, %c0_200] : memref<4x64x576xbf16, #tpu.memory_space<vmem>>, vector<1x64x576xbf16>
    %336 = vector.shape_cast %335 : vector<1x64x576xbf16> to vector<64x576xbf16>
    %c0_201 = arith.constant 0 : index
    %c0_202 = arith.constant 0 : index
    %c0_203 = arith.constant 0 : index
    %337 = vector.load %arg7[%c0_201, %c0_202, %c0_203] : memref<3x576x64xbf16, #tpu.memory_space<vmem>>, vector<1x576x64xbf16>
    %338 = vector.shape_cast %337 : vector<1x576x64xbf16> to vector<576x64xbf16>
    %cst_204 = arith.constant dense<0.000000e+00> : vector<64x64xf32>
    %339 = tpu.matmul %336, %338, %cst_204 {dimension_numbers = #tpu.dot_dimension_numbers<[1], [0], [0], [1], [0, 0, 1, 1], [], []>} : vector<64x576xbf16>, vector<576x64xbf16>, vector<64x64xf32> -> vector<64x64xf32>
    %c2_205 = arith.constant 2 : index
    %c0_206 = arith.constant 0 : index
    %c0_207 = arith.constant 0 : index
    %340 = vector.load %arg13[%c2_205, %c0_206, %c0_207] : memref<4x64x576xbf16, #tpu.memory_space<vmem>>, vector<1x64x576xbf16>
    %341 = vector.shape_cast %340 : vector<1x64x576xbf16> to vector<64x576xbf16>
    %c1_208 = arith.constant 1 : index
    %c0_209 = arith.constant 0 : index
    %c0_210 = arith.constant 0 : index
    %342 = vector.load %arg7[%c1_208, %c0_209, %c0_210] : memref<3x576x64xbf16, #tpu.memory_space<vmem>>, vector<1x576x64xbf16>
    %343 = vector.shape_cast %342 : vector<1x576x64xbf16> to vector<576x64xbf16>
    %cst_211 = arith.constant dense<0.000000e+00> : vector<64x64xf32>
    %344 = tpu.matmul %341, %343, %cst_211 {dimension_numbers = #tpu.dot_dimension_numbers<[1], [0], [0], [1], [0, 0, 1, 1], [], []>} : vector<64x576xbf16>, vector<576x64xbf16>, vector<64x64xf32> -> vector<64x64xf32>
    %345 = arith.addf %339, %344 : vector<64x64xf32>
    %c3_212 = arith.constant 3 : index
    %c0_213 = arith.constant 0 : index
    %c0_214 = arith.constant 0 : index
    %346 = vector.load %arg13[%c3_212, %c0_213, %c0_214] : memref<4x64x576xbf16, #tpu.memory_space<vmem>>, vector<1x64x576xbf16>
    %347 = vector.shape_cast %346 : vector<1x64x576xbf16> to vector<64x576xbf16>
    %c2_215 = arith.constant 2 : index
    %c0_216 = arith.constant 0 : index
    %c0_217 = arith.constant 0 : index
    %348 = vector.load %arg7[%c2_215, %c0_216, %c0_217] : memref<3x576x64xbf16, #tpu.memory_space<vmem>>, vector<1x576x64xbf16>
    %349 = vector.shape_cast %348 : vector<1x576x64xbf16> to vector<576x64xbf16>
    %cst_218 = arith.constant dense<0.000000e+00> : vector<64x64xf32>
    %350 = tpu.matmul %347, %349, %cst_218 {dimension_numbers = #tpu.dot_dimension_numbers<[1], [0], [0], [1], [0, 0, 1, 1], [], []>} : vector<64x576xbf16>, vector<576x64xbf16>, vector<64x64xf32> -> vector<64x64xf32>
    %351 = arith.addf %345, %350 : vector<64x64xf32>
    %352 = vector.shape_cast %294 : vector<64xf32> to vector<1x64xf32>
    %353 = vector.broadcast %352 : vector<1x64xf32> to vector<64x64xf32>
    %354 = arith.addf %351, %353 : vector<64x64xf32>
    %cst_219 = arith.constant 0.000000e+00 : f32
    %355 = vector.broadcast %cst_219 : f32 to vector<64x64xf32>
    %356 = arith.maximumf %354, %355 : vector<64x64xf32>
    %357 = arith.truncf %356 : vector<64x64xf32> to vector<64x64xbf16>
    %cst_220 = arith.constant dense<0.000000e+00> : vector<64x256xf32>
    %358 = tpu.matmul %357, %295, %cst_220 {dimension_numbers = #tpu.dot_dimension_numbers<[1], [0], [0], [1], [0, 0, 1, 1], [], []>} : vector<64x64xbf16>, vector<64x256xbf16>, vector<64x256xf32> -> vector<64x256xf32>
    %359 = vector.shape_cast %297 : vector<256xf32> to vector<1x256xf32>
    %360 = vector.broadcast %359 : vector<1x256xf32> to vector<64x256xf32>
    %361 = arith.addf %358, %360 : vector<64x256xf32>
    %c0_221 = arith.constant 0 : index
    %c1_222 = arith.constant 1 : index
    %c0_223 = arith.constant 0 : index
    %c0_224 = arith.constant 0 : index
    %362 = vector.load %arg3[%c0_221, %c1_222, %c0_223, %c0_224] : memref<1x2x64x256xbf16, #tpu.memory_space<vmem>>, vector<1x1x64x256xbf16>
    %363 = vector.shape_cast %362 : vector<1x1x64x256xbf16> to vector<64x256xbf16>
    %364 = arith.extf %363 : vector<64x256xbf16> to vector<64x256xf32>
    %365 = arith.addf %361, %364 : vector<64x256xf32>
    %cst_225 = arith.constant 0.000000e+00 : f32
    %366 = vector.broadcast %cst_225 : f32 to vector<64x256xf32>
    %367 = arith.maximumf %365, %366 : vector<64x256xf32>
    %368 = arith.truncf %367 : vector<64x256xf32> to vector<64x256xbf16>
    %c0_226 = arith.constant 0 : index
    %c1_227 = arith.constant 1 : index
    %c0_228 = arith.constant 0 : index
    %c0_229 = arith.constant 0 : index
    %369 = vector.load %arg12[%c0_226, %c1_227, %c0_228, %c0_229] : memref<1x2x64x256xbf16, #tpu.memory_space<vmem>>, vector<1x1x64x256xbf16>
    %370 = vector.shape_cast %369 : vector<1x1x64x256xbf16> to vector<64x256xbf16>
    %371 = vector.shape_cast %368 : vector<64x256xbf16> to vector<1x1x64x256xbf16>
    tpu.vector_store %arg12[%c0_226, %c1_227, %c0_228, %c0_229], %371 {strides = array<i32>} : memref<1x2x64x256xbf16, #tpu.memory_space<vmem>>, vector<1x1x64x256xbf16>,
    return
  }
  func.func @transform_0(%arg0: i32, %arg1: i32) -> (i32, i32, i32, i32) {
    %c2_i32 = arith.constant 2 : i32
    %0 = arith.muli %arg1, %c2_i32 : i32
    %c1_i32 = arith.constant 1 : i32
    %1 = arith.subi %0, %c1_i32 : i32
    %c0_i32 = arith.constant 0 : i32
    %2 = arith.maxsi %1, %c0_i32 : i32
    %c0_i32_0 = arith.constant 0 : i32
    %c0_i32_1 = arith.constant 0 : i32
    %c0_i32_2 = arith.constant 0 : i32
    return %arg0, %2, %c0_i32_0, %c0_i32_1 : i32, i32, i32, i32
  }
  func.func @transform_1(%arg0: i32, %arg1: i32) -> (i32, i32, i32, i32) {
    %c0_i32 = arith.constant 0 : i32
    %c0_i32_0 = arith.constant 0 : i32
    %c0_i32_1 = arith.constant 0 : i32
    return %arg0, %arg1, %c0_i32, %c0_i32_0 : i32, i32, i32, i32
  }
  func.func @transform_2(%arg0: i32, %arg1: i32) -> (i32, i32, i32, i32) {
    %c2_i32 = arith.constant 2 : i32
    %0 = arith.muli %arg1, %c2_i32 : i32
    %c2_i32_0 = arith.constant 2 : i32
    %1 = arith.addi %0, %c2_i32_0 : i32
    %c3_i32 = arith.constant 3 : i32
    %2 = arith.minsi %1, %c3_i32 : i32
    %c0_i32 = arith.constant 0 : i32
    %c0_i32_1 = arith.constant 0 : i32
    %c0_i32_2 = arith.constant 0 : i32
    return %arg0, %2, %c0_i32, %c0_i32_1 : i32, i32, i32, i32
  }
  func.func @transform_3(%arg0: i32, %arg1: i32) -> (i32, i32) {
    %c0_i32 = arith.constant 0 : i32
    %c0_i32_0 = arith.constant 0 : i32
    %c0_i32_1 = arith.constant 0 : i32
    return %c0_i32, %c0_i32_0 : i32, i32
  }
  func.func @transform_4(%arg0: i32, %arg1: i32) -> (i32, i32) {
    %c0_i32 = arith.constant 0 : i32
    %c0_i32_0 = arith.constant 0 : i32
    %c0_i32_1 = arith.constant 0 : i32
    return %c0_i32, %c0_i32_0 : i32, i32
  }
  func.func @transform_5(%arg0: i32, %arg1: i32) -> (i32, i32, i32) {
    %c0_i32 = arith.constant 0 : i32
    %c0_i32_0 = arith.constant 0 : i32
    %c0_i32_1 = arith.constant 0 : i32
    %c0_i32_2 = arith.constant 0 : i32
    return %c0_i32, %c0_i32_0, %c0_i32_1 : i32, i32, i32
  }
  func.func @transform_6(%arg0: i32, %arg1: i32) -> (i32, i32) {
    %c0_i32 = arith.constant 0 : i32
    %c0_i32_0 = arith.constant 0 : i32
    %c0_i32_1 = arith.constant 0 : i32
    return %c0_i32, %c0_i32_0 : i32, i32
  }
  func.func @transform_7(%arg0: i32, %arg1: i32) -> (i32, i32) {
    %c0_i32 = arith.constant 0 : i32
    %c0_i32_0 = arith.constant 0 : i32
    %c0_i32_1 = arith.constant 0 : i32
    return %c0_i32, %c0_i32_0 : i32, i32
  }
  func.func @transform_8(%arg0: i32, %arg1: i32) -> (i32, i32) {
    %c0_i32 = arith.constant 0 : i32
    %c0_i32_0 = arith.constant 0 : i32
    %c0_i32_1 = arith.constant 0 : i32
    return %c0_i32, %c0_i32_0 : i32, i32
  }
  func.func @transform_9(%arg0: i32, %arg1: i32) -> (i32, i32) {
    %c0_i32 = arith.constant 0 : i32
    %c0_i32_0 = arith.constant 0 : i32
    %c0_i32_1 = arith.constant 0 : i32
    return %c0_i32, %c0_i32_0 : i32, i32
  }
  func.func @transform_10(%arg0: i32, %arg1: i32) -> (i32, i32, i32, i32) {
    %c0_i32 = arith.constant 0 : i32
    %c0_i32_0 = arith.constant 0 : i32
    %c0_i32_1 = arith.constant 0 : i32
    return %arg0, %arg1, %c0_i32, %c0_i32_0 : i32, i32, i32, i32
  }
}

</mosaic_0001>

<bundles_post_ra>
// kernel: bottleneck_forward.1
= control target key start
LH: loop header
LB: loop body
LE: loop exit
PB: predicated region body
PF: predicated region fallthrough
CT: control target
= control target key end

     0   :  { %15 = vsyncpa [#allocation4], 0  ;;  %s13030_s0 = inlined_call_operand.vmem [shape: bf16[2,4,64,256], index: 0, kind: input, shape index: {}, may-alias: {0,1,2}]   ;;  %s13031_s1 = inlined_call_operand.vmem [shape: bf16[2,4,64,256], index: 1, kind: input, shape index: {}, may-alias: {0,1,2}]   ;;  %s13032_s2 = inlined_call_operand.vmem [shape: bf16[2,4,64,256], index: 2, kind: input, shape index: {}, may-alias: {0,1,2}]   ;;  %s13033_s3 = inlined_call_operand.vmem [shape: bf16[256,64], index: 3, kind: input, shape index: {}]   ;;  %s13034_s4 = inlined_call_operand.vmem [shape: f32[1,64], index: 4, kind: input, shape index: {}]   ;;  %s13035_s5 = inlined_call_operand.vmem [shape: bf16[3,576,64], index: 5, kind: input, shape index: {}]   ;;  %s13036_s6 = inlined_call_operand.vmem [shape: f32[1,64], index: 6, kind: input, shape index: {}]   ;;  %s13037_s7 = inlined_call_operand.vmem [shape: bf16[64,256], index: 7, kind: input, shape index: {}]   ;;  %s13038_s8 = inlined_call_operand.vmem [shape: f32[1,256], index: 8, kind: input, shape index: {}]   ;;  %s13039_s9 = inlined_call_operand.vmem [shape: f32[64,9], index: 9, kind: input, shape index: {}]   ;;  %s13040_s10 = inlined_call_operand.hbm [shape: bf16[2,4,64,256], index: 10, kind: output, shape index: {}]  }
   0x1   :  { %17 = vsyncpa [#allocation4 + $0x1], 0  ;;  %s9520_s13 = smov 0   ;;  %s9522_s14 = smov 0  }
   0x2   :  { %s9524_s15 = smov 0   ;;  %s9526_s16 = smov 0  }
   0x3   :  { %s9528_s17 = smov 0   ;;  %s9530_s18 = smov 0  }
   0x4   :  { %s9532_s19 = smov 0   ;;  %s9534_s20 = smov 0  }
   0x5 LB: > { %13258 = sst [smem:[#allocation6_spill]] %s9444_s18  ;;  %s6845_s21 = sadd.s32 4294967295, %s9452_s20   ;;  %s9452_s20 = sphi %s9534_s20, %s23_s20   ;;  %s9448_s19 = sphi %s9532_s19, %s13596_s19   ;;  %s9444_s18 = sphi %s9530_s18, %s13595_s18   ;;  %s9440_s17 = sphi %s9528_s17, %s13594_s17   ;;  %s9436_s16 = sphi %s9526_s16, %s13593_s16   ;;  %s9432_s15 = sphi %s9524_s15, %s13599_s15   ;;  %s9428_s14 = sphi %s9522_s14, %s13598_s14   ;;  %s9424_s13 = sphi %s9520_s13, %s13597_s13  }
   0x6   : > { %13259 = sst [smem:[#allocation7_spill]] %s9448_s19  ;;  %s6846_s22 = sadd.s32 4294967294, %s9452_s20  }
   0x7   : > { %s32_s23 = sadd.s32 1, %s9444_s18  ;;  %s35_s24 = sadd.s32 1, %s9448_s19 }
   0x8   : > { %p33_p0 = scmp.ge.s32.totalorder %s32_s23, 2  ;;  %p301_p1 = scmp.ne.s32.totalorder %s9432_s15, %s9428_s14 }
   0x9   : > { %p302_p2 = scmp.eq.s32.totalorder %s6845_s21, 3  ;;  %p307_p5 = scmp.ne.s32.totalorder %s9428_s14, %s9424_s13 }
   0xa   : > { %s13601_s23 = smov (%p33_p0, %s32_s23), 0  ;;  %s13603_s24 = smov (!%p33_p0, %s35_s24), %s9448_s19 }
   0xb   : > { %13260 = sst [smem:[#allocation8_spill]] %s13601_s23  ;;  %s287_s25 = ssub.s32 %s9444_s18, %s13601_s23 }
   0xc   : > { %p9571_p3 = por %p302_p2, %p301_p1  ;;  %p37_p4 = scmp.ge.s32.totalorder %s13603_s24, 2 }
   0xd   : > { %p308_p6 = scmp.eq.s32.totalorder %s6846_s22, 3  ;;  %p6855_p7 = scmp.ge.s32.totalorder %s9452_s20, 1 }
   0xe   : > { %s13605_s24 = smov (%p37_p4, %s13603_s24), 0  ;;  %p401_p9 = scmp.lt.s32.totalorder %s9452_s20, 5 }
   0xf   : > { %13262 = sst [smem:[#allocation9_spill]] %s13605_s24  ;;  %p9580_p8 = por %p308_p6, %p307_p5 }
  0x10   : > { %s286_s28 = ssub.s32 %s9448_s19, %s13605_s24  ;;  %s291_s29 = sadd.s32 1, %s9432_s15 }
  0x11   : > { %s288_s30 = sor.u32 %s287_s25, %s286_s28  ;;  %p402_p10 = pnand %p6855_p7, %p401_p9 }
  0x12   : > { %p289_p11 = scmp.eq.s32.totalorder %s288_s30, 0 }
  0x13   : > { %405 = sbr.rel (%p402_p10) target bundleno = 1399 (0x577), region = 60 }
  0x14   : > { %s9589_s11 = scalar_select %p289_p11, %s9432_s15, %s291_s29  }
  0x16   : > { %13264 = sst [smem:[#allocation10_spill]] %s9589_s11 }
  0x18   : > { %v9594_v0 = vld [vmem:[%s13039_s9 + $0x18] sm:$0xff]  ;;  %v9599_v1 = vld [vmem:[%s13039_s9] sm:$0xff]  ;;  %v9454_v3 = vmov 3   ;;  %v9455_v4 = vmov 1   ;;  %s9614_s29 = sshll.u32 %s9436_s16, 1  ;;  %v9628_v6 = vld [vmem:[%s13033_s3 + $0x30] sm:$0xff] }
  0x19   : > { %v9604_v2 = vld [vmem:[%s13033_s3 + $0x38] sm:$0xff]  ;;  %9299 = vset.pattern.permute.xlu2 %v9454_v3  ;;  %9302 = vset.pattern.permute.xlu0 %v9455_v4  ;;  %s9619_s18 = sadd.s32 4294967295, %s9614_s29  ;;  %v9635_v7 = vld [vmem:[%s13033_s3 + $0x70] sm:$0xff]  ;;  %v9641_v8 = vld [vmem:[%s13039_s9 + $0x20] sm:$0xff]  ;;  %s499_s25 = sadd.s32 2, %s9614_s29  ;;  %v9456_v16 = vmov 5  }
  0x1a   : > { %v9611_v5 = vld [vmem:[%s13033_s3 + $0x78] sm:$0xff]  ;;  %9298 = vset.pattern.permute.xlu1 %v9455_v4  ;;  %883 = vperm.xlu0 %9302, %v9594_v0   ;;  %p472_p12 = scmp.gt.s32.totalorder %s9619_s18, 0  ;;  %v9649_v9 = vld [vmem:[%s13039_s9 + $0x8] sm:$0xff]  ;;  %p474_p13 = scmp.lt.s32.totalorder %s9440_s17, 1  ;;  %v9678_v12 = vld [vmem:[%s13033_s3 + $0x20] sm:$0xff]  ;;  %v9457_v50 = vmov 0  }
  0x1b   : > { %1033 = vperm.xlu2 %9299, %v9599_v1   ;;  %871 = vperm.xlu1 %9298, %v9599_v1   ;;  %v9654_v10 = vld [vmem:[%s13033_s3 + $0x28] sm:$0xff]  ;;  %p6859_p0 = scmp.lt.s32.totalorder %s9619_s18, 3  ;;  %p9667_p1 = scmp.lt.s32.totalorder %s499_s25, 3  ;;  %v9686_v13 = vld [vmem:[%s13033_s3 + $0x60] sm:$0xff]  ;;  %v9701_v14 = vld [vmem:[%s13039_s9 + $0x10] sm:$0xff]  ;;  %v9458_v58 = vmov 2  }
  0x1c   : > { %711 = vmatpush.bf16.msra.mxu0 %v9604_v2  ;;  %9200 = vmatpush.bf16.msra.mxu2 %v9604_v2  ;;  %v9663_v11 = vld [vmem:[%s13033_s3 + $0x68] sm:$0xff]  ;;  %s473_s22 = scalar_select %p472_p12, %s9619_s18, 0  ;;  %v9706_v15 = vld [vmem:[%s13033_s3 + $0x18] sm:$0xff]  ;;  %v9730_v18 = vld [vmem:[%s13033_s3 + $0x10] sm:$0xff]  ;;  %vm861_vm2 = vcmask 519168   ;;  %vm950_vm3 = vcmask 1043968  }
  0x1d   : > { %9208 = vmatpush.bf16.msra.mxu3 %v9611_v5  ;;  %740 = vmatpush.bf16.msra.mxu1 %v9611_v5  ;;  %s475_s30 = scalar_select %p474_p13, %s9440_s17, 1  ;;  %v9714_v17 = vld [vmem:[%s13033_s3 + $0x58] sm:$0xff]  ;;  %v9737_v19 = vld [vmem:[%s13033_s3 + $0x50] sm:$0xff]  ;;  %v9744_v20 = vld [vmem:[%s13033_s3 + $0x8] sm:$0xff]  ;;  %vm3402_vm4 = vcmask 523264  }
  0x1e   : > { %s13607_s22 = smov (!%p6859_p0, %s473_s22), 3  ;;  %s13609_s25 = smov (!%p9667_p1, %s499_s25), 3  ;;  %v9751_v21 = vld [vmem:[%s13033_s3 + $0x48] sm:$0xff]  ;;  %v9764_v22 = vld [vmem:[%s13033_s3] sm:$0xff]  ;;  %v9810_v37 = vld [vmem:[%s13039_s9 + $0x30] sm:$0xff] }
  0x1f   : > { %s13611_s25 = smov (!%p9667_p1, %s13609_s25), 3  ;;  %s6864_s21 = sshll.u32 %s13607_s22, 4  ;;  %v9769_v23 = vld [vmem:[%s13033_s3 + $0x40] sm:$0xff]  ;;  %v9795_v36 = vld [vmem:[%s13039_s9 + $0x28] sm:$0xff]  ;;  %v9859_v51 = vld [vmem:[%s13039_s9 + $0x38] sm:$0xff] }
  0x20   : > { %712 = vmatpush.bf16.msra.mxu0 %v9628_v6  ;;  %9201 = vmatpush.bf16.msra.mxu2 %v9628_v6  ;;  %s9708_s19 = sshll.u32 %s475_s30, 6  ;;  %s9716_s23 = sshll.u32 %s13611_s25, 4 }
  0x21   : > { %9209 = vmatpush.bf16.msra.mxu3 %v9635_v7  ;;  %741 = vmatpush.bf16.msra.mxu1 %v9635_v7  ;;  %s508_s22 = sadd.s32 %s9716_s23, %s9708_s19  ;;  %s480_s30 = sadd.s32 %s9708_s19, %s6864_s21 }
  0x22   : > { %887 = vperm.xlu0 %9302, %v9641_v8   ;;  %s6866_s18 = sshll.u32 %s480_s30, 2  ;;  %p490_p2 = scmp.lt.s32.totalorder %s9614_s29, 3 }
  0x23   : > { %1037 = vperm.xlu2 %9299, %v9649_v9   ;;  %875 = vperm.xlu1 %9298, %v9649_v9   ;;  %s9756_s30 = scalar_lea.vmem %s13030_s0, %s6866_s18  ;;  %s6877_s21 = sshll.u32 %s508_s22, 2 }
  0x24   : > { %713 = vmatpush.bf16.msra.mxu0 %v9654_v10  ;;  %9202 = vmatpush.bf16.msra.mxu2 %v9654_v10  ;;  %v6880_v24 = vld [vmem:[%s9756_s30] sm:$0xf]  ;;  %v8824_v25 = vld [vmem:[%s9756_s30 + $0x4] sm:$0xf0]  ;;  %v8827_v28 = vld [vmem:[%s9756_s30 + $0x24] sm:$0xf] }
  0x25   : > { %9210 = vmatpush.bf16.msra.mxu3 %v9663_v11  ;;  %742 = vmatpush.bf16.msra.mxu1 %v9663_v11  ;;  %v6896_v26 = vld [vmem:[%s9756_s30 + $0x20] sm:$0xf]  ;;  %v8828_v27 = vld [vmem:[%s9756_s30 + $0x24] sm:$0xf0]  ;;  %v6898_v29 = vld [vmem:[%s9756_s30 + $0x28] sm:$0xf0]  ;;  %v6881_v30 = vor.u32 %v8824_v25, %v6880_v24 }
  0x26   : > { %v6897_v31 = vor.u32 %v8828_v27, %v6896_v26  ;;  %v6901_v32 = vor.u32 %v8827_v28, %v6898_v29  ;;  %v8823_v33 = vld [vmem:[%s9756_s30 + $0x4] sm:$0xf]  ;;  %v6882_v34 = vld [vmem:[%s9756_s30 + $0x8] sm:$0xf0]  ;;  %v6888_v38 = vld [vmem:[%s9756_s30 + $0x10] sm:$0xf] }
  0x27   : > { %v6885_v35 = vor.u32 %v8823_v33, %v6882_v34  ;;  %v8826_v39 = vld [vmem:[%s9756_s30 + $0x14] sm:$0xf0]  ;;  %v6904_v40 = vld [vmem:[%s9756_s30 + $0x30] sm:$0xf]  ;;  %v8829_v42 = vld [vmem:[%s9756_s30 + $0x34] sm:$0xf] }
  0x28   : > { %714 = vmatpush.bf16.msra.mxu0 %v9678_v12  ;;  %9203 = vmatpush.bf16.msra.mxu2 %v9678_v12  ;;  %v8830_v41 = vld [vmem:[%s9756_s30 + $0x34] sm:$0xf0]  ;;  %v6906_v43 = vld [vmem:[%s9756_s30 + $0x38] sm:$0xf0]  ;;  %s13613_s29 = smov (!%p490_p2, %s9614_s29), 3  ;;  %v6889_v44 = vor.u32 %v8826_v39, %v6888_v38  ;;  %v9459_v25 = vmov 7  }
  0x29   : > { %9211 = vmatpush.bf16.msra.mxu3 %v9686_v13  ;;  %743 = vmatpush.bf16.msra.mxu1 %v9686_v13  ;;  %v6905_v45 = vor.u32 %v8830_v41, %v6904_v40  ;;  %v6909_v46 = vor.u32 %v8829_v42, %v6906_v43  ;;  %v8825_v47 = vld [vmem:[%s9756_s30 + $0x14] sm:$0xf]  ;;  %v6890_v48 = vld [vmem:[%s9756_s30 + $0x18] sm:$0xf0]  ;;  %s6868_s28 = sshll.u32 %s13613_s29, 4  ;;  %p517_p4 = scmp.gt.s32.totalorder %s9436_s16, 0 }
  0x2a   : > { %9307 = vset.pattern.permute.xlu0 %v9456_v16  ;;  %v6893_v49 = vor.u32 %v8825_v47, %v6890_v48  ;;  %s494_s11 = sadd.s32 %s6868_s28, %s9708_s19  ;;  %s9462_s18 = smov 64  }
  0x2b   : > { %9301 = vset.pattern.permute.xlu2 %v9455_v4  ;;  %9300 = vset.pattern.permute.xlu1 %v9456_v16  ;;  %s6870_s29 = sshll.u32 %s494_s11, 2  ;;  %p520_p5 = scmp.lt.s32.totalorder %s9436_s16, 1 }
  0x2c   : > { %1137 = vperm.xlu0 %9307, %v9599_v1   ;;  %879 = vperm.xlu2 %9301, %v9701_v14   ;;  %s9851_s24 = scalar_lea.vmem %s13031_s1, %s6870_s29  ;;  %s9975_s29 = scalar_lea.vmem %s13032_s2, %s6877_s21 }
  0x2d   : > { %1149 = vperm.xlu1 %9300, %v9594_v0   ;;  %715 = vmatpush.bf16.msra.mxu0 %v9706_v15  ;;  %v6976_v52 = vld [vmem:[%s9851_s24] sm:$0xf]  ;;  %v8832_v53 = vld [vmem:[%s9851_s24 + $0x4] sm:$0xf0]  ;;  %v8831_v54 = vld [vmem:[%s9851_s24 + $0x4] sm:$0xf] }
  0x2e   : > { %9204 = vmatpush.bf16.msra.mxu2 %v9706_v15  ;;  %9212 = vmatpush.bf16.msra.mxu3 %v9714_v17  ;;  %v6978_v55 = vld [vmem:[%s9851_s24 + $0x8] sm:$0xf0]  ;;  %v7016_v56 = vld [vmem:[%s9851_s24 + $0x40] sm:$0xf]  ;;  %v8840_v57 = vld [vmem:[%s9851_s24 + $0x44] sm:$0xf0]  ;;  %v6977_v59 = vor.u32 %v8832_v53, %v6976_v52 }
  0x2f   : > { %744 = vmatpush.bf16.msra.mxu1 %v9714_v17  ;;  %v8839_v60 = vld [vmem:[%s9851_s24 + $0x44] sm:$0xf]  ;;  %v7018_v61 = vld [vmem:[%s9851_s24 + $0x48] sm:$0xf0]  ;;  %v6981_v62 = vor.u32 %v8831_v54, %v6978_v55  ;;  %v7017_v63 = vor.u32 %v8840_v57, %v7016_v56  ;;  %v8833_v26 = vld [vmem:[%s9851_s24 + $0x14] sm:$0xf] }
  0x30   : > { %v7021_v24 = vor.u32 %v8839_v60, %v7018_v61  ;;  %v6986_v27 = vld [vmem:[%s9851_s24 + $0x18] sm:$0xf0]  ;;  %v8841_v28 = vld [vmem:[%s9851_s24 + $0x54] sm:$0xf]  ;;  %v7034_v33 = vld [vmem:[%s9851_s24 + $0x68] sm:$0xf0] }
  0x31   : > { %716 = vmatpush.bf16.msra.mxu0 %v9730_v18  ;;  %v7026_v29 = vld [vmem:[%s9851_s24 + $0x58] sm:$0xf0]  ;;  %v8838_v39 = vld [vmem:[%s9851_s24 + $0x34] sm:$0xf0]  ;;  %v8837_v41 = vld [vmem:[%s9851_s24 + $0x34] sm:$0xf] }
  0x32   : > { %9205 = vmatpush.bf16.msra.mxu2 %v9730_v18  ;;  %9213 = vmatpush.bf16.msra.mxu3 %v9737_v19  ;;  %v8846_v40 = vld [vmem:[%s9851_s24 + $0x74] sm:$0xf0]  ;;  %v7048_v55 = vld [vmem:[%s9975_s29] sm:$0xf]  ;;  %v8848_v56 = vld [vmem:[%s9975_s29 + $0x4] sm:$0xf0] }
  0x33   : > { %745 = vmatpush.bf16.msra.mxu1 %v9737_v19  ;;  %v7050_v60 = vld [vmem:[%s9975_s29 + $0x8] sm:$0xf0]  ;;  %s518_s22 = scalar_select %p517_p4, 1, 0 }
  0x34   : > { %1141 = vperm.xlu0 %9307, %v9649_v9   ;;  %9304 = vset.pattern.permute.xlu2 %v9454_v3  ;;  %s10630_s21 = scalar_select %p520_p5, 1, 0 }
  0x35   : > { %9303 = vset.pattern.permute.xlu1 %v9454_v3  ;;  %717 = vmatpush.bf16.msra.mxu0 %v9744_v20  ;;  %s519_s30 = scvt.s32.f32 %s518_s22  ;;  %s9199_s11 = sshll.u32 %s9436_s16, 5 }
  0x36   : > { %9206 = vmatpush.bf16.msra.mxu2 %v9744_v20  ;;  %9214 = vmatpush.bf16.msra.mxu3 %v9751_v21  ;;  %s8801_s19 = sshll.u32 %s9440_s17, 6 }
  0x37   : > { %1045 = vperm.xlu2 %9304, %v9594_v0   ;;  %1041 = vperm.xlu1 %9303, %v9701_v14   ;;  %s6712_s23 = sadd.s32 %s9199_s11, %s8801_s19 }
  0x38   : > { %746 = vmatpush.bf16.msra.mxu1 %v9751_v21  ;;  %s8802_s22 = sshll.u32 %s6712_s23, 2  ;;  %s9378_s23 = scalar_lea.hbm %s13040_s10, 512 }
  0x39   : > { %718 = vmatpush.bf16.msra.mxu0 %v9764_v22 }
  0x3a   : > { %9207 = vmatpush.bf16.msra.mxu2 %v9764_v22  ;;  %9215 = vmatpush.bf16.msra.mxu3 %v9769_v23 }
  0x3c   : > { %747 = vmatpush.bf16.msra.mxu1 %v9769_v23  ;;  %719 = vmatmul.bf16.vlgmr.msra.gmra.mxu0 %v6881_v30 }
  0x3d   : > { %729 = vmatmul.bf16.vlgmr.msra.gmra.mxu2 %v6897_v31  ;;  %758 = vmatmul.bf16.vlgmr.msra.gmra.mxu3 %v6901_v32  ;;  %v7029_v32 = vor.u32 %v8841_v28, %v7026_v29 }
  0x3e   : > { %1472 = vmatpush.bf16.msrb.mxu2 %v9604_v2  ;;  %1501 = vmatpush.bf16.msrb.mxu3 %v9611_v5 }
  0x3f   : > { %1145 = vperm.xlu0 %9307, %v9701_v14   ;;  %1956 = vmatpush.bf16.msrb.mxu0 %v9604_v2 }
  0x40   : > { %9306 = vset.pattern.permute.xlu2 %v9456_v16  ;;  %9305 = vset.pattern.permute.xlu1 %v9456_v16 }
  0x41   : > { %748 = vmatmul.bf16.vlgmr.msra.gmra.mxu1 %v6885_v35  ;;  %1157 = vperm.xlu2 %9306, %v9795_v36  }
  0x42   : > { %1153 = vperm.xlu1 %9305, %v9641_v8   ;;  %1985 = vmatpush.bf16.msrb.mxu1 %v9611_v5 }
  0x43   : > { %1473 = vmatpush.bf16.msrb.mxu2 %v9628_v6  ;;  %1502 = vmatpush.bf16.msrb.mxu3 %v9635_v7 }
  0x44   : > { %1957 = vmatpush.bf16.msrb.mxu0 %v9628_v6 }
  0x46   : > { %1986 = vmatpush.bf16.msrb.mxu1 %v9635_v7 }
  0x47   : > { %1161 = vperm.xlu0 %9307, %v9810_v37   ;;  %1474 = vmatpush.bf16.msrb.mxu2 %v9654_v10 }
  0x48   : > { %1503 = vmatpush.bf16.msrb.mxu3 %v9663_v11  ;;  %1958 = vmatpush.bf16.msrb.mxu0 %v9654_v10 }
  0x49   : > { %9309 = vset.pattern.permute.xlu2 %v9454_v3 }
  0x4a   : > { %9308 = vset.pattern.permute.xlu1 %v9455_v4  ;;  %1987 = vmatpush.bf16.msrb.mxu1 %v9663_v11 }
  0x4b   : > { %1049 = vperm.xlu2 %9309, %v9641_v8   ;;  %891 = vperm.xlu1 %9308, %v9795_v36  }
  0x4c   : > { %1475 = vmatpush.bf16.msrb.mxu2 %v9678_v12  ;;  %1504 = vmatpush.bf16.msrb.mxu3 %v9686_v13 }
  0x4d   : > { %1959 = vmatpush.bf16.msrb.mxu0 %v9678_v12  ;;  %734 = vmatmul.bf16.gmra.mxu2 %v6905_v45  ;;  %v8845_v45 = vld [vmem:[%s9851_s24 + $0x74] sm:$0xf] }
  0x4e   : > { %1988 = vmatpush.bf16.msrb.mxu1 %v9686_v13  ;;  %724 = vmatmul.bf16.gmra.mxu0 %v6889_v44  ;;  %v7002_v44 = vld [vmem:[%s9851_s24 + $0x38] sm:$0xf0] }
  0x4f   : > { %763 = vmatmul.bf16.gmra.mxu3 %v6909_v46  ;;  %9314 = vset.pattern.permute.xlu0 %v9454_v3  ;;  %v7042_v46 = vld [vmem:[%s9851_s24 + $0x78] sm:$0xf0]  ;;  %v7005_v48 = vor.u32 %v8837_v41, %v7002_v44  ;;  %v8854_v44 = vld [vmem:[%s9975_s29 + $0x34] sm:$0xf0] }
  0x50   : > { %1476 = vmatpush.bf16.msrb.mxu2 %v9706_v15  ;;  %1505 = vmatpush.bf16.msrb.mxu3 %v9714_v17 }
  0x51   : > { %1960 = vmatpush.bf16.msrb.mxu0 %v9706_v15  ;;  %1053 = vperm.xlu0 %9314, %v9795_v36  }
  0x52   : > { %753 = vmatmul.bf16.gmra.mxu1 %v6893_v49  ;;  %v7045_v49 = vor.u32 %v8845_v45, %v7042_v46  ;;  %v8853_v46 = vld [vmem:[%s9975_s29 + $0x34] sm:$0xf] }
  0x53   : > { %1989 = vmatpush.bf16.msrb.mxu1 %v9714_v17  ;;  %9311 = vset.pattern.permute.xlu2 %v9457_v50 }
  0x54   : > { %9310 = vset.pattern.permute.xlu1 %v9457_v50  ;;  %812 = vperm.xlu2 %9311, %v9649_v9  }
  0x55   : > { %807 = vperm.xlu1 %9310, %v9599_v1   ;;  %1477 = vmatpush.bf16.msrb.mxu2 %v9730_v18 }
  0x56   : > { %1506 = vmatpush.bf16.msrb.mxu3 %v9737_v19  ;;  %1961 = vmatpush.bf16.msrb.mxu0 %v9730_v18 }
  0x57   : > { %1990 = vmatpush.bf16.msrb.mxu1 %v9737_v19 }
  0x59   : > { %1478 = vmatpush.bf16.msrb.mxu2 %v9744_v20  ;;  %1061 = vperm.xlu0 %9314, %v9859_v51  }
  0x5a   : > { %1507 = vmatpush.bf16.msrb.mxu3 %v9751_v21  ;;  %1962 = vmatpush.bf16.msrb.mxu0 %v9744_v20 }
  0x5b   : > { %1991 = vmatpush.bf16.msrb.mxu1 %v9751_v21 }
  0x5c   : > { %9313 = vset.pattern.permute.xlu2 %v9458_v58 }
  0x5d   : > { %9312 = vset.pattern.permute.xlu1 %v9458_v58  ;;  %1479 = vmatpush.bf16.msrb.mxu2 %v9764_v22 }
  0x5e   : > { %1508 = vmatpush.bf16.msrb.mxu3 %v9769_v23  ;;  %1963 = vmatpush.bf16.msrb.mxu0 %v9764_v22 }
  0x5f   : > { %981 = vperm.xlu2 %9313, %v9649_v9   ;;  %977 = vperm.xlu1 %9312, %v9599_v1  }
  0x60   : > { %1992 = vmatpush.bf16.msrb.mxu1 %v9769_v23  ;;  %1480 = vmatmul.bf16.vlgmr.msrb.gmra.mxu2 %v6977_v59  ;;  %v8847_v59 = vld [vmem:[%s9975_s29 + $0x4] sm:$0xf] }
  0x61   : > { %1509 = vmatmul.bf16.vlgmr.msrb.gmra.mxu3 %v6981_v62  ;;  %1964 = vmatmul.bf16.vlgmr.msrb.gmra.mxu0 %v7017_v63  ;;  %v7053_v63 = vor.u32 %v8847_v59, %v7050_v60 }
  0x62   : > { %2439 = vmatpush.bf16.msra.mxu2 %v9604_v2  ;;  %2468 = vmatpush.bf16.msra.mxu3 %v9611_v5  ;;  %v6984_v2 = vld [vmem:[%s9851_s24 + $0x10] sm:$0xf]  ;;  %v8834_v5 = vld [vmem:[%s9851_s24 + $0x14] sm:$0xf0] }
  0x63   : > { %9323 = vset.pattern.permute.xlu0 %v9459_v25  ;;  %1993 = vmatmul.bf16.vlgmr.msrb.gmra.mxu1 %v7021_v24  ;;  %v6985_v30 = vor.u32 %v8834_v5, %v6984_v2  ;;  %v7056_v5 = vld [vmem:[%s9975_s29 + $0x10] sm:$0xf] }
  0x64   : > { %1281 = vperm.xlu0 %9323, %v9599_v1  }
  0x66   : > { %2440 = vmatpush.bf16.msra.mxu2 %v9628_v6  ;;  %2469 = vmatpush.bf16.msra.mxu3 %v9635_v7  ;;  %v7024_v6 = vld [vmem:[%s9851_s24 + $0x50] sm:$0xf]  ;;  %v8842_v7 = vld [vmem:[%s9851_s24 + $0x54] sm:$0xf0] }
  0x67   : > { %9316 = vset.pattern.permute.xlu2 %v9455_v4  ;;  %9315 = vset.pattern.permute.xlu1 %v9456_v16  ;;  %v6989_v16 = vor.u32 %v8833_v26, %v6986_v27  ;;  %v7025_v31 = vor.u32 %v8842_v7, %v7024_v6  ;;  %v8850_v26 = vld [vmem:[%s9975_s29 + $0x14] sm:$0xf0]  ;;  %v8849_v6 = vld [vmem:[%s9975_s29 + $0x14] sm:$0xf]  ;;  %v7058_v7 = vld [vmem:[%s9975_s29 + $0x18] sm:$0xf0] }
  0x68   : > { %895 = vperm.xlu2 %9316, %v9810_v37   ;;  %1165 = vperm.xlu1 %9315, %v9859_v51   ;;  %v7057_v27 = vor.u32 %v8850_v26, %v7056_v5 }
  0x6a   : > { %2441 = vmatpush.bf16.msra.mxu2 %v9654_v10  ;;  %2470 = vmatpush.bf16.msra.mxu3 %v9663_v11  ;;  %v8836_v10 = vld [vmem:[%s9851_s24 + $0x24] sm:$0xf0]  ;;  %v7032_v11 = vld [vmem:[%s9851_s24 + $0x60] sm:$0xf] }
  0x6c   : > { %1293 = vperm.xlu0 %9323, %v9594_v0  }
  0x6e   : > { %2442 = vmatpush.bf16.msra.mxu2 %v9678_v12  ;;  %2471 = vmatpush.bf16.msra.mxu3 %v9686_v13  ;;  %v8844_v12 = vld [vmem:[%s9851_s24 + $0x64] sm:$0xf0]  ;;  %v8835_v13 = vld [vmem:[%s9851_s24 + $0x24] sm:$0xf] }
  0x6f   : > { %v7033_v35 = vor.u32 %v8844_v12, %v7032_v11  ;;  %v8851_v12 = vld [vmem:[%s9975_s29 + $0x24] sm:$0xf] }
  0x70   : > { %9318 = vset.pattern.permute.xlu2 %v9454_v3  ;;  %9317 = vset.pattern.permute.xlu1 %v9455_v4  ;;  %v6992_v4 = vld [vmem:[%s9851_s24 + $0x20] sm:$0xf] }
  0x71   : > { %1057 = vperm.xlu2 %9318, %v9810_v37   ;;  %899 = vperm.xlu1 %9317, %v9859_v51  }
  0x72   : > { %1485 = vmatmul.bf16.gmra.mxu2 %v6985_v30  ;;  %1514 = vmatmul.bf16.gmra.mxu3 %v6989_v16  ;;  %v13047_v16 = vmov 8  }
  0x73   : > { %1969 = vmatmul.bf16.gmra.mxu0 %v7025_v31  ;;  %1998 = vmatmul.bf16.gmra.mxu1 %v7029_v32 }
  0x74   : > { %9328 = vset.pattern.permute.xlu0 %v9457_v50  ;;  %2443 = vmatpush.bf16.msra.mxu2 %v9706_v15  ;;  %v6993_v15 = vor.u32 %v8836_v10, %v6992_v4  ;;  %v7064_v4 = vld [vmem:[%s9975_s29 + $0x20] sm:$0xf]  ;;  %v8852_v10 = vld [vmem:[%s9975_s29 + $0x24] sm:$0xf0] }
  0x75   : > { %827 = vperm.xlu0 %9328, %v9641_v8   ;;  %2472 = vmatpush.bf16.msra.mxu3 %v9714_v17  ;;  %v9913_v3 = vpop.permute.xlu2 %1033  ;;  %v6994_v17 = vld [vmem:[%s9851_s24 + $0x28] sm:$0xf0] }
  0x76   : > { %13266 = vst [vmem:[#allocation11_spill] sm:$0xff] %v9913_v3 }
  0x78   : > { %2444 = vmatpush.bf16.msra.mxu2 %v9730_v18  ;;  %v8843_v18 = vld [vmem:[%s9851_s24 + $0x64] sm:$0xf] }
  0x79   : > { %9320 = vset.pattern.permute.xlu2 %v9457_v50  ;;  %9319 = vset.pattern.permute.xlu1 %v9457_v50  ;;  %v7037_v38 = vor.u32 %v8843_v18, %v7034_v33 }
  0x7a   : > { %822 = vperm.xlu2 %9320, %v9594_v0   ;;  %817 = vperm.xlu1 %9319, %v9701_v14  }
  0x7b   : > { %2473 = vmatpush.bf16.msra.mxu3 %v9737_v19  ;;  %v6997_v19 = vor.u32 %v8835_v13, %v6994_v17  ;;  %v7066_v13 = vld [vmem:[%s9975_s29 + $0x28] sm:$0xf0]  ;;  %v7065_v17 = vor.u32 %v8852_v10, %v7064_v4 }
  0x7c   : > { %2445 = vmatpush.bf16.msra.mxu2 %v9744_v20  ;;  %v13045_v20 = vmov 6  }
  0x7d   : > { %842 = vperm.xlu0 %9328, %v9859_v51   ;;  %v9931_v34 = vpop.permute.xlu2 %1037 }
  0x7e   : > { %13267 = vst [vmem:[#allocation12_spill] sm:$0xff] %v9931_v34 }
  0x7f   : > { %2474 = vmatpush.bf16.msra.mxu3 %v9751_v21 }
  0x80   : > { %2446 = vmatpush.bf16.msra.mxu2 %v9764_v22  ;;  %v7000_v22 = vld [vmem:[%s9851_s24 + $0x30] sm:$0xf] }
  0x82   : > { %1490 = vmatmul.bf16.gmra.mxu2 %v6993_v15  ;;  %9322 = vset.pattern.permute.xlu2 %v9458_v58  ;;  %v10033_v15 = vld [vmem:[%s13034_s4] ss:$0 sm:$0xff] }
  0x83   : > { %1974 = vmatmul.bf16.gmra.mxu0 %v7033_v35  ;;  %9321 = vset.pattern.permute.xlu1 %v9458_v58 }
  0x84   : > { %989 = vperm.xlu2 %9322, %v9594_v0   ;;  %985 = vperm.xlu1 %9321, %v9701_v14   ;;  %v7040_v0 = vld [vmem:[%s9851_s24 + $0x70] sm:$0xf] }
  0x85   : > { %1519 = vmatmul.bf16.gmra.mxu3 %v6997_v19  ;;  %2003 = vmatmul.bf16.gmra.mxu1 %v7037_v38  ;;  %v7041_v47 = vor.u32 %v8846_v40, %v7040_v0 }
  0x86   : > { %9333 = vset.pattern.permute.xlu0 %v13045_v20  ;;  %2475 = vmatpush.bf16.msra.mxu3 %v9769_v23  ;;  %v9942_v21 = vpop.permute.xlu2 %879  ;;  %v7001_v23 = vor.u32 %v8838_v39, %v7000_v22 }
  0x87   : > { %1225 = vperm.xlu0 %9333, %v9599_v1   ;;  %13268 = vst [vmem:[#allocation13_spill] sm:$0xff] %v9942_v21 }
  0x8c   : > { %993 = vperm.xlu2 %9322, %v9641_v8   ;;  %9324 = vset.pattern.permute.xlu1 %v9459_v25  ;;  %v9952_v42 = vpop.permute.xlu0 %883 }
  0x8d   : > { %1285 = vperm.xlu1 %9324, %v9649_v9   ;;  %13269 = vst [vmem:[#allocation14_spill] sm:$0xff] %v9952_v42  ;;  %v9954_v43 = vpop.permute.xlu1 %871 }
  0x8e   : > { %13270 = vst [vmem:[#allocation15_spill] sm:$0xff] %v9954_v43 }
  0x91   : > { %v9959_v52 = vpop.permute.xlu2 %1045 }
  0x92   : > { %1495 = vmatmul.bf16.gmra.mxu2 %v7001_v23  ;;  %13271 = vst [vmem:[#allocation16_spill] sm:$0xff] %v9959_v52  ;;  %v7072_v23 = vld [vmem:[%s9975_s29 + $0x30] sm:$0xf] }
  0x93   : > { %1979 = vmatmul.bf16.gmra.mxu0 %v7041_v47  ;;  %v7074_v47 = vld [vmem:[%s9975_s29 + $0x38] sm:$0xf0]  ;;  %s522_s29 = scvt.s32.f32 %s10630_s21 }
  0x94   : > { %9327 = vset.pattern.permute.xlu2 %v9459_v25  ;;  %v9965_v53 = vpop.permute.xlu0 %887 }
  0x95   : > { %1524 = vmatmul.bf16.gmra.mxu3 %v7005_v48  ;;  %2008 = vmatmul.bf16.gmra.mxu1 %v7045_v49  ;;  %13272 = vst [vmem:[#allocation17_spill] sm:$0xff] %v9965_v53  ;;  %v9969_v54 = vpop.permute.xlu1 %875  ;;  %v7073_v49 = vor.u32 %v8854_v44, %v7072_v23 }
  0x96   : > { %1289 = vperm.xlu2 %9327, %v9701_v14   ;;  %9325 = vset.pattern.permute.xlu1 %v9457_v50  ;;  %13273 = vst [vmem:[#allocation18_spill] sm:$0xff] %v9969_v54  ;;  %v7049_v14 = vor.u32 %v8848_v56, %v7048_v55  ;;  %v7077_v56 = vor.u32 %v8853_v46, %v7074_v47 }
  0x97   : > { %832 = vperm.xlu1 %9325, %v9795_v36  }
  0x9b   : > { %v9979_v57 = vpop.permute.xlu2 %1157 }
  0x9c   : > { %13274 = vst [vmem:[#allocation19_spill] sm:$0xff] %v9979_v57 }
  0x9e   : > { %9329 = vset.pattern.permute.xlu2 %v9457_v50  ;;  %v9986_v61 = vpop.permute.xlu0 %1137 }
  0x9f   : > { %837 = vperm.xlu2 %9329, %v9810_v37   ;;  %9326 = vset.pattern.permute.xlu1 %v9458_v58  ;;  %13275 = vst [vmem:[#allocation20_spill] sm:$0xff] %v9986_v61  ;;  %v9989_v62 = vpop.permute.xlu1 %1149 }
  0xa0   : > { %997 = vperm.xlu1 %9326, %v9795_v36   ;;  %13276 = vst [vmem:[#allocation21_spill] sm:$0xff] %v9989_v62 }
  0xa2   : > { %2447 = vmatmul.bf16.vlgmr.msra.gmra.mxu2 %v7049_v14 }
  0xa5   : > { %2476 = vmatmul.bf16.vlgmr.msra.gmra.mxu3 %v7053_v63  ;;  %v9991_v50 = vpop.permute.xlu2 %1049 }
  0xa6   : > { %13277 = vst [vmem:[#allocation22_spill] sm:$0xff] %v9991_v50  ;;  %v9994_v24 = vpop.permute.xlu0 %1141 }
  0xa7   : > { %9330 = vset.pattern.permute.xlu2 %v9458_v58  ;;  %13278 = vst [vmem:[#allocation23_spill] sm:$0xff] %v9994_v24  ;;  %v7061_v58 = vor.u32 %v8849_v6, %v7058_v7 }
  0xa8   : > { %1005 = vperm.xlu2 %9330, %v9859_v51   ;;  %1001 = vperm.xlu1 %9326, %v9810_v37  }
  0xa9   : > { %v9998_v2 = vpop.permute.xlu1 %1041 }
  0xaa   : > { %13279 = vst [vmem:[#allocation24_spill] sm:$0xff] %v9998_v2 }
  0xae   : > { %v10004_v28 = vpop.permute.xlu2 %812 }
  0xaf   : > { %13280 = vst [vmem:[#allocation25_spill] sm:$0xff] %v10004_v28 }
  0xb0   : > { %9332 = vset.pattern.permute.xlu2 %v9459_v25  ;;  %9331 = vset.pattern.permute.xlu1 %v9459_v25 }
  0xb1   : > { %1301 = vperm.xlu2 %9332, %v9795_v36   ;;  %1297 = vperm.xlu1 %9331, %v9641_v8   ;;  %v10010_v29 = vpop.permute.xlu0 %1145 }
  0xb2   : > { %13281 = vst [vmem:[#allocation26_spill] sm:$0xff] %v10010_v29  ;;  %2452 = vmatmul.bf16.gmra.mxu2 %v7057_v27 }
  0xb4   : > { %v10012_v30 = vpop.permute.xlu1 %1153 }
  0xb5   : > { %13282 = vst [vmem:[#allocation27_spill] sm:$0xff] %v10012_v30  ;;  %2481 = vmatmul.bf16.gmra.mxu3 %v7061_v58 }
  0xb9   : > { %9335 = vset.pattern.permute.xlu2 %v13047_v16  ;;  %9334 = vset.pattern.permute.xlu1 %v13045_v20  ;;  %v10016_v31 = vpop.permute.xlu2 %981  ;;  %v10020_v8 = vpop.permute.xlu0 %1161 }
  0xba   : > { %13283 = vst [vmem:[#allocation28_spill] sm:$0xff] %v10016_v31  ;;  %1369 = vperm.xlu2 %9335, %v9599_v1   ;;  %1229 = vperm.xlu1 %9334, %v9649_v9   ;;  %v720_v36 = vpop.f32.mrf.mxu0  ;;  %v7069_v1 = vor.u32 %v8851_v12, %v7066_v13  ;;  %v794_v12 = vlaneseq }
  0xbb   : > { %13284 = vst [vmem:[#allocation29_spill] sm:$0xff] %v10020_v8  ;;  %v721_v13 = vadd.f32 %v10033_v15, %v720_v36 }
  0xbc   : > { %v10082_v46 = vshrl.u32 %v794_v12, 7 }
  0xbd   : > { %v10022_v32 = vpop.permute.xlu1 %891 }
  0xbe   : > { %13285 = vst [vmem:[#allocation30_spill] sm:$0xff] %v10022_v32  ;;  %v10026_v11 = vpop.f32.mrf.mxu1  ;;  %vm796_vm0 = vcmp.lt.s32.totalorder %v10082_v46, 1  ;;  %vm967_vm1 = vcmp.lt.s32.totalorder %v10082_v46, 7 }
  0xbf   : > { %v750_v47 = vadd.f32 %v10026_v11, %v721_v13 }
  0xc0   : > { %v730_v18 = vpop.f32.mrf.mxu2  ;;  %v759_v9 = vpop.f32.mrf.mxu3 }
  0xc1   : > { %v731_v33 = vadd.f32 %v10033_v15, %v730_v18  ;;  %v769_v11 = vmax.f32 %v750_v47, 0.0 }
  0xc2   : > { %9337 = vset.pattern.permute.xlu2 %v9459_v25  ;;  %9336 = vset.pattern.permute.xlu1 %v9459_v25  ;;  %v10038_v35 = vpop.permute.xlu2 %895  ;;  %v722_v19 = vpop.f32.mrf.mxu0 }
  0xc3   : > { %13286 = vst [vmem:[#allocation31_spill] sm:$0xff] %v10038_v35  ;;  %1309 = vperm.xlu2 %9337, %v9859_v51   ;;  %1305 = vperm.xlu1 %9336, %v9810_v37   ;;  %v10042_v38 = vadd.f32 %v759_v9, %v731_v33  ;;  %v10044_v22 = vpop.permute.xlu0 %1053  ;;  %v723_v58 = vadd.f32 %v10033_v15, %v722_v19 }
  0xc4   : > { %2457 = vmatmul.bf16.gmra.mxu2 %v7065_v17  ;;  %13287 = vst [vmem:[#allocation32_spill] sm:$0xff] %v10044_v22 }
  0xc5   : > { %2486 = vmatmul.bf16.gmra.mxu3 %v7069_v1  ;;  %v10074_v1 = vstv %s519_s30  ;;  %s6714_s30 = scalar_lea.hbm %s13040_s10, %s8802_s22 }
  0xc6   : > { %v751_v25 = vpop.f32.mrf.mxu1 }
  0xc7   : > { %v10046_v39 = vpop.permute.xlu1 %807  ;;  %v752_v23 = vadd.f32 %v751_v25, %v723_v58 }
  0xc8   : > { %13288 = vst [vmem:[#allocation33_spill] sm:$0xff] %v10046_v39  ;;  %v10048_v0 = vpop.f32.mrf.mxu2  ;;  %v10050_v40 = vpop.f32.mrf.mxu3 }
  0xcb   : > { %v10052_v51 = vpop.permute.xlu2 %1057  ;;  %v725_v41 = vpop.f32.mrf.mxu0  ;;  %9338 = vset.pattern.permute.xlu2 %v13045_v20  ;;  %9340 = vset.pattern.permute.xlu1 %v13047_v16 }
  0xcc   : > { %13289 = vst [vmem:[#allocation34_spill] sm:$0xff] %v10052_v51  ;;  %v10057_v37 = vpop.permute.xlu0 %1061  ;;  %v726_v45 = vadd.f32 %v10033_v15, %v725_v41 }
  0xcd   : > { %13290 = vst [vmem:[#allocation35_spill] sm:$0xff] %v10057_v37 }
  0xcf   : > { %v754_v48 = vpop.f32.mrf.mxu1 }
  0xd0   : > { %v755_v14 = vadd.f32 %v754_v48, %v726_v45  ;;  %v735_v59 = vpop.f32.mrf.mxu2 }
  0xd1   : > { %v10064_v55 = vpop.permute.xlu1 %977  ;;  %v736_v63 = vadd.f32 %v10033_v15, %v735_v59  ;;  %v770_v59 = vmax.f32 %v752_v23, 0.0 }
  0xd2   : > { %v764_v60 = vpop.f32.mrf.mxu3  ;;  %v771_v6 = vmax.f32 %v755_v14, 0.0 }
  0xd3   : > { %v727_v5 = vpop.f32.mrf.mxu0  ;;  %v765_v4 = vadd.f32 %v764_v60, %v736_v63 }
  0xd4   : > { %2462 = vmatmul.bf16.gmra.mxu2 %v7073_v49  ;;  %v10067_v26 = vpop.permute.xlu2 %822  ;;  %v728_v27 = vadd.f32 %v10033_v15, %v727_v5  ;;  %v10077_v18 = vmul.f32 %v10074_v1, %v771_v6 }
  0xd5   : > { %2491 = vmatmul.bf16.gmra.mxu3 %v7077_v56  ;;  %v775_v44 = vmax.f32 %v765_v4, 0.0  ;;  %v10114_v4 = vmul.f32 %v10074_v1, %v770_v59 }
  0xd6   : > { %v10070_v7 = vpop.permute.xlu0 %1281  ;;  %v13051_v14 = vrot.slane %v10077_v18, 7 }
  0xd7   : > { %13291 = vst [vmem:[#allocation36_spill] sm:$0xff] %v10070_v7  ;;  %v756_v10 = vpop.f32.mrf.mxu1  ;;  %v10095_v60 = vmul.f32 %v10074_v1, %v775_v44  ;;  %v13056_v59 = vrot.slane %v10114_v4, 7  ;;  %v960_v37 = vrot.slane %v10114_v4, 1 }
  0xd8   : > { %v757_v17 = vadd.f32 %v756_v10, %v728_v27  ;;  %v737_v41 = vpop.f32.mrf.mxu2  ;;  %13298 = vst [vmem:[#allocation43_spill] sm:$0xff] %v10114_v4 }
  0xd9   : > { %v738_v45 = vadd.f32 %v10033_v15, %v737_v41  ;;  %13295 = vst [vmem:[#allocation40_spill] sm:$0xff] %v10095_v60  ;;  %v13049_v13 = vrot.slane %v10095_v60, 7 }
  0xda   : > { %v772_v9 = vmax.f32 %v757_v17, 0.0  ;;  %v10079_v33 = vpop.permute.xlu1 %1165  ;;  %v766_v19 = vpop.f32.mrf.mxu3 }
  0xdb   : > { %13292 = vst [vmem:[#allocation37_spill] sm:$0xff] %v10079_v33  ;;  %v767_v48 = vadd.f32 %v766_v19, %v738_v45 }
  0xdc   : > { %v10086_v36 = vmul.f32 %v10074_v1, %v772_v9  ;;  %v10121_v9 = vmul.f32 %v10074_v1, %v769_v11 }
  0xdd   : > { %v776_v63 = vmax.f32 %v767_v48, 0.0 }
  0xde   : > { %13293 = vst [vmem:[#allocation38_spill] sm:$0xff] %v10086_v36  ;;  %v10088_v49 = vpop.permute.xlu2 %989  ;;  %v10090_v56 = vpop.permute.xlu0 %1293  ;;  %v13050_v25 = vrot.slane %v10086_v36, 7  ;;  %v786_v19 = vrot.slane %v10121_v9, 7 }
  0xdf   : > { %13294 = vst [vmem:[#allocation39_spill] sm:$0xff] %v10090_v56  ;;  %v10097_v5 = vpop.f32.mrf.mxu0  ;;  %v10111_v58 = vmul.f32 %v10074_v1, %v776_v63  ;;  %v959_v63 = vrot.slane %v10121_v9, 1 }
  0xe0   : > { %v10100_v27 = vpop.f32.mrf.mxu1  ;;  %v10108_v6 = vsel %vm796_vm0, %v13051_v14, %v13050_v25  ;;  %13300 = vst [vmem:[#allocation45_spill] sm:$0xff] %v10121_v9 }
  0xe1   : > { %13296 = vst [vmem:[#allocation41_spill] sm:$0xff] %v10108_v6  ;;  %v793_v17 = vrot.slane %v10111_v58, 7 }
  0xe2   : > { %13297 = vst [vmem:[#allocation42_spill] sm:$0xff] %v10111_v58 }
  0xe3   : > { %v10116_v10 = vpop.permute.xlu1 %899  ;;  %v1481_v12 = vpop.f32.mrf.mxu2  ;;  %v10128_v44 = vsel %vm796_vm0, %v13049_v13, %v793_v17 }
  0xe4   : > { %13299 = vst [vmem:[#allocation44_spill] sm:$0xff] %v10116_v10  ;;  %v1482_v41 = vadd.f32 %v10033_v15, %v1481_v12  ;;  %v1510_v23 = vpop.f32.mrf.mxu3  ;;  %v845_v11 = vmul.f32 %v10046_v39, %v10128_v44 }
  0xe5   : > { %13301 = vst [vmem:[#allocation46_spill] sm:$0xff] %v10128_v44 }
  0xe6   : > { %v1511_v45 = vadd.f32 %v1510_v23, %v1482_v41  ;;  %v10142_v16 = vpop.permute.xlu2 %993  ;;  %v10148_v23 = vsel %vm796_vm0, %v793_v17, %v786_v19  ;;  %v853_v13 = vpack.c.bf16 %v845_v11, %v845_v11  ;;  %v13307_v17 = vrot.slane %v10111_v58, 1 }
  0xe7   : > { %v10131_v47 = vpop.f32.mrf.mxu0  ;;  %v10133_v48 = vpop.permute.xlu0 %827  ;;  %13304 = vst [vmem:[#allocation49_spill] sm:$0xff] %v10142_v16  ;;  %v846_v44 = vmul.f32 %v10004_v28, %v10148_v23 }
  0xe8   : > { %13302 = vst [vmem:[#allocation47_spill] sm:$0xff] %v10133_v48  ;;  %v10140_v20 = vmax.f32 %v1511_v45, 0.0  ;;  %v10144_v41 = vpop.f32.mrf.mxu1  ;;  %v10157_v45 = vsel %vm796_vm0, %v786_v19, %v13056_v59  ;;  %v10166_v11 = vsel %vm967_vm1, %v13307_v17, %v959_v63 }
  0xe9   : > { %13305 = vst [vmem:[#allocation50_spill] sm:$0xff] %v10148_v23 }
  0xea   : > { %13303 = vst [vmem:[#allocation48_spill] sm:$0xff] %v10140_v20  ;;  %v1580_v25 = vmul.f32 %v10140_v20, %v9969_v54  ;;  %v1731_v12 = vpack.c.bf16 %v10140_v20, %v10140_v20  ;;  %v854_v54 = vpack.c.bf16 %v846_v44, %v846_v44 }
  0xeb   : > { %v1483_v14 = vpop.f32.mrf.mxu2  ;;  %13306 = vst [vmem:[#allocation51_spill] sm:$0xff] %v10157_v45 }
  0xec   : > { %862 = vst.msk [vmem:[#allocation2] sm:$0xf] %vm861_vm2, %v853_v13  ;;  %v10170_v6 = vpop.permute.xlu1 %817  ;;  %v1484_v33 = vadd.f32 %v10033_v15, %v1483_v14  ;;  %v1512_v19 = vpop.f32.mrf.mxu3  ;;  %v1588_v59 = vpack.c.bf16 %v1580_v25, %v1580_v25  ;;  %v1008_v13 = vmul.f32 %v10064_v55, %v10166_v11 }
  0xed   : > { %13308 = vst [vmem:[#allocation52_spill] sm:$0xff] %v10166_v11  ;;  %v847_v17 = vmul.f32 %v10170_v6, %v10157_v45 }
  0xee   : > { %13309 = vst [vmem:[#allocation53_spill] sm:$0xff] %v10170_v6  ;;  %v1513_v9 = vadd.f32 %v1512_v19, %v1484_v33  ;;  %1605 = vrot.lane.b32.xlu0 %v1588_v59, %s9462_s18  ;;  %v1016_v56 = vpack.c.bf16 %v1008_v13, %v1008_v13  ;;  %v13076_v19 = vrot.slane %v10140_v20, 1 }
  0xef   : > { %1739 = vst.msk [vmem:[#allocation2 + $0xa8] sm:$0xf] %vm861_vm2, %v1731_v12  ;;  %v10180_v23 = vpop.permute.xlu0 %842  ;;  %v855_v14 = vpack.c.bf16 %v847_v17, %v847_v17  ;;  %v10189_v12 = vsel %vm967_vm1, %v959_v63, %v960_v37 }
  0xf0   : > { %13310 = vst [vmem:[#allocation54_spill] sm:$0xff] %v10180_v23  ;;  %v10183_v25 = vmax.f32 %v1513_v9, 0.0  ;;  %v1970_v8 = vpop.f32.mrf.mxu0  ;;  %v10185_v11 = vpop.permute.xlu2 %1289  ;;  %v1009_v59 = vmul.f32 %v10016_v31, %v10189_v12 }
  0xf1   : > { %863 = vst.msk [vmem:[#allocation2 + $0x14] sm:$0xf] %vm861_vm2, %v854_v54  ;;  %v1999_v33 = vpop.f32.mrf.mxu1  ;;  %v1971_v13 = vadd.f32 %v10033_v15, %v1970_v8 }
  0xf2   : > { %13311 = vst [vmem:[#allocation55_spill] sm:$0xff] %v10185_v11  ;;  %v1581_v54 = vmul.f32 %v10183_v25, %v9942_v21  ;;  %v1539_v9 = vrot.slane %v10183_v25, 7  ;;  %v1636_v63 = vrot.slane %v10183_v25, 1  ;;  %v1017_v17 = vpack.c.bf16 %v1009_v59, %v1009_v59 }
  0xf3   : > { %13312 = vst [vmem:[#allocation56_spill] sm:$0xff] %v10189_v12  ;;  %v13313_v12 = vrot.slane %v10140_v20, 7  ;;  %v2000_v11 = vadd.f32 %v1999_v33, %v1971_v13 }
  0xf4   : > { %1024 = vst.msk [vmem:[#allocation2 + $0x4] sm:$0xf] %vm861_vm2, %v1016_v56  ;;  %v1732_v56 = vpack.c.bf16 %v10183_v25, %v10183_v25  ;;  %v1589_v44 = vpack.c.bf16 %v1581_v54, %v1581_v54  ;;  %v10212_v21 = vsel %vm967_vm1, %v13076_v19, %v1636_v63 }
  0xf5   : > { %864 = vst.msk [vmem:[#allocation2 + $0x28] sm:$0xf] %vm861_vm2, %v855_v14  ;;  %v1552_v14 = vsel %vm796_vm0, %v13313_v12, %v1539_v9  ;;  %v1486_v3 = vpop.f32.mrf.mxu2  ;;  %v1515_v8 = vpop.f32.mrf.mxu3  ;;  %v1747_v45 = vmul.f32 %v10212_v21, %v9986_v61  ;;  %v1652_v19 = vmul.f32 %v10212_v21, %v10016_v31  ;;  %v1827_v61 = vmul.f32 %v10183_v25, %v10070_v7 }
  0xf6   : > { %13314 = vst [vmem:[#allocation57_spill] sm:$0xff] %v10212_v21  ;;  %v1556_v59 = vmul.f32 %v1552_v14, %v10170_v6  ;;  %v1487_v54 = vadd.f32 %v10033_v15, %v1486_v3  ;;  %v10220_v12 = vpop.permute.xlu1 %985  ;;  %1607 = vrot.lane.b32.xlu2 %v1589_v44, %s9462_s18  ;;  %v13316_v3 = vrot.slane %v10077_v18, 1 }
  0xf7   : > { %1740 = vst.msk [vmem:[#allocation2 + $0xbc] sm:$0xf] %vm861_vm2, %v1732_v56  ;;  %v1755_v51 = vpack.c.bf16 %v1747_v45, %v1747_v45  ;;  %v1660_v56 = vpack.c.bf16 %v1652_v19, %v1652_v19  ;;  %v1835_v13 = vpack.c.bf16 %v1827_v61, %v1827_v61 }
  0xf8   : > { %13315 = vst [vmem:[#allocation58_spill] sm:$0xff] %v10220_v12  ;;  %v1564_v36 = vpack.c.bf16 %v1556_v59, %v1556_v59  ;;  %v1516_v6 = vadd.f32 %v1515_v8, %v1487_v54  ;;  %v1972_v22 = vpop.f32.mrf.mxu0  ;;  %v10232_v60 = vsel %vm967_vm1, %v960_v37, %v13316_v3  ;;  %v10245_v37 = vmax.f32 %v2000_v11, 0.0 }
  0xf9   : > { %1025 = vst.msk [vmem:[#allocation2 + $0x18] sm:$0xf] %vm861_vm2, %v1017_v17  ;;  %v1973_v44 = vadd.f32 %v10033_v15, %v1972_v22  ;;  %v10235_v21 = vpop.permute.xlu2 %837  ;;  %v10237_v17 = vpop.permute.xlu0 %1225  ;;  %1771 = vrot.lane.b32.xlu0 %v1755_v51, %s9462_s18  ;;  %v1010_v45 = vmul.f32 %v10220_v12, %v10232_v60 }
  0xfa   : > { %13317 = vst [vmem:[#allocation59_spill] sm:$0xff] %v10232_v60  ;;  %v1532_v25 = vmax.f32 %v1516_v6, 0.0  ;;  %v1803_v33 = vmul.f32 %v1552_v14, %v10237_v17  ;;  %v2001_v19 = vpop.f32.mrf.mxu1 }
  0xfb   : > { %13318 = vst [vmem:[#allocation60_spill] sm:$0xff] %v10235_v21  ;;  %v2002_v22 = vadd.f32 %v2001_v19, %v1973_v44  ;;  %v1018_v8 = vpack.c.bf16 %v1010_v45, %v1010_v45 }
  0xfc   : > { %13319 = vst [vmem:[#allocation61_spill] sm:$0xff] %v10237_v17  ;;  %v1582_v59 = vmul.f32 %v1532_v25, %v9952_v42  ;;  %v1637_v54 = vrot.slane %v1532_v25, 1  ;;  %v1540_v51 = vrot.slane %v1532_v25, 7  ;;  %v1811_v3 = vpack.c.bf16 %v1803_v33, %v1803_v33 }
  0xfd   : > { %1573 = vst.msk [vmem:[#allocation2 + $0xc8] sm:$0xf] %vm861_vm2, %v1564_v36  ;;  %v10248_v36 = vmax.f32 %v2002_v22, 0.0  ;;  %v1488_v7 = vpop.f32.mrf.mxu2  ;;  %v1733_v31 = vpack.c.bf16 %v1532_v25, %v1532_v25  ;;  %v1676_v33 = vmul.f32 %v1552_v14, %v9931_v34 }
  0xfe   : > { %1668 = vst.msk [vmem:[#allocation2 + $0xb8] sm:$0xf] %vm861_vm2, %v1660_v56  ;;  %v1489_v6 = vadd.f32 %v10033_v15, %v1488_v7  ;;  %1851 = vrot.lane.b32.xlu2 %v1835_v13, %s9462_s18  ;;  %v10255_v11 = vsel %vm967_vm1, %v1636_v63, %v1637_v54  ;;  %v10259_v61 = vsel %vm796_vm0, %v1539_v9, %v1540_v51  ;;  %v1517_v56 = vpop.f32.mrf.mxu3 }
  0xff   : > { %13320 = vst [vmem:[#allocation62_spill] sm:$0xff] %v10245_v37  ;;  %v10261_v44 = vpop.permute.xlu1 %1285  ;;  %v1590_v45 = vpack.c.bf16 %v1582_v59, %v1582_v59  ;;  %v1557_v7 = vmul.f32 %v10259_v61, %v10067_v26  ;;  %v1653_v19 = vmul.f32 %v10255_v11, %v10220_v12  ;;  %v13096_v9 = vrot.slane %v10248_v36, 7 }
 0x100   : > { %13321 = vst [vmem:[#allocation63_spill] sm:$0xff] %v10248_v36  ;;  %v1518_v63 = vadd.f32 %v1517_v56, %v1489_v6  ;;  %v1975_v22 = vpop.f32.mrf.mxu0  ;;  %v1828_v13 = vmul.f32 %v1532_v25, %v10261_v44 }
 0x101   : > { %1026 = vst.msk [vmem:[#allocation2 + $0x2c] sm:$0xf] %vm861_vm2, %v1018_v8  ;;  %v13097_v8 = vrot.slane %v10245_v37, 7  ;;  %v1976_v14 = vadd.f32 %v10033_v15, %v1975_v22  ;;  %1609 = vrot.lane.b32.xlu0 %v1590_v45, %s9462_s18  ;;  %v1565_v59 = vpack.c.bf16 %v1557_v7, %v1557_v7  ;;  %v1661_v56 = vpack.c.bf16 %v1653_v19, %v1653_v19 }
 0x102   : > { %13322 = vst [vmem:[#allocation64_spill] sm:$0xff] %v10261_v44  ;;  %v10277_v17 = vpop.permute.xlu2 %1005  ;;  %v2004_v42 = vpop.f32.mrf.mxu1  ;;  %v1836_v6 = vpack.c.bf16 %v1828_v13, %v1828_v13  ;;  %v1684_v45 = vpack.c.bf16 %v1676_v33, %v1676_v33  ;;  %v733_v44 = vadd.f32 %v10033_v15, %v10048_v0  ;;  %v1677_v0 = vmul.f32 %v10259_v61, %v9998_v2 }
 0x103   : > { %1819 = vst.msk [vmem:[#allocation2 + $0xac] sm:$0xf] %vm861_vm2, %v1811_v3  ;;  %v10275_v3 = vmax.f32 %v1518_v63, 0.0  ;;  %v10287_v25 = vadd.f32 %v2004_v42, %v1976_v14  ;;  %v1748_v42 = vmul.f32 %v10255_v11, %v9994_v24 }
 0x104   : > { %1741 = vst.msk [vmem:[#allocation2 + $0xd0] sm:$0xf] %vm861_vm2, %v1733_v31  ;;  %v10285_v31 = vsel %vm796_vm0, %v13097_v8, %v13096_v9  ;;  %1853 = vrot.lane.b32.xlu1 %v1836_v6, %s9462_s18  ;;  %v1685_v36 = vpack.c.bf16 %v1677_v0, %v1677_v0 }
 0x105   : > { %13323 = vst [vmem:[#allocation65_spill] sm:$0xff] %v10277_v17  ;;  %v1638_v7 = vrot.slane %v10275_v3, 1  ;;  %v1541_v63 = vrot.slane %v10275_v3, 7  ;;  %v1491_v19 = vpop.f32.mrf.mxu2  ;;  %v1734_v22 = vpack.c.bf16 %v10275_v3, %v10275_v3 }
 0x106   : > { %13324 = vst [vmem:[#allocation66_spill] sm:$0xff] %v10285_v31  ;;  %v1492_v13 = vadd.f32 %v10033_v15, %v1491_v19  ;;  %1701 = vrot.lane.b32.xlu2 %v1684_v45, %s9462_s18 }
 0x107   : > { %13325 = vst [vmem:[#allocation67_spill] sm:$0xff] %v10287_v25  ;;  %v10302_v33 = vsel %vm967_vm1, %v1637_v54, %v1638_v7  ;;  %v10306_v14 = vsel %vm796_vm0, %v1540_v51, %v1541_v63  ;;  %v1756_v54 = vpack.c.bf16 %v1748_v42, %v1748_v42  ;;  %v13330_v42 = vrot.slane %v10077_v18, 7 }
 0x108   : > { %1574 = vst.msk [vmem:[#allocation2 + $0xdc] sm:$0xf] %vm861_vm2, %v1565_v59  ;;  %v1654_v59 = vmul.f32 %v10302_v33, %v10088_v49  ;;  %v1520_v6 = vpop.f32.mrf.mxu3  ;;  %v1558_v45 = vmul.f32 %v10306_v14, %v10133_v48  ;;  %v762_v48 = vadd.f32 %v10050_v40, %v733_v44 }
 0x109   : > { %1669 = vst.msk [vmem:[#allocation2 + $0xcc] sm:$0xf] %vm861_vm2, %v1661_v56  ;;  %v1749_v56 = vmul.f32 %v10302_v33, %v10010_v29  ;;  %v1521_v19 = vadd.f32 %v1520_v6, %v1492_v13  ;;  %v10315_v9 = vpop.permute.xlu1 %832 }
 0x10a   : > { %13326 = vst [vmem:[#allocation68_spill] sm:$0xff] %v10302_v33  ;;  %v1662_v8 = vpack.c.bf16 %v1654_v59, %v1654_v59  ;;  %v1566_v31 = vpack.c.bf16 %v1558_v45, %v1558_v45  ;;  %v13331_v59 = vrot.slane %v10114_v4, 7  ;;  %v774_v44 = vmax.f32 %v762_v48, 0.0 }
 0x10b   : > { %13327 = vst [vmem:[#allocation69_spill] sm:$0xff] %v10306_v14  ;;  %v10317_v51 = vmax.f32 %v1521_v19, 0.0  ;;  %v10319_v24 = vpop.permute.xlu2 %1301 }
 0x10c   : > { %1742 = vst.msk [vmem:[#allocation2 + $0xe4] sm:$0xf] %vm861_vm2, %v1734_v22  ;;  %1773 = vrot.lane.b32.xlu1 %v1756_v54, %s9462_s18  ;;  %v1757_v22 = vpack.c.bf16 %v1749_v56, %v1749_v56  ;;  %v10333_v45 = vsel %vm796_vm0, %v13331_v59, %v13330_v42  ;;  %v1678_v42 = vmul.f32 %v10306_v14, %v9959_v52 }
 0x10d   : > { %13328 = vst [vmem:[#allocation70_spill] sm:$0xff] %v10315_v9  ;;  %v1493_v33 = vpop.f32.mrf.mxu2  ;;  %v1542_v13 = vrot.slane %v10317_v51, 7  ;;  %v1639_v6 = vrot.slane %v10317_v51, 1  ;;  %v1735_v56 = vpack.c.bf16 %v10317_v51, %v10317_v51  ;;  %v848_v19 = vmul.f32 %v10067_v26, %v10333_v45 }
 0x10e   : > { %13329 = vst [vmem:[#allocation71_spill] sm:$0xff] %v10319_v24  ;;  %1775 = vrot.lane.b32.xlu2 %v1757_v22, %s9462_s18  ;;  %v1686_v40 = vpack.c.bf16 %v1678_v42, %v1678_v42  ;;  %v10398_v42 = vmul.f32 %v10074_v1, %v774_v44 }
 0x10f   : > { %1670 = vst.msk [vmem:[#allocation2 + $0xe0] sm:$0xf] %vm861_vm2, %v1662_v8  ;;  %v1494_v8 = vadd.f32 %v10033_v15, %v1493_v33  ;;  %v10346_v54 = vsel %vm796_vm0, %v1541_v63, %v1542_v13 }
 0x110   : > { %13332 = vst [vmem:[#allocation72_spill] sm:$0xff] %v10333_v45  ;;  %v1522_v33 = vpop.f32.mrf.mxu3  ;;  %v1679_v22 = vmul.f32 %v10346_v54, %v9991_v50  ;;  %v1559_v59 = vmul.f32 %v10346_v54, %v10315_v9  ;;  %v856_v50 = vpack.c.bf16 %v848_v19, %v848_v19 }
 0x111   : > { %1575 = vst.msk [vmem:[#allocation2 + $0xf0] sm:$0xf] %vm861_vm2, %v1566_v31  ;;  %v10350_v31 = vsel %vm967_vm1, %v1638_v7, %v1639_v6  ;;  %v1523_v63 = vadd.f32 %v1522_v33, %v1494_v8  ;;  %v1584_v33 = vmul.f32 %v10317_v51, %v10022_v32 }
 0x112   : > { %13333 = vst [vmem:[#allocation73_spill] sm:$0xff] %v10346_v54  ;;  %v1655_v29 = vmul.f32 %v10350_v31, %v10142_v16  ;;  %v10362_v7 = vpop.permute.xlu1 %997  ;;  %v1687_v24 = vpack.c.bf16 %v1679_v22, %v1679_v22  ;;  %v1567_v25 = vpack.c.bf16 %v1559_v59, %v1559_v59 }
 0x113   : > { %13334 = vst [vmem:[#allocation74_spill] sm:$0xff] %v10350_v31  ;;  %v10364_v4 = vmax.f32 %v1523_v63, 0.0  ;;  %v1592_v44 = vpack.c.bf16 %v1584_v33, %v1584_v33 }
 0x114   : > { %1743 = vst.msk [vmem:[#allocation2 + $0xf8] sm:$0xf] %vm861_vm2, %v1735_v56  ;;  %v1663_v14 = vpack.c.bf16 %v1655_v29, %v1655_v29  ;;  %v10366_v52 = vpop.permute.xlu2 %1369  ;;  %1707 = vrot.lane.b32.xlu0 %v1687_v24, %s9462_s18  ;;  %1703 = vrot.lane.b32.xlu1 %v1685_v36, %s9462_s18  ;;  %v1583_v24 = vmul.f32 %v10275_v3, %v9965_v53 }
 0x115   : > { %13335 = vst [vmem:[#allocation75_spill] sm:$0xff] %v10362_v7  ;;  %v1883_v8 = vmul.f32 %v10255_v11, %v10366_v52  ;;  %v1496_v56 = vpop.f32.mrf.mxu2  ;;  %v1640_v0 = vrot.slane %v10364_v4, 1  ;;  %v1543_v36 = vrot.slane %v10364_v4, 7  ;;  %v1736_v48 = vpack.c.bf16 %v10364_v4, %v10364_v4 }
 0x116   : > { %13336 = vst [vmem:[#allocation76_spill] sm:$0xff] %v10366_v52  ;;  %v1497_v29 = vadd.f32 %v10033_v15, %v1496_v56  ;;  %1705 = vrot.lane.b32.xlu2 %v1686_v40, %s9462_s18  ;;  %v1591_v63 = vpack.c.bf16 %v1583_v24, %v1583_v24 }
 0x117   : > { %1576 = vst.msk [vmem:[#allocation2 + $0x104] sm:$0xf] %vm861_vm2, %v1567_v25  ;;  %v1891_v11 = vpack.c.bf16 %v1883_v8, %v1883_v8  ;;  %v10385_v25 = vsel %vm967_vm1, %v1639_v6, %v1640_v0  ;;  %v10392_v22 = vsel %vm796_vm0, %v1542_v13, %v1543_v36 }
 0x118   : > { %1671 = vst.msk [vmem:[#allocation2 + $0xf4] sm:$0xf] %vm861_vm2, %v1663_v14  ;;  %v773_v14 = vmax.f32 %v10042_v38, 0.0  ;;  %v1525_v19 = vpop.f32.mrf.mxu3  ;;  %v1560_v38 = vmul.f32 %v10392_v22, %v10235_v21 }
 0x119   : > { %865 = vst.msk [vmem:[#allocation2 + $0x3c] sm:$0xf] %vm861_vm2, %v856_v50  ;;  %v1656_v50 = vmul.f32 %v10385_v25, %v10362_v7  ;;  %v1526_v6 = vadd.f32 %v1525_v19, %v1497_v29  ;;  %v13124_v19 = vrot.slane %v10398_v42, 1 }
 0x11a   : > { %13337 = vst [vmem:[#allocation77_spill] sm:$0xff] %v10385_v25  ;;  %v10403_v59 = vpop.permute.xlu1 %1001  ;;  %v1568_v8 = vpack.c.bf16 %v1560_v38, %v1560_v38  ;;  %v10408_v56 = vmul.f32 %v10074_v1, %v773_v14  ;;  %v1750_v14 = vmul.f32 %v10350_v31, %v9989_v62  ;;  %v10451_v31 = vpop.f32.mrf.mxu1 }
 0x11b   : > { %13338 = vst [vmem:[#allocation78_spill] sm:$0xff] %v10392_v22  ;;  %v1664_v40 = vpack.c.bf16 %v1656_v50, %v1656_v50  ;;  %v10405_v13 = vmax.f32 %v1526_v6, 0.0  ;;  %v10418_v50 = vpop.f32.mrf.mxu0 }
 0x11c   : > { %1744 = vst.msk [vmem:[#allocation2 + $0x10c] sm:$0xf] %vm861_vm2, %v1736_v48  ;;  %1611 = vrot.lane.b32.xlu1 %v1591_v63, %s9462_s18  ;;  %v13125_v63 = vrot.slane %v10408_v56, 1  ;;  %v1758_v62 = vpack.c.bf16 %v1750_v14, %v1750_v14  ;;  %v1968_v14 = vadd.f32 %v10033_v15, %v10131_v47  ;;  %v13345_v47 = vrot.slane %v10140_v20, 7 }
 0x11d   : > { %1899 = vst.msk [vmem:[#allocation2 + $0xb0] sm:$0xf] %vm861_vm2, %v1891_v11  ;;  %v1498_v48 = vpop.f32.mrf.mxu2  ;;  %v1586_v29 = vmul.f32 %v10405_v13, %v10116_v10  ;;  %v1641_v11 = vrot.slane %v10405_v13, 1  ;;  %v1544_v24 = vrot.slane %v10405_v13, 7  ;;  %v1737_v33 = vpack.c.bf16 %v10405_v13, %v10405_v13 }
 0x11e   : > { %13339 = vst [vmem:[#allocation79_spill] sm:$0xff] %v10403_v59  ;;  %v1499_v1 = vadd.f32 %v10033_v15, %v1498_v48  ;;  %1613 = vrot.lane.b32.xlu2 %v1592_v44, %s9462_s18 }
 0x11f   : > { %1672 = vst.msk [vmem:[#allocation2 + $0x108] sm:$0xf] %vm861_vm2, %v1664_v40  ;;  %v1594_v6 = vpack.c.bf16 %v1586_v29, %v1586_v29  ;;  %v10428_v38 = vsel %vm796_vm0, %v1543_v36, %v1544_v24  ;;  %v10435_v44 = vsel %vm967_vm1, %v1640_v0, %v1641_v11  ;;  %v10447_v36 = vsel %vm967_vm1, %v13125_v63, %v13124_v19 }
 0x120   : > { %1577 = vst.msk [vmem:[#allocation2 + $0x118] sm:$0xf] %vm861_vm2, %v1568_v8  ;;  %v1527_v40 = vpop.f32.mrf.mxu3  ;;  %v1585_v8 = vmul.f32 %v10364_v4, %v10038_v35  ;;  %v1561_v48 = vmul.f32 %v10428_v38, %v10180_v23  ;;  %v1657_v0 = vmul.f32 %v10435_v44, %v10403_v59 }
 0x121   : > { %13340 = vst [vmem:[#allocation80_spill] sm:$0xff] %v10428_v38  ;;  %v1528_v29 = vadd.f32 %v1527_v40, %v1499_v1  ;;  %1617 = vrot.lane.b32.xlu0 %v1594_v6, %s9462_s18  ;;  %v1013_v1 = vmul.f32 %v10362_v7, %v10447_v36  ;;  %v902_v40 = vmul.f32 %v9954_v43, %v10111_v58 }
 0x122   : > { %13341 = vst [vmem:[#allocation81_spill] sm:$0xff] %v10435_v44  ;;  %v1569_v35 = vpack.c.bf16 %v1561_v48, %v1561_v48  ;;  %v1665_v54 = vpack.c.bf16 %v1657_v0, %v1657_v0  ;;  %v1593_v19 = vpack.c.bf16 %v1585_v8, %v1585_v8  ;;  %v1751_v0 = vmul.f32 %v10385_v25, %v10012_v30 }
 0x123   : > { %1745 = vst.msk [vmem:[#allocation2 + $0x120] sm:$0xf] %vm861_vm2, %v1737_v33  ;;  %v10455_v33 = vmax.f32 %v1528_v29, 0.0  ;;  %v10457_v6 = vpop.permute.xlu1 %1297  ;;  %v910_v8 = vpack.c.bf16 %v902_v40, %v902_v40  ;;  %v1997_v40 = vadd.f32 %v10144_v41, %v1968_v14  ;;  %v13356_v30 = vrot.slane %v10408_v56, 7 }
 0x124   : > { %13342 = vst [vmem:[#allocation82_spill] sm:$0xff] %v10447_v36  ;;  %1777 = vrot.lane.b32.xlu1 %v1758_v62, %s9462_s18  ;;  %v1021_v62 = vpack.c.bf16 %v1013_v1, %v1013_v1  ;;  %v1752_v1 = vmul.f32 %v10435_v44, %v9979_v57  ;;  %v1759_v25 = vpack.c.bf16 %v1751_v0, %v1751_v0 }
 0x125   : > { %13343 = vst [vmem:[#allocation83_spill] sm:$0xff] %v10451_v31  ;;  %v10465_v48 = vpop.f32.mrf.mxu2  ;;  %v1545_v63 = vrot.slane %v10455_v33, 7  ;;  %v1642_v29 = vrot.slane %v10455_v33, 1 }
 0x126   : > { %13344 = vst [vmem:[#allocation84_spill] sm:$0xff] %v10457_v6  ;;  %1615 = vrot.lane.b32.xlu2 %v1593_v19, %s9462_s18  ;;  %v1760_v0 = vpack.c.bf16 %v1752_v1, %v1752_v1 }
 0x127   : > { %1578 = vst.msk [vmem:[#allocation2 + $0x12c] sm:$0xf] %vm861_vm2, %v1569_v35  ;;  %v1966_v35 = vadd.f32 %v10033_v15, %v10097_v5  ;;  %v10479_v10 = vsel %vm796_vm0, %v1545_v63, %v13345_v47  ;;  %v10483_v7 = vsel %vm796_vm0, %v1544_v24, %v1545_v63  ;;  %v13348_v47 = vrot.slane %v10140_v20, 1  ;;  %v10512_v20 = vpop.f32.mrf.mxu1 }
 0x128   : > { %1673 = vst.msk [vmem:[#allocation2 + $0x11c] sm:$0xf] %vm861_vm2, %v1665_v54  ;;  %v10485_v54 = vpop.f32.mrf.mxu0  ;;  %v10487_v19 = vpop.f32.mrf.mxu3  ;;  %v1555_v5 = vmul.f32 %v10479_v10, %v10004_v28  ;;  %v1554_v63 = vmul.f32 %v10483_v7, %v10046_v39 }
 0x129   : > { %13346 = vst [vmem:[#allocation85_spill] sm:$0xff] %v10479_v10  ;;  %926 = vrot.lane.b32.xlu0 %v910_v8, %s9462_s18  ;;  %v10500_v24 = vsel %vm967_vm1, %v1642_v29, %v13348_v47  ;;  %v1995_v44 = vadd.f32 %v10100_v27, %v1966_v35  ;;  %v13355_v27 = vld [vmem:[#allocation38_spill] sm:$0xff] }
 0x12a   : > { %13347 = vst [vmem:[#allocation86_spill] sm:$0xff] %v10483_v7  ;;  %v1563_v57 = vpack.c.bf16 %v1555_v5, %v1555_v5  ;;  %v1562_v41 = vpack.c.bf16 %v1554_v63, %v1554_v63  ;;  %v1651_v14 = vmul.f32 %v10500_v24, %v10064_v55  ;;  %v13353_v63 = vld [vmem:[#allocation40_spill] sm:$0xff]  ;;  %v13357_v36 = vrot.slane %v13355_v27, 7 }
 0x12b   : > { %1029 = vst.msk [vmem:[#allocation2 + $0x68] sm:$0xf] %vm861_vm2, %v1021_v62  ;;  %v10507_v62 = vsel %vm967_vm1, %v1641_v11, %v1642_v29  ;;  %v10521_v29 = vmax.f32 %v1997_v40, 0.0  ;;  %v10543_v8 = vmax.f32 %v1995_v44, 0.0  ;;  %v1738_v44 = vpack.c.bf16 %v10455_v33, %v10455_v33 }
 0x12c   : > { %13349 = vst [vmem:[#allocation87_spill] sm:$0xff] %v10500_v24  ;;  %v10514_v47 = vpop.permute.xlu1 %1229  ;;  %1779 = vrot.lane.b32.xlu1 %v1759_v25, %s9462_s18  ;;  %v1658_v11 = vmul.f32 %v10507_v62, %v10277_v17  ;;  %v1400_v25 = vmul.f32 %v10366_v52, %v10232_v60 }
 0x12d   : > { %13350 = vst [vmem:[#allocation88_spill] sm:$0xff] %v10507_v62  ;;  %v10523_v35 = vpop.f32.mrf.mxu2  ;;  %v1804_v5 = vmul.f32 %v10259_v61, %v10514_v47  ;;  %v10541_v61 = vsel %vm796_vm0, %v13357_v36, %v13356_v30  ;;  %v1579_v30 = vmul.f32 %v10455_v33, %v9954_v43  ;;  %v13364_v43 = vrot.slane %v13353_v63, 1 }
 0x12e   : > { %13351 = vst [vmem:[#allocation89_spill] sm:$0xff] %v10514_v47  ;;  %1781 = vrot.lane.b32.xlu2 %v1760_v0, %s9462_s18  ;;  %v1408_v60 = vpack.c.bf16 %v1400_v25, %v1400_v25  ;;  %v1666_v53 = vpack.c.bf16 %v1658_v11, %v1658_v11  ;;  %v13360_v0 = vrot.slane %v13353_v63, 7  ;;  %v850_v36 = vmul.f32 %v10315_v9, %v10541_v61 }
 0x12f   : > { %1572 = vst.msk [vmem:[#allocation2 + $0xb4] sm:$0xf] %vm861_vm2, %v1563_v57  ;;  %v13354_v57 = vld [vmem:[#allocation32_spill] sm:$0xff]  ;;  %v1812_v47 = vpack.c.bf16 %v1804_v5, %v1804_v5  ;;  %v10569_v5 = vld [vmem:[%s13039_s9 + $0x18] sm:$0xff] }
 0x130   : > { %13352 = vst [vmem:[#allocation90_spill] sm:$0xff] %v10521_v29  ;;  %v1680_v1 = vmul.f32 %v10392_v22, %v13354_v57  ;;  %v13361_v22 = vrot.slane %v10398_v42, 7  ;;  %v10553_v31 = vpop.f32.mrf.mxu3  ;;  %v1982_v25 = vpop.f32.mrf.mxu0 }
 0x131   : > { %1571 = vst.msk [vmem:[#allocation2 + $0xa0] sm:$0xf] %vm861_vm2, %v1562_v41  ;;  %v1659_v41 = vpack.c.bf16 %v1651_v14, %v1651_v14  ;;  %1237 = vperm.xlu0 %9333, %v10569_v5  }
 0x132   : > { %13358 = vst [vmem:[#allocation40_spill] sm:$0xff] %v10541_v61  ;;  %v10551_v40 = vsel %vm796_vm0, %v13361_v22, %v13360_v0  ;;  %v13363_v0 = vrot.slane %v10111_v58, 1  ;;  %v858_v22 = vpack.c.bf16 %v850_v36, %v850_v36  ;;  %v13370_v36 = vrot.slane %v10543_v8, 7 }
 0x133   : > { %13359 = vst [vmem:[#allocation38_spill] sm:$0xff] %v10543_v8  ;;  %v852_v14 = vmul.f32 %v10180_v23, %v10551_v40  ;;  %v13366_v23 = vrot.slane %v10408_v56, 1 }
 0x134   : > { %13362 = vst [vmem:[#allocation91_spill] sm:$0xff] %v10551_v40  ;;  %v10579_v11 = vsel %vm967_vm1, %v13364_v43, %v13363_v0  ;;  %v1587_v43 = vpack.c.bf16 %v1579_v30, %v1579_v30 }
 0x135   : > { %1667 = vst.msk [vmem:[#allocation2 + $0xa4] sm:$0xf] %vm861_vm2, %v1659_v41  ;;  %v1688_v41 = vpack.c.bf16 %v1680_v1, %v1680_v1  ;;  %v1015_v40 = vmul.f32 %v10277_v17, %v10579_v11  ;;  %v860_v30 = vpack.c.bf16 %v852_v14, %v852_v14  ;;  %v2011_v17 = vpop.f32.mrf.mxu1  ;;  %v13373_v14 = vld [vmem:[#allocation51_spill] sm:$0xff] }
 0x136   : > { %1820 = vst.msk [vmem:[#allocation2 + $0xc0] sm:$0xf] %vm861_vm2, %v1812_v47  ;;  %v13367_v47 = vrot.slane %v13355_v27, 1  ;;  %1603 = vrot.lane.b32.xlu2 %v1587_v43, %s9462_s18  ;;  %v13374_v43 = vld [vmem:[#allocation53_spill] sm:$0xff] }
 0x137   : > { %13365 = vst [vmem:[#allocation92_spill] sm:$0xff] %v10579_v11  ;;  %1709 = vrot.lane.b32.xlu1 %v1688_v41, %s9462_s18  ;;  %v1023_v41 = vpack.c.bf16 %v1015_v40, %v1015_v40 }
 0x138   : > { %1416 = vst.msk [vmem:[#allocation2 + $0x10] sm:$0xf] %vm861_vm2, %v1408_v60  ;;  %v10589_v1 = vsel %vm967_vm1, %v13367_v47, %v13366_v23  ;;  %v1983_v23 = vadd.f32 %v10033_v15, %v1982_v25  ;;  %v2453_v47 = vpop.f32.mrf.mxu2  ;;  %v2482_v40 = vpop.f32.mrf.mxu3  ;;  %v1065_v25 = vmul.f32 %v9931_v34, %v13373_v14  ;;  %v13377_v34 = vrot.slane %v10521_v29, 1 }
 0x139   : > { %1674 = vst.msk [vmem:[#allocation2 + $0x130] sm:$0xf] %vm861_vm2, %v1666_v53  ;;  %v1012_v60 = vmul.f32 %v10142_v16, %v10589_v1  ;;  %v13369_v53 = vrot.slane %v10521_v29, 7  ;;  %v2454_v9 = vadd.f32 %v10033_v15, %v2453_v47 }
 0x13a   : > { %13368 = vst [vmem:[#allocation93_spill] sm:$0xff] %v10589_v1  ;;  %v2012_v47 = vadd.f32 %v2011_v17, %v1983_v23  ;;  %v1127_v23 = vpack.c.bf16 %v10111_v58, %v10111_v58 }
 0x13b   : > { %1746 = vst.msk [vmem:[#allocation2 + $0x134] sm:$0xf] %vm861_vm2, %v1738_v44  ;;  %v10603_v0 = vsel %vm796_vm0, %v13370_v36, %v13369_v53  ;;  %v13372_v44 = vld [vmem:[#allocation34_spill] sm:$0xff]  ;;  %v1020_v11 = vpack.c.bf16 %v1012_v60, %v1012_v60  ;;  %v1126_v60 = vpack.c.bf16 %v13353_v63, %v13353_v63  ;;  %v1125_v53 = vpack.c.bf16 %v10398_v42, %v10398_v42 }
 0x13c   : > { %13371 = vst [vmem:[#allocation94_spill] sm:$0xff] %v10603_v0  ;;  %v1681_v1 = vmul.f32 %v10428_v38, %v13372_v44  ;;  %v2040_v36 = vmul.f32 %v10603_v0, %v13374_v43  ;;  %v13375_v38 = vmov 8  }
 0x13d   : > { %867 = vst.msk [vmem:[#allocation2 + $0x64] sm:$0xf] %vm861_vm2, %v858_v22  ;;  %v1124_v22 = vpack.c.bf16 %v10408_v56, %v10408_v56  ;;  %9339 = vset.pattern.permute.xlu0 %v13375_v38 }
 0x13e   : > { %1031 = vst.msk [vmem:[#allocation2 + $0x90] sm:$0xf] %vm861_vm2, %v1023_v41  ;;  %v1689_v0 = vpack.c.bf16 %v1681_v1, %v1681_v1  ;;  %v2048_v17 = vpack.c.bf16 %v2040_v36, %v2040_v36  ;;  %v13376_v41 = vrot.slane %v10245_v37, 1  ;;  %v1073_v1 = vpack.c.bf16 %v1065_v25, %v1065_v25  ;;  %v13382_v25 = vld [vmem:[#allocation11_spill] sm:$0xff] }
 0x13f   : > { %1028 = vst.msk [vmem:[#allocation2 + $0x54] sm:$0xf] %vm861_vm2, %v1020_v11  ;;  %v9350_v11 = vld [vmem:[%s13039_s9 + $0x8] sm:$0xff] }
 0x140   : > { %869 = vst.msk [vmem:[#allocation2 + $0x8c] sm:$0xf] %vm861_vm2, %v860_v30  ;;  %1373 = vperm.xlu0 %9339, %v9350_v11   ;;  %v2483_v30 = vadd.f32 %v2482_v40, %v2454_v9  ;;  %v10644_v44 = vsel %vm967_vm1, %v13377_v34, %v13376_v41  ;;  %1711 = vrot.lane.b32.xlu1 %v1689_v0, %s9462_s18  ;;  %v10653_v40 = vmax.f32 %v2012_v47, 0.0  ;;  %v2455_v36 = vpop.f32.mrf.mxu2  ;;  %v13379_v11 = vrot.slane %v10398_v42, 7 }
 0x141   : > { %1132 = vst.msk [vmem:[#allocation2 + $0x58] sm:$0xf] %vm861_vm2, %v1124_v22  ;;  %v1066_v22 = vmul.f32 %v9998_v2, %v10333_v45  ;;  %v1981_v9 = vadd.f32 %v10033_v15, %v10485_v54  ;;  %v13380_v34 = vrot.slane %v10408_v56, 7  ;;  %v2456_v0 = vadd.f32 %v10033_v15, %v2455_v36  ;;  %1090 = vrot.lane.b32.xlu2 %v1073_v1, %s9462_s18 }
 0x142   : > { %13378 = vst [vmem:[#allocation51_spill] sm:$0xff] %v10644_v44  ;;  %v1675_v54 = vmul.f32 %v10479_v10, %v13382_v25  ;;  %v2137_v47 = vmul.f32 %v10644_v44, %v10220_v12  ;;  %v2499_v41 = vmax.f32 %v2483_v30, 0.0  ;;  %v2029_v15 = vrot.slane %v10653_v40, 7 }
 0x143   : > { %1134 = vst.msk [vmem:[#allocation2 + $0x80] sm:$0xf] %vm861_vm2, %v1126_v60  ;;  %v10661_v60 = vsel %vm796_vm0, %v13380_v34, %v13379_v11  ;;  %v2484_v11 = vpop.f32.mrf.mxu3  ;;  %v1074_v34 = vpack.c.bf16 %v1066_v22, %v1066_v22  ;;  %v2010_v1 = vadd.f32 %v10512_v20, %v1981_v9  ;;  %v10676_v2 = vstv %s522_s29  ;;  %v8970_v22 = vld [vmem:[%s13035_s5 + $0x218] sm:$0xff]  ;;  %v13383_v20 = vld [vmem:[#allocation29_spill] sm:$0xff]  ;;  %s467_s29 = sand.u32 1, %s9428_s14  }
 0x144   : > { %2057 = vst.msk [vmem:[#allocation2 + $0x168] sm:$0xf] %vm861_vm2, %v2048_v17  ;;  %v851_v17 = vmul.f32 %v10235_v21, %v10661_v60  ;;  %v2485_v58 = vadd.f32 %v2484_v11, %v2456_v0  ;;  %v1683_v10 = vpack.c.bf16 %v1675_v54, %v1675_v54  ;;  %v1753_v9 = vmul.f32 %v10507_v62, %v13383_v20  ;;  %v8969_v11 = vld [vmem:[%s13035_s5 + $0x210] sm:$0xff]  ;;  %s6700_s12 = scalar_lea.sflag [#allocation4], %s467_s29 }
 0x145   : > { %13381 = vst [vmem:[#allocation53_spill] sm:$0xff] %v10661_v60  ;;  %3502 = vmatpush.bf16.msrb.mxu3 %v8970_v22  ;;  %v13385_v54 = vrot.slane %v10543_v8, 7 }
 0x146   : > { %1133 = vst.msk [vmem:[#allocation2 + $0x6c] sm:$0xf] %vm861_vm2, %v1125_v53  ;;  %v2145_v53 = vpack.c.bf16 %v2137_v47, %v2137_v47  ;;  %v859_v36 = vpack.c.bf16 %v851_v17, %v851_v17  ;;  %v2500_v30 = vmax.f32 %v2485_v58, 0.0  ;;  %v10699_v47 = vmax.f32 %v2010_v1, 0.0  ;;  %v10716_v1 = vpop.permute.xlu2 %1309 }
 0x147   : > { %1135 = vst.msk [vmem:[#allocation2 + $0x94] sm:$0xf] %vm861_vm2, %v1127_v23  ;;  %v10681_v23 = vmul.f32 %v10676_v2, %v2499_v41  ;;  %v10697_v58 = vsel %vm796_vm0, %v2029_v15, %v13385_v54  ;;  %v10704_v41 = vld [vmem:[%s13039_s9 + $0x10] sm:$0xff]  ;;  %v1761_v22 = vpack.c.bf16 %v1753_v9, %v1753_v9  ;;  %v13389_v54 = vld [vmem:[#allocation39_spill] sm:$0xff] }
 0x148   : > { %1092 = vrot.lane.b32.xlu0 %v1074_v34, %s9462_s18  ;;  %2153 = vst.msk [vmem:[#allocation2 + $0x16c] sm:$0xf] %vm861_vm2, %v2145_v53  ;;  %1699 = vrot.lane.b32.xlu1 %v1683_v10, %s9462_s18  ;;  %v10691_v0 = vmul.f32 %v10676_v2, %v2500_v30  ;;  %v13387_v10 = vld [vmem:[#allocation50_spill] sm:$0xff]  ;;  %v10712_v34 = vpop.f32.mrf.mxu2  ;;  %v1830_v62 = vmul.f32 %v10317_v51, %v13389_v54 }
 0x149   : > { %868 = vst.msk [vmem:[#allocation2 + $0x78] sm:$0xf] %vm861_vm2, %v859_v36  ;;  %1233 = vperm.xlu2 %9338, %v10704_v41   ;;  %v1064_v17 = vmul.f32 %v13382_v25, %v13387_v10  ;;  %v13173_v36 = vrot.slane %v10681_v23, 7  ;;  %v2039_v12 = vmul.f32 %v10697_v58, %v10004_v28  ;;  %3503 = vmatpush.bf16.msrb.mxu3 %v8969_v11  ;;  %v8962_v51 = vld [vmem:[%s13035_s5 + $0x1d8] sm:$0xff]  ;;  %v8968_v10 = vld [vmem:[%s13035_s5 + $0x208] sm:$0xff]  ;;  %v13391_v11 = vrot.slane %v10699_v47, 7 }
 0x14a   : > { %13384 = vst [vmem:[#allocation95_spill] sm:$0xff] %v10691_v0  ;;  %v13172_v53 = vrot.slane %v10691_v0, 7  ;;  %3473 = vmatpush.bf16.msrb.mxu2 %v8962_v51  ;;  %v13398_v0 = vrot.slane %v10521_v29, 1 }
 0x14b   : > { %13386 = vst [vmem:[#allocation96_spill] sm:$0xff] %v10697_v58  ;;  %v10718_v30 = vpop.f32.mrf.mxu3  ;;  %v1072_v9 = vpack.c.bf16 %v1064_v17, %v1064_v17  ;;  %v10744_v54 = vsel %vm796_vm0, %v13391_v11, %v2029_v15  ;;  %v2047_v28 = vpack.c.bf16 %v2039_v12, %v2039_v12  ;;  %v13393_v17 = vld [vmem:[#allocation14_spill] sm:$0xff]  ;;  %v8967_v15 = vld [vmem:[%s13035_s5 + $0x200] sm:$0xff]  ;;  %v2367_v11 = vmul.f32 %v10644_v44, %v10366_v52  ;;  %v8960_v44 = vld [vmem:[%s13035_s5 + $0x1c8] sm:$0xff] }
 0x14c   : > { %13388 = vst [vmem:[#allocation97_spill] sm:$0xff] %v10716_v1  ;;  %v10731_v25 = vsel %vm796_vm0, %v13173_v36, %v13172_v53  ;;  %v1838_v53 = vpack.c.bf16 %v1830_v62, %v1830_v62  ;;  %v8961_v36 = vld [vmem:[%s13035_s5 + $0x1d0] sm:$0xff]  ;;  %v2038_v12 = vmul.f32 %v10744_v54, %v10046_v39  ;;  %v10768_v58 = vld [vmem:[%s13034_s4] ss:$0 sm:$0xff]  ;;  %v13397_v52 = vrot.slane %v10077_v18, 1 }
 0x14d   : > { %13390 = vst [vmem:[#allocation98_spill] sm:$0xff] %v10731_v25  ;;  %3504 = vmatpush.bf16.msrb.mxu3 %v8968_v10  ;;  %v13394_v62 = vld [vmem:[#allocation45_spill] sm:$0xff]  ;;  %v13396_v25 = vrot.slane %v13355_v27, 1  ;;  %v2375_v1 = vpack.c.bf16 %v2367_v11, %v2367_v11 }
 0x14e   : > { %13392 = vst [vmem:[#allocation99_spill] sm:$0xff] %v10744_v54  ;;  %v2046_v10 = vpack.c.bf16 %v2038_v12, %v2038_v12  ;;  %3474 = vmatpush.bf16.msrb.mxu2 %v8961_v36  ;;  %v8966_v36 = vld [vmem:[%s13035_s5 + $0x1f8] sm:$0xff] }
 0x14f   : > { %2056 = vst.msk [vmem:[#allocation2 + $0x154] sm:$0xf] %vm861_vm2, %v2047_v28  ;;  %v10780_v12 = vsel %vm967_vm1, %v13397_v52, %v13396_v25  ;;  %v13399_v52 = vrot.slane %v10543_v8, 1 }
 0x150   : > { %1783 = vrot.lane.b32.xlu0 %v1761_v22, %s9462_s18  ;;  %1088 = vrot.lane.b32.xlu1 %v1072_v9, %s9462_s18  ;;  %v905_v22 = vmul.f32 %v13393_v17, %v10077_v18  ;;  %v13395_v9 = vld [vmem:[#allocation18_spill] sm:$0xff]  ;;  %v2460_v28 = vpop.f32.mrf.mxu2  ;;  %v1608_v20 = vpop.permute.xlu2 %1607  ;;  %2383 = vst.msk [vmem:[#allocation2 + $0x150] sm:$0xf] %vm861_vm2, %v2375_v1  ;;  %v13404_v1 = vld [vmem:[#allocation28_spill] sm:$0xff] }
 0x151   : > { %1857 = vrot.lane.b32.xlu2 %v1838_v53, %s9462_s18  ;;  %v903_v51 = vmul.f32 %v13395_v9, %v13394_v62  ;;  %v2461_v53 = vadd.f32 %v10768_v58, %v2460_v28  ;;  %1629 = vst.msk [vmem:[#allocation2 + $0xc8] sm:$0xf] %vm950_vm3, %v1608_v20  ;;  %3505 = vmatpush.bf16.msrb.mxu3 %v8967_v15  ;;  %v13401_v20 = vrot.slane %v10245_v37, 7  ;;  %v13402_v15 = vrot.slane %v10521_v29, 7  ;;  %v13406_v29 = vld [vmem:[#allocation43_spill] sm:$0xff] }
 0x152   : > { %9341 = vset.pattern.permute.xlu2 %v13375_v38  ;;  %v913_v39 = vpack.c.bf16 %v905_v22, %v905_v22  ;;  %v1011_v22 = vmul.f32 %v10088_v49, %v10780_v12  ;;  %v10796_v25 = vsel %vm967_vm1, %v13399_v52, %v13398_v0  ;;  %2055 = vst.msk [vmem:[#allocation2 + $0x140] sm:$0xf] %vm861_vm2, %v2046_v10  ;;  %v8959_v52 = vld [vmem:[%s13035_s5 + $0x1c0] sm:$0xff]  ;;  %v8965_v10 = vld [vmem:[%s13035_s5 + $0x1f0] sm:$0xff] }
 0x153   : > { %v2489_v54 = vpop.f32.mrf.mxu3  ;;  %v911_v28 = vpack.c.bf16 %v903_v51, %v903_v51  ;;  %13400 = vst [vmem:[#allocation100_spill] sm:$0xff] %v10796_v25  ;;  %v10804_v11 = vsel %vm796_vm0, %v13402_v15, %v13401_v20  ;;  %v2136_v51 = vmul.f32 %v10796_v25, %v13404_v1  ;;  %v1831_v0 = vmul.f32 %v10364_v4, %v10457_v6 }
 0x154   : > { %13403 = vst [vmem:[#allocation101_spill] sm:$0xff] %v10804_v11  ;;  %v2490_v21 = vadd.f32 %v2489_v54, %v2461_v53  ;;  %3475 = vmatpush.bf16.msrb.mxu2 %v8960_v44  ;;  %v2041_v20 = vmul.f32 %v10804_v11, %v10067_v26  ;;  %v13405_v53 = vld [vmem:[#allocation55_spill] sm:$0xff]  ;;  %v13407_v11 = vld [vmem:[#allocation13_spill] sm:$0xff] }
 0x155   : > { %3506 = vmatpush.bf16.msrb.mxu3 %v8966_v36  ;;  %v2144_v54 = vpack.c.bf16 %v2136_v51, %v2136_v51  ;;  %v1829_v4 = vmul.f32 %v10275_v3, %v13405_v53  ;;  %v1839_v25 = vpack.c.bf16 %v1831_v0, %v1831_v0  ;;  %v904_v45 = vmul.f32 %v13407_v11, %v13406_v29 }
 0x156   : > { %v2049_v44 = vpack.c.bf16 %v2041_v20, %v2041_v20  ;;  %v8963_v20 = vld [vmem:[%s13035_s5 + $0x1e0] sm:$0xff] }
 0x157   : > { %2152 = vst.msk [vmem:[#allocation2 + $0x158] sm:$0xf] %vm861_vm2, %v2144_v54  ;;  %v13197_v54 = vrot.slane %v10653_v40, 1 }
 0x158   : > { %932 = vrot.lane.b32.xlu0 %v913_v39, %s9462_s18  ;;  %v1019_v39 = vpack.c.bf16 %v1011_v22, %v1011_v22  ;;  %928 = vrot.lane.b32.xlu1 %v911_v28, %s9462_s18  ;;  %v2463_v22 = vpop.f32.mrf.mxu2  ;;  %v2502_v28 = vmax.f32 %v2490_v21, 0.0  ;;  %v1852_v6 = vpop.permute.xlu2 %1851  ;;  %2058 = vst.msk [vmem:[#allocation2 + $0x17c] sm:$0xf] %vm861_vm2, %v2049_v44  ;;  %v8964_v21 = vld [vmem:[%s13035_s5 + $0x1e8] sm:$0xff]  ;;  %v13410_v44 = vrot.slane %v10398_v42, 1 }
 0x159   : > { %1381 = vperm.xlu2 %9341, %v10569_v5   ;;  %v2464_v15 = vadd.f32 %v10768_v58, %v2463_v22  ;;  %3476 = vmatpush.bf16.msrb.mxu2 %v8959_v52  ;;  %v8958_v5 = vld [vmem:[%s13035_s5 + $0x1b8] sm:$0xff]  ;;  %1875 = vst.msk [vmem:[#allocation2 + $0xac] sm:$0xf] %vm950_vm3, %v1852_v6  ;;  %v912_v52 = vpack.c.bf16 %v904_v45, %v904_v45  ;;  %v8957_v6 = vld [vmem:[%s13035_s5 + $0x1b0] sm:$0xff] }
 0x15a   : > { %1027 = vst.msk [vmem:[#allocation2 + $0x40] sm:$0xf] %vm861_vm2, %v1019_v39  ;;  %3507 = vmatpush.bf16.msrb.mxu3 %v8965_v10  ;;  %v1837_v39 = vpack.c.bf16 %v1829_v4, %v1829_v4  ;;  %v10838_v51 = vmul.f32 %v10676_v2, %v2502_v28  ;;  %v13408_v10 = vmov 6   ;;  %v8946_v45 = vld [vmem:[%s13035_s5 + $0x158] sm:$0xff]  ;;  %v13409_v4 = vrot.slane %v13353_v63, 1 }
 0x15b   : > { %v2492_v36 = vpop.f32.mrf.mxu3  ;;  %3415 = vmatpush.bf16.msra.mxu0 %v8946_v45 }
 0x15c   : > { %v2493_v3 = vadd.f32 %v2492_v36, %v2464_v15  ;;  %v10862_v22 = vsel %vm967_vm1, %v13410_v44, %v13409_v4  ;;  %v13411_v15 = vld [vmem:[#allocation35_spill] sm:$0xff] }
 0x15d   : > { %3477 = vmatpush.bf16.msrb.mxu2 %v8958_v5  ;;  %v1682_v36 = vmul.f32 %v10483_v7, %v13411_v15  ;;  %v13198_v5 = vrot.slane %v10838_v51, 7 }
 0x15e   : > { %v2503_v0 = vmax.f32 %v2493_v3, 0.0  ;;  %3508 = vmatpush.bf16.msrb.mxu3 %v8964_v21  ;;  %v1014_v3 = vmul.f32 %v10403_v59, %v10862_v22 }
 0x15f   : > { %v1690_v44 = vpack.c.bf16 %v1682_v36, %v1682_v36 }
 0x160   : > { %1859 = vrot.lane.b32.xlu0 %v1839_v25, %s9462_s18  ;;  %1855 = vrot.lane.b32.xlu1 %v1837_v39, %s9462_s18  ;;  %v10848_v25 = vmul.f32 %v10676_v2, %v2503_v0  ;;  %v1606_v28 = vpop.permute.xlu0 %1605  ;;  %v1702_v39 = vpop.permute.xlu2 %1701  ;;  %v8956_v0 = vld [vmem:[%s13035_s5 + $0x1a8] sm:$0xff]  ;;  %v1022_v4 = vpack.c.bf16 %v1014_v3, %v1014_v3 }
 0x161   : > { %930 = vrot.lane.b32.xlu2 %v912_v52, %s9462_s18  ;;  %3478 = vmatpush.bf16.msrb.mxu2 %v8957_v6  ;;  %1628 = vst.msk [vmem:[#allocation2 + $0xb4] sm:$0xf] %vm950_vm3, %v1606_v28  ;;  %v9353_v52 = vld [vmem:[%s13039_s9 + $0x28] sm:$0xff]  ;;  %v8945_v6 = vld [vmem:[%s13035_s5 + $0x150] sm:$0xff]  ;;  %v13412_v28 = vrot.slane %v10543_v8, 1 }
 0x162   : > { %9343 = vset.pattern.permute.xlu2 %v13408_v10  ;;  %v13196_v21 = vrot.slane %v10848_v25, 7  ;;  %3509 = vmatpush.bf16.msrb.mxu3 %v8963_v20  ;;  %1724 = vst.msk [vmem:[#allocation2 + $0xb8] sm:$0xf] %vm950_vm3, %v1702_v39  ;;  %v8954_v20 = vld [vmem:[%s13035_s5 + $0x198] sm:$0xff] }
 0x163   : > { %v10899_v39 = vsel %vm967_vm1, %v13197_v54, %v13412_v28  ;;  %3416 = vmatpush.bf16.msra.mxu0 %v8945_v6  ;;  %3444 = vmatpush.bf16.msra.mxu1 %v8954_v20  ;;  %1030 = vst.msk [vmem:[#allocation2 + $0x7c] sm:$0xf] %vm861_vm2, %v1022_v4  ;;  %v8953_v28 = vld [vmem:[%s13035_s5 + $0x190] sm:$0xff] }
 0x164   : > { %v10890_v45 = vsel %vm796_vm0, %v13198_v5, %v13196_v21  ;;  %13413 = vst [vmem:[#allocation28_spill] sm:$0xff] %v10899_v39  ;;  %v13414_v21 = vld [vmem:[#allocation37_spill] sm:$0xff]  ;;  %v2135_v36 = vmul.f32 %v10899_v39, %v10064_v55 }
 0x165   : > { %3479 = vmatpush.bf16.msrb.mxu2 %v8956_v0  ;;  %v1754_v3 = vmul.f32 %v10500_v24, %v13414_v21  ;;  %v8944_v0 = vld [vmem:[%s13035_s5 + $0x148] sm:$0xff]  ;;  %v10924_v54 = vld [vmem:[%s13039_s9 + $0x30] sm:$0xff] }
 0x166   : > { %v2143_v20 = vpack.c.bf16 %v2135_v36, %v2135_v36  ;;  %v13418_v5 = vld [vmem:[#allocation41_spill] sm:$0xff]  ;;  %v13419_v24 = vld [vmem:[#allocation16_spill] sm:$0xff] }
 0x167   : > { %v1762_v4 = vpack.c.bf16 %v1754_v3, %v1754_v3  ;;  %3417 = vmatpush.bf16.msra.mxu0 %v8944_v0  ;;  %3445 = vmatpush.bf16.msra.mxu1 %v8953_v28  ;;  %v13415_v3 = vld [vmem:[#allocation67_spill] sm:$0xff]  ;;  %v1120_v0 = vpack.c.bf16 %v13394_v62, %v13394_v62  ;;  %v1067_v39 = vmul.f32 %v13419_v24, %v13418_v5 }
 0x168   : > { %1389 = vperm.xlu0 %9339, %v9353_v52   ;;  %1377 = vperm.xlu1 %9340, %v10704_v41   ;;  %v8955_v41 = vld [vmem:[%s13035_s5 + $0x1a0] sm:$0xff]  ;;  %v1776_v6 = vpop.permute.xlu2 %1775  ;;  %2151 = vst.msk [vmem:[#allocation2 + $0x144] sm:$0xf] %vm861_vm2, %v2143_v20  ;;  %v10931_v36 = vmax.f32 %v13415_v3, 0.0  ;;  %v2451_v20 = vadd.f32 %v10768_v58, %v10523_v35 }
 0x169   : > { %1713 = vrot.lane.b32.xlu2 %v1690_v44, %s9462_s18  ;;  %3480 = vmatpush.bf16.msrb.mxu2 %v8955_v41  ;;  %1797 = vst.msk [vmem:[#allocation2 + $0xd0] sm:$0xf] %vm950_vm3, %v1776_v6  ;;  %v8943_v44 = vld [vmem:[%s13035_s5 + $0x140] sm:$0xff]  ;;  %v10936_v6 = vpop.permute.xlu1 %1305 }
 0x16a   : > { %13416 = vst [vmem:[#allocation55_spill] sm:$0xff] %v10931_v36  ;;  %v13420_v3 = vld [vmem:[#allocation63_spill] sm:$0xff] }
 0x16b   : > { %v1772_v41 = vpop.permute.xlu0 %1771  ;;  %13417 = vst [vmem:[#allocation43_spill] sm:$0xff] %v10936_v6  ;;  %3418 = vmatpush.bf16.msra.mxu0 %v8943_v44  ;;  %v2480_v44 = vadd.f32 %v10553_v31, %v2451_v20  ;;  %v2122_v24 = vrot.slane %v13420_v3, 1  ;;  %v8941_v31 = vld [vmem:[%s13035_s5 + $0x130] sm:$0xff] }
 0x16c   : > { %1795 = vst.msk [vmem:[#allocation2 + $0xa8] sm:$0xf] %vm950_vm3, %v1772_v41  ;;  %v13203_v41 = vrot.slane %v10931_v36, 1 }
 0x16d   : > { %1128 = vst.msk [vmem:[#allocation2 + $0x8] sm:$0xf] %vm861_vm2, %v1120_v0  ;;  %v10956_v0 = vld [vmem:[%s13039_s9 + $0x38] sm:$0xff]  ;;  %v2498_v62 = vmax.f32 %v2480_v44, 0.0 }
 0x16e   : > { %v10972_v20 = vsel %vm967_vm1, %v2122_v24, %v13203_v41 }
 0x16f   : > { %v2139_v21 = vmul.f32 %v10972_v20, %v10142_v16 }
 0x170   : > { %9345 = vset.pattern.permute.xlu0 %v13408_v10  ;;  %1785 = vrot.lane.b32.xlu1 %v1762_v4, %s9462_s18  ;;  %v8942_v4 = vld [vmem:[%s13035_s5 + $0x138] sm:$0xff]  ;;  %v1706_v28 = vpop.permute.xlu2 %1705 }
 0x171   : > { %1249 = vperm.xlu0 %9345, %v10924_v54   ;;  %9342 = vset.pattern.permute.xlu1 %v13408_v10  ;;  %v2449_v10 = vadd.f32 %v10768_v58, %v10465_v48  ;;  %1726 = vst.msk [vmem:[#allocation2 + $0xe0] sm:$0xf] %vm950_vm3, %v1706_v28  ;;  %v8952_v48 = vld [vmem:[%s13035_s5 + $0x188] sm:$0xff] }
 0x172   : > { %1245 = vperm.xlu2 %9343, %v9353_v52   ;;  %v1075_v52 = vpack.c.bf16 %v1067_v39, %v1067_v39  ;;  %3419 = vmatpush.bf16.msra.mxu0 %v8942_v4  ;;  %v13421_v28 = vld [vmem:[#allocation56_spill] sm:$0xff] }
 0x173   : > { %v1610_v35 = vpop.permute.xlu0 %1609  ;;  %v2478_v39 = vadd.f32 %v10487_v19, %v2449_v10  ;;  %v9356_v19 = vld [vmem:[%s13039_s9 + $0x20] sm:$0xff]  ;;  %3446 = vmatpush.bf16.msra.mxu1 %v8952_v48  ;;  %v2147_v10 = vpack.c.bf16 %v2139_v21, %v2139_v21 }
 0x174   : > { %1630 = vst.msk [vmem:[#allocation2 + $0xdc] sm:$0xf] %vm950_vm3, %v1610_v35  ;;  %v8939_v21 = vld [vmem:[%s13035_s5 + $0x120] sm:$0xff] }
 0x175   : > { %v2497_v41 = vmax.f32 %v2478_v39, 0.0  ;;  %2155 = vst.msk [vmem:[#allocation2 + $0x194] sm:$0xf] %vm861_vm2, %v2147_v10  ;;  %v8951_v48 = vld [vmem:[%s13035_s5 + $0x180] sm:$0xff] }
 0x176   : > { %v1854_v4 = vpop.permute.xlu1 %1853  ;;  %3420 = vmatpush.bf16.msra.mxu0 %v8941_v31  ;;  %v1069_v31 = vmul.f32 %v13354_v57, %v10661_v60  ;;  %v13426_v60 = vld [vmem:[#allocation71_spill] sm:$0xff] }
 0x177   : > { %1876 = vst.msk [vmem:[#allocation2 + $0xc0] sm:$0xf] %vm950_vm3, %v1854_v4  ;;  %v10990_v4 = vmul.f32 %v10676_v2, %v2498_v62  ;;  %v11001_v39 = vmul.f32 %v10676_v2, %v2497_v41  ;;  %v13425_v62 = vrot.slane %v10245_v37, 1  ;;  %v1832_v57 = vmul.f32 %v10405_v13, %v13426_v60  ;;  %3447 = vmatpush.bf16.msra.mxu1 %v8951_v48 }
 0x178   : > { %1094 = vrot.lane.b32.xlu1 %v1075_v52, %s9462_s18  ;;  %v13422_v52 = vld [vmem:[#allocation20_spill] sm:$0xff] }
 0x179   : > { %9346 = vset.pattern.permute.xlu0 %v13375_v38  ;;  %v1168_v35 = vmul.f32 %v13422_v52, %v13421_v28  ;;  %v1614_v52 = vpop.permute.xlu2 %1613  ;;  %13423 = vst [vmem:[#allocation13_spill] sm:$0xff] %v10990_v4  ;;  %v13432_v28 = vld [vmem:[#allocation22_spill] sm:$0xff] }
 0x17a   : > { %1397 = vperm.xlu0 %9346, %v10956_v0   ;;  %9344 = vset.pattern.permute.xlu2 %v13375_v38  ;;  %v8940_v38 = vld [vmem:[%s13035_s5 + $0x128] sm:$0xff]  ;;  %1632 = vst.msk [vmem:[#allocation2 + $0x104] sm:$0xf] %vm950_vm3, %v1614_v52  ;;  %v1077_v52 = vpack.c.bf16 %v1069_v31, %v1069_v31 }
 0x17b   : > { %1385 = vperm.xlu2 %9344, %v9356_v19   ;;  %v1176_v44 = vpack.c.bf16 %v1168_v35, %v1168_v35  ;;  %3421 = vmatpush.bf16.msra.mxu0 %v8940_v38  ;;  %13424 = vst [vmem:[#allocation67_spill] sm:$0xff] %v11001_v39  ;;  %v11007_v35 = vsel %vm967_vm1, %v13425_v62, %v2122_v24  ;;  %v13208_v24 = vrot.slane %v11001_v39, 7  ;;  %v2515_v62 = vrot.slane %v10990_v4, 7 }
 0x17c   : > { %v2138_v41 = vmul.f32 %v11007_v35, %v10088_v49 }
 0x17e   : > { %v1774_v38 = vpop.permute.xlu1 %1773  ;;  %v7162_v10 = vld [vmem:[#allocation2 + $0xbc] sm:$0xf0]  ;;  %v2146_v16 = vpack.c.bf16 %v2138_v41, %v2138_v41 }
 0x17f   : > { %3422 = vmatpush.bf16.msra.mxu0 %v8939_v21  ;;  %1796 = vst.msk [vmem:[#allocation2 + $0xbc] sm:$0xf] %vm950_vm3, %v1774_v38  ;;  %v907_v21 = vmul.f32 %v10022_v32, %v10408_v56  ;;  %v1840_v38 = vpack.c.bf16 %v1832_v57, %v1832_v57  ;;  %v8950_v57 = vld [vmem:[%s13035_s5 + $0x178] sm:$0xff] }
 0x180   : > { %1241 = vperm.xlu1 %9342, %v9356_v19   ;;  %v8920_v19 = vld [vmem:[#allocation2 + $0xac] sm:$0xf]  ;;  %2154 = vst.msk [vmem:[#allocation2 + $0x180] sm:$0xf] %vm861_vm2, %v2146_v16  ;;  %3448 = vmatpush.bf16.msra.mxu1 %v8950_v57  ;;  %v13433_v57 = vrot.slane %v13420_v3, 7 }
 0x181   : > { %v7165_v31 = vor.u32 %v8920_v19, %v7162_v10  ;;  %v1616_v13 = vpop.permute.xlu2 %1615  ;;  %v13428_v19 = vld [vmem:[#allocation83_spill] sm:$0xff]  ;;  %v2026_v10 = vrot.slane %v10931_v36, 7 }
 0x182   : > { %1192 = vrot.lane.b32.xlu0 %v1176_v44, %s9462_s18  ;;  %v2064_v44 = vmul.f32 %v10543_v8, %v13395_v9  ;;  %v1978_v9 = vadd.f32 %v10768_v58, %v10418_v50  ;;  %1633 = vst.msk [vmem:[#allocation2 + $0x118] sm:$0xf] %vm950_vm3, %v1616_v13  ;;  %v13429_v13 = vrot.slane %v10681_v23, 7 }
 0x183   : > { %1098 = vrot.lane.b32.xlu2 %v1077_v52, %s9462_s18  ;;  %3510 = vmatmul.bf16.vlgmr.msrb.gmra.mxu3 %v7165_v31  ;;  %v11028_v52 = vsel %vm796_vm0, %v13208_v24, %v2515_v62  ;;  %v13431_v24 = vld [vmem:[#allocation26_spill] sm:$0xff] }
 0x184   : > { %v2072_v48 = vpack.c.bf16 %v2064_v44, %v2064_v44  ;;  %13427 = vst [vmem:[#allocation63_spill] sm:$0xff] %v11028_v52  ;;  %v2007_v50 = vadd.f32 %v13428_v19, %v1978_v9  ;;  %v915_v44 = vpack.c.bf16 %v907_v21, %v907_v21  ;;  %v11044_v16 = vsel %vm796_vm0, %v2515_v62, %v13429_v13 }
 0x185   : > { %13430 = vst [vmem:[#allocation71_spill] sm:$0xff] %v11044_v16  ;;  %v1170_v8 = vmul.f32 %v13431_v24, %v10780_v12  ;;  %v1068_v21 = vmul.f32 %v13432_v28, %v10541_v61  ;;  %v2533_v41 = vmul.f32 %v11044_v16, %v10067_v26  ;;  %v2532_v31 = vmul.f32 %v11028_v52, %v13374_v43 }
 0x186   : > { %v1708_v9 = vpop.permute.xlu0 %1707  ;;  %v8922_v19 = vld [vmem:[#allocation2 + $0xb8] sm:$0xf0]  ;;  %v2459_v62 = vadd.f32 %v10768_v58, %v10712_v34  ;;  %v11058_v7 = vmax.f32 %v2007_v50, 0.0  ;;  %v11065_v26 = vsel %vm796_vm0, %v13433_v57, %v2026_v10  ;;  %v1833_v34 = vmul.f32 %v10455_v33, %v10936_v6  ;;  %v2465_v6 = vpop.f32.mrf.mxu2 }
 0x187   : > { %1727 = vst.msk [vmem:[#allocation2 + $0xf4] sm:$0xf] %vm950_vm3, %v1708_v9  ;;  %v2541_v24 = vpack.c.bf16 %v2533_v41, %v2533_v41  ;;  %v2540_v43 = vpack.c.bf16 %v2532_v31, %v2532_v31  ;;  %v13434_v9 = vrot.slane %v10990_v4, 1  ;;  %v13435_v50 = vrot.slane %v11001_v39, 1 }
 0x188   : > { %1861 = vrot.lane.b32.xlu1 %v1840_v38, %s9462_s18  ;;  %v7160_v38 = vld [vmem:[#allocation2 + $0xa8] sm:$0xf]  ;;  %v1178_v41 = vpack.c.bf16 %v1170_v8, %v1170_v8  ;;  %v1076_v31 = vpack.c.bf16 %v1068_v21, %v1068_v21  ;;  %v1122_v33 = vpack.c.bf16 %v10077_v18, %v10077_v18  ;;  %v1841_v21 = vpack.c.bf16 %v1833_v34, %v1833_v34 }
 0x189   : > { %v7161_v13 = vor.u32 %v8922_v19, %v7160_v38  ;;  %v1782_v52 = vpop.permute.xlu2 %1781  ;;  %v2488_v19 = vadd.f32 %v10718_v30, %v2459_v62  ;;  %2550 = vst.msk [vmem:[#allocation2 + $0x21c] sm:$0xf] %vm861_vm2, %v2541_v24  ;;  %v13438_v30 = vld [vmem:[#allocation61_spill] sm:$0xff]  ;;  %v2066_v62 = vmul.f32 %v10245_v37, %v13393_v17  ;;  %v2124_v34 = vrot.slane %v11058_v7, 1 }
 0x18a   : > { %2089 = vrot.lane.b32.xlu0 %v2072_v48, %s9462_s18  ;;  %v1704_v48 = vpop.permute.xlu1 %1703  ;;  %1800 = vst.msk [vmem:[#allocation2 + $0x10c] sm:$0xf] %vm950_vm3, %v1782_v52  ;;  %v1256_v52 = vmul.f32 %v13438_v30, %v13373_v14 }
 0x18b   : > { %936 = vrot.lane.b32.xlu2 %v915_v44, %s9462_s18  ;;  %1725 = vst.msk [vmem:[#allocation2 + $0xcc] sm:$0xf] %vm950_vm3, %v1704_v48  ;;  %3481 = vmatmul.bf16.vlgmr.msrb.gmra.mxu2 %v7161_v13  ;;  %v11075_v44 = vsel %vm967_vm1, %v13435_v50, %v13434_v9  ;;  %v13437_v48 = vld [vmem:[#allocation70_spill] sm:$0xff]  ;;  %v1121_v9 = vpack.c.bf16 %v13406_v29, %v13406_v29  ;;  %v13439_v50 = vld [vmem:[#allocation17_spill] sm:$0xff] }
 0x18c   : > { %13436 = vst [vmem:[#allocation83_spill] sm:$0xff] %v11075_v44  ;;  %v2043_v38 = vmul.f32 %v11065_v26, %v13437_v48  ;;  %v2628_v8 = vmul.f32 %v11075_v44, %v13404_v1  ;;  %v2501_v1 = vmax.f32 %v2488_v19, 0.0  ;;  %v1264_v30 = vpack.c.bf16 %v1256_v52, %v1256_v52 }
 0x18d   : > { %2549 = vst.msk [vmem:[#allocation2 + $0x208] sm:$0xf] %vm861_vm2, %v2540_v43  ;;  %v13441_v43 = vld [vmem:[#allocation89_spill] sm:$0xff] }
 0x18e   : > { %v2051_v13 = vpack.c.bf16 %v2043_v38, %v2043_v38  ;;  %1130 = vst.msk [vmem:[#allocation2 + $0x30] sm:$0xf] %vm861_vm2, %v1122_v33  ;;  %v906_v38 = vmul.f32 %v13439_v50, %v13355_v27  ;;  %v2636_v14 = vpack.c.bf16 %v2628_v8, %v2628_v8  ;;  %v13442_v33 = vrot.slane %v11058_v7, 7 }
 0x18f   : > { %1129 = vst.msk [vmem:[#allocation2 + $0x1c] sm:$0xf] %vm861_vm2, %v1121_v9  ;;  %v2074_v8 = vpack.c.bf16 %v2066_v62, %v2066_v62  ;;  %v11126_v9 = vmul.f32 %v10676_v2, %v2501_v1  ;;  %v8949_v62 = vld [vmem:[%s13035_s5 + $0x170] sm:$0xff] }
 0x190   : > { %1096 = vrot.lane.b32.xlu1 %v1076_v31, %s9462_s18  ;;  %v13440_v31 = vld [vmem:[#allocation72_spill] sm:$0xff]  ;;  %2060 = vst.msk [vmem:[#allocation2 + $0x1a4] sm:$0xf] %vm861_vm2, %v2051_v13  ;;  %v11110_v17 = vsel %vm796_vm0, %v2026_v10, %v13442_v33  ;;  %v914_v37 = vpack.c.bf16 %v906_v38, %v906_v38  ;;  %v13446_v10 = vrot.slane %v10699_v47, 1  ;;  %v13447_v38 = vld [vmem:[#allocation95_spill] sm:$0xff]  ;;  %3449 = vmatpush.bf16.msra.mxu1 %v8949_v62 }
 0x191   : > { %v1257_v57 = vmul.f32 %v13441_v43, %v13440_v31  ;;  %13443 = vst [vmem:[#allocation70_spill] sm:$0xff] %v11110_v17  ;;  %v13444_v31 = vld [vmem:[#allocation47_spill] sm:$0xff]  ;;  %v1604_v19 = vpop.permute.xlu2 %1603  ;;  %v8921_v1 = vld [vmem:[#allocation2 + $0xb0] sm:$0xf0]  ;;  %v13451_v62 = vrot.slane %v13447_v38, 1 }
 0x192   : > { %1196 = vrot.lane.b32.xlu0 %v1178_v41, %s9462_s18  ;;  %v1612_v24 = vpop.permute.xlu1 %1611  ;;  %v849_v13 = vmul.f32 %v13444_v31, %v13418_v5  ;;  %2644 = vst.msk [vmem:[#allocation2 + $0x1f8] sm:$0xf] %vm861_vm2, %v2636_v14 }
 0x193   : > { %1631 = vst.msk [vmem:[#allocation2 + $0xf0] sm:$0xf] %vm950_vm3, %v1612_v24  ;;  %1863 = vrot.lane.b32.xlu2 %v1841_v21, %s9462_s18  ;;  %v1265_v41 = vpack.c.bf16 %v1257_v57, %v1257_v57  ;;  %v13445_v24 = vld [vmem:[#allocation60_spill] sm:$0xff]  ;;  %v11123_v57 = vsel %vm967_vm1, %v2124_v34, %v13446_v10  ;;  %v1618_v33 = vpop.permute.xlu0 %1617  ;;  %v13449_v10 = vld [vmem:[#allocation27_spill] sm:$0xff] }
 0x194   : > { %v2044_v21 = vmul.f32 %v11110_v17, %v13445_v24  ;;  %1627 = vst.msk [vmem:[#allocation2 + $0xa0] sm:$0xf] %vm950_vm3, %v1604_v19  ;;  %v2141_v14 = vmul.f32 %v11123_v57, %v10403_v59  ;;  %v857_v19 = vpack.c.bf16 %v849_v13, %v849_v13  ;;  %v13450_v59 = vld [vmem:[#allocation46_spill] sm:$0xff] }
 0x195   : > { %1273 = vst.msk [vmem:[#allocation2 + $0x20] sm:$0xf] %vm861_vm2, %v1265_v41 }
 0x196   : > { %v2052_v52 = vpack.c.bf16 %v2044_v21, %v2044_v21  ;;  %1634 = vst.msk [vmem:[#allocation2 + $0x12c] sm:$0xf] %vm950_vm3, %v1618_v33  ;;  %v13448_v21 = vld [vmem:[#allocation82_spill] sm:$0xff]  ;;  %v2149_v33 = vpack.c.bf16 %v2141_v14, %v2141_v14 }
 0x197   : > { %1272 = vst.msk [vmem:[#allocation2 + $0xc] sm:$0xf] %vm861_vm2, %v1264_v30  ;;  %v1172_v17 = vmul.f32 %v13449_v10, %v13448_v21  ;;  %v1071_v10 = vmul.f32 %v13411_v15, %v13450_v59  ;;  %v13454_v59 = vld [vmem:[#allocation75_spill] sm:$0xff] }
 0x198   : > { %934 = vrot.lane.b32.xlu1 %v914_v37, %s9462_s18  ;;  %2061 = vst.msk [vmem:[#allocation2 + $0x1b8] sm:$0xf] %vm861_vm2, %v2052_v52  ;;  %v2518_v37 = vrot.slane %v11126_v9, 7  ;;  %v13453_v52 = vrot.slane %v10931_v36, 1 }
 0x199   : > { %866 = vst.msk [vmem:[#allocation2 + $0x50] sm:$0xf] %vm861_vm2, %v857_v19  ;;  %v8948_v19 = vld [vmem:[%s13035_s5 + $0x168] sm:$0xff] }
 0x19a   : > { %2093 = vrot.lane.b32.xlu0 %v2074_v8, %s9462_s18  ;;  %v1778_v41 = vpop.permute.xlu1 %1777  ;;  %v13224_v8 = vrot.slane %v10681_v23, 1  ;;  %v11161_v14 = vsel %vm967_vm1, %v13453_v52, %v2124_v34  ;;  %3450 = vmatpush.bf16.msra.mxu1 %v8948_v19  ;;  %v8947_v34 = vld [vmem:[%s13035_s5 + $0x160] sm:$0xff]  ;;  %2157 = vst.msk [vmem:[#allocation2 + $0x1bc] sm:$0xf] %vm861_vm2, %v2149_v33  ;;  %v7180_v52 = vld [vmem:[#allocation2 + $0xd0] sm:$0xf]  ;;  %v2068_v33 = vmul.f32 %v10931_v36, %v10022_v32 }
 0x19b   : > { %1798 = vst.msk [vmem:[#allocation2 + $0xe4] sm:$0xf] %vm950_vm3, %v1778_v41  ;;  %1393 = vperm.xlu2 %9344, %v10924_v54   ;;  %v1091_v13 = vpop.permute.xlu2 %1090  ;;  %v7152_v30 = vld [vmem:[#allocation2 + $0xa0] sm:$0xf]  ;;  %v1180_v41 = vpack.c.bf16 %v1172_v17, %v1172_v17  ;;  %v2140_v5 = vmul.f32 %v11161_v14, %v13454_v59  ;;  %v13468_v32 = vld [vmem:[#allocation29_spill] sm:$0xff] }
 0x19c   : > { %v11155_v54 = vsel %vm967_vm1, %v13224_v8, %v13451_v62  ;;  %1113 = vst.msk [vmem:[#allocation2 + $0x18] sm:$0xf] %vm950_vm3, %v1091_v13  ;;  %v7153_v15 = vor.u32 %v8921_v1, %v7152_v30  ;;  %v927_v62 = vpop.permute.xlu0 %926  ;;  %v13455_v8 = vrot.slane %v13447_v38, 7  ;;  %v2466_v13 = vadd.f32 %v10768_v58, %v2465_v6  ;;  %v13458_v58 = vld [vmem:[#allocation48_spill] sm:$0xff]  ;;  %v13469_v36 = vld [vmem:[#allocation91_spill] sm:$0xff] }
 0x19d   : > { %13452 = vst [vmem:[#allocation72_spill] sm:$0xff] %v11155_v54  ;;  %v2148_v17 = vpack.c.bf16 %v2140_v5, %v2140_v5  ;;  %v2630_v1 = vmul.f32 %v11155_v54, %v10088_v49  ;;  %v2494_v5 = vpop.f32.mrf.mxu3 }
 0x19e   : > { %v11173_v61 = vsel %vm796_vm0, %v13455_v8, %v2518_v37  ;;  %951 = vst.msk [vmem:[#allocation2] sm:$0xf] %vm950_vm3, %v927_v62  ;;  %3423 = vmatmul.bf16.vlgmr.msra.gmra.mxu0 %v7153_v15  ;;  %v1079_v8 = vpack.c.bf16 %v1071_v10, %v1071_v10  ;;  %v13457_v15 = vld [vmem:[#allocation97_spill] sm:$0xff]  ;;  %3451 = vmatpush.bf16.msra.mxu1 %v8947_v34  ;;  %v8898_v10 = vld [vmem:[%s13035_s5 + $0x78] sm:$0xff] }
 0x19f   : > { %13456 = vst [vmem:[#allocation89_spill] sm:$0xff] %v11173_v61  ;;  %v1834_v6 = vmul.f32 %v13458_v58, %v13457_v15  ;;  %3917 = vmatpush.bf16.msra.mxu2 %v8898_v10 }
 0x1a0   : > { %1253 = vperm.xlu1 %9342, %v10956_v0   ;;  %2156 = vst.msk [vmem:[#allocation2 + $0x1a8] sm:$0xf] %vm861_vm2, %v2148_v17  ;;  %v2638_v0 = vpack.c.bf16 %v2630_v1, %v2630_v1  ;;  %v13460_v17 = vld [vmem:[#allocation44_spill] sm:$0xff] }
 0x1a1   : > { %v909_v1 = vmul.f32 %v13460_v17, %v13353_v63  ;;  %v1842_v58 = vpack.c.bf16 %v1834_v6, %v1834_v6 }
 0x1a2   : > { %1200 = vrot.lane.b32.xlu0 %v1180_v41, %s9462_s18  ;;  %v1780_v30 = vpop.permute.xlu1 %1779  ;;  %v8927_v19 = vld [vmem:[#allocation2 + $0xe0] sm:$0xf0]  ;;  %v2535_v41 = vmul.f32 %v11173_v61, %v13437_v48  ;;  %2646 = vst.msk [vmem:[#allocation2 + $0x220] sm:$0xf] %vm861_vm2, %v2638_v0 }
 0x1a3   : > { %1799 = vst.msk [vmem:[#allocation2 + $0xf8] sm:$0xf] %vm950_vm3, %v1780_v30  ;;  %v7181_v49 = vor.u32 %v8927_v19, %v7180_v52  ;;  %1102 = vrot.lane.b32.xlu2 %v1079_v8, %s9462_s18  ;;  %v11198_v48 = vpop.permute.xlu2 %1233  ;;  %v2495_v30 = vadd.f32 %v2494_v5, %v2466_v13  ;;  %v13461_v8 = vld [vmem:[#allocation69_spill] sm:$0xff]  ;;  %v2076_v19 = vpack.c.bf16 %v2068_v33, %v2068_v33  ;;  %v8974_v13 = vld [vmem:[%s13035_s5 + $0x238] sm:$0xff]  ;;  %v13465_v5 = vrot.slane %v10838_v51, 7 }
 0x1a4   : > { %v2543_v62 = vpack.c.bf16 %v2535_v41, %v2535_v41  ;;  %13459 = vst [vmem:[#allocation47_spill] sm:$0xff] %v11198_v48  ;;  %v1805_v52 = vmul.f32 %v13461_v8, %v11198_v48  ;;  %v11204_v34 = vpop.permute.xlu0 %1237  ;;  %v13463_v41 = vld [vmem:[#allocation73_spill] sm:$0xff]  ;;  %v8890_v33 = vld [vmem:[%s13035_s5 + $0x38] sm:$0xff]  ;;  %v917_v10 = vpack.c.bf16 %v909_v1, %v909_v1  ;;  %3535 = vmatpush.bf16.msrb.mxu0 %v8974_v13 }
 0x1a5   : > { %3486 = vmatmul.bf16.gmra.mxu2 %v7181_v49  ;;  %13462 = vst [vmem:[#allocation60_spill] sm:$0xff] %v11204_v34  ;;  %v1806_v0 = vmul.f32 %v13463_v41, %v11204_v34  ;;  %v11211_v49 = vmul.f32 %v11173_v61, %v11204_v34  ;;  %v11224_v6 = vsel %vm796_vm0, %v2518_v37, %v13465_v5  ;;  %v2504_v8 = vmax.f32 %v2495_v30, 0.0  ;;  %v13467_v61 = vld [vmem:[#allocation92_spill] sm:$0xff]  ;;  %v13470_v48 = vld [vmem:[#allocation34_spill] sm:$0xff]  ;;  %v8897_v1 = vld [vmem:[%s13035_s5 + $0x70] sm:$0xff] }
 0x1a6   : > { %2552 = vst.msk [vmem:[#allocation2 + $0x244] sm:$0xf] %vm861_vm2, %v2543_v62  ;;  %v1813_v62 = vpack.c.bf16 %v1805_v52, %v1805_v52  ;;  %3888 = vmatpush.bf16.msrb.mxu1 %v8890_v33  ;;  %v1070_v37 = vmul.f32 %v13470_v48, %v13469_v36  ;;  %v2536_v30 = vmul.f32 %v11224_v6, %v13445_v24  ;;  %v13474_v36 = vld [vmem:[#allocation68_spill] sm:$0xff] }
 0x1a7   : > { %13464 = vst [vmem:[#allocation95_spill] sm:$0xff] %v11211_v49  ;;  %v1814_v41 = vpack.c.bf16 %v1806_v0, %v1806_v0  ;;  %v1174_v49 = vmul.f32 %v13468_v32, %v13467_v61  ;;  %3918 = vmatpush.bf16.msra.mxu2 %v8897_v1  ;;  %v1123_v0 = vpack.c.bf16 %v13355_v27, %v13355_v27  ;;  %v7172_v1 = vld [vmem:[#allocation2 + $0xc8] sm:$0xf]  ;;  %v13473_v32 = vld [vmem:[#allocation101_spill] sm:$0xff] }
 0x1a8   : > { %13466 = vst [vmem:[#allocation82_spill] sm:$0xff] %v11224_v6  ;;  %1865 = vrot.lane.b32.xlu1 %v1842_v58, %s9462_s18  ;;  %v8926_v58 = vld [vmem:[#allocation2 + $0xd8] sm:$0xf0]  ;;  %v2544_v13 = vpack.c.bf16 %v2536_v30, %v2536_v30  ;;  %v11243_v33 = vmul.f32 %v10676_v2, %v2504_v8  ;;  %v13472_v30 = vld [vmem:[#allocation31_spill] sm:$0xff] }
 0x1a9   : > { %1822 = vst.msk [vmem:[#allocation2 + $0xe8] sm:$0xf] %vm861_vm2, %v1814_v41  ;;  %v1182_v5 = vpack.c.bf16 %v1174_v49, %v1174_v49  ;;  %v1078_v41 = vpack.c.bf16 %v1070_v37, %v1070_v37  ;;  %v908_v6 = vmul.f32 %v13472_v30, %v10398_v42  ;;  %v7173_v49 = vor.u32 %v8926_v58, %v7172_v1 }
 0x1aa   : > { %2097 = vrot.lane.b32.xlu0 %v2076_v19, %s9462_s18  ;;  %v1710_v19 = vpop.permute.xlu1 %1709  ;;  %1821 = vst.msk [vmem:[#allocation2 + $0xd4] sm:$0xf] %vm861_vm2, %v1813_v62  ;;  %v2070_v62 = vmul.f32 %v10699_v47, %v13460_v17  ;;  %v7200_v8 = vld [vmem:[#allocation2 + $0xf8] sm:$0xf]  ;;  %v2288_v37 = vmul.f32 %v13473_v32, %v13441_v43 }
 0x1ab   : > { %1728 = vst.msk [vmem:[#allocation2 + $0x108] sm:$0xf] %vm950_vm3, %v1710_v19  ;;  %940 = vrot.lane.b32.xlu2 %v917_v10, %s9462_s18  ;;  %v1858_v52 = vpop.permute.xlu2 %1857  ;;  %v13471_v10 = vld [vmem:[#allocation15_spill] sm:$0xff]  ;;  %v8889_v19 = vld [vmem:[%s13035_s5 + $0x30] sm:$0xff] }
 0x1ac   : > { %1878 = vst.msk [vmem:[#allocation2 + $0xe8] sm:$0xf] %vm950_vm3, %v1858_v52  ;;  %v2063_v24 = vmul.f32 %v10653_v40, %v13471_v10  ;;  %3889 = vmatpush.bf16.msrb.mxu1 %v8889_v19  ;;  %v13239_v19 = vrot.slane %v11126_v9, 1  ;;  %v2521_v52 = vrot.slane %v11243_v33, 7  ;;  %v2296_v44 = vpack.c.bf16 %v2288_v37, %v2288_v37  ;;  %v13478_v37 = vld [vmem:[#allocation77_spill] sm:$0xff] }
 0x1ad   : > { %1131 = vst.msk [vmem:[#allocation2 + $0x44] sm:$0xf] %vm861_vm2, %v1123_v0 }
 0x1ae   : > { %2553 = vst.msk [vmem:[#allocation2 + $0x258] sm:$0xf] %vm861_vm2, %v2544_v13  ;;  %3428 = vmatmul.bf16.gmra.mxu0 %v7173_v49  ;;  %v2071_v1 = vpack.c.bf16 %v2063_v24, %v2063_v24  ;;  %v13475_v24 = vrot.slane %v10838_v51, 1  ;;  %v13477_v49 = vld [vmem:[#allocation64_spill] sm:$0xff] }
 0x1af   : > { %2304 = vst.msk [vmem:[#allocation2 + $0x160] sm:$0xf] %vm861_vm2, %v2296_v44 }
 0x1b0   : > { %1100 = vrot.lane.b32.xlu1 %v1078_v41, %s9462_s18 }
 0x1b2   : > { %v1374_v2 = vpop.permute.xlu0 %1373  ;;  %1204 = vrot.lane.b32.xlu0 %v1182_v5, %s9462_s18  ;;  %v1712_v58 = vpop.permute.xlu1 %1711  ;;  %v8932_v5 = vld [vmem:[#allocation2 + $0x108] sm:$0xf0] }
 0x1b3   : > { %v1401_v17 = vmul.f32 %v1374_v2, %v10780_v12  ;;  %v1884_v10 = vmul.f32 %v13474_v36, %v1374_v2  ;;  %v2368_v34 = vmul.f32 %v11007_v35, %v1374_v2  ;;  %v2860_v0 = vmul.f32 %v11155_v54, %v1374_v2  ;;  %1729 = vst.msk [vmem:[#allocation2 + $0x11c] sm:$0xf] %vm950_vm3, %v1712_v58  ;;  %v8896_v2 = vld [vmem:[%s13035_s5 + $0x68] sm:$0xff] }
 0x1b4   : > { %v7201_v36 = vor.u32 %v8932_v5, %v7200_v8  ;;  %2087 = vrot.lane.b32.xlu2 %v2071_v1, %s9462_s18  ;;  %v1313_v8 = vmul.f32 %v13477_v49, %v10077_v18  ;;  %v2078_v1 = vpack.c.bf16 %v2070_v62, %v2070_v62  ;;  %3919 = vmatpush.bf16.msra.mxu2 %v8896_v2  ;;  %v13481_v18 = vrot.slane %v10681_v23, 1 }
 0x1b5   : > { %v1409_v13 = vpack.c.bf16 %v1401_v17, %v1401_v17  ;;  %v1892_v48 = vpack.c.bf16 %v1884_v10, %v1884_v10  ;;  %v2376_v12 = vpack.c.bf16 %v2368_v34, %v2368_v34  ;;  %v2868_v41 = vpack.c.bf16 %v2860_v0, %v2860_v0  ;;  %v1382_v34 = vpop.permute.xlu2 %1381 }
 0x1b6   : > { %3491 = vmatmul.bf16.gmra.mxu2 %v7201_v36  ;;  %v11281_v17 = vsel %vm967_vm1, %v13239_v19, %v13475_v24  ;;  %v916_v10 = vpack.c.bf16 %v908_v6, %v908_v6  ;;  %v1403_v44 = vmul.f32 %v1382_v34, %v13448_v21  ;;  %v1886_v0 = vmul.f32 %v13478_v37, %v1382_v34  ;;  %v8973_v24 = vld [vmem:[%s13035_s5 + $0x230] sm:$0xff]  ;;  %v13484_v37 = vld [vmem:[#allocation76_spill] sm:$0xff] }
 0x1b7   : > { %1417 = vst.msk [vmem:[#allocation2 + $0x24] sm:$0xf] %vm861_vm2, %v1409_v13  ;;  %v2370_v58 = vmul.f32 %v11161_v14, %v1382_v34  ;;  %v2862_v5 = vmul.f32 %v11281_v17, %v1382_v34  ;;  %v13479_v13 = vrot.slane %v10848_v25, 7  ;;  %v13482_v21 = vrot.slane %v10990_v4, 1  ;;  %v8888_v34 = vld [vmem:[%s13035_s5 + $0x28] sm:$0xff]  ;;  %3536 = vmatpush.bf16.msrb.mxu0 %v8973_v24 }
 0x1b8   : > { %13476 = vst [vmem:[#allocation75_spill] sm:$0xff] %v11281_v17  ;;  %v1411_v36 = vpack.c.bf16 %v1403_v44, %v1403_v44  ;;  %938 = vrot.lane.b32.xlu1 %v916_v10, %s9462_s18  ;;  %v1321_v44 = vpack.c.bf16 %v1313_v8, %v1313_v8  ;;  %3890 = vmatpush.bf16.msrb.mxu1 %v8888_v34  ;;  %v13490_v10 = vrot.slane %v10653_v40, 1  ;;  %v13491_v8 = vrot.slane %v10699_v47, 1  ;;  %v7192_v34 = vld [vmem:[#allocation2 + $0xf0] sm:$0xf] }
 0x1b9   : > { %1900 = vst.msk [vmem:[#allocation2 + $0xc4] sm:$0xf] %vm861_vm2, %v1892_v48  ;;  %v11295_v6 = vsel %vm796_vm0, %v13479_v13, %v2521_v52  ;;  %v11303_v48 = vsel %vm967_vm1, %v13482_v21, %v13481_v18  ;;  %v2378_v62 = vpack.c.bf16 %v2370_v58, %v2370_v58  ;;  %v2870_v19 = vpack.c.bf16 %v2862_v5, %v2862_v5  ;;  %v13486_v18 = vld [vmem:[#allocation11_spill] sm:$0xff]  ;;  %v13487_v21 = vld [vmem:[#allocation96_spill] sm:$0xff] }
 0x1ba   : > { %2384 = vst.msk [vmem:[#allocation2 + $0x164] sm:$0xf] %vm861_vm2, %v2376_v12  ;;  %v1894_v12 = vpack.c.bf16 %v1886_v0, %v1886_v0  ;;  %v1093_v2 = vpop.permute.xlu0 %1092  ;;  %v2859_v13 = vmul.f32 %v11303_v48, %v13484_v37  ;;  %2101 = vrot.lane.b32.xlu0 %v2078_v1, %s9462_s18  ;;  %v13485_v0 = vld [vmem:[#allocation33_spill] sm:$0xff]  ;;  %v2159_v5 = vmul.f32 %v13487_v21, %v13486_v18  ;;  %v13488_v37 = vld [vmem:[#allocation59_spill] sm:$0xff] }
 0x1bb   : > { %13480 = vst [vmem:[#allocation97_spill] sm:$0xff] %v11295_v6  ;;  %v2530_v58 = vmul.f32 %v11295_v6, %v13485_v0  ;;  %v11333_v1 = vsel %vm967_vm1, %v13491_v8, %v13490_v10  ;;  %v13494_v0 = vld [vmem:[#allocation65_spill] sm:$0xff] }
 0x1bc   : > { %13483 = vst [vmem:[#allocation48_spill] sm:$0xff] %v11303_v48  ;;  %1338 = vrot.lane.b32.xlu2 %v1321_v44, %s9462_s18 }
 0x1bd   : > { %2876 = vst.msk [vmem:[#allocation2 + $0x204] sm:$0xf] %vm861_vm2, %v2868_v41  ;;  %v1700_v41 = vpop.permute.xlu1 %1699  ;;  %v931_v24 = vpop.permute.xlu2 %930  ;;  %v2538_v8 = vpack.c.bf16 %v2530_v58, %v2530_v58 }
 0x1be   : > { %1114 = vst.msk [vmem:[#allocation2 + $0x2c] sm:$0xf] %vm950_vm3, %v1093_v2  ;;  %v13489_v2 = vld [vmem:[#allocation23_spill] sm:$0xff] }
 0x1bf   : > { %1419 = vst.msk [vmem:[#allocation2 + $0x4c] sm:$0xf] %vm861_vm2, %v1411_v36  ;;  %v1169_v4 = vmul.f32 %v13489_v2, %v13488_v37  ;;  %v2867_v36 = vpack.c.bf16 %v2859_v13, %v2859_v13  ;;  %v2142_v37 = vmul.f32 %v11333_v1, %v13494_v0  ;;  %v13495_v13 = vld [vmem:[#allocation90_spill] sm:$0xff] }
 0x1c0   : > { %1902 = vst.msk [vmem:[#allocation2 + $0xec] sm:$0xf] %vm861_vm2, %v1894_v12  ;;  %v2780_v12 = vmul.f32 %v11044_v16, %v13441_v43  ;;  %v2065_v10 = vmul.f32 %v13495_v13, %v13407_v11  ;;  %v2167_v43 = vpack.c.bf16 %v2159_v5, %v2159_v5  ;;  %v8931_v16 = vld [vmem:[#allocation2 + $0x100] sm:$0xf0] }
 0x1c1   : > { %2386 = vst.msk [vmem:[#allocation2 + $0x18c] sm:$0xf] %vm861_vm2, %v2378_v62  ;;  %v13492_v62 = vrot.slane %v11001_v39, 7  ;;  %v7193_v18 = vor.u32 %v8931_v16, %v7192_v34  ;;  %v13497_v5 = vld [vmem:[#allocation51_spill] sm:$0xff]  ;;  %v2632_v34 = vmul.f32 %v11281_v17, %v13454_v59 }
 0x1c2   : > { %2878 = vst.msk [vmem:[#allocation2 + $0x22c] sm:$0xf] %vm861_vm2, %v2870_v19  ;;  %v1177_v19 = vpack.c.bf16 %v1169_v4, %v1169_v4  ;;  %v1784_v21 = vpop.permute.xlu0 %1783  ;;  %2183 = vrot.lane.b32.xlu0 %v2167_v43, %s9462_s18  ;;  %v2150_v4 = vpack.c.bf16 %v2142_v37, %v2142_v37  ;;  %v2073_v16 = vpack.c.bf16 %v2065_v10, %v2065_v10  ;;  %v7154_v43 = vld [vmem:[#allocation2 + $0xb4] sm:$0xf0]  ;;  %v8895_v10 = vld [vmem:[%s13035_s5 + $0x60] sm:$0xff] }
 0x1c3   : > { %v11342_v44 = vsel %vm796_vm0, %v2521_v52, %v13492_v62  ;;  %1723 = vst.msk [vmem:[#allocation2 + $0xa4] sm:$0xf] %vm950_vm3, %v1700_v41  ;;  %v2788_v52 = vpack.c.bf16 %v2780_v12, %v2780_v12  ;;  %v13496_v62 = vld [vmem:[#allocation25_spill] sm:$0xff]  ;;  %v8972_v41 = vld [vmem:[%s13035_s5 + $0x228] sm:$0xff]  ;;  %3433 = vmatmul.bf16.gmra.mxu0 %v7193_v18  ;;  %v13499_v59 = vld [vmem:[#allocation39_spill] sm:$0xff]  ;;  %3920 = vmatpush.bf16.msra.mxu2 %v8895_v10 }
 0x1c4   : > { %13493 = vst [vmem:[#allocation69_spill] sm:$0xff] %v11342_v44  ;;  %v2531_v54 = vmul.f32 %v11342_v44, %v13496_v62  ;;  %1194 = vrot.lane.b32.xlu1 %v1177_v19, %s9462_s18  ;;  %3537 = vmatpush.bf16.msrb.mxu0 %v8972_v41  ;;  %v1315_v19 = vmul.f32 %v13499_v59, %v10408_v56  ;;  %v13500_v56 = vld [vmem:[#allocation58_spill] sm:$0xff]  ;;  %v13509_v44 = vrot.slane %v11001_v39, 1  ;;  %v13513_v39 = vld [vmem:[#allocation88_spill] sm:$0xff] }
 0x1c5   : > { %953 = vst.msk [vmem:[#allocation2 + $0x28] sm:$0xf] %vm950_vm3, %v931_v24  ;;  %v1089_v58 = vpop.permute.xlu1 %1088  ;;  %2091 = vrot.lane.b32.xlu2 %v2073_v16, %s9462_s18  ;;  %v1714_v37 = vpop.permute.xlu2 %1713  ;;  %v2629_v16 = vmul.f32 %v11303_v48, %v13500_v56 }
 0x1c6   : > { %2875 = vst.msk [vmem:[#allocation2 + $0x1f0] sm:$0xf] %vm861_vm2, %v2867_v36  ;;  %v2232_v36 = vmul.f32 %v13497_v5, %v13489_v2  ;;  %v2539_v24 = vpack.c.bf16 %v2531_v54, %v2531_v54  ;;  %v2640_v54 = vpack.c.bf16 %v2632_v34, %v2632_v34 }
 0x1c7   : > { %1801 = vst.msk [vmem:[#allocation2 + $0x120] sm:$0xf] %vm950_vm3, %v1784_v21  ;;  %v13498_v21 = vld [vmem:[#allocation36_spill] sm:$0xff]  ;;  %v2637_v10 = vpack.c.bf16 %v2629_v16, %v2629_v16  ;;  %v2067_v16 = vmul.f32 %v13420_v3, %v13439_v50 }
 0x1c8   : > { %2547 = vst.msk [vmem:[#allocation2 + $0x1e0] sm:$0xf] %vm861_vm2, %v2538_v8  ;;  %v1312_v12 = vmul.f32 %v13498_v21, %v13406_v29  ;;  %v8971_v29 = vld [vmem:[%s13035_s5 + $0x220] sm:$0xff]  ;;  %v2240_v62 = vpack.c.bf16 %v2232_v36, %v2232_v36  ;;  %v1323_v36 = vpack.c.bf16 %v1315_v19, %v1315_v19  ;;  %v2618_v19 = vrot.slane %v11243_v33, 1 }
 0x1c9   : > { %1112 = vst.msk [vmem:[#allocation2 + $0x4] sm:$0xf] %vm950_vm3, %v1089_v58  ;;  %3538 = vmatpush.bf16.msrb.mxu0 %v8971_v29  ;;  %v8894_v58 = vld [vmem:[%s13035_s5 + $0x58] sm:$0xff]  ;;  %v13504_v29 = vrot.slane %v10699_v47, 7 }
 0x1ca   : > { %2796 = vst.msk [vmem:[#allocation2 + $0x200] sm:$0xf] %vm861_vm2, %v2788_v52  ;;  %v8919_v18 = vld [vmem:[#allocation2 + $0xa4] sm:$0xf]  ;;  %v1320_v41 = vpack.c.bf16 %v1312_v12, %v1312_v12  ;;  %2257 = vrot.lane.b32.xlu0 %v2240_v62, %s9462_s18  ;;  %v8886_v12 = vld [vmem:[%s13035_s5 + $0x18] sm:$0xff]  ;;  %3921 = vmatpush.bf16.msra.mxu2 %v8894_v58 }
 0x1cb   : > { %2158 = vst.msk [vmem:[#allocation2 + $0x1d0] sm:$0xf] %vm861_vm2, %v2150_v4  ;;  %v7157_v8 = vor.u32 %v8919_v18, %v7154_v43  ;;  %v8887_v52 = vld [vmem:[%s13035_s5 + $0x20] sm:$0xff]  ;;  %v933_v4 = vpop.permute.xlu0 %932  ;;  %v13502_v43 = vld [vmem:[#allocation93_spill] sm:$0xff]  ;;  %v13506_v62 = vld [vmem:[#allocation54_spill] sm:$0xff] }
 0x1cc   : > { %1730 = vst.msk [vmem:[#allocation2 + $0x130] sm:$0xf] %vm950_vm3, %v1714_v37  ;;  %1336 = vrot.lane.b32.xlu1 %v1320_v41, %s9462_s18  ;;  %3891 = vmatpush.bf16.msrb.mxu1 %v8887_v52  ;;  %v13503_v18 = vld [vmem:[#allocation21_spill] sm:$0xff]  ;;  %v13507_v58 = vld [vmem:[#allocation66_spill] sm:$0xff] }
 0x1cd   : > { %2548 = vst.msk [vmem:[#allocation2 + $0x1f4] sm:$0xf] %vm861_vm2, %v2539_v24  ;;  %3452 = vmatmul.bf16.vlgmr.msra.gmra.mxu1 %v7157_v8  ;;  %v929_v5 = vpop.permute.xlu1 %928  ;;  %v13501_v24 = vld [vmem:[#allocation24_spill] sm:$0xff]  ;;  %v1171_v37 = vmul.f32 %v13503_v18, %v13502_v43  ;;  %1342 = vrot.lane.b32.xlu2 %v1323_v36, %s9462_s18  ;;  %v11410_v52 = vpop.permute.xlu2 %1245 }
 0x1ce   : > { %2648 = vst.msk [vmem:[#allocation2 + $0x248] sm:$0xf] %vm861_vm2, %v2640_v54  ;;  %v2161_v34 = vmul.f32 %v13473_v32, %v13501_v24  ;;  %v13505_v54 = vrot.slane %v11058_v7, 7  ;;  %v8936_v32 = vld [vmem:[#allocation2 + $0x128] sm:$0xf0]  ;;  %v11419_v56 = vmul.f32 %v10890_v45, %v11410_v52 }
 0x1cf   : > { %954 = vst.msk [vmem:[#allocation2 + $0x3c] sm:$0xf] %vm950_vm3, %v933_v4  ;;  %v2042_v4 = vmul.f32 %v13507_v58, %v13444_v31  ;;  %v1179_v36 = vpack.c.bf16 %v1171_v37, %v1171_v37  ;;  %v8893_v37 = vld [vmem:[%s13035_s5 + $0x50] sm:$0xff] }
 0x1d0   : > { %952 = vst.msk [vmem:[#allocation2 + $0x14] sm:$0xf] %vm950_vm3, %v929_v5  ;;  %v11407_v8 = vsel %vm796_vm0, %v13505_v54, %v13504_v29  ;;  %3892 = vmatpush.bf16.msrb.mxu1 %v8886_v12  ;;  %v2169_v5 = vpack.c.bf16 %v2161_v34, %v2161_v34  ;;  %v7212_v29 = vld [vmem:[#allocation2 + $0x118] sm:$0xf]  ;;  %v2075_v34 = vpack.c.bf16 %v2067_v16, %v2067_v16 }
 0x1d1   : > { %v2045_v41 = vmul.f32 %v11407_v8, %v13506_v62  ;;  %2645 = vst.msk [vmem:[#allocation2 + $0x20c] sm:$0xf] %vm861_vm2, %v2637_v10  ;;  %v2050_v24 = vpack.c.bf16 %v2042_v4, %v2042_v4  ;;  %v7213_v2 = vor.u32 %v8936_v32, %v7212_v29  ;;  %v11429_v10 = vsel %vm967_vm1, %v2618_v19, %v13509_v44  ;;  %v8885_v32 = vld [vmem:[%s13035_s5 + $0x10] sm:$0xff]  ;;  %v8924_v44 = vld [vmem:[#allocation2 + $0xcc] sm:$0xf] }
 0x1d2   : > { %13508 = vst [vmem:[#allocation73_spill] sm:$0xff] %v11419_v56  ;;  %2187 = vrot.lane.b32.xlu0 %v2169_v5, %s9462_s18  ;;  %v1314_v4 = vmul.f32 %v13405_v53, %v13355_v27  ;;  %v2627_v16 = vmul.f32 %v11429_v10, %v10064_v55  ;;  %3922 = vmatpush.bf16.msra.mxu2 %v8893_v37  ;;  %v7174_v5 = vld [vmem:[#allocation2 + $0xdc] sm:$0xf0]  ;;  %v13512_v37 = vrot.slane %v10838_v51, 1 }
 0x1d3   : > { %v2053_v54 = vpack.c.bf16 %v2045_v41, %v2045_v41  ;;  %v11423_v48 = vpop.permute.xlu0 %1859  ;;  %13510 = vst [vmem:[#allocation92_spill] sm:$0xff] %v11429_v10  ;;  %3438 = vmatmul.bf16.gmra.mxu0 %v7213_v2  ;;  %v2617_v41 = vrot.slane %v10848_v25, 1  ;;  %v2234_v2 = vmul.f32 %v10972_v20, %v13503_v18  ;;  %v13511_v18 = vld [vmem:[#allocation81_spill] sm:$0xff] }
 0x1d4   : > { %1198 = vrot.lane.b32.xlu1 %v1179_v36, %s9462_s18  ;;  %2059 = vst.msk [vmem:[#allocation2 + $0x190] sm:$0xf] %vm861_vm2, %v2050_v24  ;;  %v1317_v24 = vmul.f32 %v13426_v60, %v13353_v63  ;;  %3893 = vmatpush.bf16.msrb.mxu1 %v8885_v32  ;;  %v2635_v29 = vpack.c.bf16 %v2627_v16, %v2627_v16 }
 0x1d5   : > { %2062 = vst.msk [vmem:[#allocation2 + $0x1cc] sm:$0xf] %vm861_vm2, %v2053_v54  ;;  %v1856_v12 = vpop.permute.xlu1 %1855  ;;  %2095 = vrot.lane.b32.xlu2 %v2075_v34, %s9462_s18  ;;  %v1386_v36 = vpop.permute.xlu2 %1385  ;;  %v7177_v54 = vor.u32 %v8924_v44, %v7174_v5  ;;  %v11457_v55 = vsel %vm967_vm1, %v2617_v41, %v2618_v19  ;;  %v2242_v34 = vpack.c.bf16 %v2234_v2, %v2234_v2  ;;  %v8892_v19 = vld [vmem:[%s13035_s5 + $0x48] sm:$0xff] }
 0x1d6   : > { %1877 = vst.msk [vmem:[#allocation2 + $0xd4] sm:$0xf] %vm950_vm3, %v1856_v12  ;;  %v1404_v12 = vmul.f32 %v1386_v36, %v10862_v22  ;;  %v1887_v56 = vmul.f32 %v13511_v18, %v1386_v36  ;;  %v2371_v27 = vmul.f32 %v11123_v57, %v1386_v36  ;;  %v11463_v50 = vsel %vm967_vm1, %v13512_v37, %v2617_v41 }
 0x1d7   : > { %v1322_v63 = vpack.c.bf16 %v1314_v4, %v1314_v4  ;;  %2643 = vst.msk [vmem:[#allocation2 + $0x1e4] sm:$0xf] %vm861_vm2, %v2635_v29  ;;  %v2863_v5 = vmul.f32 %v11463_v50, %v1386_v36  ;;  %v1325_v29 = vpack.c.bf16 %v1317_v24, %v1317_v24  ;;  %3923 = vmatpush.bf16.msra.mxu2 %v8892_v19 }
 0x1d8   : > { %v1412_v44 = vpack.c.bf16 %v1404_v12, %v1404_v12  ;;  %v1895_v18 = vpack.c.bf16 %v1887_v56, %v1887_v56  ;;  %v2379_v16 = vpack.c.bf16 %v2371_v27, %v2371_v27  ;;  %v8884_v56 = vld [vmem:[%s13035_s5 + $0x8] sm:$0xff] }
 0x1d9   : > { %3894 = vmatpush.bf16.msrb.mxu1 %v8884_v56  ;;  %v8906_v56 = vld [vmem:[%s13035_s5 + $0xb8] sm:$0xff] }
 0x1da   : > { %2261 = vrot.lane.b32.xlu0 %v2242_v34, %s9462_s18  ;;  %1420 = vst.msk [vmem:[#allocation2 + $0x60] sm:$0xf] %vm861_vm2, %v1412_v44  ;;  %v13516_v44 = vrot.slane %v13447_v38, 1  ;;  %3946 = vmatpush.bf16.msra.mxu3 %v8906_v56 }
 0x1db   : > { %v1390_v32 = vpop.permute.xlu0 %1389  ;;  %1903 = vst.msk [vmem:[#allocation2 + $0x100] sm:$0xf] %vm861_vm2, %v1895_v18  ;;  %v2871_v18 = vpack.c.bf16 %v2863_v5, %v2863_v5 }
 0x1dc   : > { %v1405_v2 = vmul.f32 %v1390_v32, %v13467_v61  ;;  %v1888_v17 = vmul.f32 %v13513_v39, %v1390_v32  ;;  %v2372_v41 = vmul.f32 %v11333_v1, %v1390_v32  ;;  %v2864_v4 = vmul.f32 %v11457_v55, %v1390_v32  ;;  %1340 = vrot.lane.b32.xlu1 %v1322_v63, %s9462_s18  ;;  %v13514_v39 = vld [vmem:[#allocation19_spill] sm:$0xff] }
 0x1dd   : > { %3457 = vmatmul.bf16.gmra.mxu1 %v7177_v54  ;;  %v1378_v36 = vpop.permute.xlu1 %1377  ;;  %v8925_v54 = vld [vmem:[#allocation2 + $0xd4] sm:$0xf]  ;;  %v2163_v61 = vmul.f32 %v11065_v26, %v13432_v28  ;;  %v1173_v12 = vmul.f32 %v13514_v39, %v10862_v22  ;;  %v13515_v32 = vrot.slane %v11126_v9, 1  ;;  %2387 = vst.msk [vmem:[#allocation2 + $0x1a0] sm:$0xf] %vm861_vm2, %v2379_v16  ;;  %v13517_v22 = vld [vmem:[#allocation74_spill] sm:$0xff]  ;;  %1346 = vrot.lane.b32.xlu2 %v1325_v29, %s9462_s18 }
 0x1de   : > { %v1413_v27 = vpack.c.bf16 %v1405_v2, %v1405_v2  ;;  %v1896_v34 = vpack.c.bf16 %v1888_v17, %v1888_v17  ;;  %v2380_v37 = vpack.c.bf16 %v2372_v41, %v2372_v41  ;;  %v2872_v63 = vpack.c.bf16 %v2864_v4, %v2864_v4  ;;  %v7182_v2 = vld [vmem:[#allocation2 + $0xe4] sm:$0xf0]  ;;  %v8923_v4 = vld [vmem:[#allocation2 + $0xc0] sm:$0xf0]  ;;  %v7168_v29 = vld [vmem:[#allocation2 + $0xb0] sm:$0xf] }
 0x1df   : > { %v11491_v24 = vsel %vm967_vm1, %v13516_v44, %v13515_v32  ;;  %v1402_v28 = vmul.f32 %v1378_v36, %v13502_v43  ;;  %v1885_v19 = vmul.f32 %v13517_v22, %v1378_v36  ;;  %v2369_v17 = vmul.f32 %v10972_v20, %v1378_v36  ;;  %v1099_v32 = vpop.permute.xlu2 %1098  ;;  %v8891_v43 = vld [vmem:[%s13035_s5 + $0x40] sm:$0xff]  ;;  %2879 = vst.msk [vmem:[#allocation2 + $0x240] sm:$0xf] %vm861_vm2, %v2871_v18  ;;  %v13518_v44 = vld [vmem:[#allocation80_spill] sm:$0xff]  ;;  %v13519_v22 = vld [vmem:[#allocation86_spill] sm:$0xff] }
 0x1e0   : > { %1421 = vst.msk [vmem:[#allocation2 + $0x74] sm:$0xf] %vm861_vm2, %v1413_v27  ;;  %v2861_v41 = vmul.f32 %v11491_v24, %v1378_v36  ;;  %v7185_v46 = vor.u32 %v8925_v54, %v7182_v2  ;;  %v2171_v5 = vpack.c.bf16 %v2163_v61, %v2163_v61  ;;  %v2069_v36 = vmul.f32 %v11058_v7, %v13472_v30 }
 0x1e1   : > { %1904 = vst.msk [vmem:[#allocation2 + $0x114] sm:$0xf] %vm861_vm2, %v1896_v34  ;;  %v1410_v16 = vpack.c.bf16 %v1402_v28, %v1402_v28  ;;  %v1893_v20 = vpack.c.bf16 %v1885_v19, %v1885_v19  ;;  %v2377_v28 = vpack.c.bf16 %v2369_v17, %v2369_v17  ;;  %3924 = vmatpush.bf16.msra.mxu2 %v8891_v43  ;;  %v8929_v43 = vld [vmem:[#allocation2 + $0xf4] sm:$0xf] }
 0x1e2   : > { %2388 = vst.msk [vmem:[#allocation2 + $0x1b4] sm:$0xf] %vm861_vm2, %v2380_v37  ;;  %3515 = vmatmul.bf16.gmra.mxu3 %v7185_v46  ;;  %v2869_v54 = vpack.c.bf16 %v2861_v41, %v2861_v41  ;;  %2191 = vrot.lane.b32.xlu0 %v2171_v5, %s9462_s18  ;;  %v1181_v61 = vpack.c.bf16 %v1173_v12, %v1173_v12  ;;  %v8883_v37 = vld [vmem:[%s13035_s5] sm:$0xff]  ;;  %v7194_v12 = vld [vmem:[#allocation2 + $0x104] sm:$0xf0]  ;;  %v9002_v46 = vld [vmem:[%s13035_s5 + $0x278] sm:$0xff] }
 0x1e3   : > { %2880 = vst.msk [vmem:[#allocation2 + $0x254] sm:$0xf] %vm861_vm2, %v2872_v63  ;;  %v11513_v27 = vpop.permute.xlu0 %1249  ;;  %v7169_v34 = vor.u32 %v8923_v4, %v7168_v29  ;;  %v1808_v63 = vmul.f32 %v13518_v44, %v11410_v52  ;;  %v2077_v18 = vpack.c.bf16 %v2069_v36, %v2069_v36  ;;  %v2236_v41 = vmul.f32 %v11123_v57, %v13514_v39  ;;  %v8914_v4 = vld [vmem:[%s13035_s5 + $0xf8] sm:$0xff] }
 0x1e4   : > { %1418 = vst.msk [vmem:[#allocation2 + $0x38] sm:$0xf] %vm861_vm2, %v1410_v16  ;;  %v1809_v19 = vmul.f32 %v13519_v22, %v11513_v27  ;;  %v11525_v17 = vmul.f32 %v11295_v6, %v11513_v27  ;;  %1202 = vrot.lane.b32.xlu1 %v1181_v61, %s9462_s18  ;;  %3895 = vmatpush.bf16.msrb.mxu1 %v8883_v37  ;;  %v8905_v16 = vld [vmem:[%s13035_s5 + $0xb0] sm:$0xff] }
 0x1e5   : > { %v1786_v2 = vpop.permute.xlu1 %1785  ;;  %1901 = vst.msk [vmem:[#allocation2 + $0xd8] sm:$0xf] %vm861_vm2, %v1893_v20  ;;  %7374 = vmatmul.msk.bf16.vlgmr.msrb.gmra.mxu0 %vm3402_vm4, %v7169_v34  ;;  %2099 = vrot.lane.b32.xlu2 %v2077_v18, %s9462_s18  ;;  %v13521_v20 = vld [vmem:[#allocation84_spill] sm:$0xff]  ;;  %v7197_v56 = vor.u32 %v8929_v43, %v7194_v12  ;;  %v1816_v61 = vpack.c.bf16 %v1808_v63, %v1808_v63  ;;  %v13523_v63 = vld [vmem:[#allocation34_spill] sm:$0xff]  ;;  %v13525_v12 = vld [vmem:[#allocation57_spill] sm:$0xff] }
 0x1e6   : > { %13520 = vst [vmem:[#allocation31_spill] sm:$0xff] %v11525_v17  ;;  %v1316_v5 = vmul.f32 %v13521_v20, %v10398_v42  ;;  %v1817_v36 = vpack.c.bf16 %v1809_v19, %v1809_v19  ;;  %4458 = vmatpush.bf16.msrb.mxu2 %v9002_v46  ;;  %3947 = vmatpush.bf16.msra.mxu3 %v8905_v16  ;;  %v13524_v19 = vld [vmem:[#allocation56_spill] sm:$0xff]  ;;  %v13527_v16 = vld [vmem:[#allocation83_spill] sm:$0xff] }
 0x1e7   : > { %2385 = vst.msk [vmem:[#allocation2 + $0x178] sm:$0xf] %vm861_vm2, %v2377_v28  ;;  %v937_v57 = vpop.permute.xlu2 %936  ;;  %v13522_v28 = vld [vmem:[#allocation45_spill] sm:$0xff]  ;;  %3975 = vmatpush.bf16.msra.mxu0 %v8914_v4  ;;  %v2165_v22 = vmul.f32 %v11407_v8, %v13523_v63  ;;  %v13528_v43 = vld [vmem:[#allocation40_spill] sm:$0xff] }
 0x1e8   : > { %2877 = vst.msk [vmem:[#allocation2 + $0x218] sm:$0xf] %vm861_vm2, %v2869_v54  ;;  %v1319_v29 = vmul.f32 %v13457_v15, %v13522_v28  ;;  %v2244_v54 = vpack.c.bf16 %v2236_v41, %v2236_v41  ;;  %v1324_v42 = vpack.c.bf16 %v1316_v5, %v1316_v5  ;;  %v13526_v41 = vld [vmem:[#allocation100_spill] sm:$0xff]  ;;  %v8913_v28 = vld [vmem:[%s13035_s5 + $0xf0] sm:$0xff] }
 0x1e9   : > { %1117 = vst.msk [vmem:[#allocation2 + $0x68] sm:$0xf] %vm950_vm3, %v1099_v32  ;;  %v8918_v32 = vld [vmem:[%s13035_s5 + $0x118] sm:$0xff] }
 0x1ea   : > { %1802 = vst.msk [vmem:[#allocation2 + $0x134] sm:$0xf] %vm950_vm3, %v1786_v2  ;;  %2265 = vrot.lane.b32.xlu0 %v2244_v54, %s9462_s18  ;;  %v1327_v44 = vpack.c.bf16 %v1319_v29, %v1319_v29  ;;  %4008 = vmatpush.bf16.msra.mxu1 %v8918_v32  ;;  %v13530_v32 = vld [vmem:[#allocation52_spill] sm:$0xff] }
 0x1eb   : > { %956 = vst.msk [vmem:[#allocation2 + $0x64] sm:$0xf] %vm950_vm3, %v937_v57  ;;  %v13529_v57 = vld [vmem:[#allocation60_spill] sm:$0xff]  ;;  %3976 = vmatpush.bf16.msra.mxu0 %v8913_v28 }
 0x1ec   : > { %1825 = vst.msk [vmem:[#allocation2 + $0x124] sm:$0xf] %vm861_vm2, %v1817_v36  ;;  %v1398_v34 = vpop.permute.xlu0 %1397  ;;  %1344 = vrot.lane.b32.xlu1 %v1324_v42, %s9462_s18  ;;  %v1259_v5 = vmul.f32 %v13529_v57, %v13528_v43  ;;  %v9001_v36 = vld [vmem:[%s13035_s5 + $0x270] sm:$0xff]  ;;  %v7220_v42 = vld [vmem:[#allocation2 + $0x120] sm:$0xf] }
 0x1ed   : > { %3462 = vmatmul.bf16.gmra.mxu1 %v7197_v56  ;;  %v1095_v37 = vpop.permute.xlu1 %1094  ;;  %1824 = vst.msk [vmem:[#allocation2 + $0x110] sm:$0xf] %vm861_vm2, %v1816_v61  ;;  %v1407_v2 = vmul.f32 %v1398_v34, %v13524_v19  ;;  %v1890_v18 = vmul.f32 %v13525_v12, %v1398_v34  ;;  %v2374_v46 = vmul.f32 %v13526_v41, %v1398_v34  ;;  %v8904_v56 = vld [vmem:[%s13035_s5 + $0xa8] sm:$0xff]  ;;  %v7188_v17 = vld [vmem:[#allocation2 + $0xd8] sm:$0xf] }
 0x1ee   : > { %v2866_v4 = vmul.f32 %v13527_v16, %v1398_v34  ;;  %1115 = vst.msk [vmem:[#allocation2 + $0x40] sm:$0xf] %vm950_vm3, %v1095_v37  ;;  %1350 = vrot.lane.b32.xlu2 %v1327_v44, %s9462_s18  ;;  %v13531_v37 = vld [vmem:[#allocation37_spill] sm:$0xff]  ;;  %4459 = vmatpush.bf16.msrb.mxu2 %v9001_v36  ;;  %v8928_v44 = vld [vmem:[#allocation2 + $0xe8] sm:$0xf0]  ;;  %v1267_v39 = vpack.c.bf16 %v1259_v5, %v1259_v5 }
 0x1ef   : > { %v1415_v29 = vpack.c.bf16 %v1407_v2, %v1407_v2  ;;  %v1898_v61 = vpack.c.bf16 %v1890_v18, %v1890_v18  ;;  %v2382_v54 = vpack.c.bf16 %v2374_v46, %v2374_v46  ;;  %v1864_v34 = vpop.permute.xlu2 %1863  ;;  %v1175_v19 = vmul.f32 %v13531_v37, %v13530_v32  ;;  %3948 = vmatpush.bf16.msra.mxu3 %v8904_v56  ;;  %v13532_v18 = vld [vmem:[#allocation20_spill] sm:$0xff] }
 0x1f0   : > { %v2874_v12 = vpack.c.bf16 %v2866_v4, %v2866_v4  ;;  %1881 = vst.msk [vmem:[#allocation2 + $0x124] sm:$0xf] %vm950_vm3, %v1864_v34  ;;  %v2173_v2 = vpack.c.bf16 %v2165_v22, %v2165_v22  ;;  %v2231_v46 = vmul.f32 %v13526_v41, %v13532_v18  ;;  %v7189_v36 = vor.u32 %v8928_v44, %v7188_v17  ;;  %v7214_v41 = vld [vmem:[#allocation2 + $0x12c] sm:$0xf0]  ;;  %v8934_v17 = vld [vmem:[#allocation2 + $0x11c] sm:$0xf] }
 0x1f1   : > { %v8937_v43 = vld [vmem:[#allocation2 + $0x130] sm:$0xf0]  ;;  %1423 = vst.msk [vmem:[#allocation2 + $0x9c] sm:$0xf] %vm861_vm2, %v1415_v29  ;;  %v1183_v4 = vpack.c.bf16 %v1175_v19, %v1175_v19  ;;  %v2216_v56 = vpack.c.bf16 %v13495_v13, %v13495_v13  ;;  %v13536_v34 = vld [vmem:[#allocation43_spill] sm:$0xff]  ;;  %v7217_v44 = vor.u32 %v8934_v17, %v7214_v41  ;;  %v13538_v41 = vld [vmem:[#allocation62_spill] sm:$0xff] }
 0x1f2   : > { %v7221_v63 = vor.u32 %v8937_v43, %v7220_v42  ;;  %1906 = vst.msk [vmem:[#allocation2 + $0x13c] sm:$0xf] %vm861_vm2, %v1898_v61  ;;  %2195 = vrot.lane.b32.xlu0 %v2173_v2, %s9462_s18  ;;  %v2239_v28 = vpack.c.bf16 %v2231_v46, %v2231_v46  ;;  %v13534_v61 = vld [vmem:[#allocation28_spill] sm:$0xff]  ;;  %v13535_v42 = vld [vmem:[#allocation42_spill] sm:$0xff]  ;;  %v8903_v43 = vld [vmem:[%s13035_s5 + $0xa0] sm:$0xff] }
 0x1f3   : > { %2390 = vst.msk [vmem:[#allocation2 + $0x1dc] sm:$0xf] %vm861_vm2, %v2382_v54  ;;  %v2238_v54 = vmul.f32 %v13534_v61, %v13531_v37  ;;  %v1318_v19 = vmul.f32 %v13536_v34, %v13535_v42  ;;  %v8912_v2 = vld [vmem:[%s13035_s5 + $0xe8] sm:$0xff]  ;;  %3949 = vmatpush.bf16.msra.mxu3 %v8903_v43  ;;  %v8917_v17 = vld [vmem:[%s13035_s5 + $0x110] sm:$0xff] }
 0x1f4   : > { %3496 = vmatmul.bf16.gmra.mxu2 %v7221_v63  ;;  %2882 = vst.msk [vmem:[#allocation2 + $0x27c] sm:$0xf] %vm861_vm2, %v2874_v12  ;;  %v1193_v22 = vpop.permute.xlu0 %1192  ;;  %1206 = vrot.lane.b32.xlu1 %v1183_v4, %s9462_s18  ;;  %v13533_v63 = vld [vmem:[#allocation78_spill] sm:$0xff]  ;;  %v9000_v12 = vld [vmem:[%s13035_s5 + $0x268] sm:$0xff] }
 0x1f5   : > { %v11589_v29 = vpop.permute.xlu1 %1241  ;;  %1216 = vst.msk [vmem:[#allocation2 + $0x8] sm:$0xf] %vm950_vm3, %v1193_v22  ;;  %7375 = vmatmul.msk.bf16.gmra.mxu0 %vm3402_vm4, %v7189_v36  ;;  %v2218_v36 = vpack.c.bf16 %v13420_v3, %v13420_v3  ;;  %4460 = vmatpush.bf16.msrb.mxu2 %v9000_v12  ;;  %v13540_v12 = vld [vmem:[#allocation47_spill] sm:$0xff] }
 0x1f6   : > { %v1807_v5 = vmul.f32 %v13533_v63, %v11589_v29  ;;  %1275 = vst.msk [vmem:[#allocation2 + $0x48] sm:$0xf] %vm861_vm2, %v1267_v39  ;;  %2255 = vrot.lane.b32.xlu2 %v2239_v28, %s9462_s18  ;;  %v13537_v63 = vld [vmem:[#allocation87_spill] sm:$0xff]  ;;  %v2246_v39 = vpack.c.bf16 %v2238_v54, %v2238_v54  ;;  %3977 = vmatpush.bf16.msra.mxu0 %v8912_v2 }
 0x1f7   : > { %v1394_v4 = vpop.permute.xlu2 %1393  ;;  %2224 = vst.msk [vmem:[#allocation2 + $0x15c] sm:$0xf] %vm861_vm2, %v2216_v56  ;;  %4009 = vmatpush.bf16.msra.mxu1 %v8917_v17  ;;  %v8863_v2 = vld [vmem:[#allocation2 + $0x4] sm:$0xf]  ;;  %v8933_v17 = vld [vmem:[#allocation2 + $0x110] sm:$0xf0] }
 0x1f8   : > { %v1815_v46 = vpack.c.bf16 %v1807_v5, %v1807_v5  ;;  %v1406_v22 = vmul.f32 %v1394_v4, %v13530_v32  ;;  %v1889_v42 = vmul.f32 %v13537_v63, %v1394_v4  ;;  %v2373_v37 = vmul.f32 %v13534_v61, %v1394_v4  ;;  %v13539_v61 = vld [vmem:[#allocation41_spill] sm:$0xff]  ;;  %2226 = vst.msk [vmem:[#allocation2 + $0x184] sm:$0xf] %vm861_vm2, %v2218_v36  ;;  %v8911_v36 = vld [vmem:[%s13035_s5 + $0xe0] sm:$0xff]  ;;  %v7382_v63 = vld [vmem:[#allocation2 + $0x14] sm:$0xf0] }
 0x1f9   : > { %v2865_v6 = vmul.f32 %v11429_v10, %v1394_v4  ;;  %v2312_v5 = vmul.f32 %v13538_v41, %v13477_v49  ;;  %v1326_v4 = vpack.c.bf16 %v1318_v19, %v1318_v19  ;;  %v8902_v19 = vld [vmem:[%s13035_s5 + $0x98] sm:$0xff] }
 0x1fa   : > { %1823 = vst.msk [vmem:[#allocation2 + $0xfc] sm:$0xf] %vm861_vm2, %v1815_v46  ;;  %v1414_v32 = vpack.c.bf16 %v1406_v22, %v1406_v22  ;;  %v1897_v56 = vpack.c.bf16 %v1889_v42, %v1889_v42  ;;  %v2381_v28 = vpack.c.bf16 %v2373_v37, %v2373_v37  ;;  %v1258_v46 = vmul.f32 %v13540_v12, %v13539_v61  ;;  %v13544_v61 = vld [vmem:[#allocation38_spill] sm:$0xff] }
 0x1fb   : > { %1879 = vst.msk [vmem:[#allocation2 + $0xfc] sm:$0xf] %vm950_vm3, %v11423_v48  ;;  %2269 = vrot.lane.b32.xlu0 %v2246_v39, %s9462_s18  ;;  %v2873_v54 = vpack.c.bf16 %v2865_v6, %v2865_v6  ;;  %v2320_v37 = vpack.c.bf16 %v2312_v5, %v2312_v5  ;;  %v8999_v6 = vld [vmem:[%s13035_s5 + $0x260] sm:$0xff]  ;;  %v13542_v39 = vld [vmem:[#allocation12_spill] sm:$0xff]  ;;  %v13543_v5 = vld [vmem:[#allocation94_spill] sm:$0xff]  ;;  %3950 = vmatpush.bf16.msra.mxu3 %v8902_v19 }
 0x1fc   : > { %1422 = vst.msk [vmem:[#allocation2 + $0x88] sm:$0xf] %vm861_vm2, %v1414_v32  ;;  %v2090_v48 = vpop.permute.xlu0 %2089  ;;  %1348 = vrot.lane.b32.xlu1 %v1326_v4, %s9462_s18  ;;  %v2160_v32 = vmul.f32 %v13543_v5, %v13542_v39  ;;  %4461 = vmatpush.bf16.msrb.mxu2 %v8999_v6  ;;  %v2215_v4 = vpack.c.bf16 %v13544_v61, %v13544_v61  ;;  %v13546_v19 = vld [vmem:[#allocation61_spill] sm:$0xff] }
 0x1fd   : > { %3467 = vmatmul.bf16.gmra.mxu1 %v7217_v44  ;;  %v1862_v43 = vpop.permute.xlu1 %1861  ;;  %1905 = vst.msk [vmem:[#allocation2 + $0x128] sm:$0xf] %vm861_vm2, %v1897_v56  ;;  %v13541_v44 = vld [vmem:[#allocation15_spill] sm:$0xff]  ;;  %v1266_v56 = vpack.c.bf16 %v1258_v46, %v1258_v46  ;;  %3978 = vmatpush.bf16.msra.mxu0 %v8911_v36  ;;  %v2290_v46 = vmul.f32 %v11065_v26, %v13529_v57  ;;  %v8865_v57 = vld [vmem:[#allocation2 + $0x10] sm:$0xf0]  ;;  %v13547_v36 = vld [vmem:[#allocation14_spill] sm:$0xff] }
 0x1fe   : > { %v2555_v22 = vmul.f32 %v11243_v33, %v13541_v44  ;;  %2389 = vst.msk [vmem:[#allocation2 + $0x1c8] sm:$0xf] %vm861_vm2, %v2381_v28  ;;  %2337 = vrot.lane.b32.xlu2 %v2320_v37, %s9462_s18  ;;  %v7208_v28 = vld [vmem:[#allocation2 + $0x100] sm:$0xf]  ;;  %v13545_v37 = vld [vmem:[#allocation26_spill] sm:$0xff] }
 0x1ff   : > { %2881 = vst.msk [vmem:[#allocation2 + $0x268] sm:$0xf] %vm861_vm2, %v2873_v54  ;;  %v1103_v42 = vpop.permute.xlu2 %1102  ;;  %v7385_v54 = vor.u32 %v8863_v2, %v7382_v63  ;;  %v2233_v10 = vmul.f32 %v11007_v35, %v13545_v37  ;;  %v7209_v6 = vor.u32 %v8933_v17, %v7208_v28  ;;  %v2220_v35 = vpack.c.bf16 %v11058_v7, %v11058_v7 }
 0x200   : > { %2112 = vst.msk [vmem:[#allocation2 + $0x154] sm:$0xf] %vm950_vm3, %v2090_v48  ;;  %v2563_v44 = vpack.c.bf16 %v2555_v22, %v2555_v22  ;;  %v2168_v48 = vpack.c.bf16 %v2160_v32, %v2160_v32  ;;  %v2558_v63 = vmul.f32 %v10681_v23, %v13547_v36  ;;  %v8901_v32 = vld [vmem:[%s13035_s5 + $0x90] sm:$0xff]  ;;  %v2289_v28 = vmul.f32 %v13507_v58, %v13540_v12 }
 0x201   : > { %1880 = vst.msk [vmem:[#allocation2 + $0x110] sm:$0xf] %vm950_vm3, %v1862_v43  ;;  %v2287_v43 = vmul.f32 %v13543_v5, %v13546_v19  ;;  %v2241_v26 = vpack.c.bf16 %v2233_v10, %v2233_v10  ;;  %v8998_v5 = vld [vmem:[%s13035_s5 + $0x258] sm:$0xff]  ;;  %3951 = vmatpush.bf16.msra.mxu3 %v8901_v32 }
 0x202   : > { %1119 = vst.msk [vmem:[#allocation2 + $0x90] sm:$0xf] %vm950_vm3, %v1103_v42  ;;  %v2217_v42 = vpack.c.bf16 %v13538_v41, %v13538_v41  ;;  %v8910_v10 = vld [vmem:[%s13035_s5 + $0xd8] sm:$0xff]  ;;  %v7380_v41 = vld [vmem:[#allocation2] sm:$0xf]  ;;  %4462 = vmatpush.bf16.msrb.mxu2 %v8998_v5 }
 0x203   : > { %2579 = vrot.lane.b32.xlu0 %v2563_v44, %s9462_s18  ;;  %1274 = vst.msk [vmem:[#allocation2 + $0x34] sm:$0xf] %vm861_vm2, %v1266_v56  ;;  %v2298_v56 = vpack.c.bf16 %v2290_v46, %v2290_v46  ;;  %v2295_v46 = vpack.c.bf16 %v2287_v43, %v2287_v43  ;;  %3979 = vmatpush.bf16.msra.mxu0 %v8910_v10  ;;  %v13550_v5 = vld [vmem:[#allocation98_spill] sm:$0xff] }
 0x204   : > { %3925 = vmatmul.bf16.vlgmr.msra.gmra.mxu2 %v7385_v54  ;;  %v1197_v2 = vpop.permute.xlu0 %1196  ;;  %2223 = vst.msk [vmem:[#allocation2 + $0x148] sm:$0xf] %vm861_vm2, %v2215_v4  ;;  %2185 = vrot.lane.b32.xlu1 %v2168_v48, %s9462_s18  ;;  %v2311_v4 = vmul.f32 %v13495_v13, %v13498_v21  ;;  %v13548_v54 = vld [vmem:[#allocation55_spill] sm:$0xff]  ;;  %v8930_v48 = vld [vmem:[#allocation2 + $0xfc] sm:$0xf]  ;;  %v8916_v13 = vld [vmem:[%s13035_s5 + $0x108] sm:$0xff] }
 0x205   : > { %v1097_v22 = vpop.permute.xlu1 %1096  ;;  %1218 = vst.msk [vmem:[#allocation2 + $0x30] sm:$0xf] %vm950_vm3, %v1197_v2  ;;  %7376 = vmatmul.msk.bf16.gmra.mxu0 %vm3402_vm4, %v7209_v6  ;;  %v2219_v44 = vpack.c.bf16 %v13548_v54, %v13548_v54  ;;  %v7381_v2 = vor.u32 %v8865_v57, %v7380_v41  ;;  %v2314_v36 = vmul.f32 %v13548_v54, %v13499_v59  ;;  %v13551_v41 = vld [vmem:[#allocation95_spill] sm:$0xff]  ;;  %v13552_v54 = vld [vmem:[#allocation16_spill] sm:$0xff] }
 0x206   : > { %1116 = vst.msk [vmem:[#allocation2 + $0x54] sm:$0xf] %vm950_vm3, %v1097_v22  ;;  %2259 = vrot.lane.b32.xlu2 %v2241_v26, %s9462_s18  ;;  %v2566_v26 = vpack.c.bf16 %v2558_v63, %v2558_v63  ;;  %v2319_v43 = vpack.c.bf16 %v2311_v4, %v2311_v4  ;;  %v2297_v63 = vpack.c.bf16 %v2289_v28, %v2289_v28 }
 0x207   : > { %v941_v17 = vpop.permute.xlu2 %940  ;;  %2228 = vst.msk [vmem:[#allocation2 + $0x1ac] sm:$0xf] %vm861_vm2, %v2220_v35  ;;  %v13549_v35 = vld [vmem:[#allocation63_spill] sm:$0xff]  ;;  %4010 = vmatpush.bf16.msra.mxu1 %v8916_v13  ;;  %v2561_v28 = vmul.f32 %v10838_v51, %v13472_v30  ;;  %v8909_v30 = vld [vmem:[%s13035_s5 + $0xd0] sm:$0xff] }
 0x208   : > { %v7202_v6 = vld [vmem:[#allocation2 + $0x10c] sm:$0xf0]  ;;  %958 = vst.msk [vmem:[#allocation2 + $0x8c] sm:$0xf] %vm950_vm3, %v941_v17  ;;  %v2779_v57 = vmul.f32 %v13549_v35, %v13546_v19  ;;  %v2537_v19 = vmul.f32 %v10890_v45, %v13506_v62  ;;  %v2322_v17 = vpack.c.bf16 %v2314_v36, %v2314_v36  ;;  %3980 = vmatpush.bf16.msra.mxu0 %v8909_v30  ;;  %v7400_v30 = vld [vmem:[#allocation2 + $0x28] sm:$0xf] }
 0x209   : > { %v7205_v22 = vor.u32 %v8930_v48, %v7202_v6  ;;  %2225 = vst.msk [vmem:[#allocation2 + $0x170] sm:$0xf] %vm861_vm2, %v2217_v42  ;;  %v2534_v42 = vmul.f32 %v13550_v5, %v13444_v31  ;;  %v7402_v31 = vld [vmem:[#allocation2 + $0x3c] sm:$0xf0]  ;;  %v8997_v62 = vld [vmem:[%s13035_s5 + $0x250] sm:$0xff]  ;;  %v8900_v48 = vld [vmem:[%s13035_s5 + $0x88] sm:$0xff] }
 0x20a   : > { %2306 = vst.msk [vmem:[#allocation2 + $0x188] sm:$0xf] %vm861_vm2, %v2298_v56  ;;  %v2790_v56 = vpack.c.bf16 %v13551_v41, %v13551_v41  ;;  %v2787_v4 = vpack.c.bf16 %v2779_v57, %v2779_v57  ;;  %v13553_v36 = vld [vmem:[#allocation49_spill] sm:$0xff]  ;;  %4463 = vmatpush.bf16.msrb.mxu2 %v8997_v62  ;;  %3952 = vmatpush.bf16.msra.mxu3 %v8900_v48 }
 0x20b   : > { %3520 = vmatmul.bf16.gmra.mxu3 %v7205_v22  ;;  %2585 = vrot.lane.b32.xlu0 %v2566_v26, %s9462_s18  ;;  %2227 = vst.msk [vmem:[#allocation2 + $0x198] sm:$0xf] %vm861_vm2, %v2219_v44  ;;  %v2162_v44 = vmul.f32 %v13507_v58, %v13552_v54  ;;  %v2542_v6 = vpack.c.bf16 %v2534_v42, %v2534_v42  ;;  %v7228_v22 = vld [vmem:[#allocation2 + $0x128] sm:$0xf]  ;;  %v8938_v42 = vld [vmem:[#allocation2 + $0x138] sm:$0xf0] }
 0x20c   : > { %v2094_v32 = vpop.permute.xlu0 %2093  ;;  %2303 = vst.msk [vmem:[#allocation2 + $0x14c] sm:$0xf] %vm861_vm2, %v2295_v46  ;;  %2335 = vrot.lane.b32.xlu1 %v2319_v43, %s9462_s18  ;;  %v8868_v46 = vld [vmem:[#allocation2 + $0x2c] sm:$0xf]  ;;  %v2545_v26 = vpack.c.bf16 %v2537_v19, %v2537_v19  ;;  %v2631_v13 = vmul.f32 %v11491_v24, %v13553_v36  ;;  %v2569_v43 = vpack.c.bf16 %v2561_v28, %v2561_v28 }
 0x20d   : > { %3896 = vmatmul.bf16.vlgmr.msrb.gmra.mxu1 %v7381_v2  ;;  %v935_v10 = vpop.permute.xlu1 %934  ;;  %2114 = vst.msk [vmem:[#allocation2 + $0x17c] sm:$0xf] %vm950_vm3, %v2094_v32  ;;  %v2634_v2 = vmul.f32 %v11457_v55, %v13494_v0  ;;  %v7405_v57 = vor.u32 %v8868_v46, %v7402_v31  ;;  %v13554_v32 = vld [vmem:[#allocation27_spill] sm:$0xff]  ;;  %v2170_v0 = vpack.c.bf16 %v2162_v44, %v2162_v44  ;;  %v13556_v44 = vld [vmem:[#allocation85_spill] sm:$0xff]  ;;  %v8996_v46 = vld [vmem:[%s13035_s5 + $0x248] sm:$0xff] }
 0x20e   : > { %955 = vst.msk [vmem:[#allocation2 + $0x50] sm:$0xf] %vm950_vm3, %v935_v10  ;;  %2341 = vrot.lane.b32.xlu2 %v2322_v17, %s9462_s18  ;;  %v7229_v10 = vor.u32 %v8938_v42, %v7228_v22  ;;  %v2222_v31 = vpack.c.bf16 %v10653_v40, %v10653_v40  ;;  %4464 = vmatpush.bf16.msrb.mxu2 %v8996_v46  ;;  %v8915_v42 = vld [vmem:[%s13035_s5 + $0x100] sm:$0xff] }
 0x20f   : > { %2305 = vst.msk [vmem:[#allocation2 + $0x174] sm:$0xf] %vm861_vm2, %v2297_v63  ;;  %v2088_v58 = vpop.permute.xlu2 %2087  ;;  %v2235_v63 = vmul.f32 %v11161_v14, %v13554_v32  ;;  %v2642_v41 = vpack.c.bf16 %v2634_v2, %v2634_v2  ;;  %v2292_v14 = vmul.f32 %v11407_v8, %v11410_v52  ;;  %v8870_v8 = vld [vmem:[#allocation2 + $0x38] sm:$0xf0]  ;;  %4011 = vmatpush.bf16.msra.mxu1 %v8915_v42 }
 0x210   : > { %2798 = vst.msk [vmem:[#allocation2 + $0x228] sm:$0xf] %vm861_vm2, %v2790_v56  ;;  %v13555_v56 = vld [vmem:[#allocation91_spill] sm:$0xff]  ;;  %v7401_v22 = vor.u32 %v8870_v8, %v7400_v30 }
 0x211   : > { %2111 = vst.msk [vmem:[#allocation2 + $0x140] sm:$0xf] %vm950_vm3, %v2088_v58  ;;  %v1261_v19 = vmul.f32 %v11410_v52, %v13555_v56  ;;  %v2243_v48 = vpack.c.bf16 %v2235_v63, %v2235_v63  ;;  %v2804_v52 = vmul.f32 %v10681_v23, %v13477_v49  ;;  %v8899_v58 = vld [vmem:[%s13035_s5 + $0x80] sm:$0xff]  ;;  %v8908_v49 = vld [vmem:[%s13035_s5 + $0xc8] sm:$0xff]  ;;  %v2316_v63 = vmul.f32 %v10699_v47, %v13426_v60 }
 0x212   : > { %2795 = vst.msk [vmem:[#allocation2 + $0x1ec] sm:$0xf] %vm861_vm2, %v2787_v4  ;;  %v2639_v4 = vpack.c.bf16 %v2631_v13, %v2631_v13  ;;  %v2300_v13 = vpack.c.bf16 %v2292_v14, %v2292_v14  ;;  %3953 = vmatpush.bf16.msra.mxu3 %v8899_v58  ;;  %3981 = vmatpush.bf16.msra.mxu0 %v8908_v49  ;;  %v8907_v8 = vld [vmem:[%s13035_s5 + $0xc0] sm:$0xff] }
 0x213   : > { %2591 = vrot.lane.b32.xlu0 %v2569_v43, %s9462_s18  ;;  %2551 = vst.msk [vmem:[#allocation2 + $0x230] sm:$0xf] %vm861_vm2, %v2542_v6  ;;  %v2313_v6 = vmul.f32 %v13420_v3, %v13405_v53  ;;  %v1269_v36 = vpack.c.bf16 %v1261_v19, %v1261_v19  ;;  %v13557_v3 = vld [vmem:[#allocation79_spill] sm:$0xff]  ;;  %v2812_v43 = vpack.c.bf16 %v2804_v52, %v2804_v52 }
 0x214   : > { %3930 = vmatmul.bf16.gmra.mxu2 %v7405_v57  ;;  %v1201_v17 = vpop.permute.xlu0 %1200  ;;  %2554 = vst.msk [vmem:[#allocation2 + $0x26c] sm:$0xf] %vm861_vm2, %v2545_v26  ;;  %2189 = vrot.lane.b32.xlu1 %v2170_v0, %s9462_s18  ;;  %v2633_v57 = vmul.f32 %v11463_v50, %v13557_v3  ;;  %v2324_v14 = vpack.c.bf16 %v2316_v63, %v2316_v63 }
 0x215   : > { %v11742_v28 = vpop.permute.xlu1 %1253  ;;  %1220 = vst.msk [vmem:[#allocation2 + $0x58] sm:$0xf] %vm950_vm3, %v1201_v17  ;;  %7377 = vmatmul.msk.bf16.gmra.mxu0 %vm3402_vm4, %v7229_v10  ;;  %v2321_v0 = vpack.c.bf16 %v2313_v6, %v2313_v6  ;;  %v2723_v17 = vmul.f32 %v13527_v16, %v13532_v18  ;;  %v9010_v16 = vld [vmem:[%s13035_s5 + $0x2b8] sm:$0xff]  ;;  %v7422_v18 = vld [vmem:[#allocation2 + $0x64] sm:$0xf0] }
 0x216   : > { %v1810_v62 = vmul.f32 %v13556_v44, %v11742_v28  ;;  %2230 = vst.msk [vmem:[#allocation2 + $0x1d4] sm:$0xf] %vm861_vm2, %v2222_v31  ;;  %2263 = vrot.lane.b32.xlu2 %v2243_v48, %s9462_s18  ;;  %v2641_v56 = vpack.c.bf16 %v2633_v57, %v2633_v57  ;;  %v2781_v31 = vmul.f32 %v13550_v5, %v13540_v12  ;;  %v13558_v44 = vld [vmem:[#allocation32_spill] sm:$0xff]  ;;  %v7420_v57 = vld [vmem:[#allocation2 + $0x50] sm:$0xf] }
 0x217   : > { %2650 = vst.msk [vmem:[#allocation2 + $0x270] sm:$0xf] %vm861_vm2, %v2642_v41  ;;  %v1339_v26 = vpop.permute.xlu2 %1338  ;;  %v2221_v41 = vpack.c.bf16 %v10699_v47, %v10699_v47  ;;  %v8995_v47 = vld [vmem:[%s13035_s5 + $0x240] sm:$0xff]  ;;  %v2731_v6 = vpack.c.bf16 %v2723_v17, %v2723_v17  ;;  %3982 = vmatpush.bf16.msra.mxu0 %v8907_v8  ;;  %4487 = vmatpush.bf16.msrb.mxu3 %v9010_v16 }
 0x218   : > { %v1818_v2 = vpack.c.bf16 %v1810_v62, %v1810_v62  ;;  %2647 = vst.msk [vmem:[#allocation2 + $0x234] sm:$0xf] %vm861_vm2, %v2639_v4  ;;  %v8873_v4 = vld [vmem:[#allocation2 + $0x54] sm:$0xf]  ;;  %v13559_v62 = vld [vmem:[#allocation70_spill] sm:$0xff]  ;;  %4465 = vmatpush.bf16.msrb.mxu2 %v8995_v47  ;;  %v2789_v58 = vpack.c.bf16 %v2781_v31, %v2781_v31  ;;  %v2318_v31 = vmul.f32 %v13544_v61, %v13457_v15 }
 0x219   : > { %1361 = vst.msk [vmem:[#allocation2 + $0x20] sm:$0xf] %vm950_vm3, %v1339_v26  ;;  %v2164_v48 = vmul.f32 %v13559_v62, %v13558_v44  ;;  %v7425_v30 = vor.u32 %v8873_v4, %v7422_v18  ;;  %v8935_v26 = vld [vmem:[#allocation2 + $0x124] sm:$0xf]  ;;  %v9030_v4 = vld [vmem:[%s13035_s5 + $0x358] sm:$0xff] }
 0x21a   : > { %1826 = vst.msk [vmem:[#allocation2 + $0x138] sm:$0xf] %vm861_vm2, %v1818_v2  ;;  %v13560_v2 = vld [vmem:[#allocation29_spill] sm:$0xff]  ;;  %v9018_v47 = vld [vmem:[%s13035_s5 + $0x2f8] sm:$0xff] }
 0x21b   : > { %2829 = vrot.lane.b32.xlu0 %v2812_v43, %s9462_s18  ;;  %1277 = vst.msk [vmem:[#allocation2 + $0x70] sm:$0xf] %vm861_vm2, %v1269_v36  ;;  %v11803_v12 = vpop.f32.mrf.mxu0  ;;  %v2237_v46 = vmul.f32 %v11333_v1, %v13560_v2  ;;  %v2172_v49 = vpack.c.bf16 %v2164_v48, %v2164_v48  ;;  %v2806_v1 = vmul.f32 %v11126_v9, %v13499_v59  ;;  %v13561_v43 = vld [vmem:[#allocation46_spill] sm:$0xff] }
 0x21c   : > { %v2098_v10 = vpop.permute.xlu0 %2097  ;;  %2308 = vst.msk [vmem:[#allocation2 + $0x1b0] sm:$0xf] %vm861_vm2, %v2300_v13  ;;  %2339 = vrot.lane.b32.xlu1 %v2321_v0, %s9462_s18  ;;  %v1262_v63 = vmul.f32 %v11513_v27, %v13561_v43  ;;  %v13562_v0 = vld [vmem:[#allocation50_spill] sm:$0xff]  ;;  %4578 = vmatpush.bf16.msra.mxu2 %v9030_v4  ;;  %v2317_v4 = vmul.f32 %v10653_v40, %v13536_v34 }
 0x21d   : > { %3901 = vmatmul.bf16.gmra.mxu1 %v7401_v22  ;;  %2116 = vst.msk [vmem:[#allocation2 + $0x1a4] sm:$0xf] %vm950_vm3, %v2098_v10  ;;  %v1866_v19 = vpop.permute.xlu1 %1865  ;;  %v2245_v13 = vpack.c.bf16 %v2237_v46, %v2237_v46  ;;  %v1263_v10 = vmul.f32 %v11742_v28, %v13562_v0  ;;  %v2814_v17 = vpack.c.bf16 %v2806_v1, %v2806_v1  ;;  %v9026_v61 = vld [vmem:[%s13035_s5 + $0x338] sm:$0xff]  ;;  %v13563_v46 = vld [vmem:[#allocation72_spill] sm:$0xff] }
 0x21e   : > { %1882 = vst.msk [vmem:[#allocation2 + $0x138] sm:$0xf] %vm950_vm3, %v1866_v19  ;;  %2345 = vrot.lane.b32.xlu2 %v2324_v14, %s9462_s18  ;;  %v1270_v48 = vpack.c.bf16 %v1262_v63, %v1262_v63  ;;  %4516 = vmatpush.bf16.msrb.mxu0 %v9018_v47  ;;  %v9008_v63 = vld [vmem:[%s13035_s5 + $0x2a8] sm:$0xff] }
 0x21f   : > { %2229 = vst.msk [vmem:[#allocation2 + $0x1c0] sm:$0xf] %vm861_vm2, %v2221_v41  ;;  %v2092_v52 = vpop.permute.xlu2 %2091  ;;  %v8875_v41 = vld [vmem:[#allocation2 + $0x60] sm:$0xf0]  ;;  %v1271_v16 = vpack.c.bf16 %v1263_v10, %v1263_v10  ;;  %4545 = vmatpush.bf16.msrb.mxu1 %v9026_v61  ;;  %v9025_v10 = vld [vmem:[%s13035_s5 + $0x330] sm:$0xff]  ;;  %v9016_v47 = vld [vmem:[%s13035_s5 + $0x2e8] sm:$0xff] }
 0x220   : > { %2649 = vst.msk [vmem:[#allocation2 + $0x25c] sm:$0xf] %vm861_vm2, %v2641_v56  ;;  %v2315_v56 = vmul.f32 %v11058_v7, %v13521_v20  ;;  %v7421_v19 = vor.u32 %v8875_v41, %v7420_v57  ;;  %v9009_v7 = vld [vmem:[%s13035_s5 + $0x2b0] sm:$0xff] }
 0x221   : > { %2113 = vst.msk [vmem:[#allocation2 + $0x168] sm:$0xf] %vm950_vm3, %v2092_v52  ;;  %4488 = vmatpush.bf16.msrb.mxu3 %v9009_v7  ;;  %v9029_v7 = vld [vmem:[%s13035_s5 + $0x350] sm:$0xff] }
 0x222   : > { %2797 = vst.msk [vmem:[#allocation2 + $0x214] sm:$0xf] %vm861_vm2, %v2789_v58  ;;  %v2323_v8 = vpack.c.bf16 %v2315_v56, %v2315_v56  ;;  %v2725_v58 = vmul.f32 %v13563_v46, %v13545_v37  ;;  %v13566_v37 = vld [vmem:[#allocation13_spill] sm:$0xff]  ;;  %4579 = vmatpush.bf16.msra.mxu2 %v9029_v7  ;;  %v2325_v46 = vpack.c.bf16 %v2317_v4, %v2317_v4 }
 0x223   : > { %2747 = vrot.lane.b32.xlu0 %v2731_v6, %s9462_s18  ;;  %v11823_v14 = vpop.f32.mrf.mxu0  ;;  %1278 = vst.msk [vmem:[#allocation2 + $0x84] sm:$0xf] %vm861_vm2, %v1270_v48  ;;  %v2557_v43 = vmul.f32 %v13566_v37, %v13407_v11  ;;  %4546 = vmatpush.bf16.msrb.mxu1 %v9025_v10  ;;  %v13570_v10 = vld [vmem:[#allocation18_spill] sm:$0xff]  ;;  %v2803_v7 = vmul.f32 %v13566_v37, %v13498_v21 }
 0x224   : > { %3935 = vmatmul.bf16.gmra.mxu2 %v7425_v30  ;;  %v1205_v22 = vpop.permute.xlu0 %1204  ;;  %2193 = vrot.lane.b32.xlu1 %v2172_v49, %s9462_s18  ;;  %v2326_v30 = vpack.c.bf16 %v2318_v31, %v2318_v31  ;;  %1279 = vst.msk [vmem:[#allocation2 + $0x98] sm:$0xf] %vm861_vm2, %v1271_v16  ;;  %v7442_v49 = vld [vmem:[#allocation2 + $0x8c] sm:$0xf0]  ;;  %v2733_v1 = vpack.c.bf16 %v2725_v58, %v2725_v58  ;;  %v8880_v31 = vld [vmem:[#allocation2 + $0x88] sm:$0xf0] }
 0x225   : > { %1222 = vst.msk [vmem:[#allocation2 + $0x80] sm:$0xf] %vm950_vm3, %v1205_v22  ;;  %v1101_v36 = vpop.permute.xlu1 %1100  ;;  %v7222_v3 = vld [vmem:[#allocation2 + $0x134] sm:$0xf0]  ;;  %4489 = vmatpush.bf16.msrb.mxu3 %v9008_v63 }
 0x226   : > { %1118 = vst.msk [vmem:[#allocation2 + $0x7c] sm:$0xf] %vm950_vm3, %v1101_v36  ;;  %v7225_v42 = vor.u32 %v8935_v26, %v7222_v3  ;;  %2267 = vrot.lane.b32.xlu2 %v2245_v13, %s9462_s18  ;;  %v13564_v26 = vld [vmem:[#allocation35_spill] sm:$0xff] }
 0x227   : > { %v1343_v59 = vpop.permute.xlu2 %1342  ;;  %v13565_v36 = vld [vmem:[#allocation99_spill] sm:$0xff] }
 0x228   : > { %3525 = vmatmul.bf16.gmra.mxu3 %v7225_v42  ;;  %1363 = vst.msk [vmem:[#allocation2 + $0x48] sm:$0xf] %vm950_vm3, %v1343_v59  ;;  %v2166_v13 = vmul.f32 %v13565_v36, %v13564_v26  ;;  %v9017_v42 = vld [vmem:[%s13035_s5 + $0x2f0] sm:$0xff]  ;;  %v2293_v41 = vmul.f32 %v13565_v36, %v11513_v27  ;;  %v2808_v59 = vmul.f32 %v10848_v25, %v13426_v60  ;;  %v9007_v60 = vld [vmem:[%s13035_s5 + $0x2a0] sm:$0xff]  ;;  %v7388_v36 = vld [vmem:[#allocation2 + $0x8] sm:$0xf] }
 0x229   : > { %4517 = vmatpush.bf16.msrb.mxu0 %v9017_v42  ;;  %4490 = vmatpush.bf16.msrb.mxu3 %v9007_v60  ;;  %v7680_v42 = vld [vmem:[#allocation2 + $0x140] sm:$0xf] }
 0x22a   : > { %v2174_v0 = vpack.c.bf16 %v2166_v13, %v2166_v13  ;;  %v2301_v48 = vpack.c.bf16 %v2293_v41, %v2293_v41  ;;  %v13569_v13 = vld [vmem:[#allocation75_spill] sm:$0xff] }
 0x22b   : > { %2833 = vrot.lane.b32.xlu0 %v2814_v17, %s9462_s18  ;;  %v11851_v57 = vpop.f32.mrf.mxu0  ;;  %v13571_v41 = vld [vmem:[#allocation67_spill] sm:$0xff] }
 0x22c   : > { %2343 = vrot.lane.b32.xlu1 %v2323_v8, %s9462_s18  ;;  %v2102_v18 = vpop.permute.xlu0 %2101  ;;  %v13567_v8 = vld [vmem:[#allocation53_spill] sm:$0xff]  ;;  %2309 = vst.msk [vmem:[#allocation2 + $0x1c4] sm:$0xf] %vm861_vm2, %v2301_v48  ;;  %v2810_v21 = vmul.f32 %v13571_v41, %v13457_v15 }
 0x22d   : > { %3906 = vmatmul.bf16.gmra.mxu1 %v7421_v19  ;;  %v939_v52 = vpop.permute.xlu1 %938  ;;  %v8878_v6 = vld [vmem:[#allocation2 + $0x7c] sm:$0xf]  ;;  %2118 = vst.msk [vmem:[#allocation2 + $0x1cc] sm:$0xf] %vm950_vm3, %v2102_v18  ;;  %v2565_v19 = vpack.c.bf16 %v2557_v43, %v2557_v43  ;;  %v1260_v61 = vmul.f32 %v11589_v29, %v13567_v8  ;;  %v2816_v18 = vpack.c.bf16 %v2808_v59, %v2808_v59  ;;  %v3482_v43 = vpop.f32.mrf.mxu2 }
 0x22e   : > { %957 = vst.msk [vmem:[#allocation2 + $0x78] sm:$0xf] %vm950_vm3, %v939_v52  ;;  %2349 = vrot.lane.b32.xlu2 %v2326_v30, %s9462_s18  ;;  %v7445_v22 = vor.u32 %v8878_v6, %v7442_v49  ;;  %v13568_v52 = vld [vmem:[#allocation30_spill] sm:$0xff]  ;;  %v9024_v6 = vld [vmem:[%s13035_s5 + $0x328] sm:$0xff]  ;;  %4518 = vmatpush.bf16.msrb.mxu0 %v9016_v47  ;;  %v2291_v59 = vmul.f32 %v13559_v62, %v11589_v29  ;;  %v9023_v62 = vld [vmem:[%s13035_s5 + $0x320] sm:$0xff] }
 0x22f   : > { %v2096_v3 = vpop.permute.xlu2 %2095  ;;  %v2560_v30 = vmul.f32 %v11126_v9, %v13568_v52  ;;  %4547 = vmatpush.bf16.msrb.mxu1 %v9024_v6  ;;  %v2811_v8 = vpack.c.bf16 %v2803_v7, %v2803_v7  ;;  %v7390_v52 = vld [vmem:[#allocation2 + $0x1c] sm:$0xf0] }
 0x230   : > { %2115 = vst.msk [vmem:[#allocation2 + $0x190] sm:$0xf] %vm950_vm3, %v2096_v3  ;;  %v2727_v3 = vmul.f32 %v13569_v13, %v13554_v32  ;;  %v9006_v32 = vld [vmem:[%s13035_s5 + $0x298] sm:$0xff]  ;;  %v9028_v13 = vld [vmem:[%s13035_s5 + $0x348] sm:$0xff] }
 0x231   : > { %4491 = vmatpush.bf16.msrb.mxu3 %v9006_v32  ;;  %4580 = vmatpush.bf16.msra.mxu2 %v9028_v13  ;;  %v3511_v32 = vpop.f32.mrf.mxu3  ;;  %v7410_v13 = vld [vmem:[#allocation2 + $0x44] sm:$0xf0] }
 0x233   : > { %2751 = vrot.lane.b32.xlu0 %v2733_v1, %s9462_s18  ;;  %v11887_v16 = vpop.f32.mrf.mxu0  ;;  %v1268_v1 = vpack.c.bf16 %v1260_v61, %v1260_v61  ;;  %v8867_v61 = vld [vmem:[#allocation2 + $0x20] sm:$0xf0]  ;;  %4548 = vmatpush.bf16.msrb.mxu1 %v9023_v62 }
 0x234   : > { %3940 = vmatmul.bf16.gmra.mxu2 %v7445_v22  ;;  %2197 = vrot.lane.b32.xlu1 %v2174_v0, %s9462_s18  ;;  %v2184_v11 = vpop.permute.xlu0 %2183  ;;  %v2568_v22 = vpack.c.bf16 %v2560_v30, %v2560_v30 }
 0x235   : > { %2207 = vst.msk [vmem:[#allocation2 + $0x144] sm:$0xf] %vm950_vm3, %v2184_v11  ;;  %v7440_v17 = vld [vmem:[#allocation2 + $0x78] sm:$0xf]  ;;  %v2556_v11 = vmul.f32 %v13571_v41, %v13570_v10 }
 0x236   : > { %v1195_v56 = vpop.permute.xlu1 %1194  ;;  %2583 = vrot.lane.b32.xlu2 %v2565_v19, %s9462_s18  ;;  %v7441_v27 = vor.u32 %v8880_v31, %v7440_v17  ;;  %1276 = vst.msk [vmem:[#allocation2 + $0x5c] sm:$0xf] %vm861_vm2, %v1268_v1  ;;  %v9015_v19 = vld [vmem:[%s13035_s5 + $0x2e0] sm:$0xff]  ;;  %v9014_v1 = vld [vmem:[%s13035_s5 + $0x2d8] sm:$0xff] }
 0x237   : > { %1217 = vst.msk [vmem:[#allocation2 + $0x1c] sm:$0xf] %vm950_vm3, %v1195_v56  ;;  %v1347_v40 = vpop.permute.xlu2 %1346  ;;  %v8977_v56 = vld [vmem:[#allocation2 + $0x150] sm:$0xf0]  ;;  %4519 = vmatpush.bf16.msrb.mxu0 %v9015_v19  ;;  %v2564_v60 = vpack.c.bf16 %v2556_v11, %v2556_v11 }
 0x238   : > { %1365 = vst.msk [vmem:[#allocation2 + $0x70] sm:$0xf] %vm950_vm3, %v1347_v40  ;;  %v7681_v17 = vor.u32 %v8977_v56, %v7680_v42  ;;  %v2818_v42 = vpack.c.bf16 %v2810_v21, %v2810_v21  ;;  %v13573_v11 = vld [vmem:[#allocation73_spill] sm:$0xff]  ;;  %v8982_v21 = vld [vmem:[#allocation2 + $0x178] sm:$0xf0] }
 0x239   : > { %v2792_v56 = vpack.c.bf16 %v13573_v11, %v13573_v11 }
 0x23b   : > { %2837 = vrot.lane.b32.xlu0 %v2816_v18, %s9462_s18  ;;  %v2299_v18 = vpack.c.bf16 %v2291_v59, %v2291_v59  ;;  %v9022_v59 = vld [vmem:[%s13035_s5 + $0x318] sm:$0xff]  ;;  %4520 = vmatpush.bf16.msrb.mxu0 %v9014_v1  ;;  %2800 = vst.msk [vmem:[#allocation2 + $0x250] sm:$0xf] %vm861_vm2, %v2792_v56 }
 0x23c   : > { %2347 = vrot.lane.b32.xlu1 %v2325_v46, %s9462_s18  ;;  %v2258_v58 = vpop.permute.xlu0 %2257  ;;  %v7396_v46 = vld [vmem:[#allocation2 + $0x10] sm:$0xf]  ;;  %4549 = vmatpush.bf16.msrb.mxu1 %v9022_v59  ;;  %v9003_v59 = vld [vmem:[%s13035_s5 + $0x280] sm:$0xff] }
 0x23d   : > { %3911 = vmatmul.bf16.gmra.mxu1 %v7441_v27  ;;  %2280 = vst.msk [vmem:[#allocation2 + $0x15c] sm:$0xf] %vm950_vm3, %v2258_v58  ;;  %v2735_v27 = vpack.c.bf16 %v2727_v3, %v2727_v3  ;;  %v13572_v58 = vld [vmem:[#allocation17_spill] sm:$0xff] }
 0x23e   : > { %v1337_v49 = vpop.permute.xlu1 %1336  ;;  %v8866_v63 = vld [vmem:[#allocation2 + $0x18] sm:$0xf0]  ;;  %2589 = vrot.lane.b32.xlu2 %v2568_v22, %s9462_s18  ;;  %v11931_v22 = vpop.f32.mrf.mxu2  ;;  %v9005_v3 = vld [vmem:[%s13035_s5 + $0x290] sm:$0xff]  ;;  %2307 = vst.msk [vmem:[#allocation2 + $0x19c] sm:$0xf] %vm861_vm2, %v2299_v18 }
 0x23f   : > { %1360 = vst.msk [vmem:[#allocation2 + $0xc] sm:$0xf] %vm950_vm3, %v1337_v49  ;;  %v7389_v0 = vor.u32 %v8866_v63, %v7388_v36  ;;  %v2100_v4 = vpop.permute.xlu2 %2099  ;;  %v2559_v49 = vmul.f32 %v13447_v38, %v13572_v58  ;;  %v7397_v36 = vor.u32 %v8867_v61, %v7396_v46  ;;  %4492 = vmatpush.bf16.msrb.mxu3 %v9005_v3  ;;  %v9021_v58 = vld [vmem:[%s13035_s5 + $0x310] sm:$0xff] }
 0x240   : > { %v11914_v31 = vpop.f32.mrf.mxu0  ;;  %2117 = vst.msk [vmem:[#allocation2 + $0x1b8] sm:$0xf] %vm950_vm3, %v2100_v4  ;;  %4550 = vmatpush.bf16.msrb.mxu1 %v9021_v58 }
 0x241   : > { %3954 = vmatmul.bf16.vlgmr.msra.gmra.mxu3 %v7389_v0  ;;  %v2652_v0 = vmul.f32 %v13549_v35, %v13542_v39  ;;  %v2567_v19 = vpack.c.bf16 %v2559_v49, %v2559_v49 }
 0x243   : > { %2755 = vrot.lane.b32.xlu0 %v2735_v27, %s9462_s18  ;;  %v2660_v35 = vpack.c.bf16 %v2652_v0, %v2652_v0  ;;  %v2729_v27 = vmul.f32 %v11457_v55, %v13560_v2  ;;  %v9004_v55 = vld [vmem:[%s13035_s5 + $0x288] sm:$0xff]  ;;  %v9013_v2 = vld [vmem:[%s13035_s5 + $0x2d0] sm:$0xff]  ;;  %v13575_v0 = vld [vmem:[#allocation11_spill] sm:$0xff] }
 0x244   : > { %4466 = vmatmul.bf16.vlgmr.msrb.gmra.mxu2 %v7681_v17  ;;  %2581 = vrot.lane.b32.xlu1 %v2564_v60, %s9462_s18  ;;  %v2188_v47 = vpop.permute.xlu0 %2187  ;;  %v7700_v60 = vld [vmem:[#allocation2 + $0x168] sm:$0xf] }
 0x245   : > { %2209 = vst.msk [vmem:[#allocation2 + $0x16c] sm:$0xf] %vm950_vm3, %v2188_v47  ;;  %v7701_v18 = vor.u32 %v8982_v21, %v7700_v60  ;;  %4493 = vmatpush.bf16.msrb.mxu3 %v9004_v55  ;;  %4521 = vmatpush.bf16.msrb.mxu0 %v9013_v2  ;;  %v7720_v21 = vld [vmem:[#allocation2 + $0x190] sm:$0xf]  ;;  %v7428_v2 = vld [vmem:[#allocation2 + $0x58] sm:$0xf] }
 0x246   : > { %v1199_v48 = vpop.permute.xlu1 %1198  ;;  %v8864_v40 = vld [vmem:[#allocation2 + $0xc] sm:$0xf]  ;;  %2827 = vrot.lane.b32.xlu2 %v2811_v8, %s9462_s18  ;;  %v3487_v61 = vpop.f32.mrf.mxu2 }
 0x247   : > { %1219 = vst.msk [vmem:[#allocation2 + $0x44] sm:$0xf] %vm950_vm3, %v1199_v48  ;;  %v7393_v6 = vor.u32 %v8864_v40, %v7390_v52  ;;  %v13574_v48 = vld [vmem:[#allocation44_spill] sm:$0xff]  ;;  %v2737_v52 = vpack.c.bf16 %v2729_v27, %v2729_v27 }
 0x248   : > { %v11944_v63 = vpop.f32.mrf.mxu0  ;;  %v2562_v8 = vmul.f32 %v10848_v25, %v13574_v48  ;;  %v12013_v48 = vpop.f32.mrf.mxu3 }
 0x249   : > { %3983 = vmatmul.bf16.vlgmr.msra.gmra.mxu0 %v7393_v6  ;;  %v2805_v6 = vmul.f32 %v13447_v38, %v13405_v53  ;;  %4494 = vmatpush.bf16.msrb.mxu3 %v9003_v59  ;;  %v7436_v59 = vld [vmem:[#allocation2 + $0x60] sm:$0xf] }
 0x24a   : > { %v3453_v30 = vpop.f32.mrf.mxu1  ;;  %v2570_v46 = vpack.c.bf16 %v2562_v8, %v2562_v8 }
 0x24b   : > { %v3454_v15 = vadd.f32 %v3453_v30, %v11803_v12  ;;  %v1351_v12 = vpop.permute.xlu2 %1350  ;;  %2841 = vrot.lane.b32.xlu0 %v2818_v42, %s9462_s18 }
 0x24c   : > { %1367 = vst.msk [vmem:[#allocation2 + $0x98] sm:$0xf] %vm950_vm3, %v1351_v12  ;;  %2587 = vrot.lane.b32.xlu1 %v2567_v19, %s9462_s18  ;;  %v2262_v39 = vpop.permute.xlu0 %2261  ;;  %v8872_v12 = vld [vmem:[#allocation2 + $0x48] sm:$0xf0]  ;;  %v9027_v19 = vld [vmem:[%s13035_s5 + $0x340] sm:$0xff] }
 0x24d   : > { %v3483_v10 = vadd.f32 %v3482_v43, %v3454_v15  ;;  %7602 = vmatmul.msk.bf16.vlgmr.msra.gmra.mxu1 %vm3402_vm4, %v7397_v36  ;;  %v7408_v43 = vld [vmem:[#allocation2 + $0x30] sm:$0xf]  ;;  %2282 = vst.msk [vmem:[#allocation2 + $0x184] sm:$0xf] %vm950_vm3, %v2262_v39  ;;  %v2813_v15 = vpack.c.bf16 %v2805_v6, %v2805_v6  ;;  %v7416_v36 = vld [vmem:[#allocation2 + $0x38] sm:$0xf]  ;;  %4581 = vmatpush.bf16.msra.mxu2 %v9027_v19 }
 0x24e   : > { %v1341_v4 = vpop.permute.xlu1 %1340  ;;  %v8871_v7 = vld [vmem:[#allocation2 + $0x40] sm:$0xf0]  ;;  %2677 = vrot.lane.b32.xlu2 %v2660_v35, %s9462_s18  ;;  %v9012_v39 = vld [vmem:[%s13035_s5 + $0x2c8] sm:$0xff]  ;;  %v13577_v35 = vld [vmem:[#allocation82_spill] sm:$0xff] }
 0x24f   : > { %v11956_v17 = vadd.f32 %v3511_v32, %v3483_v10  ;;  %1362 = vst.msk [vmem:[#allocation2 + $0x34] sm:$0xf] %vm950_vm3, %v1341_v4  ;;  %v7409_v47 = vor.u32 %v8871_v7, %v7408_v43  ;;  %v13576_v10 = vld [vmem:[#allocation69_spill] sm:$0xff]  ;;  %v7417_v32 = vor.u32 %v8872_v12, %v7416_v36  ;;  %v2783_v43 = vmul.f32 %v13577_v35, %v11589_v29  ;;  %v12006_v7 = vpop.f32.mrf.mxu2  ;;  %v9020_v29 = vld [vmem:[%s13035_s5 + $0x308] sm:$0xff] }
 0x250   : > { %v11975_v40 = vpop.f32.mrf.mxu0  ;;  %v2651_v11 = vmul.f32 %v13576_v10, %v13575_v0  ;;  %v2654_v4 = vmul.f32 %v13550_v5, %v13552_v54  ;;  %4522 = vmatpush.bf16.msrb.mxu0 %v9012_v39  ;;  %4551 = vmatpush.bf16.msrb.mxu1 %v9020_v29  ;;  %v13580_v36 = vld [vmem:[#allocation96_spill] sm:$0xff]  ;;  %v9019_v0 = vld [vmem:[%s13035_s5 + $0x300] sm:$0xff]  ;;  %v8877_v39 = vld [vmem:[#allocation2 + $0x70] sm:$0xf0] }
 0x251   : > { %3959 = vmatmul.bf16.gmra.mxu3 %v7409_v47  ;;  %v2791_v8 = vpack.c.bf16 %v2783_v43, %v2783_v43  ;;  %v7430_v29 = vld [vmem:[#allocation2 + $0x6c] sm:$0xf0] }
 0x252   : > { %v11963_v62 = vpop.f32.mrf.mxu1  ;;  %v2659_v47 = vpack.c.bf16 %v2651_v11, %v2651_v11  ;;  %v2662_v54 = vpack.c.bf16 %v2654_v4, %v2654_v4 }
 0x253   : > { %v2256_v30 = vpop.permute.xlu2 %2255  ;;  %2759 = vrot.lane.b32.xlu0 %v2737_v52, %s9462_s18  ;;  %v13578_v52 = vld [vmem:[#allocation23_spill] sm:$0xff]  ;;  %2799 = vst.msk [vmem:[#allocation2 + $0x23c] sm:$0xf] %vm861_vm2, %v2791_v8 }
 0x254   : > { %2279 = vst.msk [vmem:[#allocation2 + $0x148] sm:$0xf] %vm950_vm3, %v2256_v30  ;;  %4471 = vmatmul.bf16.gmra.mxu2 %v7701_v18  ;;  %2593 = vrot.lane.b32.xlu1 %v2570_v46, %s9462_s18  ;;  %v2192_v49 = vpop.permute.xlu0 %2191  ;;  %v13579_v30 = vld [vmem:[#allocation48_spill] sm:$0xff]  ;;  %v2707_v46 = vpack.c.bf16 %v13571_v41, %v13571_v41 }
 0x255   : > { %2211 = vst.msk [vmem:[#allocation2 + $0x194] sm:$0xf] %vm950_vm3, %v2192_v49  ;;  %v2724_v6 = vmul.f32 %v13579_v30, %v13578_v52  ;;  %v8987_v49 = vld [vmem:[#allocation2 + $0x1a0] sm:$0xf0]  ;;  %4552 = vmatpush.bf16.msrb.mxu1 %v9019_v0  ;;  %v2809_v0 = vmul.f32 %v11243_v33, %v13536_v34  ;;  %v8882_v34 = vld [vmem:[#allocation2 + $0x98] sm:$0xf0] }
 0x256   : > { %v8869_v53 = vld [vmem:[#allocation2 + $0x34] sm:$0xf]  ;;  %v1203_v1 = vpop.permute.xlu1 %1202  ;;  %2831 = vrot.lane.b32.xlu2 %v2813_v15, %s9462_s18  ;;  %v9011_v15 = vld [vmem:[%s13035_s5 + $0x2c0] sm:$0xff]  ;;  %2715 = vst.msk [vmem:[#allocation2 + $0x1e8] sm:$0xf] %vm861_vm2, %v2707_v46 }
 0x257   : > { %v7413_v42 = vor.u32 %v8869_v53, %v7410_v13  ;;  %1221 = vst.msk [vmem:[#allocation2 + $0x6c] sm:$0xf] %vm950_vm3, %v1203_v1  ;;  %v2294_v53 = vmul.f32 %v13580_v36, %v11742_v28  ;;  %v7721_v13 = vor.u32 %v8987_v49, %v7720_v21  ;;  %v2807_v1 = vmul.f32 %v10838_v51, %v13521_v20  ;;  %v3492_v11 = vpop.f32.mrf.mxu2  ;;  %v7448_v49 = vld [vmem:[#allocation2 + $0x80] sm:$0xf]  ;;  %v13583_v36 = vld [vmem:[#allocation21_spill] sm:$0xff] }
 0x258   : > { %4523 = vmatpush.bf16.msrb.mxu0 %v9011_v15  ;;  %v2732_v12 = vpack.c.bf16 %v2724_v6, %v2724_v6 }
 0x259   : > { %3988 = vmatmul.bf16.gmra.mxu0 %v7413_v42  ;;  %v2815_v19 = vpack.c.bf16 %v2807_v1, %v2807_v1  ;;  %v2302_v43 = vpack.c.bf16 %v2294_v53, %v2294_v53  ;;  %v2726_v53 = vmul.f32 %v11491_v24, %v13583_v36 }
 0x25a   : > { %v3458_v3 = vpop.f32.mrf.mxu1 }
 0x25b   : > { %v3459_v56 = vadd.f32 %v3458_v3, %v11851_v57  ;;  %v12002_v57 = vpop.f32.mrf.mxu0  ;;  %v2338_v27 = vpop.permute.xlu2 %2337  ;;  %2310 = vst.msk [vmem:[#allocation2 + $0x1d8] sm:$0xf] %vm861_vm2, %v2302_v43 }
 0x25c   : > { %2360 = vst.msk [vmem:[#allocation2 + $0x160] sm:$0xf] %vm950_vm3, %v2338_v27  ;;  %2675 = vrot.lane.b32.xlu1 %v2659_v47, %s9462_s18  ;;  %v2266_v5 = vpop.permute.xlu0 %2265 }
 0x25d   : > { %7603 = vmatmul.msk.bf16.gmra.mxu1 %vm3402_vm4, %v7417_v32  ;;  %v3488_v60 = vadd.f32 %v3487_v61, %v3459_v56  ;;  %2284 = vst.msk [vmem:[#allocation2 + $0x1ac] sm:$0xf] %vm950_vm3, %v2266_v5  ;;  %v13581_v5 = vld [vmem:[#allocation24_spill] sm:$0xff] }
 0x25e   : > { %v1345_v55 = vpop.permute.xlu1 %1344  ;;  %2681 = vrot.lane.b32.xlu2 %v2662_v54, %s9462_s18  ;;  %v8876_v18 = vld [vmem:[#allocation2 + $0x68] sm:$0xf0]  ;;  %v13582_v54 = vld [vmem:[#allocation71_spill] sm:$0xff] }
 0x25f   : > { %1364 = vst.msk [vmem:[#allocation2 + $0x5c] sm:$0xf] %vm950_vm3, %v1345_v55  ;;  %v7429_v58 = vor.u32 %v8876_v18, %v7428_v2  ;;  %v7437_v55 = vor.u32 %v8877_v39, %v7436_v59  ;;  %v3494_v46 = vpop.f32.mrf.mxu2  ;;  %v7456_v59 = vld [vmem:[#allocation2 + $0x88] sm:$0xf] }
 0x261   : > { %3964 = vmatmul.bf16.gmra.mxu3 %v7429_v58 }
 0x262   : > { %v12017_v61 = vpop.f32.mrf.mxu1 }
 0x263   : > { %v2260_v3 = vpop.permute.xlu2 %2259  ;;  %v3540_v41 = vpop.f32.mrf.mxu0 }
 0x264   : > { %2281 = vst.msk [vmem:[#allocation2 + $0x170] sm:$0xf] %vm950_vm3, %v2260_v3  ;;  %4476 = vmatmul.bf16.gmra.mxu2 %v7721_v13  ;;  %v12036_v42 = vadd.f32 %v3540_v41, %v11956_v17  ;;  %2749 = vrot.lane.b32.xlu1 %v2732_v12, %s9462_s18  ;;  %v2196_v32 = vpop.permute.xlu0 %2195  ;;  %v2786_v17 = vmul.f32 %v13576_v10, %v11742_v28  ;;  %v8992_v3 = vld [vmem:[#allocation2 + $0x1c8] sm:$0xf0] }
 0x265   : > { %v3516_v56 = vpop.f32.mrf.mxu3  ;;  %2213 = vst.msk [vmem:[#allocation2 + $0x1bc] sm:$0xf] %vm950_vm3, %v2196_v32  ;;  %v2656_v28 = vmul.f32 %v13577_v35, %v13558_v44  ;;  %v7740_v44 = vld [vmem:[#allocation2 + $0x1b8] sm:$0xf]  ;;  %v2734_v32 = vpack.c.bf16 %v2726_v53, %v2726_v53 }
 0x266   : > { %v3517_v20 = vadd.f32 %v3516_v56, %v3488_v60  ;;  %v1207_v4 = vpop.permute.xlu1 %1206  ;;  %2835 = vrot.lane.b32.xlu2 %v2815_v19, %s9462_s18  ;;  %v8874_v47 = vld [vmem:[#allocation2 + $0x5c] sm:$0xf]  ;;  %v2653_v60 = vmul.f32 %v13582_v54, %v13581_v5  ;;  %v2794_v52 = vpack.c.bf16 %v2786_v17, %v2786_v17  ;;  %v7741_v41 = vor.u32 %v8992_v3, %v7740_v44  ;;  %v13587_v44 = vld [vmem:[#allocation19_spill] sm:$0xff] }
 0x267   : > { %1223 = vst.msk [vmem:[#allocation2 + $0x94] sm:$0xf] %vm950_vm3, %v1207_v4  ;;  %v7433_v21 = vor.u32 %v8874_v47, %v7430_v29  ;;  %v2664_v30 = vpack.c.bf16 %v2656_v28, %v2656_v28  ;;  %v2817_v19 = vpack.c.bf16 %v2809_v0, %v2809_v0  ;;  %v7450_v4 = vld [vmem:[#allocation2 + $0x94] sm:$0xf0]  ;;  %v13585_v29 = vld [vmem:[#allocation89_spill] sm:$0xff]  ;;  %v3456_v3 = vadd.f32 %v11963_v62, %v11823_v14 }
 0x268   : > { %v2661_v18 = vpack.c.bf16 %v2653_v60, %v2653_v60  ;;  %2802 = vst.msk [vmem:[#allocation2 + $0x278] sm:$0xf] %vm861_vm2, %v2794_v52  ;;  %v13584_v47 = vld [vmem:[#allocation22_spill] sm:$0xff]  ;;  %v7457_v60 = vor.u32 %v8882_v34, %v7456_v59  ;;  %v7690_v62 = vld [vmem:[#allocation2 + $0x15c] sm:$0xf0] }
 0x269   : > { %3993 = vmatmul.bf16.gmra.mxu0 %v7433_v21  ;;  %v2655_v5 = vmul.f32 %v13585_v29, %v13584_v47  ;;  %v13588_v59 = vld [vmem:[#allocation34_spill] sm:$0xff]  ;;  %v3485_v34 = vadd.f32 %v11931_v22, %v3456_v3  ;;  %v13589_v47 = vld [vmem:[#allocation31_spill] sm:$0xff] }
 0x26a   : > { %v3463_v27 = vpop.f32.mrf.mxu1  ;;  %v2793_v29 = vpack.c.bf16 %v13589_v47, %v13589_v47 }
 0x26b   : > { %v3464_v8 = vadd.f32 %v3463_v27, %v11914_v31  ;;  %v2342_v2 = vpop.permute.xlu2 %2341  ;;  %v12054_v10 = vpop.f32.mrf.mxu0  ;;  %v2663_v28 = vpack.c.bf16 %v2655_v5, %v2655_v5  ;;  %v9120_v5 = vld [vmem:[%s13035_s5 + $0x188] sm:$0xff] }
 0x26c   : > { %2362 = vst.msk [vmem:[#allocation2 + $0x188] sm:$0xf] %vm950_vm3, %v2342_v2  ;;  %2679 = vrot.lane.b32.xlu1 %v2661_v18, %s9462_s18 }
 0x26d   : > { %7604 = vmatmul.msk.bf16.gmra.mxu1 %vm3402_vm4, %v7437_v55  ;;  %v2270_v31 = vpop.permute.xlu0 %2269  ;;  %v12058_v6 = vadd.f32 %v3492_v11, %v3464_v8  ;;  %v2708_v8 = vpack.c.bf16 %v13566_v37, %v13566_v37  ;;  %v13586_v55 = vld [vmem:[#allocation97_spill] sm:$0xff]  ;;  %v8979_v37 = vld [vmem:[#allocation2 + $0x160] sm:$0xf0]  ;;  %2801 = vst.msk [vmem:[#allocation2 + $0x264] sm:$0xf] %vm861_vm2, %v2793_v29 }
 0x26e   : > { %2286 = vst.msk [vmem:[#allocation2 + $0x1d4] sm:$0xf] %vm950_vm3, %v2270_v31  ;;  %v1349_v58 = vpop.permute.xlu1 %1348  ;;  %2685 = vrot.lane.b32.xlu2 %v2664_v30, %s9462_s18  ;;  %v8881_v15 = vld [vmem:[#allocation2 + $0x90] sm:$0xf0]  ;;  %v2658_v2 = vmul.f32 %v13586_v55, %v13564_v26  ;;  %v8975_v26 = vld [vmem:[#allocation2 + $0x144] sm:$0xf] }
 0x26f   : > { %1366 = vst.msk [vmem:[#allocation2 + $0x84] sm:$0xf] %vm950_vm3, %v1349_v58  ;;  %v7449_v13 = vor.u32 %v8881_v15, %v7448_v49  ;;  %v7696_v49 = vld [vmem:[#allocation2 + $0x150] sm:$0xf]  ;;  %v7736_v29 = vld [vmem:[#allocation2 + $0x1a0] sm:$0xf] }
 0x270   : > { %2716 = vst.msk [vmem:[#allocation2 + $0x1fc] sm:$0xf] %vm861_vm2, %v2708_v8  ;;  %v2666_v18 = vpack.c.bf16 %v2658_v2, %v2658_v2  ;;  %v7697_v15 = vor.u32 %v8979_v37, %v7696_v49  ;;  %v13590_v37 = vld [vmem:[#allocation37_spill] sm:$0xff] }
 0x271   : > { %3969 = vmatmul.bf16.gmra.mxu3 %v7449_v13  ;;  %v9122_v13 = vld [vmem:[%s13035_s5 + $0x198] sm:$0xff] }
 0x272   : > { %v3465_v35 = vpop.f32.mrf.mxu1  ;;  %5370 = vmatpush.bf16.msrb.mxu2 %v9122_v13  ;;  %v9118_v13 = vld [vmem:[%s13035_s5 + $0x178] sm:$0xff] }
 0x273   : > { %v3466_v1 = vadd.f32 %v3465_v35, %v11944_v63  ;;  %v2264_v12 = vpop.permute.xlu2 %2263  ;;  %v3545_v11 = vpop.f32.mrf.mxu0  ;;  %v2709_v63 = vpack.c.bf16 %v10681_v23, %v10681_v23  ;;  %v2728_v35 = vmul.f32 %v11463_v50, %v13587_v44 }
 0x274   : > { %2283 = vst.msk [vmem:[#allocation2 + $0x198] sm:$0xf] %vm950_vm3, %v2264_v12  ;;  %4481 = vmatmul.bf16.gmra.mxu2 %v7741_v41  ;;  %v12070_v56 = vadd.f32 %v3545_v11, %v3517_v20  ;;  %2753 = vrot.lane.b32.xlu1 %v2734_v32, %s9462_s18  ;;  %v12108_v50 = vpop.f32.mrf.mxu3  ;;  %v7688_v41 = vld [vmem:[#allocation2 + $0x148] sm:$0xf]  ;;  %v2711_v12 = vpack.c.bf16 %v11126_v9, %v11126_v9  ;;  %v8978_v32 = vld [vmem:[#allocation2 + $0x158] sm:$0xf0] }
 0x275   : > { %v2580_v24 = vpop.permute.xlu0 %2579  ;;  %v12073_v39 = vadd.f32 %v3494_v46, %v3466_v1  ;;  %2717 = vst.msk [vmem:[#allocation2 + $0x210] sm:$0xf] %vm861_vm2, %v2709_v63  ;;  %v2736_v53 = vpack.c.bf16 %v2728_v35, %v2728_v35  ;;  %v2657_v63 = vmul.f32 %v10890_v45, %v13588_v59  ;;  %v9114_v45 = vld [vmem:[%s13035_s5 + $0x158] sm:$0xff]  ;;  %v8984_v35 = vld [vmem:[#allocation2 + $0x188] sm:$0xf0] }
 0x276   : > { %2603 = vst.msk [vmem:[#allocation2 + $0x1e0] sm:$0xf] %vm950_vm3, %v2580_v24  ;;  %v2186_v17 = vpop.permute.xlu1 %2185  ;;  %2839 = vrot.lane.b32.xlu2 %v2817_v19, %s9462_s18  ;;  %v8879_v20 = vld [vmem:[#allocation2 + $0x84] sm:$0xf]  ;;  %5341 = vmatpush.bf16.msra.mxu1 %v9114_v45  ;;  %v8989_v45 = vld [vmem:[#allocation2 + $0x1b0] sm:$0xf0] }
 0x277   : > { %v12077_v43 = vpop.f32.mrf.mxu2  ;;  %2208 = vst.msk [vmem:[#allocation2 + $0x158] sm:$0xf] %vm950_vm3, %v2186_v17  ;;  %v7453_v54 = vor.u32 %v8879_v20, %v7450_v4  ;;  %v7689_v17 = vor.u32 %v8978_v32, %v7688_v41  ;;  %v9121_v20 = vld [vmem:[%s13035_s5 + $0x190] sm:$0xff]  ;;  %v3461_v41 = vadd.f32 %v12017_v61, %v11887_v16  ;;  %v9111_v16 = vld [vmem:[%s13035_s5 + $0x140] sm:$0xff] }
 0x278   : > { %2719 = vst.msk [vmem:[#allocation2 + $0x238] sm:$0xf] %vm861_vm2, %v2711_v12  ;;  %5371 = vmatpush.bf16.msrb.mxu2 %v9121_v20  ;;  %v9117_v61 = vld [vmem:[%s13035_s5 + $0x170] sm:$0xff]  ;;  %v9116_v20 = vld [vmem:[%s13035_s5 + $0x168] sm:$0xff] }
 0x279   : > { %3998 = vmatmul.bf16.gmra.mxu0 %v7453_v54  ;;  %v3514_v54 = vadd.f32 %v12013_v48, %v3485_v34 }
 0x27a   : > { %v3468_v27 = vpop.f32.mrf.mxu1 }
 0x27b   : > { %v3469_v23 = vadd.f32 %v3468_v27, %v11975_v40  ;;  %v2346_v21 = vpop.permute.xlu2 %2345  ;;  %v12113_v0 = vpop.f32.mrf.mxu0  ;;  %v3543_v8 = vadd.f32 %v12054_v10, %v3514_v54  ;;  %v8985_v54 = vld [vmem:[#allocation2 + $0x194] sm:$0xf] }
 0x27c   : > { %2364 = vst.msk [vmem:[#allocation2 + $0x1b0] sm:$0xf] %vm950_vm3, %v2346_v21  ;;  %2683 = vrot.lane.b32.xlu1 %v2663_v28, %s9462_s18  ;;  %5372 = vmatpush.bf16.msrb.mxu2 %v9120_v5 }
 0x27d   : > { %7605 = vmatmul.msk.bf16.gmra.mxu1 %vm3402_vm4, %v7457_v60  ;;  %v2586_v40 = vpop.permute.xlu0 %2585  ;;  %v12136_v22 = vadd.f32 %v12077_v43, %v3469_v23  ;;  %v7716_v43 = vld [vmem:[#allocation2 + $0x178] sm:$0xf] }
 0x27e   : > { %2606 = vst.msk [vmem:[#allocation2 + $0x21c] sm:$0xf] %vm950_vm3, %v2586_v40  ;;  %v2336_v31 = vpop.permute.xlu1 %2335  ;;  %2689 = vrot.lane.b32.xlu2 %v2666_v18, %s9462_s18  ;;  %v7682_v46 = vld [vmem:[#allocation2 + $0x154] sm:$0xf0]  ;;  %v8980_v18 = vld [vmem:[#allocation2 + $0x16c] sm:$0xf] }
 0x27f   : > { %v12094_v52 = vpop.f32.mrf.mxu2  ;;  %2359 = vst.msk [vmem:[#allocation2 + $0x14c] sm:$0xf] %vm950_vm3, %v2336_v31  ;;  %v7685_v58 = vor.u32 %v8975_v26, %v7682_v46  ;;  %v13591_v31 = vld [vmem:[#allocation92_spill] sm:$0xff] }
 0x280   : > { %v2730_v26 = vmul.f32 %v13591_v31, %v13590_v37  ;;  %v7728_v37 = vld [vmem:[#allocation2 + $0x198] sm:$0xf] }
 0x281   : > { %4495 = vmatmul.bf16.vlgmr.msrb.gmra.mxu3 %v7685_v58 }
 0x282   : > { %v3470_v30 = vpop.f32.mrf.mxu1 }
 0x283   : > { %v2268_v36 = vpop.permute.xlu2 %2267  ;;  %v3471_v23 = vadd.f32 %v3470_v30, %v12002_v57  ;;  %v3550_v46 = vpop.f32.mrf.mxu0  ;;  %v9113_v57 = vld [vmem:[%s13035_s5 + $0x150] sm:$0xff]  ;;  %v7717_v30 = vor.u32 %v8984_v35, %v7716_v43  ;;  %v7737_v43 = vor.u32 %v8989_v45, %v7736_v29  ;;  %v8988_v35 = vld [vmem:[#allocation2 + $0x1a8] sm:$0xf0] }
 0x284   : > { %2285 = vst.msk [vmem:[#allocation2 + $0x1c0] sm:$0xf] %vm950_vm3, %v2268_v36  ;;  %7902 = vmatmul.msk.bf16.vlgmr.msra.gmra.mxu2 %vm3402_vm4, %v7697_v15  ;;  %2757 = vrot.lane.b32.xlu1 %v2736_v53, %s9462_s18  ;;  %v2738_v15 = vpack.c.bf16 %v2730_v26, %v2730_v26  ;;  %v9112_v36 = vld [vmem:[%s13035_s5 + $0x148] sm:$0xff]  ;;  %v2713_v26 = vpack.c.bf16 %v10848_v25, %v10848_v25  ;;  %v9107_v25 = vld [vmem:[%s13035_s5 + $0x120] sm:$0xff] }
 0x285   : > { %v2592_v1 = vpop.permute.xlu0 %2591  ;;  %5342 = vmatpush.bf16.msra.mxu1 %v9113_v57  ;;  %v12169_v53 = vadd.f32 %v12094_v52, %v3471_v23 }
 0x286   : > { %2609 = vst.msk [vmem:[#allocation2 + $0x258] sm:$0xf] %vm950_vm3, %v2592_v1  ;;  %v2190_v24 = vpop.permute.xlu1 %2189  ;;  %v8976_v14 = vld [vmem:[#allocation2 + $0x14c] sm:$0xf]  ;;  %v7708_v1 = vld [vmem:[#allocation2 + $0x170] sm:$0xf] }
 0x287   : > { %v12115_v11 = vpop.f32.mrf.mxu2  ;;  %2210 = vst.msk [vmem:[#allocation2 + $0x180] sm:$0xf] %vm950_vm3, %v2190_v24  ;;  %v7693_v27 = vor.u32 %v8976_v14, %v7690_v62  ;;  %v8983_v24 = vld [vmem:[#allocation2 + $0x180] sm:$0xf0]  ;;  %v7710_v14 = vld [vmem:[#allocation2 + $0x184] sm:$0xf0] }
 0x288   : > { %v7709_v59 = vor.u32 %v8983_v24, %v7708_v1  ;;  %2721 = vst.msk [vmem:[#allocation2 + $0x260] sm:$0xf] %vm861_vm2, %v2713_v26 }
 0x289   : > { %4524 = vmatmul.bf16.vlgmr.msrb.gmra.mxu0 %v7689_v17  ;;  %5343 = vmatpush.bf16.msra.mxu1 %v9112_v36  ;;  %v3490_v17 = vadd.f32 %v12006_v7, %v3461_v41 }
 0x28a   : > { %v3897_v19 = vpop.f32.mrf.mxu1 }
 0x28b   : > { %v12124_v9 = vadd.f32 %v3897_v19, %v12036_v42  ;;  %v2350_v4 = vpop.permute.xlu2 %2349  ;;  %v2665_v42 = vpack.c.bf16 %v2657_v63, %v2657_v63 }
 0x28c   : > { %2366 = vst.msk [vmem:[#allocation2 + $0x1d8] sm:$0xf] %vm950_vm3, %v2350_v4 }
 0x28d   : > { %4553 = vmatmul.bf16.vlgmr.msrb.gmra.mxu1 %v7693_v27  ;;  %2687 = vrot.lane.b32.xlu1 %v2665_v42, %s9462_s18  ;;  %v2830_v60 = vpop.permute.xlu0 %2829  ;;  %v3519_v27 = vadd.f32 %v12108_v50, %v3490_v17  ;;  %v7748_v17 = vld [vmem:[#allocation2 + $0x1c0] sm:$0xf] }
 0x28e   : > { %v3521_v21 = vpop.f32.mrf.mxu3  ;;  %2852 = vst.msk [vmem:[#allocation2 + $0x200] sm:$0xf] %vm950_vm3, %v2830_v60  ;;  %v2340_v28 = vpop.permute.xlu1 %2339  ;;  %v7702_v48 = vld [vmem:[#allocation2 + $0x17c] sm:$0xf0]  ;;  %5344 = vmatpush.bf16.msra.mxu1 %v9111_v16 }
 0x28f   : > { %v12145_v55 = vpop.f32.mrf.mxu2  ;;  %v3522_v2 = vadd.f32 %v3521_v21, %v12058_v6  ;;  %2361 = vst.msk [vmem:[#allocation2 + $0x174] sm:$0xf] %vm950_vm3, %v2340_v28  ;;  %v7705_v44 = vor.u32 %v8980_v18, %v7702_v48  ;;  %v9119_v6 = vld [vmem:[%s13035_s5 + $0x180] sm:$0xff]  ;;  %v3548_v47 = vadd.f32 %v12113_v0, %v3519_v27  ;;  %v9109_v0 = vld [vmem:[%s13035_s5 + $0x130] sm:$0xff]  ;;  %v12219_v18 = vadd.f32 %v12115_v11, %v12124_v9 }
 0x290   : > { %5373 = vmatpush.bf16.msrb.mxu2 %v9119_v6  ;;  %v9115_v21 = vld [vmem:[%s13035_s5 + $0x160] sm:$0xff]  ;;  %v7730_v6 = vld [vmem:[#allocation2 + $0x1ac] sm:$0xf0]  ;;  %v2710_v11 = vpack.c.bf16 %v13447_v38, %v13447_v38 }
 0x291   : > { %v12161_v49 = vadd.f32 %v3550_v46, %v3522_v2  ;;  %4500 = vmatmul.bf16.gmra.mxu3 %v7705_v44  ;;  %v3552_v2 = vpop.f32.mrf.mxu0 }
 0x292   : > { %v3899_v40 = vpop.f32.mrf.mxu1  ;;  %2718 = vst.msk [vmem:[#allocation2 + $0x224] sm:$0xf] %vm861_vm2, %v2710_v11  ;;  %v8020_v11 = vld [vmem:[#allocation2 + $0x140] sm:$0xf] }
 0x293   : > { %v12153_v10 = vadd.f32 %v3899_v40, %v3543_v8  ;;  %v2584_v58 = vpop.permute.xlu2 %2583  ;;  %v9108_v40 = vld [vmem:[%s13035_s5 + $0x128] sm:$0xff]  ;;  %v7750_v45 = vld [vmem:[#allocation2 + $0x1d4] sm:$0xf0] }
 0x294   : > { %2605 = vst.msk [vmem:[#allocation2 + $0x208] sm:$0xf] %vm950_vm3, %v2584_v58  ;;  %7903 = vmatmul.msk.bf16.gmra.mxu2 %vm3402_vm4, %v7717_v30  ;;  %v7729_v30 = vor.u32 %v8988_v35, %v7728_v37 }
 0x295   : > { %2761 = vrot.lane.b32.xlu1 %v2738_v15, %s9462_s18  ;;  %v2748_v3 = vpop.permute.xlu0 %2747  ;;  %5374 = vmatpush.bf16.msrb.mxu2 %v9118_v13  ;;  %v12240_v38 = vadd.f32 %v12145_v55, %v12153_v10  ;;  %s6856_s18 = sshll.u32 %s467_s29, 7 }
 0x296   : > { %2771 = vst.msk [vmem:[#allocation2 + $0x1e8] sm:$0xf] %vm950_vm3, %v2748_v3  ;;  %v2194_v32 = vpop.permute.xlu1 %2193  ;;  %v8981_v19 = vld [vmem:[#allocation2 + $0x174] sm:$0xf]  ;;  %v3523_v28 = vpop.f32.mrf.mxu3  ;;  %s12736_s25 = scalar_lea.vmem [#allocation3], %s6856_s18  ;;  %s6717_s18 = sshll.u32 %s6714_s30, 4  ;;  %s6718_s18 = int_to_ptr.hbm [resolvable:$true] %s6717_s18 }
 0x297   : > { %v12177_v12 = vpop.f32.mrf.mxu2  ;;  %2212 = vst.msk [vmem:[#allocation2 + $0x1a8] sm:$0xf] %vm950_vm3, %v2194_v32  ;;  %v7713_v63 = vor.u32 %v8981_v19, %v7710_v14  ;;  %v3524_v36 = vadd.f32 %v3523_v28, %v12073_v39  ;;  %v7756_v32 = vld [vmem:[#allocation2 + $0x1c8] sm:$0xf]  ;;  %v8990_v14 = vld [vmem:[#allocation2 + $0x1bc] sm:$0xf] }
 0x298   : > { %s9372_s21 = sshra.s32 %s6718_s18, 4  ;;  %s9373_s21 = int_to_ptr.hbm [resolvable:$true] %s9372_s21 }
 0x299   : > { %4529 = vmatmul.bf16.gmra.mxu0 %v7709_v59  ;;  %5375 = vmatpush.bf16.msrb.mxu2 %v9117_v61  ;;  %v3555_v3 = vpop.f32.mrf.mxu0  ;;  %v3553_v39 = vadd.f32 %v3552_v2, %v3524_v36  ;;  %v8862_v2 = vld [vmem:[%s13037_s7 + $0x34] sm:$0xf0]  ;;  %s9374_s28 = scalar_lea.hbm %s9373_s21, 128  ;;  %p9379_p10 = scmp.lt.s32.totalorder %s9373_s21, %s13040_s10 }
 0x29a   : > { %v3902_v52 = vpop.f32.mrf.mxu1  ;;  %p9375_p6 = scmp.ne.s32.totalorder %s9373_s21, %s9374_s28  ;;  %p9380_p11 = scmp.lt.s32.totalorder %s9378_s23, %s9374_s28 }
 0x29b   : > { %v12182_v62 = vadd.f32 %v3902_v52, %v12070_v56  ;;  %v2590_v34 = vpop.permute.xlu2 %2589  ;;  %v9110_v56 = vld [vmem:[%s13035_s5 + $0x138] sm:$0xff] }
 0x29c   : > { %2608 = vst.msk [vmem:[#allocation2 + $0x244] sm:$0xf] %vm950_vm3, %v2590_v34  ;;  %5345 = vmatpush.bf16.msra.mxu1 %v9110_v56  ;;  %p9376_p7 = pnand %p9375_p6, %p9571_p3  ;;  %p9381_p12 = por %p9380_p11, %p9379_p10 }
 0x29d   : > { %4558 = vmatmul.bf16.gmra.mxu1 %v7713_v63  ;;  %v2834_v4 = vpop.permute.xlu0 %2833  ;;  %5376 = vmatpush.bf16.msrb.mxu2 %v9116_v20  ;;  %v8994_v63 = vld [vmem:[#allocation2 + $0x1d8] sm:$0xf0]  ;;  %v12254_v61 = vadd.f32 %v12177_v12, %v12182_v62 }
 0x29e   : > { %2854 = vst.msk [vmem:[#allocation2 + $0x228] sm:$0xf] %vm950_vm3, %v2834_v4  ;;  %v2344_v42 = vpop.permute.xlu1 %2343  ;;  %v7722_v60 = vld [vmem:[#allocation2 + $0x1a4] sm:$0xf0]  ;;  %p9377_p9 = pneg %p9376_p7 }
 0x29f   : > { %v12200_v7 = vpop.f32.mrf.mxu2  ;;  %2363 = vst.msk [vmem:[#allocation2 + $0x19c] sm:$0xf] %vm950_vm3, %v2344_v42  ;;  %v7725_v8 = vor.u32 %v8985_v54, %v7722_v60 }
 0x2a0   : > { %5346 = vmatpush.bf16.msra.mxu1 %v9109_v0  ;;  %p9382_p13 = pnand %p9381_p12, %p9377_p9 }
 0x2a1   : > { %4505 = vmatmul.bf16.gmra.mxu3 %v7725_v8  ;;  %5377 = vmatpush.bf16.msrb.mxu2 %v9115_v21  ;;  %v3557_v8 = vpop.f32.mrf.mxu0  ;;  %v8022_v21 = vld [vmem:[#allocation2 + $0x154] sm:$0xf0] }
 0x2a2   : > { %v3904_v5 = vpop.f32.mrf.mxu1 }
 0x2a3   : > { %v12204_v50 = vadd.f32 %v3904_v5, %v3548_v47  ;;  %v2828_v23 = vpop.permute.xlu2 %2827  ;;  %v8993_v47 = vld [vmem:[#allocation2 + $0x1d0] sm:$0xf0] }
 0x2a4   : > { %2851 = vst.msk [vmem:[#allocation2 + $0x1ec] sm:$0xf] %vm950_vm3, %v2828_v23  ;;  %7904 = vmatmul.msk.bf16.gmra.mxu2 %vm3402_vm4, %v7737_v43  ;;  %5347 = vmatpush.bf16.msra.mxu1 %v9108_v40  ;;  %v7749_v5 = vor.u32 %v8993_v47, %v7748_v17 }
 0x2a5   : > { %v2752_v48 = vpop.permute.xlu0 %2751  ;;  %v12266_v60 = vadd.f32 %v12200_v7, %v12204_v50 }
 0x2a6   : > { %2773 = vst.msk [vmem:[#allocation2 + $0x210] sm:$0xf] %vm950_vm3, %v2752_v48  ;;  %v2198_v46 = vpop.permute.xlu1 %2197  ;;  %v8986_v57 = vld [vmem:[#allocation2 + $0x19c] sm:$0xf]  ;;  %v9087_v48 = vld [vmem:[#allocation2 + $0x144] sm:$0xf] }
 0x2a7   : > { %v12221_v31 = vpop.f32.mrf.mxu2  ;;  %2214 = vst.msk [vmem:[#allocation2 + $0x1d0] sm:$0xf] %vm950_vm3, %v2198_v46  ;;  %v7733_v58 = vor.u32 %v8986_v57, %v7730_v6  ;;  %v8025_v37 = vor.u32 %v9087_v48, %v8022_v21  ;;  %v9058_v46 = vld [vmem:[%s13035_s5 + $0x38] sm:$0xff] }
 0x2a8   : > { %5348 = vmatpush.bf16.msra.mxu1 %v9107_v25  ;;  %5814 = vmatpush.bf16.msra.mxu2 %v9058_v46  ;;  %v9142_v21 = vld [vmem:[%s13035_s5 + $0x238] sm:$0xff] }
 0x2a9   : > { %4534 = vmatmul.bf16.gmra.mxu0 %v7729_v30 }
 0x2aa   : > { %v3907_v44 = vpop.f32.mrf.mxu1 }
 0x2ab   : > { %v12230_v9 = vadd.f32 %v3907_v44, %v12161_v49  ;;  %v2678_v15 = vpop.permute.xlu2 %2677  ;;  %v3526_v49 = vpop.f32.mrf.mxu3 }
 0x2ac   : > { %2700 = vst.msk [vmem:[#allocation2 + $0x1f8] sm:$0xf] %vm950_vm3, %v2678_v15  ;;  %v3527_v13 = vadd.f32 %v3526_v49, %v12136_v22  ;;  %v7757_v22 = vor.u32 %v8994_v63, %v7756_v32  ;;  %v9089_v49 = vld [vmem:[#allocation2 + $0x150] sm:$0xf0]  ;;  %5461 = vmatpush.bf16.msrb.mxu1 %v9142_v21 }
 0x2ad   : > { %4563 = vmatmul.bf16.gmra.mxu1 %v7733_v58  ;;  %v2838_v1 = vpop.permute.xlu0 %2837  ;;  %v12289_v44 = vadd.f32 %v12221_v31, %v12230_v9 }
 0x2ae   : > { %2856 = vst.msk [vmem:[#allocation2 + $0x250] sm:$0xf] %vm950_vm3, %v2838_v1  ;;  %v3556_v52 = vadd.f32 %v3555_v3, %v3527_v13  ;;  %v2348_v24 = vpop.permute.xlu1 %2347  ;;  %v7742_v55 = vld [vmem:[#allocation2 + $0x1cc] sm:$0xf0]  ;;  %v8021_v13 = vor.u32 %v9089_v49, %v8020_v11 }
 0x2af   : > { %v12244_v41 = vpop.f32.mrf.mxu2  ;;  %2365 = vst.msk [vmem:[#allocation2 + $0x1c4] sm:$0xf] %vm950_vm3, %v2348_v24  ;;  %v7745_v59 = vor.u32 %v8990_v14, %v7742_v55  ;;  %v7924_v14 = vld [vmem:[%s13037_s7 + $0x20] sm:$0xf]  ;;  %v8060_v49 = vld [vmem:[#allocation2 + $0x190] sm:$0xf] }
 0x2b1   : > { %4510 = vmatmul.bf16.gmra.mxu3 %v7745_v59 }
 0x2b2   : > { %v3909_v19 = vpop.f32.mrf.mxu1 }
 0x2b3   : > { %v12248_v10 = vadd.f32 %v3909_v19, %v3553_v39  ;;  %v2832_v16 = vpop.permute.xlu2 %2831  ;;  %v3528_v56 = vpop.f32.mrf.mxu3  ;;  %v9056_v39 = vld [vmem:[%s13035_s5 + $0x28] sm:$0xff]  ;;  %v8042_v19 = vld [vmem:[#allocation2 + $0x17c] sm:$0xf0] }
 0x2b4   : > { %2853 = vst.msk [vmem:[#allocation2 + $0x214] sm:$0xf] %vm950_vm3, %v2832_v16  ;;  %7905 = vmatmul.msk.bf16.gmra.mxu2 %vm3402_vm4, %v7757_v22  ;;  %v3529_v62 = vadd.f32 %v3528_v56, %v12169_v53  ;;  %v7932_v53 = vld [vmem:[%s13037_s7 + $0x30] sm:$0xf]  ;;  %v9092_v22 = vld [vmem:[#allocation2 + $0x16c] sm:$0xf] }
 0x2b5   : > { %v2756_v34 = vpop.permute.xlu0 %2755  ;;  %v12277_v7 = vor.u32 %v8862_v2, %v7932_v53  ;;  %v12304_v3 = vadd.f32 %v12244_v41, %v12248_v10  ;;  %v8860_v41 = vld [vmem:[%s13037_s7 + $0x24] sm:$0xf0]  ;;  %v9055_v56 = vld [vmem:[%s13035_s5 + $0x20] sm:$0xff] }
 0x2b6   : > { %2775 = vst.msk [vmem:[#allocation2 + $0x238] sm:$0xf] %vm950_vm3, %v2756_v34  ;;  %v2582_v20 = vpop.permute.xlu1 %2581  ;;  %v8991_v29 = vld [vmem:[#allocation2 + $0x1c4] sm:$0xf]  ;;  %v3558_v23 = vadd.f32 %v3557_v8, %v3529_v62  ;;  %v12318_v63 = vor.u32 %v8860_v41, %v7924_v14  ;;  %v8045_v34 = vor.u32 %v9092_v22, %v8042_v19  ;;  %v9094_v8 = vld [vmem:[#allocation2 + $0x178] sm:$0xf0] }
 0x2b7   : > { %v12256_v27 = vpop.f32.mrf.mxu2  ;;  %2604 = vst.msk [vmem:[#allocation2 + $0x1f4] sm:$0xf] %vm950_vm3, %v2582_v20  ;;  %v7753_v54 = vor.u32 %v8991_v29, %v7750_v45  ;;  %4695 = vmatpush.bf16.msra.mxu3 %v12277_v7  ;;  %v8040_v29 = vld [vmem:[#allocation2 + $0x168] sm:$0xf] }
 0x2b8   : > { %v9052_v2 = vld [vmem:[%s13035_s5 + $0x8] sm:$0xff] }
 0x2b9   : > { %4539 = vmatmul.bf16.gmra.mxu0 %v7749_v5 }
 0x2ba   : > { %v3912_v4 = vpop.f32.mrf.mxu1 }
 0x2bb   : > { %v12260_v42 = vadd.f32 %v3912_v4, %v3556_v52  ;;  %v2682_v12 = vpop.permute.xlu2 %2681  ;;  %4696 = vmatpush.bf16.msra.mxu3 %v12318_v63  ;;  %v9054_v4 = vld [vmem:[%s13035_s5 + $0x18] sm:$0xff] }
 0x2bc   : > { %2702 = vst.msk [vmem:[#allocation2 + $0x220] sm:$0xf] %vm950_vm3, %v2682_v12 }
 0x2bd   : > { %4568 = vmatmul.bf16.gmra.mxu1 %v7753_v54  ;;  %v2842_v0 = vpop.permute.xlu0 %2841 }
 0x2be   : > { %2858 = vst.msk [vmem:[#allocation2 + $0x278] sm:$0xf] %vm950_vm3, %v2842_v0  ;;  %v2588_v28 = vpop.permute.xlu1 %2587 }
 0x2bf   : > { %v12268_v43 = vpop.f32.mrf.mxu2  ;;  %2607 = vst.msk [vmem:[#allocation2 + $0x230] sm:$0xf] %vm950_vm3, %v2588_v28 }
 0x2c2   : > { %v3914_v40 = vpop.f32.mrf.mxu1 }
 0x2c3   : > { %v12280_v50 = vadd.f32 %v3914_v40, %v3558_v23  ;;  %v2836_v26 = vpop.permute.xlu2 %2835 }
 0x2c4   : > { %2855 = vst.msk [vmem:[#allocation2 + $0x23c] sm:$0xf] %vm950_vm3, %v2836_v26  ;;  %5378 = vmatmul.bf16.vlgmr.msrb.gmra.mxu2 %v8025_v37  ;;  %v3955_v35 = vpop.f32.mrf.mxu3  ;;  %v8062_v37 = vld [vmem:[#allocation2 + $0x1a4] sm:$0xf0]  ;;  %v7916_v26 = vld [vmem:[%s13037_s7 + $0x10] sm:$0xf] }
 0x2c5   : > { %v3956_v57 = vadd.f32 %v3955_v35, %v12219_v18  ;;  %v2760_v6 = vpop.permute.xlu0 %2759  ;;  %v9057_v18 = vld [vmem:[%s13035_s5 + $0x30] sm:$0xff]  ;;  %v12353_v23 = vadd.f32 %v12268_v43, %v12280_v50  ;;  %v8858_v43 = vld [vmem:[%s13037_s7 + $0x14] sm:$0xf0] }
 0x2c6   : > { %2777 = vst.msk [vmem:[#allocation2 + $0x260] sm:$0xf] %vm950_vm3, %v2760_v6  ;;  %v3984_v58 = vpop.f32.mrf.mxu0  ;;  %v2594_v15 = vpop.permute.xlu1 %2593  ;;  %5815 = vmatpush.bf16.msra.mxu2 %v9057_v18  ;;  %v9097_v6 = vld [vmem:[#allocation2 + $0x194] sm:$0xf] }
 0x2c7   : > { %v12292_v30 = vpop.f32.mrf.mxu2  ;;  %v3985_v25 = vadd.f32 %v3984_v58, %v3956_v57  ;;  %2610 = vst.msk [vmem:[#allocation2 + $0x26c] sm:$0xf] %vm950_vm3, %v2594_v15  ;;  %v12367_v57 = vor.u32 %v8858_v43, %v7916_v26  ;;  %v8065_v58 = vor.u32 %v9097_v6, %v8062_v37  ;;  %v9141_v15 = vld [vmem:[%s13035_s5 + $0x230] sm:$0xff]  ;;  %v7926_v43 = vld [vmem:[%s13037_s7 + $0x28] sm:$0xf0] }
 0x2c8   : > { %5462 = vmatpush.bf16.msrb.mxu1 %v9141_v15 }
 0x2c9   : > { %4697 = vmatpush.bf16.msra.mxu3 %v12367_v57 }
 0x2ca   : > { %v4013_v36 = vpop.f32.mrf.mxu1  ;;  %5816 = vmatpush.bf16.msra.mxu2 %v9056_v39  ;;  %v9099_v39 = vld [vmem:[#allocation2 + $0x1a0] sm:$0xf0] }
 0x2cb   : > { %v12296_v31 = vadd.f32 %v4013_v36, %v3985_v25  ;;  %v2686_v9 = vpop.permute.xlu2 %2685  ;;  %v9051_v25 = vld [vmem:[%s13035_s5] sm:$0xff]  ;;  %v8061_v19 = vor.u32 %v9099_v39, %v8060_v49 }
 0x2cc   : > { %2704 = vst.msk [vmem:[#allocation2 + $0x248] sm:$0xf] %vm950_vm3, %v2686_v9  ;;  %v3957_v1 = vpop.f32.mrf.mxu3  ;;  %v8855_v39 = vld [vmem:[%s13037_s7 + $0x4] sm:$0xf] }
 0x2cd   : > { %5349 = vmatmul.bf16.vlgmr.msra.gmra.mxu1 %v8021_v13  ;;  %v3958_v32 = vadd.f32 %v3957_v1, %v12240_v38  ;;  %v2712_v38 = vpack.c.bf16 %v10838_v51, %v10838_v51  ;;  %v12333_v51 = vadd.f32 %v12256_v27, %v12260_v42  ;;  %v8041_v27 = vor.u32 %v9094_v8, %v8040_v29 }
 0x2ce   : > { %v3986_v24 = vpop.f32.mrf.mxu0  ;;  %v2676_v55 = vpop.permute.xlu1 %2675  ;;  %5817 = vmatpush.bf16.msra.mxu2 %v9055_v56 }
 0x2cf   : > { %v12310_v52 = vpop.f32.mrf.mxu2  ;;  %v3987_v10 = vadd.f32 %v3986_v24, %v3958_v32  ;;  %2699 = vst.msk [vmem:[#allocation2 + $0x1e4] sm:$0xf] %vm950_vm3, %v2676_v55 }
 0x2d0   : > { %2720 = vst.msk [vmem:[#allocation2 + $0x24c] sm:$0xf] %vm861_vm2, %v2712_v38 }
 0x2d2   : > { %v4015_v59 = vpop.f32.mrf.mxu1  ;;  %5818 = vmatpush.bf16.msra.mxu2 %v9054_v4  ;;  %v9139_v4 = vld [vmem:[%s13035_s5 + $0x220] sm:$0xff] }
 0x2d3   : > { %v12323_v16 = vadd.f32 %v4015_v59, %v3987_v10  ;;  %v2840_v17 = vpop.permute.xlu2 %2839 }
 0x2d4   : > { %2857 = vst.msk [vmem:[#allocation2 + $0x264] sm:$0xf] %vm950_vm3, %v2840_v17  ;;  %5383 = vmatmul.bf16.gmra.mxu2 %v8045_v34  ;;  %v3960_v20 = vpop.f32.mrf.mxu3  ;;  %v9102_v17 = vld [vmem:[#allocation2 + $0x1bc] sm:$0xf] }
 0x2d5   : > { %v3961_v47 = vadd.f32 %v3960_v20, %v12254_v61  ;;  %v9053_v61 = vld [vmem:[%s13035_s5 + $0x10] sm:$0xff] }
 0x2d6   : > { %v3989_v5 = vpop.f32.mrf.mxu0  ;;  %v2750_v54 = vpop.permute.xlu1 %2749  ;;  %5819 = vmatpush.bf16.msra.mxu2 %v9053_v61 }
 0x2d7   : > { %v12339_v45 = vpop.f32.mrf.mxu2  ;;  %v3990_v12 = vadd.f32 %v3989_v5, %v3961_v47  ;;  %2772 = vst.msk [vmem:[#allocation2 + $0x1fc] sm:$0xf] %vm950_vm3, %v2750_v54  ;;  %v8856_v47 = vld [vmem:[%s13037_s7 + $0x4] sm:$0xf0]  ;;  %v8080_v54 = vld [vmem:[#allocation2 + $0x1b8] sm:$0xf] }
 0x2da   : > { %v4018_v62 = vpop.f32.mrf.mxu1  ;;  %5820 = vmatpush.bf16.msra.mxu2 %v9052_v2 }
 0x2db   : > { %v12342_v42 = vadd.f32 %v4018_v62, %v3990_v12  ;;  %v2690_v0 = vpop.permute.xlu2 %2689 }
 0x2dc   : > { %2706 = vst.msk [vmem:[#allocation2 + $0x270] sm:$0xf] %vm950_vm3, %v2690_v0  ;;  %v3962_v53 = vpop.f32.mrf.mxu3  ;;  %v9104_v0 = vld [vmem:[#allocation2 + $0x1c8] sm:$0xf0] }
 0x2dd   : > { %5354 = vmatmul.bf16.gmra.mxu1 %v8041_v27  ;;  %v3963_v28 = vadd.f32 %v3962_v53, %v12266_v60  ;;  %v2714_v60 = vpack.c.bf16 %v11243_v33, %v11243_v33  ;;  %v9140_v33 = vld [vmem:[%s13035_s5 + $0x228] sm:$0xff]  ;;  %v8081_v53 = vor.u32 %v9104_v0, %v8080_v54 }
 0x2de   : > { %v3991_v48 = vpop.f32.mrf.mxu0  ;;  %v2680_v50 = vpop.permute.xlu1 %2679  ;;  %5821 = vmatpush.bf16.msra.mxu2 %v9051_v25  ;;  %5463 = vmatpush.bf16.msrb.mxu1 %v9140_v33  ;;  %v9033_v33 = vld [vmem:[#allocation2 + $0xb0] sm:$0xf0] }
 0x2df   : > { %v12359_v40 = vpop.f32.mrf.mxu2  ;;  %v3992_v46 = vadd.f32 %v3991_v48, %v3963_v28  ;;  %2701 = vst.msk [vmem:[#allocation2 + $0x20c] sm:$0xf] %vm950_vm3, %v2680_v50  ;;  %v8861_v28 = vld [vmem:[%s13037_s7 + $0x34] sm:$0xf]  ;;  %v8859_v48 = vld [vmem:[%s13037_s7 + $0x24] sm:$0xf] }
 0x2e0   : > { %2722 = vst.msk [vmem:[#allocation2 + $0x274] sm:$0xf] %vm861_vm2, %v2714_v60 }
 0x2e2   : > { %v4020_v35 = vpop.f32.mrf.mxu1  ;;  %5464 = vmatpush.bf16.msrb.mxu1 %v9139_v4 }
 0x2e3   : > { %v12372_v11 = vadd.f32 %v4020_v35, %v3992_v46  ;;  %v8248_v35 = vld [vmem:[#allocation2 + $0xa0] sm:$0xf] }
 0x2e4   : > { %5388 = vmatmul.bf16.gmra.mxu2 %v8065_v58  ;;  %v3965_v36 = vpop.f32.mrf.mxu3  ;;  %v12433_v58 = vor.u32 %v8859_v48, %v7926_v43  ;;  %v9082_v48 = vld [vmem:[%s13035_s5 + $0xf8] sm:$0xff] }
 0x2e5   : > { %v3966_v13 = vadd.f32 %v3965_v36, %v12289_v44  ;;  %v8082_v44 = vld [vmem:[#allocation2 + $0x1cc] sm:$0xf0]  ;;  %v8249_v36 = vor.u32 %v9033_v33, %v8248_v35  ;;  %v8056_v43 = vld [vmem:[#allocation2 + $0x178] sm:$0xf] }
 0x2e6   : > { %v2754_v18 = vpop.permute.xlu1 %2753  ;;  %v3994_v1 = vpop.f32.mrf.mxu0  ;;  %v8085_v56 = vor.u32 %v9102_v17, %v8082_v44  ;;  %5901 = vmatpush.bf16.msra.mxu1 %v9082_v48 }
 0x2e7   : > { %v12386_v9 = vpop.f32.mrf.mxu2  ;;  %2774 = vst.msk [vmem:[#allocation2 + $0x224] sm:$0xf] %vm950_vm3, %v2754_v18  ;;  %v3995_v32 = vadd.f32 %v3994_v1, %v3966_v13  ;;  %v7918_v13 = vld [vmem:[%s13037_s7 + $0x18] sm:$0xf0] }
 0x2e8   : > { %v9130_v1 = vld [vmem:[%s13035_s5 + $0x1d8] sm:$0xff] }
 0x2ea   : > { %v4023_v24 = vpop.f32.mrf.mxu1 }
 0x2eb   : > { %v12389_v14 = vadd.f32 %v4023_v24, %v3995_v32  ;;  %v7910_v32 = vld [vmem:[%s13037_s7 + $0x8] sm:$0xf0] }
 0x2ec   : > { %v3967_v41 = vpop.f32.mrf.mxu3 }
 0x2ed   : > { %5359 = vmatmul.bf16.gmra.mxu1 %v8061_v19  ;;  %v3968_v55 = vadd.f32 %v3967_v41, %v12304_v3  ;;  %v7908_v3 = vld [vmem:[%s13037_s7] sm:$0xf]  ;;  %v9091_v19 = vld [vmem:[#allocation2 + $0x160] sm:$0xf0] }
 0x2ee   : > { %v2684_v59 = vpop.permute.xlu1 %2683  ;;  %v3996_v38 = vpop.f32.mrf.mxu0  ;;  %v12406_v29 = vor.u32 %v8856_v47, %v7908_v3 }
 0x2ef   : > { %v12392_v10 = vpop.f32.mrf.mxu2  ;;  %2703 = vst.msk [vmem:[#allocation2 + $0x234] sm:$0xf] %vm950_vm3, %v2684_v59  ;;  %v3997_v22 = vadd.f32 %v3996_v38, %v3968_v55  ;;  %v8036_v38 = vld [vmem:[#allocation2 + $0x150] sm:$0xf] }
 0x2f0   : > { %4698 = vmatpush.bf16.msra.mxu3 %v12406_v29 }
 0x2f2   : > { %v4025_v34 = vpop.f32.mrf.mxu1 }
 0x2f3   : > { %v12395_v20 = vadd.f32 %v4025_v34, %v3997_v22  ;;  %v12458_v22 = vor.u32 %v8855_v39, %v7910_v32 }
 0x2f4   : > { %5393 = vmatmul.bf16.gmra.mxu2 %v8085_v56  ;;  %v3970_v5 = vpop.f32.mrf.mxu3  ;;  %5399 = vmatpush.bf16.msrb.mxu3 %v9130_v1  ;;  %v8037_v56 = vor.u32 %v9091_v19, %v8036_v38 }
 0x2f5   : > { %v3971_v12 = vadd.f32 %v3970_v5, %v12333_v51  ;;  %v7934_v51 = vld [vmem:[%s13037_s7 + $0x38] sm:$0xf0] }
 0x2f6   : > { %v2758_v8 = vpop.permute.xlu1 %2757  ;;  %v3999_v27 = vpop.f32.mrf.mxu0  ;;  %v12424_v26 = vor.u32 %v8861_v28, %v7934_v51  ;;  %v12471_v28 = vld [vmem:[%s13036_s6] ss:$0 sm:$0xff] }
 0x2f7   : > { %v12410_v62 = vpop.f32.mrf.mxu2  ;;  %2776 = vst.msk [vmem:[#allocation2 + $0x24c] sm:$0xf] %vm950_vm3, %v2758_v8  ;;  %v4000_v61 = vadd.f32 %v3999_v27, %v3971_v12  ;;  %v9038_v8 = vld [vmem:[#allocation2 + $0xd8] sm:$0xf0] }
 0x2f8   : > { %4724 = vmatpush.bf16.msra.mxu0 %v12424_v26 }
 0x2fa   : > { %v4028_v21 = vpop.f32.mrf.mxu1 }
 0x2fb   : > { %v12413_v2 = vadd.f32 %v4028_v21, %v4000_v61  ;;  %v8268_v21 = vld [vmem:[#allocation2 + $0xc8] sm:$0xf] }
 0x2fc   : > { %v3972_v37 = vpop.f32.mrf.mxu3  ;;  %4725 = vmatpush.bf16.msra.mxu0 %v12433_v58 }
 0x2fd   : > { %5364 = vmatmul.bf16.gmra.mxu1 %v8081_v53  ;;  %v3973_v50 = vadd.f32 %v3972_v37, %v12353_v23  ;;  %v8857_v23 = vld [vmem:[%s13037_s7 + $0x14] sm:$0xf]  ;;  %v8269_v53 = vor.u32 %v9038_v8, %v8268_v21  ;;  %v9078_v8 = vld [vmem:[%s13035_s5 + $0xd8] sm:$0xff] }
 0x2fe   : > { %v4001_v6 = vpop.f32.mrf.mxu0  ;;  %v12445_v18 = vor.u32 %v8857_v23, %v7918_v13  ;;  %v9101_v21 = vld [vmem:[#allocation2 + $0x1b0] sm:$0xf0] }
 0x2ff   : > { %v12430_v46 = vpop.f32.mrf.mxu2  ;;  %v2688_v60 = vpop.permute.xlu1 %2687  ;;  %v4002_v15 = vadd.f32 %v4001_v6, %v3973_v50 }
 0x300   : > { %2705 = vst.msk [vmem:[#allocation2 + $0x25c] sm:$0xf] %vm950_vm3, %v2688_v60  ;;  %4726 = vmatpush.bf16.msra.mxu0 %v12445_v18 }
 0x302   : > { %v4030_v25 = vpop.f32.mrf.mxu1 }
 0x303   : > { %v12436_v49 = vadd.f32 %v4030_v25, %v4002_v15  ;;  %v9096_v25 = vld [vmem:[#allocation2 + $0x188] sm:$0xf0] }
 0x304   : > { %5822 = vmatmul.bf16.vlgmr.msra.gmra.mxu2 %v8249_v36  ;;  %v4496_v24 = vpop.f32.mrf.mxu3  ;;  %4727 = vmatpush.bf16.msra.mxu0 %v12458_v22  ;;  %v8057_v13 = vor.u32 %v9096_v25, %v8056_v43  ;;  %v9083_v25 = vld [vmem:[%s13035_s5 + $0x100] sm:$0xff] }
 0x305   : > { %v4497_v41 = vadd.f32 %v4496_v24, %v12292_v30  ;;  %v9129_v30 = vld [vmem:[%s13035_s5 + $0x1d0] sm:$0xff] }
 0x306   : > { %v4525_v59 = vpop.f32.mrf.mxu0  ;;  %5400 = vmatpush.bf16.msrb.mxu3 %v9129_v30  ;;  %v9081_v24 = vld [vmem:[%s13035_s5 + $0xf0] sm:$0xff] }
 0x307   : > { %v4583_v55 = vpop.f32.mrf.mxu2  ;;  %v2762_v44 = vpop.permute.xlu1 %2761  ;;  %v4526_v34 = vadd.f32 %v4525_v59, %v4497_v41  ;;  %5902 = vmatpush.bf16.msra.mxu1 %v9081_v24 }
 0x308   : > { %2778 = vst.msk [vmem:[#allocation2 + $0x274] sm:$0xf] %vm950_vm3, %v2762_v44 }
 0x30a   : > { %v4554_v17 = vpop.f32.mrf.mxu1 }
 0x30b   : > { %v4555_v4 = vadd.f32 %v4554_v17, %v4526_v34  ;;  %v8288_v17 = vld [vmem:[#allocation2 + $0xf0] sm:$0xf] }
 0x30c   : > { %v4498_v47 = vpop.f32.mrf.mxu3 }
 0x30d   : > { %8242 = vmatmul.msk.bf16.vlgmr.msrb.gmra.mxu1 %vm3402_vm4, %v8037_v56  ;;  %v4584_v3 = vadd.f32 %v4583_v55, %v4555_v4  ;;  %v4499_v54 = vadd.f32 %v4498_v47, %v12310_v52  ;;  %v9080_v55 = vld [vmem:[%s13035_s5 + $0xe8] sm:$0xff] }
 0x30e   : > { %v4527_v27 = vpop.f32.mrf.mxu0  ;;  %5903 = vmatpush.bf16.msra.mxu1 %v9080_v55 }
 0x30f   : > { %v4603_v5 = vadd.f32 %v4584_v3, %v12296_v31  ;;  %v4585_v12 = vpop.f32.mrf.mxu2  ;;  %v4528_v0 = vadd.f32 %v4527_v27, %v4499_v54  ;;  %v9128_v31 = vld [vmem:[%s13035_s5 + $0x1c8] sm:$0xff]  ;;  %v9043_v3 = vld [vmem:[#allocation2 + $0x100] sm:$0xf0] }
 0x310   : > { %5401 = vmatpush.bf16.msrb.mxu3 %v9128_v31  ;;  %v8289_v47 = vor.u32 %v9043_v3, %v8288_v17  ;;  %v9079_v54 = vld [vmem:[%s13035_s5 + $0xe0] sm:$0xff]  ;;  %v9084_v27 = vld [vmem:[%s13035_s5 + $0x108] sm:$0xff] }
 0x311   : > { %v4614_v50 = vadd.f32 %v12471_v28, %v4603_v5 }
 0x312   : > { %v4556_v61 = vpop.f32.mrf.mxu1  ;;  %5904 = vmatpush.bf16.msra.mxu1 %v9079_v54 }
 0x313   : > { %v4557_v51 = vadd.f32 %v4556_v61, %v4528_v0  ;;  %v4622_v1 = vmax.f32 %v4614_v50, 0.0  ;;  %v8076_v61 = vld [vmem:[#allocation2 + $0x1a0] sm:$0xf] }
 0x314   : > { %5827 = vmatmul.bf16.gmra.mxu2 %v8269_v53  ;;  %v4501_v37 = vpop.f32.mrf.mxu3 }
 0x315   : > { %v4586_v52 = vadd.f32 %v4585_v12, %v4557_v51  ;;  %v4502_v60 = vadd.f32 %v4501_v37, %v12339_v45  ;;  %v9127_v45 = vld [vmem:[%s13035_s5 + $0x1c0] sm:$0xff] }
 0x316   : > { %v4530_v15 = vpop.f32.mrf.mxu0  ;;  %5402 = vmatpush.bf16.msrb.mxu3 %v9127_v45  ;;  %5905 = vmatpush.bf16.msra.mxu1 %v9078_v8  ;;  %v9048_v45 = vld [vmem:[#allocation2 + $0x128] sm:$0xf0] }
 0x317   : > { %v4604_v35 = vadd.f32 %v4586_v52, %v12323_v16  ;;  %v4588_v6 = vpop.f32.mrf.mxu2  ;;  %v4531_v36 = vadd.f32 %v4530_v15, %v4502_v60  ;;  %v9086_v16 = vld [vmem:[%s13035_s5 + $0x118] sm:$0xff] }
 0x318   : > { %5934 = vmatpush.bf16.msrb.mxu2 %v9086_v16 }
 0x319   : > { %v4615_v33 = vadd.f32 %v12471_v28, %v4604_v35  ;;  %v8077_v35 = vor.u32 %v9101_v21, %v8076_v61  ;;  %v9134_v21 = vld [vmem:[%s13035_s5 + $0x1f8] sm:$0xff] }
 0x31a   : > { %v4559_v23 = vpop.f32.mrf.mxu1 }
 0x31b   : > { %v4623_v39 = vmax.f32 %v4615_v33, 0.0  ;;  %v4560_v32 = vadd.f32 %v4559_v23, %v4531_v36  ;;  %v9125_v33 = vld [vmem:[%s13035_s5 + $0x1b0] sm:$0xff] }
 0x31c   : > { %v4503_v44 = vpop.f32.mrf.mxu3 }
 0x31d   : > { %8243 = vmatmul.msk.bf16.gmra.mxu1 %vm3402_vm4, %v8057_v13  ;;  %v4630_v19 = vpack.c.bf16 %v4623_v39, %v4622_v1  ;;  %v4589_v41 = vadd.f32 %v4588_v6, %v4560_v32  ;;  %v4504_v38 = vadd.f32 %v4503_v44, %v12359_v40  ;;  %v9126_v40 = vld [vmem:[%s13035_s5 + $0x1b8] sm:$0xff]  ;;  %v9137_v13 = vld [vmem:[%s13035_s5 + $0x210] sm:$0xff]  ;;  %v9076_v1 = vld [vmem:[%s13035_s5 + $0xc8] sm:$0xff] }
 0x31e   : > { %v4532_v56 = vpop.f32.mrf.mxu0  ;;  %5403 = vmatpush.bf16.msrb.mxu3 %v9126_v40 }
 0x31f   : > { %v4605_v59 = vadd.f32 %v4589_v41, %v12342_v42  ;;  %v4590_v34 = vpop.f32.mrf.mxu2  ;;  %7938 = vmatmul.msk.bf16.vlgmr.msra.gmra.mxu3 %vm3402_vm4, %v4630_v19  ;;  %7942 = vmatmul.msk.bf16.vlgmr.msra.gmra.mxu0 %vm3402_vm4, %v4630_v19  ;;  %v4533_v4 = vadd.f32 %v4532_v56, %v4504_v38  ;;  %v9085_v42 = vld [vmem:[%s13035_s5 + $0x110] sm:$0xff]  ;;  %v9124_v19 = vld [vmem:[%s13035_s5 + $0x1a8] sm:$0xff]  ;;  %v9135_v56 = vld [vmem:[%s13035_s5 + $0x200] sm:$0xff] }
 0x320   : > { %5935 = vmatpush.bf16.msrb.mxu2 %v9085_v42  ;;  %v9123_v42 = vld [vmem:[%s13035_s5 + $0x1a0] sm:$0xff] }
 0x321   : > { %v4616_v53 = vadd.f32 %v12471_v28, %v4605_v59  ;;  %v8308_v59 = vld [vmem:[#allocation2 + $0x118] sm:$0xf] }
 0x322   : > { %v4561_v30 = vpop.f32.mrf.mxu1  ;;  %5404 = vmatpush.bf16.msrb.mxu3 %v9125_v33  ;;  %v8309_v38 = vor.u32 %v9048_v45, %v8308_v59  ;;  %v9194_v33 = vld [vmem:[%s13035_s5 + $0x338] sm:$0xff] }
 0x323   : > { %v4562_v5 = vadd.f32 %v4561_v30, %v4533_v4  ;;  %v4624_v60 = vmax.f32 %v4616_v53, 0.0  ;;  %v8096_v30 = vld [vmem:[#allocation2 + $0x1c8] sm:$0xf] }
 0x324   : > { %5832 = vmatmul.bf16.gmra.mxu2 %v8289_v47  ;;  %v4506_v0 = vpop.f32.mrf.mxu3 }
 0x325   : > { %v4591_v12 = vadd.f32 %v4590_v34, %v4562_v5  ;;  %v4507_v48 = vadd.f32 %v4506_v0, %v12386_v9  ;;  %5936 = vmatpush.bf16.msrb.mxu2 %v9084_v27  ;;  %v9077_v9 = vld [vmem:[%s13035_s5 + $0xd0] sm:$0xff] }
 0x326   : > { %v4535_v52 = vpop.f32.mrf.mxu0  ;;  %5906 = vmatpush.bf16.msra.mxu1 %v9077_v9  ;;  %5405 = vmatpush.bf16.msrb.mxu3 %v9124_v19  ;;  %v8264_v9 = vld [vmem:[#allocation2 + $0xb0] sm:$0xf] }
 0x327   : > { %v4606_v51 = vadd.f32 %v4591_v12, %v12372_v11  ;;  %v4593_v31 = vpop.f32.mrf.mxu2  ;;  %v4536_v43 = vadd.f32 %v4535_v52, %v4507_v48  ;;  %v9138_v11 = vld [vmem:[%s13035_s5 + $0x218] sm:$0xff] }
 0x328   : > { %5428 = vmatpush.bf16.msrb.mxu0 %v9138_v11  ;;  %v9106_v12 = vld [vmem:[#allocation2 + $0x1d8] sm:$0xf0] }
 0x329   : > { %v4617_v37 = vadd.f32 %v12471_v28, %v4606_v51  ;;  %5937 = vmatpush.bf16.msrb.mxu2 %v9083_v25  ;;  %v8097_v61 = vor.u32 %v9106_v12, %v8096_v30 }
 0x32a   : > { %v4564_v50 = vpop.f32.mrf.mxu1  ;;  %5907 = vmatpush.bf16.msra.mxu1 %v9076_v1  ;;  %5406 = vmatpush.bf16.msrb.mxu3 %v9123_v42  ;;  %v9190_v42 = vld [vmem:[%s13035_s5 + $0x318] sm:$0xff] }
 0x32b   : > { %v4625_v6 = vmax.f32 %v4617_v37, 0.0  ;;  %v4565_v15 = vadd.f32 %v4564_v50, %v4536_v43 }
 0x32c   : > { %v4508_v39 = vpop.f32.mrf.mxu3  ;;  %5429 = vmatpush.bf16.msrb.mxu0 %v9137_v13  ;;  %v8258_v13 = vld [vmem:[#allocation2 + $0xbc] sm:$0xf0] }
 0x32d   : > { %8244 = vmatmul.msk.bf16.gmra.mxu1 %vm3402_vm4, %v8077_v35  ;;  %v4594_v36 = vadd.f32 %v4593_v31, %v4565_v15  ;;  %v4631_v23 = vpack.c.bf16 %v4625_v6, %v4624_v60  ;;  %v4509_v24 = vadd.f32 %v4508_v39, %v12392_v10  ;;  %v9075_v10 = vld [vmem:[%s13035_s5 + $0xc0] sm:$0xff]  ;;  %v9133_v31 = vld [vmem:[%s13035_s5 + $0x1f0] sm:$0xff]  ;;  %v9066_v60 = vld [vmem:[%s13035_s5 + $0x78] sm:$0xff]  ;;  %6470 = vmatpush.bf16.msra.mxu2 %v9194_v33 }
 0x32e   : > { %v4537_v41 = vpop.f32.mrf.mxu0  ;;  %5908 = vmatpush.bf16.msra.mxu1 %v9075_v10  ;;  %v9035_v35 = vld [vmem:[#allocation2 + $0xc0] sm:$0xf0]  ;;  %5843 = vmatpush.bf16.msra.mxu3 %v9066_v60  ;;  %v8304_v60 = vld [vmem:[#allocation2 + $0x100] sm:$0xf] }
 0x32f   : > { %v4607_v32 = vadd.f32 %v4594_v36, %v12389_v14  ;;  %v4595_v16 = vpop.f32.mrf.mxu2  ;;  %7939 = vmatmul.msk.bf16.gmra.mxu3 %vm3402_vm4, %v4631_v23  ;;  %7943 = vmatmul.msk.bf16.gmra.mxu0 %vm3402_vm4, %v4631_v23  ;;  %v4538_v55 = vadd.f32 %v4537_v41, %v4509_v24  ;;  %v9136_v14 = vld [vmem:[%s13035_s5 + $0x208] sm:$0xff]  ;;  %v9131_v23 = vld [vmem:[%s13035_s5 + $0x1e0] sm:$0xff]  ;;  %v9065_v24 = vld [vmem:[%s13035_s5 + $0x70] sm:$0xff] }
 0x330   : > { %5430 = vmatpush.bf16.msrb.mxu0 %v9136_v14  ;;  %v9186_v14 = vld [vmem:[%s13035_s5 + $0x2f8] sm:$0xff]  ;;  %v9187_v33 = vld [vmem:[%s13035_s5 + $0x300] sm:$0xff] }
 0x331   : > { %v4618_v3 = vadd.f32 %v12471_v28, %v4607_v32 }
 0x332   : > { %v4566_v44 = vpop.f32.mrf.mxu1  ;;  %5844 = vmatpush.bf16.msra.mxu3 %v9065_v24  ;;  %6441 = vmatpush.bf16.msrb.mxu1 %v9186_v14  ;;  %v8050_v14 = vld [vmem:[#allocation2 + $0x184] sm:$0xf0] }
 0x333   : > { %v4567_v34 = vadd.f32 %v4566_v44, %v4538_v55  ;;  %v9193_v44 = vld [vmem:[%s13035_s5 + $0x330] sm:$0xff] }
 0x334   : > { %5837 = vmatmul.bf16.gmra.mxu2 %v8309_v38  ;;  %v4511_v4 = vpop.f32.mrf.mxu3  ;;  %5431 = vmatpush.bf16.msrb.mxu0 %v9135_v56 }
 0x335   : > { %v4596_v17 = vadd.f32 %v4595_v16, %v4567_v34  ;;  %v4512_v5 = vadd.f32 %v4511_v4, %v12410_v62  ;;  %v9032_v16 = vld [vmem:[#allocation2 + $0xac] sm:$0xf]  ;;  %6471 = vmatpush.bf16.msra.mxu2 %v9193_v44  ;;  %v8284_v34 = vld [vmem:[#allocation2 + $0xd8] sm:$0xf]  ;;  %v8048_v44 = vld [vmem:[#allocation2 + $0x170] sm:$0xf] }
 0x336   : > { %v4540_v40 = vpop.f32.mrf.mxu0  ;;  %v8261_v41 = vor.u32 %v9032_v16, %v8258_v13  ;;  %v9040_v4 = vld [vmem:[#allocation2 + $0xe8] sm:$0xf0]  ;;  %v8298_v13 = vld [vmem:[#allocation2 + $0x10c] sm:$0xf0] }
 0x337   : > { %v4608_v47 = vadd.f32 %v4596_v17, %v12395_v20  ;;  %v4598_v54 = vpop.f32.mrf.mxu2  ;;  %v4541_v27 = vadd.f32 %v4540_v40, %v4512_v5  ;;  %v4626_v20 = vmax.f32 %v4618_v3, 0.0  ;;  %v9064_v17 = vld [vmem:[%s13035_s5 + $0x68] sm:$0xff]  ;;  %v8285_v3 = vor.u32 %v9040_v4, %v8284_v34  ;;  %v9191_v5 = vld [vmem:[%s13035_s5 + $0x320] sm:$0xff]  ;;  %v9037_v40 = vld [vmem:[#allocation2 + $0xd4] sm:$0xf] }
 0x338   : > { %5432 = vmatpush.bf16.msrb.mxu0 %v9134_v21  ;;  %5845 = vmatpush.bf16.msra.mxu3 %v9064_v17  ;;  %v8028_v21 = vld [vmem:[#allocation2 + $0x148] sm:$0xf] }
 0x339   : > { %v4619_v8 = vadd.f32 %v12471_v28, %v4608_v47  ;;  %v9185_v47 = vld [vmem:[%s13035_s5 + $0x2f0] sm:$0xff]  ;;  %v8324_v17 = vld [vmem:[#allocation2 + $0x128] sm:$0xf] }
 0x33a   : > { %v4569_v0 = vpop.f32.mrf.mxu1  ;;  %6442 = vmatpush.bf16.msrb.mxu1 %v9185_v47  ;;  %v9070_v47 = vld [vmem:[%s13035_s5 + $0x98] sm:$0xff] }
 0x33b   : > { %v4627_v62 = vmax.f32 %v4619_v8, 0.0  ;;  %v4570_v53 = vadd.f32 %v4569_v0, %v4541_v27  ;;  %v9063_v8 = vld [vmem:[%s13035_s5 + $0x60] sm:$0xff]  ;;  %v8278_v27 = vld [vmem:[#allocation2 + $0xe4] sm:$0xf0] }
 0x33c   : > { %v4513_v52 = vpop.f32.mrf.mxu3  ;;  %5433 = vmatpush.bf16.msrb.mxu0 %v9133_v31  ;;  %5846 = vmatpush.bf16.msra.mxu3 %v9063_v8  ;;  %v8030_v31 = vld [vmem:[#allocation2 + $0x15c] sm:$0xf0]  ;;  %v9047_v8 = vld [vmem:[#allocation2 + $0x124] sm:$0xf] }
 0x33d   : > { %8245 = vmatmul.msk.bf16.gmra.mxu1 %vm3402_vm4, %v8097_v61  ;;  %v4599_v51 = vadd.f32 %v4598_v54, %v4570_v53  ;;  %v4632_v48 = vpack.c.bf16 %v4627_v62, %v4626_v20  ;;  %v4514_v43 = vadd.f32 %v4513_v52, %v12430_v46  ;;  %v8265_v46 = vor.u32 %v9035_v35, %v8264_v9  ;;  %v9184_v54 = vld [vmem:[%s13035_s5 + $0x2e8] sm:$0xff]  ;;  %v9183_v53 = vld [vmem:[%s13035_s5 + $0x2e0] sm:$0xff]  ;;  %v9182_v52 = vld [vmem:[%s13035_s5 + $0x2d8] sm:$0xff] }
 0x33e   : > { %v4542_v6 = vpop.f32.mrf.mxu0  ;;  %6443 = vmatpush.bf16.msrb.mxu1 %v9184_v54  ;;  %v8281_v61 = vor.u32 %v9037_v40, %v8278_v27  ;;  %v9088_v62 = vld [vmem:[#allocation2 + $0x14c] sm:$0xf] }
 0x33f   : > { %v4609_v37 = vadd.f32 %v4599_v51, %v12413_v2  ;;  %v4600_v50 = vpop.f32.mrf.mxu2  ;;  %7940 = vmatmul.msk.bf16.gmra.mxu3 %vm3402_vm4, %v4632_v48  ;;  %7944 = vmatmul.msk.bf16.gmra.mxu0 %vm3402_vm4, %v4632_v48  ;;  %v4543_v15 = vadd.f32 %v4542_v6, %v4514_v43  ;;  %v9132_v2 = vld [vmem:[%s13035_s5 + $0x1e8] sm:$0xff]  ;;  %v9189_v51 = vld [vmem:[%s13035_s5 + $0x310] sm:$0xff]  ;;  %v9090_v48 = vld [vmem:[#allocation2 + $0x158] sm:$0xf0]  ;;  %v8033_v43 = vor.u32 %v9088_v62, %v8030_v31 }
 0x340   : > { %5434 = vmatpush.bf16.msrb.mxu0 %v9132_v2  ;;  %v9045_v6 = vld [vmem:[#allocation2 + $0x110] sm:$0xf0]  ;;  %v9098_v62 = vld [vmem:[#allocation2 + $0x19c] sm:$0xf]  ;;  %v9144_v31 = vld [vmem:[#allocation2 + $0x1ec] sm:$0xf] }
 0x341   : > { %v4620_v1 = vadd.f32 %v12471_v28, %v4609_v37  ;;  %v8029_v37 = vor.u32 %v9090_v48, %v8028_v21  ;;  %v8305_v2 = vor.u32 %v9045_v6, %v8304_v60  ;;  %v8068_v21 = vld [vmem:[#allocation2 + $0x198] sm:$0xf]  ;;  %v9146_v6 = vld [vmem:[#allocation2 + $0x1f8] sm:$0xf0] }
 0x342   : > { %v4571_v11 = vpop.f32.mrf.mxu1  ;;  %6444 = vmatpush.bf16.msrb.mxu1 %v9183_v53  ;;  %v8070_v53 = vld [vmem:[#allocation2 + $0x1ac] sm:$0xf0] }
 0x343   : > { %v4572_v25 = vadd.f32 %v4571_v11, %v4543_v15  ;;  %v4628_v59 = vmax.f32 %v4620_v1, 0.0  ;;  %v9062_v15 = vld [vmem:[%s13035_s5 + $0x58] sm:$0xff]  ;;  %v8073_v48 = vor.u32 %v9098_v62, %v8070_v53  ;;  %v4750_v62 = vld [vmem:[%s9851_s24 + $0x8] sm:$0xff] }
 0x344   : > { %8470 = vmatmul.msk.bf16.vlgmr.msrb.gmra.mxu2 %vm3402_vm4, %v8265_v46  ;;  %5435 = vmatpush.bf16.msrb.mxu0 %v9131_v23  ;;  %v9074_v46 = vld [vmem:[%s13035_s5 + $0xb8] sm:$0xff]  ;;  %v9180_v23 = vld [vmem:[%s13035_s5 + $0x2c8] sm:$0xff] }
 0x345   : > { %v4601_v36 = vadd.f32 %v4600_v50, %v4572_v25  ;;  %v9188_v50 = vld [vmem:[%s13035_s5 + $0x308] sm:$0xff]  ;;  %5847 = vmatpush.bf16.msra.mxu3 %v9062_v15  ;;  %v9181_v25 = vld [vmem:[%s13035_s5 + $0x2d0] sm:$0xff] }
 0x346   : > { %6445 = vmatpush.bf16.msrb.mxu1 %v9182_v52  ;;  %v8556_v15 = vld [vmem:[#allocation2 + $0x1e8] sm:$0xf] }
 0x347   : > { %v4610_v39 = vadd.f32 %v4601_v36, %v12436_v49  ;;  %v5379_v32 = vpop.f32.mrf.mxu2  ;;  %v9073_v36 = vld [vmem:[%s13035_s5 + $0xb0] sm:$0xff] }
 0x348   : > { %5872 = vmatpush.bf16.msra.mxu0 %v9074_v46  ;;  %v9103_v46 = vld [vmem:[#allocation2 + $0x1c4] sm:$0xf] }
 0x349   : > { %v4621_v45 = vadd.f32 %v12471_v28, %v4610_v39  ;;  %v9192_v28 = vld [vmem:[%s13035_s5 + $0x328] sm:$0xff]  ;;  %v9061_v39 = vld [vmem:[%s13035_s5 + $0x50] sm:$0xff] }
 0x34a   : > { %v5350_v19 = vpop.f32.mrf.mxu1  ;;  %6472 = vmatpush.bf16.msra.mxu2 %v9192_v28  ;;  %6446 = vmatpush.bf16.msrb.mxu1 %v9181_v25  ;;  %v9071_v28 = vld [vmem:[%s13035_s5 + $0xa0] sm:$0xff]  ;;  %v9169_v25 = vld [vmem:[%s13035_s5 + $0x270] sm:$0xff] }
 0x34b   : > { %v12591_v55 = vadd.f32 %v5379_v32, %v5350_v19  ;;  %v4629_v49 = vmax.f32 %v4621_v45, 0.0  ;;  %v9042_v32 = vld [vmem:[#allocation2 + $0xfc] sm:$0xf]  ;;  %5848 = vmatpush.bf16.msra.mxu3 %v9061_v39  ;;  %v9072_v45 = vld [vmem:[%s13035_s5 + $0xa8] sm:$0xff]  ;;  %v9179_v19 = vld [vmem:[%s13035_s5 + $0x2c0] sm:$0xff] }
 0x34c   : > { %5873 = vmatpush.bf16.msra.mxu0 %v9073_v36  ;;  %v8301_v16 = vor.u32 %v9042_v32, %v8298_v13  ;;  %v8090_v36 = vld [vmem:[#allocation2 + $0x1d4] sm:$0xf0]  ;;  %v8578_v39 = vld [vmem:[#allocation2 + $0x224] sm:$0xf0] }
 0x34d   : > { %5909 = vmatmul.bf16.vlgmr.msra.gmra.mxu1 %v8261_v41  ;;  %v4633_v10 = vpack.c.bf16 %v4629_v49, %v4628_v59  ;;  %v9093_v59 = vld [vmem:[#allocation2 + $0x174] sm:$0xf]  ;;  %v9095_v49 = vld [vmem:[#allocation2 + $0x180] sm:$0xf0]  ;;  %v8093_v13 = vor.u32 %v9103_v46, %v8090_v36 }
 0x34e   : > { %6473 = vmatpush.bf16.msra.mxu2 %v9191_v5  ;;  %6447 = vmatpush.bf16.msrb.mxu1 %v9180_v23 }
 0x34f   : > { %v5381_v38 = vpop.f32.mrf.mxu2  ;;  %7941 = vmatmul.msk.bf16.gmra.mxu3 %vm3402_vm4, %v4633_v10  ;;  %7945 = vmatmul.msk.bf16.gmra.mxu0 %vm3402_vm4, %v4633_v10  ;;  %v8049_v10 = vor.u32 %v9095_v49, %v8048_v44  ;;  %v9034_v49 = vld [vmem:[#allocation2 + $0xb8] sm:$0xf0] }
 0x350   : > { %5874 = vmatpush.bf16.msra.mxu0 %v9072_v45  ;;  %v8576_v45 = vld [vmem:[#allocation2 + $0x210] sm:$0xf] }
 0x352   : > { %v5352_v56 = vpop.f32.mrf.mxu1  ;;  %6474 = vmatpush.bf16.msra.mxu2 %v9190_v42  ;;  %6448 = vmatpush.bf16.msrb.mxu1 %v9179_v19  ;;  %v8318_v42 = vld [vmem:[#allocation2 + $0x134] sm:$0xf0]  ;;  %v2892_v19 = vld [vmem:[%s13038_s8] sm:$0x3] }
 0x353   : > { %v12607_v30 = vadd.f32 %v5381_v38, %v5352_v56  ;;  %v8053_v38 = vor.u32 %v9093_v59, %v8050_v14  ;;  %v9060_v56 = vld [vmem:[%s13035_s5 + $0x48] sm:$0xff]  ;;  %v9031_v59 = vld [vmem:[#allocation2 + $0xa4] sm:$0xf]  ;;  %v12715_v14 = vperm.slane %v2892_v19, 1 }
 0x354   : > { %8471 = vmatmul.msk.bf16.gmra.mxu2 %vm3402_vm4, %v8285_v3  ;;  %5875 = vmatpush.bf16.msra.mxu0 %v9071_v28  ;;  %v9050_v3 = vld [vmem:[#allocation2 + $0x138] sm:$0xf0]  ;;  %v9167_v28 = vld [vmem:[%s13035_s5 + $0x260] sm:$0xff] }
 0x355   : > { %5849 = vmatpush.bf16.msra.mxu3 %v9060_v56  ;;  %v8325_v54 = vor.u32 %v9050_v3, %v8324_v17  ;;  %v8256_v17 = vld [vmem:[#allocation2 + $0xa8] sm:$0xf] }
 0x356   : > { %6475 = vmatpush.bf16.msra.mxu2 %v9189_v51  ;;  %6601 = vmatpush.bf16.msra.mxu1 %v12424_v26  ;;  %v9069_v26 = vld [vmem:[%s13035_s5 + $0x90] sm:$0xff] }
 0x357   : > { %v5384_v12 = vpop.f32.mrf.mxu2 }
 0x358   : > { %5876 = vmatpush.bf16.msra.mxu0 %v9070_v47 }
 0x35a   : > { %v5355_v0 = vpop.f32.mrf.mxu1  ;;  %6476 = vmatpush.bf16.msra.mxu2 %v9188_v50  ;;  %6602 = vmatpush.bf16.msra.mxu1 %v12433_v58  ;;  %v9068_v58 = vld [vmem:[%s13035_s5 + $0x88] sm:$0xff]  ;;  %v9067_v50 = vld [vmem:[%s13035_s5 + $0x80] sm:$0xff] }
 0x35b   : > { %v12625_v20 = vadd.f32 %v5384_v12, %v5355_v0  ;;  %v9059_v12 = vld [vmem:[%s13035_s5 + $0x40] sm:$0xff]  ;;  %v8321_v0 = vor.u32 %v9047_v8, %v8318_v42 }
 0x35c   : > { %5877 = vmatpush.bf16.msra.mxu0 %v9069_v26  ;;  %5850 = vmatpush.bf16.msra.mxu3 %v9059_v12  ;;  %v9154_v26 = vld [vmem:[#allocation2 + $0x23c] sm:$0xf] }
 0x35d   : > { %5914 = vmatmul.bf16.gmra.mxu1 %v8281_v61 }
 0x35e   : > { %6477 = vmatpush.bf16.msra.mxu2 %v9187_v33  ;;  %6603 = vmatpush.bf16.msra.mxu1 %v12445_v18  ;;  %v9100_v18 = vld [vmem:[#allocation2 + $0x1a8] sm:$0xf0]  ;;  %v9105_v33 = vld [vmem:[#allocation2 + $0x1d0] sm:$0xf0] }
 0x35f   : > { %v5386_v35 = vpop.f32.mrf.mxu2  ;;  %5407 = vmatmul.bf16.vlgmr.msrb.gmra.mxu3 %v8029_v37  ;;  %5436 = vmatmul.bf16.vlgmr.msrb.gmra.mxu0 %v8033_v43  ;;  %v8069_v51 = vor.u32 %v9100_v18, %v8068_v21  ;;  %v8558_v43 = vld [vmem:[#allocation2 + $0x1fc] sm:$0xf0]  ;;  %v9178_v18 = vld [vmem:[%s13035_s5 + $0x2b8] sm:$0xff] }
 0x360   : > { %5878 = vmatpush.bf16.msra.mxu0 %v9068_v58  ;;  %v8561_v60 = vor.u32 %v9144_v31, %v8558_v43  ;;  %v9166_v58 = vld [vmem:[%s13035_s5 + $0x258] sm:$0xff] }
 0x361   : > { %v8596_v43 = vld [vmem:[#allocation2 + $0x238] sm:$0xf] }
 0x362   : > { %v5357_v11 = vpop.f32.mrf.mxu1  ;;  %6604 = vmatpush.bf16.msra.mxu1 %v12458_v22  ;;  %v9170_v22 = vld [vmem:[%s13035_s5 + $0x278] sm:$0xff] }
 0x363   : > { %v12642_v9 = vadd.f32 %v5386_v35, %v5357_v11  ;;  %6383 = vmatpush.bf16.msrb.mxu3 %v9170_v22  ;;  %v8557_v11 = vor.u32 %v9146_v6, %v8556_v15  ;;  %v4759_v22 = vunpack.c.l.bf16 %v4750_v62  ;;  %v9036_v15 = vld [vmem:[#allocation2 + $0xcc] sm:$0xf] }
 0x364   : > { %8472 = vmatmul.msk.bf16.gmra.mxu2 %vm3402_vm4, %v8305_v2  ;;  %5879 = vmatpush.bf16.msra.mxu0 %v9067_v50  ;;  %v8088_v2 = vld [vmem:[#allocation2 + $0x1c0] sm:$0xf] }
 0x365   : > { %v8089_v23 = vor.u32 %v9105_v33, %v8088_v2  ;;  %v9165_v33 = vld [vmem:[%s13035_s5 + $0x250] sm:$0xff] }
 0x367   : > { %v5389_v1 = vpop.f32.mrf.mxu2  ;;  %6384 = vmatpush.bf16.msrb.mxu3 %v9169_v25  ;;  %v9177_v25 = vld [vmem:[%s13035_s5 + $0x2b0] sm:$0xff] }
 0x368   : > { %6412 = vmatpush.bf16.msrb.mxu0 %v9178_v18 }
 0x36a   : > { %v5360_v24 = vpop.f32.mrf.mxu1 }
 0x36b   : > { %v12669_v41 = vadd.f32 %v5389_v1, %v5360_v24  ;;  %v9149_v1 = vld [vmem:[#allocation2 + $0x214] sm:$0xf]  ;;  %v9168_v24 = vld [vmem:[%s13035_s5 + $0x268] sm:$0xff] }
 0x36c   : > { %v8581_v32 = vor.u32 %v9149_v1, %v8578_v39  ;;  %6385 = vmatpush.bf16.msrb.mxu3 %v9168_v24  ;;  %v8276_v1 = vld [vmem:[#allocation2 + $0xd0] sm:$0xf]  ;;  %6413 = vmatpush.bf16.msrb.mxu0 %v9177_v25 }
 0x36d   : > { %5919 = vmatmul.bf16.gmra.mxu1 %v8301_v16  ;;  %v9151_v16 = vld [vmem:[#allocation2 + $0x220] sm:$0xf0] }
 0x36e   : > { %v8577_v44 = vor.u32 %v9151_v16, %v8576_v45  ;;  %v9176_v16 = vld [vmem:[%s13035_s5 + $0x2a8] sm:$0xff] }
 0x36f   : > { %v5391_v34 = vpop.f32.mrf.mxu2  ;;  %5412 = vmatmul.bf16.gmra.mxu3 %v8049_v10  ;;  %5441 = vmatmul.bf16.gmra.mxu0 %v8053_v38  ;;  %v4749_v38 = vld [vmem:[%s9851_s24] sm:$0xff] }
 0x370   : > { %6386 = vmatpush.bf16.msrb.mxu3 %v9167_v28  ;;  %v4758_v47 = vunpack.c.h.bf16 %v4749_v38  ;;  %v4757_v42 = vunpack.c.l.bf16 %v4749_v38  ;;  %v8618_v38 = vld [vmem:[#allocation2 + $0x274] sm:$0xf0]  ;;  %6414 = vmatpush.bf16.msrb.mxu0 %v9176_v16 }
 0x372   : > { %v5362_v4 = vpop.f32.mrf.mxu1 }
 0x373   : > { %v12681_v5 = vadd.f32 %v5391_v34, %v5362_v4  ;;  %v8250_v34 = vld [vmem:[#allocation2 + $0xb4] sm:$0xf0]  ;;  %v8257_v4 = vor.u32 %v9034_v49, %v8256_v17  ;;  %v9159_v49 = vld [vmem:[#allocation2 + $0x264] sm:$0xf] }
 0x374   : > { %8473 = vmatmul.msk.bf16.gmra.mxu2 %vm3402_vm4, %v8325_v54  ;;  %v8253_v56 = vor.u32 %v9031_v59, %v8250_v34  ;;  %v12722_v54 = vperm.slane %v2892_v19, 0  ;;  %6387 = vmatpush.bf16.msrb.mxu3 %v9166_v58  ;;  %v8621_v17 = vor.u32 %v9159_v49, %v8618_v38  ;;  %v4754_v49 = vld [vmem:[%s9851_s24 + $0x28] sm:$0xff] }
 0x377   : > { %v5394_v40 = vpop.f32.mrf.mxu2 }
 0x378   : > { %6388 = vmatpush.bf16.msrb.mxu3 %v9165_v33  ;;  %v9172_v33 = vld [vmem:[%s13035_s5 + $0x288] sm:$0xff] }
 0x37a   : > { %v5365_v27 = vpop.f32.mrf.mxu1 }
 0x37b   : > { %v12695_v61 = vadd.f32 %v5394_v40, %v5365_v27  ;;  %v8598_v40 = vld [vmem:[#allocation2 + $0x24c] sm:$0xf0] }
 0x37c   : > { %v8601_v8 = vor.u32 %v9154_v26, %v8598_v40 }
 0x37d   : > { %5924 = vmatmul.bf16.gmra.mxu1 %v8321_v0 }
 0x37f   : > { %5417 = vmatmul.bf16.gmra.mxu3 %v8069_v51  ;;  %5446 = vmatmul.bf16.gmra.mxu0 %v8073_v48  ;;  %v5396_v52 = vpop.f32.mrf.mxu2  ;;  %v9156_v51 = vld [vmem:[#allocation2 + $0x248] sm:$0xf0] }
 0x382   : > { %v5367_v37 = vpop.f32.mrf.mxu1 }
 0x383   : > { %v12704_v35 = vadd.f32 %v5396_v52, %v5367_v37  ;;  %v4760_v37 = vunpack.c.h.bf16 %v4750_v62  ;;  %v8616_v62 = vld [vmem:[#allocation2 + $0x260] sm:$0xf] }
 0x384   : > { %6478 = vmatmul.bf16.vlgmr.msra.gmra.mxu2 %v8561_v60  ;;  %v8597_v60 = vor.u32 %v9156_v51, %v8596_v43 }
 0x38d   : > { %6449 = vmatmul.bf16.vlgmr.msrb.gmra.mxu1 %v8557_v11  ;;  %v9039_v11 = vld [vmem:[#allocation2 + $0xe0] sm:$0xf0] }
 0x38e   : > { %v8277_v24 = vor.u32 %v9039_v11, %v8276_v1  ;;  %v9044_v11 = vld [vmem:[#allocation2 + $0x108] sm:$0xf0] }
 0x38f   : > { %5422 = vmatmul.bf16.gmra.mxu3 %v8089_v23  ;;  %5451 = vmatmul.bf16.gmra.mxu0 %v8093_v13  ;;  %v4751_v23 = vld [vmem:[%s9851_s24 + $0x10] sm:$0xff]  ;;  %v8270_v13 = vld [vmem:[#allocation2 + $0xdc] sm:$0xf0] }
 0x390   : > { %v4762_v59 = vunpack.c.h.bf16 %v4751_v23 }
 0x394   : > { %6483 = vmatmul.bf16.gmra.mxu2 %v8581_v32  ;;  %v8273_v32 = vor.u32 %v9036_v15, %v8270_v13  ;;  %v9041_v15 = vld [vmem:[#allocation2 + $0xf4] sm:$0xf] }
 0x39c   : > { %v4729_v10 = vpop.f32.mrf.mxu0 }
 0x39d   : > { %6454 = vmatmul.bf16.gmra.mxu1 %v8577_v44  ;;  %v4730_v3 = vadd.f32 %v4729_v10, %v12715_v14  ;;  %v4761_v10 = vunpack.c.l.bf16 %v4751_v23 }
 0x39f   : > { %5851 = vmatmul.bf16.vlgmr.msra.gmra.mxu3 %v8253_v56  ;;  %5880 = vmatmul.bf16.vlgmr.msra.gmra.mxu0 %v8257_v4  ;;  %v4774_v27 = vadd.f32 %v4758_v47, %v4730_v3  ;;  %v9175_v3 = vld [vmem:[%s13035_s5 + $0x2a0] sm:$0xff]  ;;  %v9164_v47 = vld [vmem:[%s13035_s5 + $0x248] sm:$0xff] }
 0x3a0   : > { %6415 = vmatpush.bf16.msrb.mxu0 %v9175_v3  ;;  %6389 = vmatpush.bf16.msrb.mxu3 %v9164_v47  ;;  %v4767_v3 = vunpack.c.l.bf16 %v4754_v49 }
 0x3a1   : > { %v4790_v48 = vmax.f32 %v4774_v27, 0.0 }
 0x3a2   : > { %v4700_v12 = vpop.f32.mrf.mxu3 }
 0x3a3   : > { %v4701_v0 = vadd.f32 %v4700_v12, %v12722_v54  ;;  %v9174_v12 = vld [vmem:[%s13035_s5 + $0x298] sm:$0xff] }
 0x3a4   : > { %6488 = vmatmul.bf16.gmra.mxu2 %v8601_v8  ;;  %v4731_v21 = vpop.f32.mrf.mxu0  ;;  %v9161_v8 = vld [vmem:[#allocation2 + $0x270] sm:$0xf0]  ;;  %6416 = vmatpush.bf16.msrb.mxu0 %v9174_v12 }
 0x3a5   : > { %v4773_v53 = vadd.f32 %v4757_v42, %v4701_v0  ;;  %v4732_v52 = vadd.f32 %v4731_v21, %v12715_v14  ;;  %v4752_v42 = vld [vmem:[%s9851_s24 + $0x18] sm:$0xff]  ;;  %v8617_v51 = vor.u32 %v9161_v8, %v8616_v62  ;;  %v4755_v8 = vld [vmem:[%s9851_s24 + $0x30] sm:$0xff] }
 0x3a6   : > { %v4764_v21 = vunpack.c.h.bf16 %v4752_v42 }
 0x3a7   : > { %v4789_v31 = vmax.f32 %v4773_v53, 0.0  ;;  %v4776_v2 = vadd.f32 %v4760_v37, %v4732_v52  ;;  %v4763_v53 = vunpack.c.l.bf16 %v4752_v42  ;;  %v8296_v52 = vld [vmem:[#allocation2 + $0xf8] sm:$0xf]  ;;  %v9049_v42 = vld [vmem:[#allocation2 + $0x130] sm:$0xf0] }
 0x3a8   : > { %v8297_v25 = vor.u32 %v9044_v11, %v8296_v52  ;;  %v4769_v52 = vunpack.c.l.bf16 %v4755_v8 }
 0x3a9   : > { %v4805_v50 = vpack.c.bf16 %v4790_v48, %v4789_v31  ;;  %v4792_v45 = vmax.f32 %v4776_v2, 0.0  ;;  %v8290_v31 = vld [vmem:[#allocation2 + $0x104] sm:$0xf0] }
 0x3aa   : > { %v4702_v6 = vpop.f32.mrf.mxu3 }
 0x3ab   : > { %4813 = vst [vmem:[%s12736_s25] sm:$0xff] %v4805_v50  ;;  %v4703_v46 = vadd.f32 %v4702_v6, %v12722_v54  ;;  %v9173_v50 = vld [vmem:[%s13035_s5 + $0x290] sm:$0xff]  ;;  %v4753_v6 = vld [vmem:[%s9851_s24 + $0x20] sm:$0xff] }
 0x3ac   : > { %v4734_v36 = vpop.f32.mrf.mxu0  ;;  %6417 = vmatpush.bf16.msrb.mxu0 %v9173_v50  ;;  %v4766_v1 = vunpack.c.h.bf16 %v4753_v6 }
 0x3ad   : > { %6459 = vmatmul.bf16.gmra.mxu1 %v8597_v60  ;;  %v4775_v39 = vadd.f32 %v4759_v22, %v4703_v46  ;;  %v4735_v44 = vadd.f32 %v4734_v36, %v12715_v14  ;;  %v9163_v22 = vld [vmem:[%s13035_s5 + $0x240] sm:$0xff]  ;;  %v8293_v46 = vor.u32 %v9041_v15, %v8290_v31 }
 0x3ae   : > { %6390 = vmatpush.bf16.msrb.mxu3 %v9163_v22 }
 0x3af   : > { %v4791_v19 = vmax.f32 %v4775_v39, 0.0  ;;  %5856 = vmatmul.bf16.gmra.mxu3 %v8273_v32  ;;  %5885 = vmatmul.bf16.gmra.mxu0 %v8277_v24  ;;  %v4778_v56 = vadd.f32 %v4762_v59, %v4735_v44  ;;  %v4765_v32 = vunpack.c.l.bf16 %v4753_v6  ;;  %v9198_v44 = vld [vmem:[%s13035_s5 + $0x358] sm:$0xff] }
 0x3b0   : > { %6418 = vmatpush.bf16.msrb.mxu0 %v9172_v33 }
 0x3b1   : > { %v4806_v28 = vpack.c.bf16 %v4792_v45, %v4791_v19  ;;  %v4794_v27 = vmax.f32 %v4778_v56, 0.0  ;;  %v9171_v19 = vld [vmem:[%s13035_s5 + $0x280] sm:$0xff]  ;;  %v12788_v56 = vpop.f32.mrf.mxu1 }
 0x3b2   : > { %v4705_v34 = vpop.f32.mrf.mxu3  ;;  %6503 = vmatpush.bf16.msra.mxu3 %v9198_v44 }
 0x3b3   : > { %4814 = vst [vmem:[%s12736_s25 + $0x8] sm:$0xff] %v4806_v28  ;;  %v4706_v4 = vadd.f32 %v4705_v34, %v12722_v54 }
 0x3b4   : > { %6493 = vmatmul.bf16.gmra.mxu2 %v8621_v17  ;;  %v4736_v26 = vpop.f32.mrf.mxu0  ;;  %6419 = vmatpush.bf16.msrb.mxu0 %v9171_v19  ;;  %v4768_v17 = vunpack.c.h.bf16 %v4754_v49 }
 0x3b5   : > { %v4777_v40 = vadd.f32 %v4761_v10, %v4706_v4  ;;  %v4737_v58 = vadd.f32 %v4736_v26, %v12715_v14  ;;  %v8310_v26 = vld [vmem:[#allocation2 + $0x12c] sm:$0xf0] }
 0x3b7   : > { %v4793_v0 = vmax.f32 %v4777_v40, 0.0  ;;  %v4780_v37 = vadd.f32 %v4764_v21, %v4737_v58 }
 0x3b8   : > { %6572 = vmatpush.bf16.msra.mxu0 %v12277_v7 }
 0x3b9   : > { %v4807_v18 = vpack.c.bf16 %v4794_v27, %v4793_v0  ;;  %v4796_v36 = vmax.f32 %v4780_v37, 0.0  ;;  %v9046_v27 = vld [vmem:[#allocation2 + $0x11c] sm:$0xf]  ;;  %v8316_v0 = vld [vmem:[#allocation2 + $0x120] sm:$0xf]  ;;  %v12799_v37 = vpop.f32.mrf.mxu1 }
 0x3ba   : > { %v4707_v48 = vpop.f32.mrf.mxu3  ;;  %v8313_v21 = vor.u32 %v9046_v27, %v8310_v26  ;;  %v8317_v62 = vor.u32 %v9049_v42, %v8316_v0  ;;  %v8568_v26 = vld [vmem:[#allocation2 + $0x208] sm:$0xf]  ;;  %v9148_v42 = vld [vmem:[#allocation2 + $0x20c] sm:$0xf] }
 0x3bb   : > { %4815 = vst [vmem:[%s12736_s25 + $0x10] sm:$0xff] %v4807_v18  ;;  %v4708_v43 = vadd.f32 %v4707_v48, %v12722_v54  ;;  %v9197_v48 = vld [vmem:[%s13035_s5 + $0x350] sm:$0xff] }
 0x3bc   : > { %v4739_v60 = vpop.f32.mrf.mxu0  ;;  %6573 = vmatpush.bf16.msra.mxu0 %v12318_v63  ;;  %v4770_v63 = vunpack.c.h.bf16 %v4755_v8  ;;  %6504 = vmatpush.bf16.msra.mxu3 %v9197_v48  ;;  %v8570_v8 = vld [vmem:[#allocation2 + $0x21c] sm:$0xf0]  ;;  %v8588_v48 = vld [vmem:[#allocation2 + $0x230] sm:$0xf] }
 0x3bd   : > { %6464 = vmatmul.bf16.gmra.mxu1 %v8617_v51  ;;  %v4779_v2 = vadd.f32 %v4763_v53, %v4708_v43  ;;  %v4740_v13 = vadd.f32 %v4739_v60, %v12715_v14  ;;  %v4756_v60 = vld [vmem:[%s9851_s24 + $0x38] sm:$0xff]  ;;  %v8573_v0 = vor.u32 %v9148_v42, %v8570_v8 }
 0x3be   : > { %v4771_v33 = vunpack.c.l.bf16 %v4756_v60 }
 0x3bf   : > { %v4795_v23 = vmax.f32 %v4779_v2, 0.0  ;;  %5861 = vmatmul.bf16.gmra.mxu3 %v8293_v46  ;;  %5890 = vmatmul.bf16.gmra.mxu0 %v8297_v25  ;;  %v4782_v16 = vadd.f32 %v4766_v1, %v4740_v13  ;;  %v4772_v46 = vunpack.c.h.bf16 %v4756_v60  ;;  %v9143_v13 = vld [vmem:[#allocation2 + $0x1e4] sm:$0xf] }
 0x3c0   : > { %6574 = vmatpush.bf16.msra.mxu0 %v12367_v57 }
 0x3c1   : > { %v4808_v39 = vpack.c.bf16 %v4796_v36, %v4795_v23  ;;  %v4798_v10 = vmax.f32 %v4782_v16, 0.0  ;;  %v9145_v23 = vld [vmem:[#allocation2 + $0x1f0] sm:$0xf0]  ;;  %v8550_v16 = vld [vmem:[#allocation2 + $0x1f4] sm:$0xf0] }
 0x3c2   : > { %v4710_v24 = vpop.f32.mrf.mxu3  ;;  %v8553_v44 = vor.u32 %v9143_v13, %v8550_v16 }
 0x3c3   : > { %4816 = vst [vmem:[%s12736_s25 + $0x18] sm:$0xff] %v4808_v39  ;;  %v4711_v45 = vadd.f32 %v4710_v24, %v12722_v54  ;;  %v12808_v39 = vpop.f32.mrf.mxu1  ;;  %v8548_v24 = vld [vmem:[#allocation2 + $0x1e0] sm:$0xf] }
 0x3c4   : > { %v4741_v59 = vpop.f32.mrf.mxu0  ;;  %6575 = vmatpush.bf16.msra.mxu0 %v12406_v29  ;;  %v8549_v19 = vor.u32 %v9145_v23, %v8548_v24 }
 0x3c5   : > { %v4781_v28 = vadd.f32 %v4765_v32, %v4711_v45  ;;  %v4742_v34 = vadd.f32 %v4741_v59, %v12715_v14 }
 0x3c7   : > { %v4797_v38 = vmax.f32 %v4781_v28, 0.0  ;;  %v4784_v40 = vadd.f32 %v4768_v17, %v4742_v34  ;;  %v9196_v28 = vld [vmem:[%s13035_s5 + $0x348] sm:$0xff] }
 0x3c8   : > { %6505 = vmatpush.bf16.msra.mxu3 %v9196_v28 }
 0x3c9   : > { %v4809_v4 = vpack.c.bf16 %v4798_v10, %v4797_v38  ;;  %v4800_v18 = vmax.f32 %v4784_v40, 0.0 }
 0x3ca   : > { %v4712_v47 = vpop.f32.mrf.mxu3 }
 0x3cb   : > { %4817 = vst [vmem:[%s12736_s25 + $0x20] sm:$0xff] %v4809_v4  ;;  %v4713_v12 = vadd.f32 %v4712_v47, %v12722_v54 }
 0x3cc   : > { %v4744_v7 = vpop.f32.mrf.mxu0 }
 0x3cd   : > { %v4783_v58 = vadd.f32 %v4767_v3, %v4713_v12  ;;  %v4745_v51 = vadd.f32 %v4744_v7, %v12715_v14  ;;  %v12819_v3 = vpop.f32.mrf.mxu1  ;;  %v9150_v7 = vld [vmem:[#allocation2 + $0x218] sm:$0xf0] }
 0x3ce   : > { %v8569_v27 = vor.u32 %v9150_v7, %v8568_v26 }
 0x3cf   : > { %v4799_v53 = vmax.f32 %v4783_v58, 0.0  ;;  %5866 = vmatmul.bf16.gmra.mxu3 %v8313_v21  ;;  %5895 = vmatmul.bf16.gmra.mxu0 %v8317_v62  ;;  %v4786_v57 = vadd.f32 %v4770_v63, %v4745_v51  ;;  %v5823_v21 = vpop.f32.mrf.mxu2 }
 0x3d1   : > { %v4810_v31 = vpack.c.bf16 %v4800_v18, %v4799_v53  ;;  %v4802_v15 = vmax.f32 %v4786_v57, 0.0 }
 0x3d2   : > { %v4715_v43 = vpop.f32.mrf.mxu3 }
 0x3d3   : > { %4818 = vst [vmem:[%s12736_s25 + $0x28] sm:$0xff] %v4810_v31  ;;  %v4716_v50 = vadd.f32 %v4715_v43, %v12722_v54  ;;  %v9153_v31 = vld [vmem:[#allocation2 + $0x234] sm:$0xf] }
 0x3d4   : > { %v4746_v22 = vpop.f32.mrf.mxu0 }
 0x3d5   : > { %v4785_v6 = vadd.f32 %v4769_v52, %v4716_v50  ;;  %v4747_v2 = vadd.f32 %v4746_v22, %v12715_v14  ;;  %v12825_v58 = vpop.f32.mrf.mxu1  ;;  %v9155_v50 = vld [vmem:[#allocation2 + $0x240] sm:$0xf0]  ;;  %v8590_v22 = vld [vmem:[#allocation2 + $0x244] sm:$0xf0] }
 0x3d6   : > { %v8589_v60 = vor.u32 %v9155_v50, %v8588_v48  ;;  %v8584_v48 = vld [vmem:[#allocation2 + $0x218] sm:$0xf] }
 0x3d7   : > { %v4801_v11 = vmax.f32 %v4785_v6, 0.0  ;;  %v4788_v29 = vadd.f32 %v4772_v46, %v4747_v2  ;;  %v5825_v43 = vpop.f32.mrf.mxu2  ;;  %v8593_v6 = vor.u32 %v9153_v31, %v8590_v22  ;;  %v9152_v31 = vld [vmem:[#allocation2 + $0x228] sm:$0xf0] }
 0x3d9   : > { %v4811_v25 = vpack.c.bf16 %v4802_v15, %v4801_v11  ;;  %v4804_v59 = vmax.f32 %v4788_v29, 0.0  ;;  %v8608_v29 = vld [vmem:[#allocation2 + $0x258] sm:$0xf] }
 0x3da   : > { %v4717_v36 = vpop.f32.mrf.mxu3 }
 0x3db   : > { %4819 = vst [vmem:[%s12736_s25 + $0x30] sm:$0xff] %v4811_v25  ;;  %v4718_v1 = vadd.f32 %v4717_v36, %v12722_v54  ;;  %v9158_v36 = vld [vmem:[#allocation2 + $0x25c] sm:$0xf] }
 0x3dc   : > { %v5437_v32 = vpop.f32.mrf.mxu0 }
 0x3dd   : > { %v4787_v45 = vadd.f32 %v4771_v33, %v4718_v1  ;;  %v12832_v51 = vpop.f32.mrf.mxu1  ;;  %v9160_v33 = vld [vmem:[#allocation2 + $0x268] sm:$0xf0]  ;;  %v8610_v1 = vld [vmem:[#allocation2 + $0x26c] sm:$0xf0] }
 0x3de   : > { %v8613_v24 = vor.u32 %v9158_v36, %v8610_v1 }
 0x3df   : > { %v4803_v49 = vmax.f32 %v4787_v45, 0.0  ;;  %6391 = vmatmul.bf16.vlgmr.msrb.gmra.mxu3 %v8549_v19  ;;  %6420 = vmatmul.bf16.vlgmr.msrb.gmra.mxu0 %v8553_v44  ;;  %v5828_v25 = vpop.f32.mrf.mxu2 }
 0x3e1   : > { %v4812_v10 = vpack.c.bf16 %v4804_v59, %v4803_v49 }
 0x3e2   : > { %v5408_v38 = vpop.f32.mrf.mxu3 }
 0x3e3   : > { %4820 = vst [vmem:[%s12736_s25 + $0x38] sm:$0xff] %v4812_v10  ;;  %v5409_v34 = vadd.f32 %v5408_v38, %v12591_v55  ;;  %v9195_v55 = vld [vmem:[%s13035_s5 + $0x340] sm:$0xff] }
 0x3e4   : > { %v12815_v17 = vpop.f32.mrf.mxu0  ;;  %6506 = vmatpush.bf16.msra.mxu3 %v9195_v55  ;;  %v9147_v10 = vld [vmem:[#allocation2 + $0x200] sm:$0xf0] }
 0x3e5   : > { %v12817_v4 = vadd.f32 %v5437_v32, %v5409_v34  ;;  %v12838_v11 = vpop.f32.mrf.mxu1  ;;  %v8609_v32 = vor.u32 %v9160_v33, %v8608_v29  ;;  %v9157_v29 = vld [vmem:[#allocation2 + $0x250] sm:$0xf0] }
 0x3e7   : > { %v5467_v42 = vadd.f32 %v12788_v56, %v12817_v4 }
 0x3ea   : > { %v5410_v47 = vpop.f32.mrf.mxu3 }
 0x3eb   : > { %v5411_v40 = vadd.f32 %v5410_v47, %v12607_v30  ;;  %v8564_v47 = vld [vmem:[#allocation2 + $0x1f0] sm:$0xf] }
 0x3ec   : > { %v5442_v12 = vpop.f32.mrf.mxu0  ;;  %v8565_v26 = vor.u32 %v9147_v10, %v8564_v47 }
 0x3ed   : > { %v12847_v16 = vpop.f32.mrf.mxu1 }
 0x3ef   : > { %6396 = vmatmul.bf16.gmra.mxu3 %v8569_v27  ;;  %6425 = vmatmul.bf16.gmra.mxu0 %v8573_v0 }
 0x3f2   : > { %v5413_v62 = vpop.f32.mrf.mxu3 }
 0x3f3   : > { %v5414_v18 = vadd.f32 %v5413_v62, %v12625_v20 }
 0x3f4   : > { %v12828_v53 = vpop.f32.mrf.mxu0 }
 0x3f5   : > { %v12830_v30 = vadd.f32 %v5442_v12, %v5414_v18  ;;  %v12854_v49 = vpop.f32.mrf.mxu1  ;;  %v5824_v12 = vadd.f32 %v5823_v21, %v5467_v42 }
 0x3fa   : > { %v5415_v63 = vpop.f32.mrf.mxu3 }
 0x3fb   : > { %v12835_v52 = vadd.f32 %v5415_v63, %v12642_v9 }
 0x3fc   : > { %v5447_v57 = vpop.f32.mrf.mxu0 }
 0x3fd   : > { %v5912_v7 = vpop.f32.mrf.mxu1 }
 0x3ff   : > { %6401 = vmatmul.bf16.gmra.mxu3 %v8589_v60  ;;  %6430 = vmatmul.bf16.gmra.mxu0 %v8593_v6 }
 0x402   : > { %v5418_v20 = vpop.f32.mrf.mxu3 }
 0x403   : > { %v5419_v15 = vadd.f32 %v5418_v20, %v12669_v41  ;;  %v5830_v41 = vpop.f32.mrf.mxu2 }
 0x404   : > { %v12840_v2 = vpop.f32.mrf.mxu0 }
 0x405   : > { %v12842_v46 = vadd.f32 %v5447_v57, %v5419_v15  ;;  %v12866_v56 = vpop.f32.mrf.mxu1 }
 0x40a   : > { %v5420_v9 = vpop.f32.mrf.mxu3 }
 0x40b   : > { %v12845_v23 = vadd.f32 %v5420_v9, %v12681_v5  ;;  %v5833_v5 = vpop.f32.mrf.mxu2 }
 0x40c   : > { %v5452_v13 = vpop.f32.mrf.mxu0 }
 0x40d   : > { %v5917_v33 = vpop.f32.mrf.mxu1 }
 0x40f   : > { %6406 = vmatmul.bf16.gmra.mxu3 %v8609_v32  ;;  %6435 = vmatmul.bf16.gmra.mxu0 %v8613_v24 }
 0x412   : > { %v5423_v45 = vpop.f32.mrf.mxu3 }
 0x413   : > { %v5424_v19 = vadd.f32 %v5423_v45, %v12695_v61  ;;  %v5440_v61 = vadd.f32 %v12815_v17, %v5411_v40  ;;  %v5835_v0 = vpop.f32.mrf.mxu2  ;;  %v8585_v17 = vor.u32 %v9152_v31, %v8584_v48  ;;  %v5472_v40 = vadd.f32 %v12808_v39, %v12830_v30  ;;  %v8604_v30 = vld [vmem:[#allocation2 + $0x240] sm:$0xf] }
 0x414   : > { %v12850_v44 = vpop.f32.mrf.mxu0  ;;  %v8605_v24 = vor.u32 %v9157_v29, %v8604_v30 }
 0x415   : > { %v12852_v59 = vadd.f32 %v5452_v13, %v5424_v19  ;;  %v12881_v45 = vpop.f32.mrf.mxu1 }
 0x41a   : > { %v5425_v28 = vpop.f32.mrf.mxu3 }
 0x41b   : > { %v12857_v38 = vadd.f32 %v5425_v28, %v12704_v35  ;;  %v5469_v35 = vadd.f32 %v12799_v37, %v5440_v61  ;;  %v5838_v21 = vpop.f32.mrf.mxu2  ;;  %v5445_v37 = vadd.f32 %v12828_v53, %v12835_v52  ;;  %v5477_v53 = vadd.f32 %v12825_v58, %v12842_v46  ;;  %v8624_v61 = vld [vmem:[#allocation2 + $0x268] sm:$0xf] }
 0x41c   : > { %v5881_v34 = vpop.f32.mrf.mxu0 }
 0x41d   : > { %v5826_v18 = vadd.f32 %v5825_v43, %v5469_v35  ;;  %v5829_v43 = vadd.f32 %v5828_v25, %v5472_v40  ;;  %v5474_v9 = vadd.f32 %v12819_v3, %v5445_v37  ;;  %v5450_v3 = vadd.f32 %v12840_v2, %v12845_v23  ;;  %v5922_v46 = vpop.f32.mrf.mxu1 }
 0x41e   : > { %v5834_v19 = vadd.f32 %v5833_v5, %v5477_v53  ;;  %v5482_v2 = vadd.f32 %v12838_v11, %v12852_v59  ;;  %v5455_v5 = vadd.f32 %v12850_v44, %v12857_v38 }
 0x41f   : > { %8770 = vmatmul.msk.bf16.vlgmr.msra.gmra.mxu3 %vm3402_vm4, %v8565_v26  ;;  %v5831_v13 = vadd.f32 %v5830_v41, %v5474_v9  ;;  %v5479_v47 = vadd.f32 %v12832_v51, %v5450_v3 }
 0x420   : > { %v5839_v51 = vadd.f32 %v5838_v21, %v5482_v2  ;;  %v5484_v31 = vadd.f32 %v12847_v16, %v5455_v5 }
 0x421   : > { %v5836_v58 = vadd.f32 %v5835_v0, %v5479_v47 }
 0x422   : > { %v5852_v8 = vpop.f32.mrf.mxu3 }
 0x423   : > { %v5853_v27 = vadd.f32 %v5852_v8, %v5824_v12  ;;  %v5840_v36 = vpop.f32.mrf.mxu2  ;;  %v9162_v12 = vld [vmem:[#allocation2 + $0x278] sm:$0xf0] }
 0x424   : > { %v5883_v55 = vpop.f32.mrf.mxu0 }
 0x425   : > { %v12863_v62 = vadd.f32 %v5881_v34, %v5853_v27 }
 0x427   : > { %v5911_v47 = vadd.f32 %v12854_v49, %v12863_v62  ;;  %v12921_v49 = vld [vmem:[%s13036_s6] ss:$0 sm:$0xff] }
 0x42a   : > { %v5854_v63 = vpop.f32.mrf.mxu3 }
 0x42b   : > { %v5855_v57 = vadd.f32 %v5854_v63, %v5826_v18  ;;  %v12885_v41 = vpop.f32.mrf.mxu2  ;;  %v12895_v63 = vpop.f32.mrf.mxu1 }
 0x42c   : > { %v5886_v4 = vpop.f32.mrf.mxu0 }
 0x42d   : > { %v5884_v50 = vadd.f32 %v5883_v55, %v5855_v57  ;;  %v8625_v55 = vor.u32 %v9162_v12, %v8624_v61 }
 0x42f   : > { %v12870_v22 = vadd.f32 %v5912_v7, %v5884_v50  ;;  %8771 = vmatmul.msk.bf16.gmra.mxu3 %vm3402_vm4, %v8585_v17 }
 0x432   : > { %v5857_v60 = vpop.f32.mrf.mxu3 }
 0x433   : > { %v5858_v6 = vadd.f32 %v5857_v60, %v5829_v43  ;;  %v5941_v8 = vpop.f32.mrf.mxu2  ;;  %v5927_v40 = vpop.f32.mrf.mxu1 }
 0x434   : > { %v5888_v20 = vpop.f32.mrf.mxu0 }
 0x435   : > { %v12875_v15 = vadd.f32 %v5886_v4, %v5858_v6  ;;  %v5841_v4 = vadd.f32 %v5840_v36, %v5484_v31  ;;  %v5942_v36 = vadd.f32 %v5941_v8, %v12870_v22 }
 0x43a   : > { %v5859_v39 = vpop.f32.mrf.mxu3 }
 0x43b   : > { %v5860_v1 = vadd.f32 %v5859_v39, %v5831_v13  ;;  %v12900_v57 = vpop.f32.mrf.mxu2  ;;  %v6450_v30 = vpop.f32.mrf.mxu1 }
 0x43c   : > { %v5891_v52 = vpop.f32.mrf.mxu0 }
 0x43d   : > { %v5889_v32 = vadd.f32 %v5888_v20, %v5860_v1 }
 0x43f   : > { %v5918_v25 = vadd.f32 %v5917_v33, %v5889_v32  ;;  %8772 = vmatmul.msk.bf16.gmra.mxu3 %vm3402_vm4, %v8605_v24 }
 0x442   : > { %v5862_v28 = vpop.f32.mrf.mxu3 }
 0x443   : > { %v5863_v10 = vadd.f32 %v5862_v28, %v5834_v19  ;;  %v5946_v44 = vpop.f32.mrf.mxu2  ;;  %v6452_v24 = vpop.f32.mrf.mxu1 }
 0x444   : > { %v5893_v26 = vpop.f32.mrf.mxu0 }
 0x445   : > { %v12887_v34 = vadd.f32 %v5891_v52, %v5863_v10  ;;  %v5947_v52 = vadd.f32 %v5946_v44, %v5918_v25 }
 0x44a   : > { %v5864_v42 = vpop.f32.mrf.mxu3 }
 0x44b   : > { %v5865_v7 = vadd.f32 %v5864_v42, %v5836_v58  ;;  %v12904_v21 = vpop.f32.mrf.mxu2  ;;  %v6455_v58 = vpop.f32.mrf.mxu1  ;;  %v5940_v42 = vadd.f32 %v12885_v41, %v5911_v47 }
 0x44c   : > { %v5896_v35 = vpop.f32.mrf.mxu0 }
 0x44d   : > { %v5894_v27 = vadd.f32 %v5893_v26, %v5865_v7 }
 0x44f   : > { %v5923_v23 = vadd.f32 %v5922_v46, %v5894_v27  ;;  %8773 = vmatmul.msk.bf16.gmra.mxu3 %vm3402_vm4, %v8625_v55 }
 0x452   : > { %v5867_v0 = vpop.f32.mrf.mxu3 }
 0x453   : > { %v5868_v18 = vadd.f32 %v5867_v0, %v5839_v51  ;;  %v5951_v6 = vpop.f32.mrf.mxu2 }
 0x454   : > { %v5898_v50 = vpop.f32.mrf.mxu0  ;;  %v5952_v2 = vadd.f32 %v5951_v6, %v5923_v23 }
 0x455   : > { %v12897_v48 = vadd.f32 %v5896_v35, %v5868_v18  ;;  %v6457_v35 = vpop.f32.mrf.mxu1  ;;  %v5916_v18 = vadd.f32 %v12866_v56, %v12875_v15 }
 0x45a   : > { %v5869_v11 = vpop.f32.mrf.mxu3 }
 0x45b   : > { %v5870_v59 = vadd.f32 %v5869_v11, %v5841_v4  ;;  %v12906_v9 = vpop.f32.mrf.mxu2 }
 0x45c   : > { %v6421_v13 = vpop.f32.mrf.mxu0 }
 0x45d   : > { %v5899_v17 = vadd.f32 %v5898_v50, %v5870_v59  ;;  %v6460_v56 = vpop.f32.mrf.mxu1 }
 0x45f   : > { %v12902_v37 = vadd.f32 %v5927_v40, %v5899_v17 }
 0x462   : > { %v6392_v38 = vpop.f32.mrf.mxu3 }
 0x463   : > { %v5956_v33 = vpop.f32.mrf.mxu2  ;;  %v6422_v53 = vadd.f32 %v6421_v13, %v6392_v38  ;;  %v5945_v38 = vadd.f32 %v12900_v57, %v5916_v18 }
 0x464   : > { %v6423_v32 = vpop.f32.mrf.mxu0 }
 0x465   : > { %v6451_v28 = vadd.f32 %v6450_v30, %v6422_v53 }
 0x46a   : > { %v6394_v43 = vpop.f32.mrf.mxu3 }
 0x46b   : > { %v6479_v29 = vpop.f32.mrf.mxu2  ;;  %v6424_v22 = vadd.f32 %v6423_v32, %v6394_v43 }
 0x46c   : > { %v6426_v10 = vpop.f32.mrf.mxu0  ;;  %v6480_v26 = vadd.f32 %v6479_v29, %v6451_v28 }
 0x46d   : > { %v6453_v12 = vadd.f32 %v6452_v24, %v6424_v22 }
 0x472   : > { %v6397_v60 = vpop.f32.mrf.mxu3 }
 0x473   : > { %v6481_v19 = vpop.f32.mrf.mxu2  ;;  %v6427_v25 = vadd.f32 %v6426_v10, %v6397_v60  ;;  %v6462_v10 = vpop.f32.mrf.mxu1 }
 0x474   : > { %v6428_v27 = vpop.f32.mrf.mxu0  ;;  %v6482_v55 = vadd.f32 %v6481_v19, %v6453_v12  ;;  %v5921_v19 = vadd.f32 %v12881_v45, %v12887_v34 }
 0x475   : > { %v6456_v0 = vadd.f32 %v6455_v58, %v6427_v25 }
 0x476   : > { %v5950_v58 = vadd.f32 %v12904_v21, %v5921_v19 }
 0x47a   : > { %v6399_v20 = vpop.f32.mrf.mxu3 }
 0x47b   : > { %v6484_v8 = vpop.f32.mrf.mxu2  ;;  %v6429_v11 = vadd.f32 %v6428_v27, %v6399_v20  ;;  %v5957_v20 = vadd.f32 %v5956_v33, %v12902_v37 }
 0x47c   : > { %v6485_v50 = vadd.f32 %v6484_v8, %v6456_v0  ;;  %v6431_v17 = vpop.f32.mrf.mxu0 }
 0x47d   : > { %v6458_v60 = vadd.f32 %v6457_v35, %v6429_v11 }
 0x482   : > { %v6402_v16 = vpop.f32.mrf.mxu3 }
 0x483   : > { %v6486_v4 = vpop.f32.mrf.mxu2  ;;  %v6432_v15 = vadd.f32 %v6431_v17, %v6402_v16 }
 0x484   : > { %v6433_v32 = vpop.f32.mrf.mxu0 }
 0x485   : > { %v6461_v24 = vadd.f32 %v6460_v56, %v6432_v15 }
 0x48a   : > { %v12909_v39 = vpop.f32.mrf.mxu3 }
 0x48b   : > { %v6489_v13 = vpop.f32.mrf.mxu2  ;;  %v6434_v47 = vadd.f32 %v6433_v32, %v12909_v39  ;;  %v6465_v39 = vpop.f32.mrf.mxu1 }
 0x48c   : > { %v6436_v45 = vpop.f32.mrf.mxu0 }
 0x492   : > { %v12911_v1 = vpop.f32.mrf.mxu3 }
 0x493   : > { %v6437_v34 = vadd.f32 %v6436_v45, %v12911_v1 }
 0x494   : > { %v6438_v35 = vpop.f32.mrf.mxu0 }
 0x495   : > { %v6466_v27 = vadd.f32 %v6465_v39, %v6437_v34 }
 0x49a   : > { %v12913_v3 = vpop.f32.mrf.mxu3 }
 0x49b   : > { %v6439_v0 = vadd.f32 %v6438_v35, %v12913_v3 }
 0x4a2   : > { %v6508_v46 = vpop.f32.mrf.mxu3 }
 0x4a3   : > { %v6509_v61 = vadd.f32 %v6508_v46, %v6480_v26  ;;  %v6490_v26 = vadd.f32 %v6489_v13, %v6461_v24 }
 0x4a5   : > { %v6528_v7 = vadd.f32 %v6509_v61, %v5940_v42  ;;  %v6491_v42 = vpop.f32.mrf.mxu2  ;;  %v6463_v61 = vadd.f32 %v6462_v10, %v6434_v47 }
 0x4a7   : > { %v6536_v62 = vadd.f32 %v12921_v49, %v6528_v7 }
 0x4a9   : > { %v6544_v23 = vmax.f32 %v6536_v62, 0.0 }
 0x4aa   : > { %v6510_v5 = vpop.f32.mrf.mxu3 }
 0x4ab   : > { %v6511_v51 = vadd.f32 %v6510_v5, %v6482_v55  ;;  %v5926_v5 = vadd.f32 %v12895_v63, %v12897_v48 }
 0x4ad   : > { %v6529_v41 = vadd.f32 %v6511_v51, %v5942_v36  ;;  %v6487_v36 = vadd.f32 %v6486_v4, %v6458_v60  ;;  %v6494_v21 = vpop.f32.mrf.mxu2  ;;  %v5955_v4 = vadd.f32 %v12906_v9, %v5926_v5  ;;  %v8782_v60 = vld [vmem:[%s9851_s24 + $0x40] sm:$0xff] }
 0x4ae   : > { %v6495_v1 = vadd.f32 %v6494_v21, %v6466_v27  ;;  %v6635_v56 = vunpack.c.h.bf16 %v8782_v60 }
 0x4af   : > { %v6537_v31 = vadd.f32 %v12921_v49, %v6529_v41 }
 0x4b1   : > { %v6545_v59 = vmax.f32 %v6537_v31, 0.0 }
 0x4b2   : > { %v6513_v40 = vpop.f32.mrf.mxu3 }
 0x4b3   : > { %v6552_v44 = vpack.c.bf16 %v6545_v59, %v6544_v23  ;;  %v6514_v43 = vadd.f32 %v6513_v40, %v6485_v50  ;;  %v6467_v23 = vpop.f32.mrf.mxu1 }
 0x4b4   : > { %v6468_v59 = vadd.f32 %v6467_v23, %v6439_v0 }
 0x4b5   : > { %v6530_v6 = vadd.f32 %v6514_v43, %v5945_v38  ;;  %8774 = vmatmul.msk.bf16.vlgmr.msra.gmra.mxu0 %vm3402_vm4, %v6552_v44  ;;  %8778 = vmatmul.msk.bf16.vlgmr.msra.gmra.mxu1 %vm3402_vm4, %v6552_v44  ;;  %v6496_v63 = vpop.f32.mrf.mxu2 }
 0x4b6   : > { %v6497_v48 = vadd.f32 %v6496_v63, %v6468_v59 }
 0x4b7   : > { %v6538_v53 = vadd.f32 %v12921_v49, %v6530_v6  ;;  %v6634_v6 = vunpack.c.l.bf16 %v8782_v60 }
 0x4b9   : > { %v6546_v16 = vmax.f32 %v6538_v53, 0.0 }
 0x4ba   : > { %v6515_v30 = vpop.f32.mrf.mxu3 }
 0x4bb   : > { %v6516_v29 = vadd.f32 %v6515_v30, %v6487_v36 }
 0x4bd   : > { %v6531_v57 = vadd.f32 %v6516_v29, %v5947_v52  ;;  %v6492_v52 = vadd.f32 %v6491_v42, %v6463_v61  ;;  %v8783_v29 = vld [vmem:[%s9851_s24 + $0x48] sm:$0xff] }
 0x4be   : > { %v6637_v19 = vunpack.c.h.bf16 %v8783_v29 }
 0x4bf   : > { %v6539_v28 = vadd.f32 %v12921_v49, %v6531_v57  ;;  %v6636_v57 = vunpack.c.l.bf16 %v8783_v29 }
 0x4c1   : > { %v6547_v22 = vmax.f32 %v6539_v28, 0.0 }
 0x4c2   : > { %v6518_v37 = vpop.f32.mrf.mxu3 }
 0x4c3   : > { %v6553_v33 = vpack.c.bf16 %v6547_v22, %v6546_v16  ;;  %v6519_v46 = vadd.f32 %v6518_v37, %v6490_v26  ;;  %v8784_v37 = vld [vmem:[%s9851_s24 + $0x50] sm:$0xff] }
 0x4c4   : > { %v6638_v42 = vunpack.c.l.bf16 %v8784_v37  ;;  %v6639_v61 = vunpack.c.h.bf16 %v8784_v37 }
 0x4c5   : > { %v6532_v12 = vadd.f32 %v6519_v46, %v5950_v58  ;;  %8775 = vmatmul.msk.bf16.gmra.mxu0 %vm3402_vm4, %v6553_v33  ;;  %8779 = vmatmul.msk.bf16.gmra.mxu1 %vm3402_vm4, %v6553_v33 }
 0x4c7   : > { %v6540_v25 = vadd.f32 %v12921_v49, %v6532_v12 }
 0x4c9   : > { %v6548_v62 = vmax.f32 %v6540_v25, 0.0 }
 0x4ca   : > { %v6520_v7 = vpop.f32.mrf.mxu3 }
 0x4cb   : > { %v6521_v8 = vadd.f32 %v6520_v7, %v6492_v52 }
 0x4cd   : > { %v6533_v55 = vadd.f32 %v6521_v8, %v5952_v2  ;;  %v8785_v8 = vld [vmem:[%s9851_s24 + $0x58] sm:$0xff] }
 0x4ce   : > { %v6640_v21 = vunpack.c.l.bf16 %v8785_v8  ;;  %v6641_v5 = vunpack.c.h.bf16 %v8785_v8 }
 0x4cf   : > { %v6541_v51 = vadd.f32 %v12921_v49, %v6533_v55 }
 0x4d1   : > { %v6549_v41 = vmax.f32 %v6541_v51, 0.0 }
 0x4d2   : > { %v6523_v18 = vpop.f32.mrf.mxu3 }
 0x4d3   : > { %v6554_v31 = vpack.c.bf16 %v6549_v41, %v6548_v62  ;;  %v6524_v11 = vadd.f32 %v6523_v18, %v6495_v1  ;;  %v8786_v18 = vld [vmem:[%s9851_s24 + $0x60] sm:$0xff] }
 0x4d4   : > { %v6642_v23 = vunpack.c.l.bf16 %v8786_v18  ;;  %v6643_v59 = vunpack.c.h.bf16 %v8786_v18 }
 0x4d5   : > { %v6534_v2 = vadd.f32 %v6524_v11, %v5955_v4  ;;  %8776 = vmatmul.msk.bf16.gmra.mxu0 %vm3402_vm4, %v6554_v31  ;;  %8780 = vmatmul.msk.bf16.gmra.mxu1 %vm3402_vm4, %v6554_v31 }
 0x4d7   : > { %v6542_v17 = vadd.f32 %v12921_v49, %v6534_v2 }
 0x4d9   : > { %v6550_v9 = vmax.f32 %v6542_v17, 0.0 }
 0x4da   : > { %v6525_v50 = vpop.f32.mrf.mxu3 }
 0x4db   : > { %v6526_v3 = vadd.f32 %v6525_v50, %v6497_v48 }
 0x4dd   : > { %v6535_v40 = vadd.f32 %v6526_v3, %v5957_v20 }
 0x4df   : > { %v6543_v44 = vadd.f32 %v12921_v49, %v6535_v40  ;;  %v8787_v40 = vld [vmem:[%s9851_s24 + $0x68] sm:$0xff] }
 0x4e0   : > { %v6645_v60 = vunpack.c.h.bf16 %v8787_v40 }
 0x4e1   : > { %v6551_v38 = vmax.f32 %v6543_v44, 0.0 }
 0x4e3   : > { %v6555_v43 = vpack.c.bf16 %v6551_v38, %v6550_v9 }
 0x4e5   : > { %8777 = vmatmul.msk.bf16.gmra.mxu0 %vm3402_vm4, %v6555_v43  ;;  %8781 = vmatmul.msk.bf16.gmra.mxu1 %vm3402_vm4, %v6555_v43  ;;  %v6644_v43 = vunpack.c.l.bf16 %v8787_v40 }
 0x532   : > { %v6577_v15 = vpop.f32.mrf.mxu0  ;;  %v6606_v36 = vpop.f32.mrf.mxu1 }
 0x533   : > { %v6578_v13 = vadd.f32 %v6577_v15, %v12722_v54  ;;  %v6607_v20 = vadd.f32 %v6606_v36, %v12715_v14 }
 0x535   : > { %v6650_v30 = vadd.f32 %v6634_v6, %v6578_v13  ;;  %v6651_v49 = vadd.f32 %v6635_v56, %v6607_v20 }
 0x537   : > { %v6666_v32 = vmax.f32 %v6650_v30, 0.0  ;;  %v6667_v24 = vmax.f32 %v6651_v49, 0.0  ;;  %v8788_v30 = vld [vmem:[%s9851_s24 + $0x70] sm:$0xff] }
 0x539   : > { %v6682_v53 = vpack.c.bf16 %v6667_v24, %v6666_v32  ;;  %v6646_v24 = vunpack.c.l.bf16 %v8788_v30 }
 0x53a   : > { %v6579_v28 = vpop.f32.mrf.mxu0  ;;  %v6608_v10 = vpop.f32.mrf.mxu1 }
 0x53b   : > { %8790 = vst [vmem:[%s12736_s25 + $0x40] sm:$0xff] %v6682_v53  ;;  %v6580_v47 = vadd.f32 %v6579_v28, %v12722_v54  ;;  %v6609_v16 = vadd.f32 %v6608_v10, %v12715_v14  ;;  %v6647_v53 = vunpack.c.h.bf16 %v8788_v30 }
 0x53d   : > { %v6652_v22 = vadd.f32 %v6636_v57, %v6580_v47  ;;  %v6653_v26 = vadd.f32 %v6637_v19, %v6609_v16 }
 0x53f   : > { %v6668_v33 = vmax.f32 %v6652_v22, 0.0  ;;  %v6669_v58 = vmax.f32 %v6653_v26, 0.0  ;;  %v8789_v22 = vld [vmem:[%s9851_s24 + $0x78] sm:$0xff]  ;;  %s6715_s24 = sshll.u32 %s12736_s25, 4  ;;  %s6716_s24 = int_to_ptr.vmem [resolvable:$true] %s6715_s24 }
 0x541   : > { %v6683_v46 = vpack.c.bf16 %v6669_v58, %v6668_v33  ;;  %v6648_v58 = vunpack.c.l.bf16 %v8789_v22 }
 0x542   : > { %v6582_v12 = vpop.f32.mrf.mxu0  ;;  %v6611_v45 = vpop.f32.mrf.mxu1 }
 0x543   : > { %8791 = vst [vmem:[%s12736_s25 + $0x48] sm:$0xff] %v6683_v46  ;;  %v6583_v34 = vadd.f32 %v6582_v12, %v12722_v54  ;;  %v6612_v52 = vadd.f32 %v6611_v45, %v12715_v14  ;;  %v6649_v46 = vunpack.c.h.bf16 %v8789_v22 }
 0x545   : > { %v6654_v39 = vadd.f32 %v6638_v42, %v6583_v34  ;;  %v6655_v7 = vadd.f32 %v6639_v61, %v6612_v52 }
 0x547   : > { %v6670_v27 = vmax.f32 %v6654_v39, 0.0  ;;  %v6671_v25 = vmax.f32 %v6655_v7, 0.0 }
 0x549   : > { %v6684_v55 = vpack.c.bf16 %v6671_v25, %v6670_v27 }
 0x54a   : > { %v6584_v51 = vpop.f32.mrf.mxu0  ;;  %v6613_v35 = vpop.f32.mrf.mxu1 }
 0x54b   : > { %8792 = vst [vmem:[%s12736_s25 + $0x50] sm:$0xff] %v6684_v55  ;;  %v6585_v0 = vadd.f32 %v6584_v51, %v12722_v54  ;;  %v6614_v62 = vadd.f32 %v6613_v35, %v12715_v14 }
 0x54d   : > { %v6656_v41 = vadd.f32 %v6640_v21, %v6585_v0  ;;  %v6657_v1 = vadd.f32 %v6641_v5, %v6614_v62 }
 0x54f   : > { %v6672_v31 = vmax.f32 %v6656_v41, 0.0  ;;  %v6673_v4 = vmax.f32 %v6657_v1, 0.0 }
 0x551   : > { %v6685_v11 = vpack.c.bf16 %v6673_v4, %v6672_v31 }
 0x552   : > { %v6587_v2 = vpop.f32.mrf.mxu0  ;;  %v6616_v63 = vpop.f32.mrf.mxu1 }
 0x553   : > { %8793 = vst [vmem:[%s12736_s25 + $0x58] sm:$0xff] %v6685_v11  ;;  %v6588_v48 = vadd.f32 %v6587_v2, %v12722_v54  ;;  %v6617_v50 = vadd.f32 %v6616_v63, %v12715_v14 }
 0x555   : > { %v6658_v3 = vadd.f32 %v6642_v23, %v6588_v48  ;;  %v6659_v17 = vadd.f32 %v6643_v59, %v6617_v50 }
 0x557   : > { %v6674_v44 = vmax.f32 %v6658_v3, 0.0  ;;  %v6675_v9 = vmax.f32 %v6659_v17, 0.0 }
 0x559   : > { %v6686_v38 = vpack.c.bf16 %v6675_v9, %v6674_v44 }
 0x55a   : > { %v6589_v6 = vpop.f32.mrf.mxu0  ;;  %v6618_v56 = vpop.f32.mrf.mxu1 }
 0x55b   : > { %8794 = vst [vmem:[%s12736_s25 + $0x60] sm:$0xff] %v6686_v38  ;;  %v6590_v15 = vadd.f32 %v6589_v6, %v12722_v54  ;;  %v6619_v36 = vadd.f32 %v6618_v56, %v12715_v14 }
 0x55d   : > { %v6660_v13 = vadd.f32 %v6644_v43, %v6590_v15  ;;  %v6661_v20 = vadd.f32 %v6645_v60, %v6619_v36 }
 0x55f   : > { %v6676_v49 = vmax.f32 %v6660_v13, 0.0  ;;  %v6677_v29 = vmax.f32 %v6661_v20, 0.0 }
 0x561   : > { %v6687_v32 = vpack.c.bf16 %v6677_v29, %v6676_v49 }
 0x562   : > { %v6592_v57 = vpop.f32.mrf.mxu0  ;;  %v6621_v19 = vpop.f32.mrf.mxu1 }
 0x563   : > { %8795 = vst [vmem:[%s12736_s25 + $0x68] sm:$0xff] %v6687_v32  ;;  %v6593_v28 = vadd.f32 %v6592_v57, %v12722_v54  ;;  %v6622_v10 = vadd.f32 %v6621_v19, %v12715_v14 }
 0x565   : > { %v6662_v47 = vadd.f32 %v6646_v24, %v6593_v28  ;;  %v6663_v16 = vadd.f32 %v6647_v53, %v6622_v10 }
 0x567   : > { %v6678_v26 = vmax.f32 %v6662_v47, 0.0  ;;  %v6679_v37 = vmax.f32 %v6663_v16, 0.0 }
 0x569   : > { %v6688_v33 = vpack.c.bf16 %v6679_v37, %v6678_v26 }
 0x56a   : > { %v6594_v42 = vpop.f32.mrf.mxu0  ;;  %v6623_v61 = vpop.f32.mrf.mxu1 }
 0x56b   : > { %8796 = vst [vmem:[%s12736_s25 + $0x70] sm:$0xff] %v6688_v33  ;;  %v6595_v12 = vadd.f32 %v6594_v42, %v12722_v54  ;;  %v6624_v45 = vadd.f32 %v6623_v61, %v12715_v14 }
 0x56d   : > { %v6664_v34 = vadd.f32 %v6648_v58, %v6595_v12  ;;  %v6665_v52 = vadd.f32 %v6649_v46, %v6624_v45 }
 0x56f   : > { %v6680_v39 = vmax.f32 %v6664_v34, 0.0  ;;  %v6681_v7 = vmax.f32 %v6665_v52, 0.0 }
 0x571   : > { %v6689_v8 = vpack.c.bf16 %v6681_v7, %v6680_v39 }
 0x573   : > { %8797 = vst [vmem:[%s12736_s25 + $0x78] sm:$0xff] %v6689_v8 }
 0x574   : > { %9385 = shalt.err (!%p9382_p13)
}
 0x575   : > { %s9463_s29 = smov 128   ;;  %s9464_s25 = smov 8  }
 0x576   : > { %9216 = dma.vmem_to_hbm [thread:$0]  (%p9571_p3), %s6716_s24, 2048, %s6718_s18, %s6700_s12, %s9463_s29, %s9463_s29, %s9464_s25  }
 0x577 PF: > { %p9222_p0 = scmp.ge.s32.totalorder %s9452_s20, 2  ;;  %s6732_s17 = sand.u32 1, %s9424_s13  }
 0x578   : > { %s6733_s30 = scalar_lea.sflag [#allocation4], %s6732_s17 }
 0x579   : > { %p9219_p1 = pnand %p9222_p0, %p9580_p8 }
 0x57b   : > { %p9220_p2 = pneg %p9219_p1 }
 0x57d   : > { %9419 = dma.done.wait (%p9220_p2), %s6733_s30, 2048  }
 0x57e   : > { %9421 = vsyncadd (%p9220_p2), %s6733_s30, 4294965248  ;;  %s23_s20 = sadd.s32 1, %s9452_s20   ;;  %s13592_s21 = sld [smem:[#allocation10_spill]] }
 0x57f   : > { %p20_p4 = scmp.ge.s32.totalorder %s23_s20, 6   ;;  %s13593_s16 = sld [smem:[#allocation6_spill]] }
 0x580   : > { %s13594_s17 = sld [smem:[#allocation7_spill]]  ;;  %s13597_s13 = smov %s9428_s14 }
 0x581   : > { %s13595_s18 = sld [smem:[#allocation8_spill]]  ;;  %s13598_s14 = smov %s9432_s15 }
 0x582   : > { %s13596_s19 = sld [smem:[#allocation9_spill]]  ;;  %22 = sbr.rel (!%p20_p4) target bundleno = 5 (0x5), region = 108 }
 0x584   : > { %s13599_s15 = smov %s13592_s21 }
 0x587   :  { %6739 = vsyncpa [#allocation4], 1 }
 0x588   :  { %6741 = vsyncpa [#allocation4 + $0x1], 1 }

</bundles_post_ra>
